<compile_context>
chip_gen: v7x
topology: tpu7x:2x2x1
jax: 0.10.0
libtpu: 0.0.40
codegen_flags: <defaults>
</compile_context>

<pallas_src>
import math
from functools import partial

import jax
import jax.numpy as jnp
from jax.experimental import pallas as pl
from jax.experimental.pallas import tpu as pltpu


# ---------------------------------------------------------------------------
# Flat-row geometry (per example).  After space-to-depth(4) + zero pad, each
# of the four parity-split inputs is an 11x11 image flattened to 121 rows
# (row pitch TY=11).  Every layer keeps that row pitch; garbage columns/rows
# at the edges are computed but never read by valid outputs.
# ---------------------------------------------------------------------------
TY = 11        # flat row pitch (columns per spatial row)
M1 = 109       # rows computed per conv1 parity block  (= 9*TY + 10)
M2 = 97        # rows computed for conv2 output        (= 8*TY + 9)
M3 = 73        # rows computed for conv3 output        (= 6*TY + 7)
HEAD_LANES = 128   # fused (policy + critic) output padded to a full lane vreg


# ---------------------------------------------------------------------------
# Pallas kernel 1: fused conv1 + conv2 + conv3 (per-example grid)
# ---------------------------------------------------------------------------
def conv_stack_kernel(y00_ref, y01_ref, y10_ref, y11_ref,
                      w1_ref, b1_ref, w2_ref, b2_ref, w3_ref, b3_ref, o_ref):
    f32 = jnp.float32
    # Four parity-split space-to-depth inputs, each (121, 16*C) bf16.
    ys = ((y00_ref[0], y01_ref[0]), (y10_ref[0], y11_ref[0]))

    # conv1: 2x2 stride-1 conv on the s2d input, computed as the four output
    # parity blocks so that conv2's stride-2 becomes plain row shifts.
    pblocks = [[None, None], [None, None]]
    for p in range(2):
        for q in range(2):
            acc = jnp.zeros((M1, 32), f32)
            for i in range(2):
                for j in range(2):
                    src = ys[(p + i) % 2][(q + j) % 2]
                    off = ((p + i) // 2) * TY + (q + j) // 2
                    acc += jnp.dot(src[off:off + M1, :], w1_ref[2 * i + j],
                                   preferred_element_type=f32)
            pblocks[p][q] = jnp.maximum(acc + b1_ref[...], 0.0).astype(jnp.bfloat16)

    # conv2: 4x4 stride-2 conv == 16 shifted-slab GEMMs over the parity blocks.
    acc2 = jnp.zeros((M2, 64), f32)
    k = 0
    for p in range(2):
        for q in range(2):
            for a in range(2):
                for b in range(2):
                    off = a * TY + b
                    acc2 += jnp.dot(pblocks[p][q][off:off + M2, :], w2_ref[k],
                                    preferred_element_type=f32)
                    k += 1
    o2 = jnp.maximum(acc2 + b2_ref[...], 0.0).astype(jnp.bfloat16)

    # conv3: 3x3 stride-1 conv == 9 shifted-slab GEMMs.
    acc3 = jnp.zeros((M3, 32), f32)
    for i in range(3):
        for j in range(3):
            off = i * TY + j
            acc3 += jnp.dot(o2[off:off + M3, :], w3_ref[3 * i + j],
                            preferred_element_type=f32)
    o3 = jnp.maximum(acc3 + b3_ref[...], 0.0)
    o_ref[0] = o3.astype(o_ref.dtype)


def conv_stack(ys, packed):
    n = ys[0].shape[0]
    kc = ys[0].shape[-1]                       # 16 * num_inputs
    y_spec = pl.BlockSpec((1, 121, kc), lambda i: (i, 0, 0))

    def const3(shape):
        return pl.BlockSpec(shape, lambda i: (0, 0, 0))

    def const2(shape):
        return pl.BlockSpec(shape, lambda i: (0, 0))

    return pl.pallas_call(
        conv_stack_kernel,
        out_shape=jax.ShapeDtypeStruct((n, M3, 32), jnp.bfloat16),
        grid=(n,),
        in_specs=[y_spec, y_spec, y_spec, y_spec,
                  const3((4, kc, 32)), const2((1, 32)),
                  const3((16, 32, 64)), const2((1, 64)),
                  const3((9, 64, 32)), const2((1, 32))],
        out_specs=pl.BlockSpec((1, M3, 32), lambda i: (i, 0, 0)),
        compiler_params=pltpu.CompilerParams(
            dimension_semantics=("parallel",),
            vmem_limit_bytes=32 * 1024 * 1024),
    )(ys[0], ys[1], ys[2], ys[3],
      packed["w1"], packed["b1"], packed["w2"], packed["b2"],
      packed["w3"], packed["b3"])


# ---------------------------------------------------------------------------
# Pallas kernel 2: fused fc (ReLU) + policy/critic heads, batch-tiled M grid
# ---------------------------------------------------------------------------
def fc_heads_kernel(x_ref, wf_ref, bf_ref, wh_ref, bh_ref, o_ref):
    feat = jnp.dot(x_ref[...], wf_ref[...], preferred_element_type=jnp.float32)
    feat = jnp.maximum(feat + bf_ref[...], 0.0)
    out = jnp.dot(feat.astype(wh_ref.dtype), wh_ref[...],
                  preferred_element_type=jnp.float32)
    o_ref[...] = out + bh_ref[...]


def fc_heads(flat, w_fc, b_fc, w_heads, b_heads):
    m, k = flat.shape
    _, f = w_fc.shape
    _, hp = w_heads.shape                      # padded head width (128)
    tm = m if m <= 128 else 128                # edge block is masked by Pallas
    return pl.pallas_call(
        fc_heads_kernel,
        out_shape=jax.ShapeDtypeStruct((m, hp), jnp.float32),
        grid=(pl.cdiv(m, tm),),
        in_specs=[
            pl.BlockSpec((tm, k), lambda i: (i, 0)),
            pl.BlockSpec((k, f), lambda i: (0, 0)),
            pl.BlockSpec((1, f), lambda i: (0, 0)),
            pl.BlockSpec((f, hp), lambda i: (0, 0)),
            pl.BlockSpec((1, hp), lambda i: (0, 0)),
        ],
        out_specs=pl.BlockSpec((tm, hp), lambda i: (i, 0)),
        compiler_params=pltpu.CompilerParams(
            dimension_semantics=("parallel",),
            vmem_limit_bytes=32 * 1024 * 1024),
    )(flat, w_fc, b_fc, w_heads, b_heads)


# ---------------------------------------------------------------------------
# Parameter init (PyTorch layouts) and one-time packing for the Pallas path
# ---------------------------------------------------------------------------
def _orthogonal(key, rows, cols, gain):
    return jax.nn.initializers.orthogonal(scale=gain)(key, (rows, cols), jnp.float32)


def init_params_torch(key, num_inputs, num_outputs):
    """Parameters in the exact layouts of the reference PyTorch CNN."""
    ks = jax.random.split(key, 6)
    g = math.sqrt(2.0)  # nn.init.calculate_gain('relu')
    return {
        "conv1_w": _orthogonal(ks[0], 32, num_inputs * 8 * 8, g).reshape(32, num_inputs, 8, 8),
        "conv1_b": jnp.zeros((32,), jnp.float32),
        "conv2_w": _orthogonal(ks[1], 64, 32 * 4 * 4, g).reshape(64, 32, 4, 4),
        "conv2_b": jnp.zeros((64,), jnp.float32),
        "conv3_w": _orthogonal(ks[2], 32, 64 * 3 * 3, g).reshape(32, 64, 3, 3),
        "conv3_b": jnp.zeros((32,), jnp.float32),
        "fc_w": _orthogonal(ks[3], 512, 32 * 7 * 7, g),
        "fc_b": jnp.zeros((512,), jnp.float32),
        "pol_w": _orthogonal(ks[4], num_outputs, 512, 0.01),
        "pol_b": jnp.zeros((num_outputs,), jnp.float32),
        "crit_w": _orthogonal(ks[5], 1, 512, 1.0),
        "crit_b": jnp.zeros((1,), jnp.float32),
    }


def pack_params(p):
    """One-time re-layout: s2d/parity conv weight slabs, NHWC fc columns, fused heads."""
    c_in = p["conv1_w"].shape[1]

    # conv1 (32, C, 8, 8) -> 4 stacked (16C, 32) slabs, kernel pos kk = 2I+J,
    # K order (i4, j4, c) matching the wrapper's space-to-depth channel order.
    w1 = p["conv1_w"].transpose(2, 3, 1, 0)            # (kh, kw, c, co)
    w1 = w1.reshape(2, 4, 2, 4, c_in, 32)              # (I, i4, J, j4, c, co)
    w1 = w1.transpose(0, 2, 1, 3, 4, 5)                # (I, J, i4, j4, c, co)
    w1 = w1.reshape(4, 16 * c_in, 32).astype(jnp.bfloat16)

    # conv2 (64, 32, 4, 4) -> 16 stacked (32, 64) slabs indexed by
    # (out-parity p, q, shift a, b); slab = w2[:, :, 2a+p, 2b+q]^T.
    wt2 = p["conv2_w"].transpose(2, 3, 1, 0)           # (i, j, ci, co)
    blocks = []
    for pp in range(2):
        for qq in range(2):
            for aa in range(2):
                for bb in range(2):
                    blocks.append(wt2[2 * aa + pp, 2 * bb + qq])
    w2 = jnp.stack(blocks).astype(jnp.bfloat16)        # (16, 32, 64)

    # conv3 (32, 64, 3, 3) -> 9 stacked (64, 32) slabs, kk = 3i+j.
    w3 = p["conv3_w"].transpose(2, 3, 1, 0).reshape(9, 64, 32).astype(jnp.bfloat16)

    # fc: permute columns from torch (C,H,W)-flatten order to our (H,W,C) order.
    fc_w = p["fc_w"].reshape(512, 32, 7, 7).transpose(0, 2, 3, 1).reshape(512, 1568)

    num_outputs = p["pol_w"].shape[0]
    n_heads = num_outputs + 1
    head_pad = max(HEAD_LANES, ((n_heads + 127) // 128) * 128)
    w_heads = jnp.concatenate([p["pol_w"], p["crit_w"]], axis=0)     # (A+1, 512)
    b_heads = jnp.concatenate([p["pol_b"], p["crit_b"]], axis=0)
    w_heads = jnp.pad(w_heads, ((0, head_pad - n_heads), (0, 0)))
    b_heads = jnp.pad(b_heads, (0, head_pad - n_heads))

    return {
        "w1": w1, "b1": p["conv1_b"].reshape(1, -1),
        "w2": w2, "b2": p["conv2_b"].reshape(1, -1),
        "w3": w3, "b3": p["conv3_b"].reshape(1, -1),
        "w_fc": fc_w.T.astype(jnp.bfloat16),                         # (1568, 512)
        "b_fc": p["fc_b"].reshape(1, -1),
        "w_heads": w_heads.T.astype(jnp.bfloat16),                   # (512, 128)
        "b_heads": b_heads.reshape(1, -1),
    }


# ---------------------------------------------------------------------------
# Forward pass (mirrors CNN.forward)
# ---------------------------------------------------------------------------
def cnn_forward(packed, x, *, num_outputs):
    """x: (N, num_inputs, 84, 84) f32, NCHW (PyTorch convention)."""
    n, c, hh, ww = x.shape
    x = jnp.transpose(x, (0, 2, 3, 1)).astype(jnp.bfloat16)          # NHWC, once
    # NCHW->NHWC + factor-4 space-to-depth: conv1 becomes 2x2 stride-1.
    y = x.reshape(n, 21, 4, 21, 4, c).transpose(0, 1, 3, 2, 4, 5)
    y = y.reshape(n, 21, 21, 16 * c)
    # One zero row/col of padding, then row/col parity split -> four flat
    # (121, 16C) streams so every in-kernel conv is a stride-1 row-shift GEMM.
    y = jnp.pad(y, ((0, 0), (0, 1), (0, 1), (0, 0)))
    ys = [y[:, a::2, b::2, :].reshape(n, 121, 16 * c)
          for a in (0, 1) for b in (0, 1)]

    o3 = conv_stack(ys, packed)                                      # (N, 73, 32) bf16
    # Flat rows are s*11 + t (valid s,t in 0..6): pad, fold, and crop in XLA.
    o3 = jnp.pad(o3, ((0, 0), (0, 7 * TY - M3), (0, 0)))
    o3 = o3.reshape(n, 7, TY, 32)[:, :, :7, :]                       # (N,7,7,32) NHWC
    flat = o3.reshape(n, 7 * 7 * 32)

    heads = fc_heads(flat, packed["w_fc"], packed["b_fc"],
                     packed["w_heads"], packed["b_heads"])           # (N, 128) f32
    policy_logits = heads[:, :num_outputs]
    critic = heads[:, num_outputs:num_outputs + 1]
    return policy_logits, critic


# Plain-JAX reference of the original PyTorch module (for correctness check).
def cnn_reference(p, x):
    def conv(h, w, b, stride):
        y = jax.lax.conv_general_dilated(
            h, w, window_strides=(stride, stride), padding="VALID",
            dimension_numbers=("NCHW", "OIHW", "NCHW"))
        return jax.nn.relu(y + b.reshape(1, -1, 1, 1))
    h = conv(x, p["conv1_w"], p["conv1_b"], 4)
    h = conv(h, p["conv2_w"], p["conv2_b"], 2)
    h = conv(h, p["conv3_w"], p["conv3_b"], 1)
    flat = h.reshape(h.shape[0], -1)                                 # torch Flatten (NCHW)
    feat = jax.nn.relu(flat @ p["fc_w"].T + p["fc_b"])
    policy_logits = feat @ p["pol_w"].T + p["pol_b"]
    critic = feat @ p["crit_w"].T + p["crit_b"]
    return policy_logits, critic


if __name__ == "__main__":
    key = jax.random.PRNGKey(0)
    pkey, xkey = jax.random.split(key)
    batch, num_inputs, num_outputs = 2, 4, 6                         # 84x84 forced by 32*7*7 fc

    torch_params = init_params_torch(pkey, num_inputs, num_outputs)
    packed = pack_params(torch_params)                               # one-time packing
    x = jax.random.normal(xkey, (batch, num_inputs, 84, 84), jnp.float32)

    fwd = jax.jit(partial(cnn_forward, num_outputs=num_outputs))
    policy_logits, value = fwd(packed, x)
    jax.block_until_ready((policy_logits, value))

    assert policy_logits.shape == (batch, num_outputs)
    assert value.shape == (batch, 1)
    assert policy_logits.dtype == jnp.float32 and value.dtype == jnp.float32

    # Check against the f32 reference (bf16 MXU inputs -> small relative error).
    ref_logits, ref_value = jax.jit(cnn_reference)(torch_params, x)
    jax.block_until_ready((ref_logits, ref_value))

    def rel_err(a, b):
        return float(jnp.linalg.norm(a - b) / (jnp.linalg.norm(b) + 1e-6))

    assert rel_err(policy_logits, ref_logits) < 0.1, rel_err(policy_logits, ref_logits)
    assert rel_err(value, ref_value) < 0.1, rel_err(value, ref_value)

    print("KERNEL_OK")
</pallas_src>

<mosaic_0001>
module attributes {stable_mosaic.version = 11 : i64} {
  func.func @conv_stack_kernel(%arg0: i32, %arg1: memref<1x121x64xbf16, #tpu.memory_space<vmem>>, %arg2: memref<1x121x64xbf16, #tpu.memory_space<vmem>>, %arg3: memref<1x121x64xbf16, #tpu.memory_space<vmem>>, %arg4: memref<1x121x64xbf16, #tpu.memory_space<vmem>>, %arg5: memref<4x64x32xbf16, #tpu.memory_space<vmem>>, %arg6: memref<1x32xf32, #tpu.memory_space<vmem>>, %arg7: memref<16x32x64xbf16, #tpu.memory_space<vmem>>, %arg8: memref<1x64xf32, #tpu.memory_space<vmem>>, %arg9: memref<9x64x32xbf16, #tpu.memory_space<vmem>>, %arg10: memref<1x32xf32, #tpu.memory_space<vmem>>, %arg11: memref<1x73x32xbf16, #tpu.memory_space<vmem>>) attributes {dimension_semantics = [#tpu.dimension_semantics<parallel>], iteration_bounds = array<i64: 2>, scalar_prefetch = 0 : i64, scratch_operands = 0 : i64, tpu.core_type = #tpu.core_type<tc>, window_params = [{transform_indices = @transform_0, window_bounds = array<i64: 1, 121, 64>}, {transform_indices = @transform_1, window_bounds = array<i64: 1, 121, 64>}, {transform_indices = @transform_2, window_bounds = array<i64: 1, 121, 64>}, {transform_indices = @transform_3, window_bounds = array<i64: 1, 121, 64>}, {pipeline_mode = #tpu.pipeline_mode<synchronous>, transform_indices = @transform_4, window_bounds = array<i64: 4, 64, 32>}, {pipeline_mode = #tpu.pipeline_mode<synchronous>, transform_indices = @transform_5, window_bounds = array<i64: 1, 32>}, {pipeline_mode = #tpu.pipeline_mode<synchronous>, transform_indices = @transform_6, window_bounds = array<i64: 16, 32, 64>}, {pipeline_mode = #tpu.pipeline_mode<synchronous>, transform_indices = @transform_7, window_bounds = array<i64: 1, 64>}, {pipeline_mode = #tpu.pipeline_mode<synchronous>, transform_indices = @transform_8, window_bounds = array<i64: 9, 64, 32>}, {pipeline_mode = #tpu.pipeline_mode<synchronous>, transform_indices = @transform_9, window_bounds = array<i64: 1, 32>}, {transform_indices = @transform_10, window_bounds = array<i64: 1, 73, 32>}]} {
    %c0 = arith.constant 0 : index
    %c0_0 = arith.constant 0 : index
    %c0_1 = arith.constant 0 : index
    %0 = vector.load %arg1[%c0, %c0_0, %c0_1] : memref<1x121x64xbf16, #tpu.memory_space<vmem>>, vector<1x121x64xbf16>
    %1 = vector.shape_cast %0 : vector<1x121x64xbf16> to vector<121x64xbf16>
    %c0_2 = arith.constant 0 : index
    %c0_3 = arith.constant 0 : index
    %c0_4 = arith.constant 0 : index
    %2 = vector.load %arg2[%c0_2, %c0_3, %c0_4] : memref<1x121x64xbf16, #tpu.memory_space<vmem>>, vector<1x121x64xbf16>
    %3 = vector.shape_cast %2 : vector<1x121x64xbf16> to vector<121x64xbf16>
    %c0_5 = arith.constant 0 : index
    %c0_6 = arith.constant 0 : index
    %c0_7 = arith.constant 0 : index
    %4 = vector.load %arg3[%c0_5, %c0_6, %c0_7] : memref<1x121x64xbf16, #tpu.memory_space<vmem>>, vector<1x121x64xbf16>
    %5 = vector.shape_cast %4 : vector<1x121x64xbf16> to vector<121x64xbf16>
    %c0_8 = arith.constant 0 : index
    %c0_9 = arith.constant 0 : index
    %c0_10 = arith.constant 0 : index
    %6 = vector.load %arg4[%c0_8, %c0_9, %c0_10] : memref<1x121x64xbf16, #tpu.memory_space<vmem>>, vector<1x121x64xbf16>
    %7 = vector.shape_cast %6 : vector<1x121x64xbf16> to vector<121x64xbf16>
    %cst = arith.constant 0.000000e+00 : f32
    %8 = vector.broadcast %cst : f32 to vector<109x32xf32>
    %9 = vector.extract_strided_slice %1 {offsets = [0, 0], sizes = [109, 64], strides = [1, 1]} : vector<121x64xbf16> to vector<109x64xbf16>
    %c0_11 = arith.constant 0 : index
    %c0_12 = arith.constant 0 : index
    %c0_13 = arith.constant 0 : index
    %10 = vector.load %arg5[%c0_11, %c0_12, %c0_13] : memref<4x64x32xbf16, #tpu.memory_space<vmem>>, vector<1x64x32xbf16>
    %11 = vector.shape_cast %10 : vector<1x64x32xbf16> to vector<64x32xbf16>
    %cst_14 = arith.constant dense<0.000000e+00> : vector<109x32xf32>
    %12 = tpu.matmul %9, %11, %cst_14 {dimension_numbers = #tpu.dot_dimension_numbers<[1], [0], [0], [1], [0, 0, 1, 1], [], []>} : vector<109x64xbf16>, vector<64x32xbf16>, vector<109x32xf32> -> vector<109x32xf32>
    %13 = arith.addf %8, %12 : vector<109x32xf32>
    %14 = vector.extract_strided_slice %3 {offsets = [0, 0], sizes = [109, 64], strides = [1, 1]} : vector<121x64xbf16> to vector<109x64xbf16>
    %c1 = arith.constant 1 : index
    %c0_15 = arith.constant 0 : index
    %c0_16 = arith.constant 0 : index
    %15 = vector.load %arg5[%c1, %c0_15, %c0_16] : memref<4x64x32xbf16, #tpu.memory_space<vmem>>, vector<1x64x32xbf16>
    %16 = vector.shape_cast %15 : vector<1x64x32xbf16> to vector<64x32xbf16>
    %cst_17 = arith.constant dense<0.000000e+00> : vector<109x32xf32>
    %17 = tpu.matmul %14, %16, %cst_17 {dimension_numbers = #tpu.dot_dimension_numbers<[1], [0], [0], [1], [0, 0, 1, 1], [], []>} : vector<109x64xbf16>, vector<64x32xbf16>, vector<109x32xf32> -> vector<109x32xf32>
    %18 = arith.addf %13, %17 : vector<109x32xf32>
    %19 = vector.extract_strided_slice %5 {offsets = [0, 0], sizes = [109, 64], strides = [1, 1]} : vector<121x64xbf16> to vector<109x64xbf16>
    %c2 = arith.constant 2 : index
    %c0_18 = arith.constant 0 : index
    %c0_19 = arith.constant 0 : index
    %20 = vector.load %arg5[%c2, %c0_18, %c0_19] : memref<4x64x32xbf16, #tpu.memory_space<vmem>>, vector<1x64x32xbf16>
    %21 = vector.shape_cast %20 : vector<1x64x32xbf16> to vector<64x32xbf16>
    %cst_20 = arith.constant dense<0.000000e+00> : vector<109x32xf32>
    %22 = tpu.matmul %19, %21, %cst_20 {dimension_numbers = #tpu.dot_dimension_numbers<[1], [0], [0], [1], [0, 0, 1, 1], [], []>} : vector<109x64xbf16>, vector<64x32xbf16>, vector<109x32xf32> -> vector<109x32xf32>
    %23 = arith.addf %18, %22 : vector<109x32xf32>
    %24 = vector.extract_strided_slice %7 {offsets = [0, 0], sizes = [109, 64], strides = [1, 1]} : vector<121x64xbf16> to vector<109x64xbf16>
    %c3 = arith.constant 3 : index
    %c0_21 = arith.constant 0 : index
    %c0_22 = arith.constant 0 : index
    %25 = vector.load %arg5[%c3, %c0_21, %c0_22] : memref<4x64x32xbf16, #tpu.memory_space<vmem>>, vector<1x64x32xbf16>
    %26 = vector.shape_cast %25 : vector<1x64x32xbf16> to vector<64x32xbf16>
    %cst_23 = arith.constant dense<0.000000e+00> : vector<109x32xf32>
    %27 = tpu.matmul %24, %26, %cst_23 {dimension_numbers = #tpu.dot_dimension_numbers<[1], [0], [0], [1], [0, 0, 1, 1], [], []>} : vector<109x64xbf16>, vector<64x32xbf16>, vector<109x32xf32> -> vector<109x32xf32>
    %28 = arith.addf %23, %27 : vector<109x32xf32>
    %c0_24 = arith.constant 0 : index
    %c0_25 = arith.constant 0 : index
    %29 = vector.load %arg6[%c0_24, %c0_25] : memref<1x32xf32, #tpu.memory_space<vmem>>, vector<1x32xf32>
    %30 = vector.broadcast %29 : vector<1x32xf32> to vector<109x32xf32>
    %31 = arith.addf %28, %30 : vector<109x32xf32>
    %cst_26 = arith.constant 0.000000e+00 : f32
    %32 = vector.broadcast %cst_26 : f32 to vector<109x32xf32>
    %33 = arith.maximumf %31, %32 : vector<109x32xf32>
    %34 = arith.truncf %33 : vector<109x32xf32> to vector<109x32xbf16>
    %cst_27 = arith.constant 0.000000e+00 : f32
    %35 = vector.broadcast %cst_27 : f32 to vector<109x32xf32>
    %36 = vector.extract_strided_slice %3 {offsets = [0, 0], sizes = [109, 64], strides = [1, 1]} : vector<121x64xbf16> to vector<109x64xbf16>
    %c0_28 = arith.constant 0 : index
    %c0_29 = arith.constant 0 : index
    %c0_30 = arith.constant 0 : index
    %37 = vector.load %arg5[%c0_28, %c0_29, %c0_30] : memref<4x64x32xbf16, #tpu.memory_space<vmem>>, vector<1x64x32xbf16>
    %38 = vector.shape_cast %37 : vector<1x64x32xbf16> to vector<64x32xbf16>
    %cst_31 = arith.constant dense<0.000000e+00> : vector<109x32xf32>
    %39 = tpu.matmul %36, %38, %cst_31 {dimension_numbers = #tpu.dot_dimension_numbers<[1], [0], [0], [1], [0, 0, 1, 1], [], []>} : vector<109x64xbf16>, vector<64x32xbf16>, vector<109x32xf32> -> vector<109x32xf32>
    %40 = arith.addf %35, %39 : vector<109x32xf32>
    %41 = vector.extract_strided_slice %1 {offsets = [1, 0], sizes = [109, 64], strides = [1, 1]} : vector<121x64xbf16> to vector<109x64xbf16>
    %c1_32 = arith.constant 1 : index
    %c0_33 = arith.constant 0 : index
    %c0_34 = arith.constant 0 : index
    %42 = vector.load %arg5[%c1_32, %c0_33, %c0_34] : memref<4x64x32xbf16, #tpu.memory_space<vmem>>, vector<1x64x32xbf16>
    %43 = vector.shape_cast %42 : vector<1x64x32xbf16> to vector<64x32xbf16>
    %cst_35 = arith.constant dense<0.000000e+00> : vector<109x32xf32>
    %44 = tpu.matmul %41, %43, %cst_35 {dimension_numbers = #tpu.dot_dimension_numbers<[1], [0], [0], [1], [0, 0, 1, 1], [], []>} : vector<109x64xbf16>, vector<64x32xbf16>, vector<109x32xf32> -> vector<109x32xf32>
    %45 = arith.addf %40, %44 : vector<109x32xf32>
    %46 = vector.extract_strided_slice %7 {offsets = [0, 0], sizes = [109, 64], strides = [1, 1]} : vector<121x64xbf16> to vector<109x64xbf16>
    %c2_36 = arith.constant 2 : index
    %c0_37 = arith.constant 0 : index
    %c0_38 = arith.constant 0 : index
    %47 = vector.load %arg5[%c2_36, %c0_37, %c0_38] : memref<4x64x32xbf16, #tpu.memory_space<vmem>>, vector<1x64x32xbf16>
    %48 = vector.shape_cast %47 : vector<1x64x32xbf16> to vector<64x32xbf16>
    %cst_39 = arith.constant dense<0.000000e+00> : vector<109x32xf32>
    %49 = tpu.matmul %46, %48, %cst_39 {dimension_numbers = #tpu.dot_dimension_numbers<[1], [0], [0], [1], [0, 0, 1, 1], [], []>} : vector<109x64xbf16>, vector<64x32xbf16>, vector<109x32xf32> -> vector<109x32xf32>
    %50 = arith.addf %45, %49 : vector<109x32xf32>
    %51 = vector.extract_strided_slice %5 {offsets = [1, 0], sizes = [109, 64], strides = [1, 1]} : vector<121x64xbf16> to vector<109x64xbf16>
    %c3_40 = arith.constant 3 : index
    %c0_41 = arith.constant 0 : index
    %c0_42 = arith.constant 0 : index
    %52 = vector.load %arg5[%c3_40, %c0_41, %c0_42] : memref<4x64x32xbf16, #tpu.memory_space<vmem>>, vector<1x64x32xbf16>
    %53 = vector.shape_cast %52 : vector<1x64x32xbf16> to vector<64x32xbf16>
    %cst_43 = arith.constant dense<0.000000e+00> : vector<109x32xf32>
    %54 = tpu.matmul %51, %53, %cst_43 {dimension_numbers = #tpu.dot_dimension_numbers<[1], [0], [0], [1], [0, 0, 1, 1], [], []>} : vector<109x64xbf16>, vector<64x32xbf16>, vector<109x32xf32> -> vector<109x32xf32>
    %55 = arith.addf %50, %54 : vector<109x32xf32>
    %c0_44 = arith.constant 0 : index
    %c0_45 = arith.constant 0 : index
    %56 = vector.load %arg6[%c0_44, %c0_45] : memref<1x32xf32, #tpu.memory_space<vmem>>, vector<1x32xf32>
    %57 = vector.broadcast %56 : vector<1x32xf32> to vector<109x32xf32>
    %58 = arith.addf %55, %57 : vector<109x32xf32>
    %cst_46 = arith.constant 0.000000e+00 : f32
    %59 = vector.broadcast %cst_46 : f32 to vector<109x32xf32>
    %60 = arith.maximumf %58, %59 : vector<109x32xf32>
    %61 = arith.truncf %60 : vector<109x32xf32> to vector<109x32xbf16>
    %cst_47 = arith.constant 0.000000e+00 : f32
    %62 = vector.broadcast %cst_47 : f32 to vector<109x32xf32>
    %63 = vector.extract_strided_slice %5 {offsets = [0, 0], sizes = [109, 64], strides = [1, 1]} : vector<121x64xbf16> to vector<109x64xbf16>
    %c0_48 = arith.constant 0 : index
    %c0_49 = arith.constant 0 : index
    %c0_50 = arith.constant 0 : index
    %64 = vector.load %arg5[%c0_48, %c0_49, %c0_50] : memref<4x64x32xbf16, #tpu.memory_space<vmem>>, vector<1x64x32xbf16>
    %65 = vector.shape_cast %64 : vector<1x64x32xbf16> to vector<64x32xbf16>
    %cst_51 = arith.constant dense<0.000000e+00> : vector<109x32xf32>
    %66 = tpu.matmul %63, %65, %cst_51 {dimension_numbers = #tpu.dot_dimension_numbers<[1], [0], [0], [1], [0, 0, 1, 1], [], []>} : vector<109x64xbf16>, vector<64x32xbf16>, vector<109x32xf32> -> vector<109x32xf32>
    %67 = arith.addf %62, %66 : vector<109x32xf32>
    %68 = vector.extract_strided_slice %7 {offsets = [0, 0], sizes = [109, 64], strides = [1, 1]} : vector<121x64xbf16> to vector<109x64xbf16>
    %c1_52 = arith.constant 1 : index
    %c0_53 = arith.constant 0 : index
    %c0_54 = arith.constant 0 : index
    %69 = vector.load %arg5[%c1_52, %c0_53, %c0_54] : memref<4x64x32xbf16, #tpu.memory_space<vmem>>, vector<1x64x32xbf16>
    %70 = vector.shape_cast %69 : vector<1x64x32xbf16> to vector<64x32xbf16>
    %cst_55 = arith.constant dense<0.000000e+00> : vector<109x32xf32>
    %71 = tpu.matmul %68, %70, %cst_55 {dimension_numbers = #tpu.dot_dimension_numbers<[1], [0], [0], [1], [0, 0, 1, 1], [], []>} : vector<109x64xbf16>, vector<64x32xbf16>, vector<109x32xf32> -> vector<109x32xf32>
    %72 = arith.addf %67, %71 : vector<109x32xf32>
    %73 = vector.extract_strided_slice %1 {offsets = [11, 0], sizes = [109, 64], strides = [1, 1]} : vector<121x64xbf16> to vector<109x64xbf16>
    %c2_56 = arith.constant 2 : index
    %c0_57 = arith.constant 0 : index
    %c0_58 = arith.constant 0 : index
    %74 = vector.load %arg5[%c2_56, %c0_57, %c0_58] : memref<4x64x32xbf16, #tpu.memory_space<vmem>>, vector<1x64x32xbf16>
    %75 = vector.shape_cast %74 : vector<1x64x32xbf16> to vector<64x32xbf16>
    %cst_59 = arith.constant dense<0.000000e+00> : vector<109x32xf32>
    %76 = tpu.matmul %73, %75, %cst_59 {dimension_numbers = #tpu.dot_dimension_numbers<[1], [0], [0], [1], [0, 0, 1, 1], [], []>} : vector<109x64xbf16>, vector<64x32xbf16>, vector<109x32xf32> -> vector<109x32xf32>
    %77 = arith.addf %72, %76 : vector<109x32xf32>
    %78 = vector.extract_strided_slice %3 {offsets = [11, 0], sizes = [109, 64], strides = [1, 1]} : vector<121x64xbf16> to vector<109x64xbf16>
    %c3_60 = arith.constant 3 : index
    %c0_61 = arith.constant 0 : index
    %c0_62 = arith.constant 0 : index
    %79 = vector.load %arg5[%c3_60, %c0_61, %c0_62] : memref<4x64x32xbf16, #tpu.memory_space<vmem>>, vector<1x64x32xbf16>
    %80 = vector.shape_cast %79 : vector<1x64x32xbf16> to vector<64x32xbf16>
    %cst_63 = arith.constant dense<0.000000e+00> : vector<109x32xf32>
    %81 = tpu.matmul %78, %80, %cst_63 {dimension_numbers = #tpu.dot_dimension_numbers<[1], [0], [0], [1], [0, 0, 1, 1], [], []>} : vector<109x64xbf16>, vector<64x32xbf16>, vector<109x32xf32> -> vector<109x32xf32>
    %82 = arith.addf %77, %81 : vector<109x32xf32>
    %c0_64 = arith.constant 0 : index
    %c0_65 = arith.constant 0 : index
    %83 = vector.load %arg6[%c0_64, %c0_65] : memref<1x32xf32, #tpu.memory_space<vmem>>, vector<1x32xf32>
    %84 = vector.broadcast %83 : vector<1x32xf32> to vector<109x32xf32>
    %85 = arith.addf %82, %84 : vector<109x32xf32>
    %cst_66 = arith.constant 0.000000e+00 : f32
    %86 = vector.broadcast %cst_66 : f32 to vector<109x32xf32>
    %87 = arith.maximumf %85, %86 : vector<109x32xf32>
    %88 = arith.truncf %87 : vector<109x32xf32> to vector<109x32xbf16>
    %cst_67 = arith.constant 0.000000e+00 : f32
    %89 = vector.broadcast %cst_67 : f32 to vector<109x32xf32>
    %90 = vector.extract_strided_slice %7 {offsets = [0, 0], sizes = [109, 64], strides = [1, 1]} : vector<121x64xbf16> to vector<109x64xbf16>
    %c0_68 = arith.constant 0 : index
    %c0_69 = arith.constant 0 : index
    %c0_70 = arith.constant 0 : index
    %91 = vector.load %arg5[%c0_68, %c0_69, %c0_70] : memref<4x64x32xbf16, #tpu.memory_space<vmem>>, vector<1x64x32xbf16>
    %92 = vector.shape_cast %91 : vector<1x64x32xbf16> to vector<64x32xbf16>
    %cst_71 = arith.constant dense<0.000000e+00> : vector<109x32xf32>
    %93 = tpu.matmul %90, %92, %cst_71 {dimension_numbers = #tpu.dot_dimension_numbers<[1], [0], [0], [1], [0, 0, 1, 1], [], []>} : vector<109x64xbf16>, vector<64x32xbf16>, vector<109x32xf32> -> vector<109x32xf32>
    %94 = arith.addf %89, %93 : vector<109x32xf32>
    %95 = vector.extract_strided_slice %5 {offsets = [1, 0], sizes = [109, 64], strides = [1, 1]} : vector<121x64xbf16> to vector<109x64xbf16>
    %c1_72 = arith.constant 1 : index
    %c0_73 = arith.constant 0 : index
    %c0_74 = arith.constant 0 : index
    %96 = vector.load %arg5[%c1_72, %c0_73, %c0_74] : memref<4x64x32xbf16, #tpu.memory_space<vmem>>, vector<1x64x32xbf16>
    %97 = vector.shape_cast %96 : vector<1x64x32xbf16> to vector<64x32xbf16>
    %cst_75 = arith.constant dense<0.000000e+00> : vector<109x32xf32>
    %98 = tpu.matmul %95, %97, %cst_75 {dimension_numbers = #tpu.dot_dimension_numbers<[1], [0], [0], [1], [0, 0, 1, 1], [], []>} : vector<109x64xbf16>, vector<64x32xbf16>, vector<109x32xf32> -> vector<109x32xf32>
    %99 = arith.addf %94, %98 : vector<109x32xf32>
    %100 = vector.extract_strided_slice %3 {offsets = [11, 0], sizes = [109, 64], strides = [1, 1]} : vector<121x64xbf16> to vector<109x64xbf16>
    %c2_76 = arith.constant 2 : index
    %c0_77 = arith.constant 0 : index
    %c0_78 = arith.constant 0 : index
    %101 = vector.load %arg5[%c2_76, %c0_77, %c0_78] : memref<4x64x32xbf16, #tpu.memory_space<vmem>>, vector<1x64x32xbf16>
    %102 = vector.shape_cast %101 : vector<1x64x32xbf16> to vector<64x32xbf16>
    %cst_79 = arith.constant dense<0.000000e+00> : vector<109x32xf32>
    %103 = tpu.matmul %100, %102, %cst_79 {dimension_numbers = #tpu.dot_dimension_numbers<[1], [0], [0], [1], [0, 0, 1, 1], [], []>} : vector<109x64xbf16>, vector<64x32xbf16>, vector<109x32xf32> -> vector<109x32xf32>
    %104 = arith.addf %99, %103 : vector<109x32xf32>
    %105 = vector.extract_strided_slice %1 {offsets = [12, 0], sizes = [109, 64], strides = [1, 1]} : vector<121x64xbf16> to vector<109x64xbf16>
    %c3_80 = arith.constant 3 : index
    %c0_81 = arith.constant 0 : index
    %c0_82 = arith.constant 0 : index
    %106 = vector.load %arg5[%c3_80, %c0_81, %c0_82] : memref<4x64x32xbf16, #tpu.memory_space<vmem>>, vector<1x64x32xbf16>
    %107 = vector.shape_cast %106 : vector<1x64x32xbf16> to vector<64x32xbf16>
    %cst_83 = arith.constant dense<0.000000e+00> : vector<109x32xf32>
    %108 = tpu.matmul %105, %107, %cst_83 {dimension_numbers = #tpu.dot_dimension_numbers<[1], [0], [0], [1], [0, 0, 1, 1], [], []>} : vector<109x64xbf16>, vector<64x32xbf16>, vector<109x32xf32> -> vector<109x32xf32>
    %109 = arith.addf %104, %108 : vector<109x32xf32>
    %c0_84 = arith.constant 0 : index
    %c0_85 = arith.constant 0 : index
    %110 = vector.load %arg6[%c0_84, %c0_85] : memref<1x32xf32, #tpu.memory_space<vmem>>, vector<1x32xf32>
    %111 = vector.broadcast %110 : vector<1x32xf32> to vector<109x32xf32>
    %112 = arith.addf %109, %111 : vector<109x32xf32>
    %cst_86 = arith.constant 0.000000e+00 : f32
    %113 = vector.broadcast %cst_86 : f32 to vector<109x32xf32>
    %114 = arith.maximumf %112, %113 : vector<109x32xf32>
    %115 = arith.truncf %114 : vector<109x32xf32> to vector<109x32xbf16>
    %cst_87 = arith.constant 0.000000e+00 : f32
    %116 = vector.broadcast %cst_87 : f32 to vector<97x64xf32>
    %117 = vector.extract_strided_slice %34 {offsets = [0, 0], sizes = [97, 32], strides = [1, 1]} : vector<109x32xbf16> to vector<97x32xbf16>
    %c0_88 = arith.constant 0 : index
    %c0_89 = arith.constant 0 : index
    %c0_90 = arith.constant 0 : index
    %118 = vector.load %arg7[%c0_88, %c0_89, %c0_90] : memref<16x32x64xbf16, #tpu.memory_space<vmem>>, vector<1x32x64xbf16>
    %119 = vector.shape_cast %118 : vector<1x32x64xbf16> to vector<32x64xbf16>
    %cst_91 = arith.constant dense<0.000000e+00> : vector<97x64xf32>
    %120 = tpu.matmul %117, %119, %cst_91 {dimension_numbers = #tpu.dot_dimension_numbers<[1], [0], [0], [1], [0, 0, 1, 1], [], []>} : vector<97x32xbf16>, vector<32x64xbf16>, vector<97x64xf32> -> vector<97x64xf32>
    %121 = arith.addf %116, %120 : vector<97x64xf32>
    %122 = vector.extract_strided_slice %34 {offsets = [1, 0], sizes = [97, 32], strides = [1, 1]} : vector<109x32xbf16> to vector<97x32xbf16>
    %c1_92 = arith.constant 1 : index
    %c0_93 = arith.constant 0 : index
    %c0_94 = arith.constant 0 : index
    %123 = vector.load %arg7[%c1_92, %c0_93, %c0_94] : memref<16x32x64xbf16, #tpu.memory_space<vmem>>, vector<1x32x64xbf16>
    %124 = vector.shape_cast %123 : vector<1x32x64xbf16> to vector<32x64xbf16>
    %cst_95 = arith.constant dense<0.000000e+00> : vector<97x64xf32>
    %125 = tpu.matmul %122, %124, %cst_95 {dimension_numbers = #tpu.dot_dimension_numbers<[1], [0], [0], [1], [0, 0, 1, 1], [], []>} : vector<97x32xbf16>, vector<32x64xbf16>, vector<97x64xf32> -> vector<97x64xf32>
    %126 = arith.addf %121, %125 : vector<97x64xf32>
    %127 = vector.extract_strided_slice %34 {offsets = [11, 0], sizes = [97, 32], strides = [1, 1]} : vector<109x32xbf16> to vector<97x32xbf16>
    %c2_96 = arith.constant 2 : index
    %c0_97 = arith.constant 0 : index
    %c0_98 = arith.constant 0 : index
    %128 = vector.load %arg7[%c2_96, %c0_97, %c0_98] : memref<16x32x64xbf16, #tpu.memory_space<vmem>>, vector<1x32x64xbf16>
    %129 = vector.shape_cast %128 : vector<1x32x64xbf16> to vector<32x64xbf16>
    %cst_99 = arith.constant dense<0.000000e+00> : vector<97x64xf32>
    %130 = tpu.matmul %127, %129, %cst_99 {dimension_numbers = #tpu.dot_dimension_numbers<[1], [0], [0], [1], [0, 0, 1, 1], [], []>} : vector<97x32xbf16>, vector<32x64xbf16>, vector<97x64xf32> -> vector<97x64xf32>
    %131 = arith.addf %126, %130 : vector<97x64xf32>
    %132 = vector.extract_strided_slice %34 {offsets = [12, 0], sizes = [97, 32], strides = [1, 1]} : vector<109x32xbf16> to vector<97x32xbf16>
    %c3_100 = arith.constant 3 : index
    %c0_101 = arith.constant 0 : index
    %c0_102 = arith.constant 0 : index
    %133 = vector.load %arg7[%c3_100, %c0_101, %c0_102] : memref<16x32x64xbf16, #tpu.memory_space<vmem>>, vector<1x32x64xbf16>
    %134 = vector.shape_cast %133 : vector<1x32x64xbf16> to vector<32x64xbf16>
    %cst_103 = arith.constant dense<0.000000e+00> : vector<97x64xf32>
    %135 = tpu.matmul %132, %134, %cst_103 {dimension_numbers = #tpu.dot_dimension_numbers<[1], [0], [0], [1], [0, 0, 1, 1], [], []>} : vector<97x32xbf16>, vector<32x64xbf16>, vector<97x64xf32> -> vector<97x64xf32>
    %136 = arith.addf %131, %135 : vector<97x64xf32>
    %137 = vector.extract_strided_slice %61 {offsets = [0, 0], sizes = [97, 32], strides = [1, 1]} : vector<109x32xbf16> to vector<97x32xbf16>
    %c4 = arith.constant 4 : index
    %c0_104 = arith.constant 0 : index
    %c0_105 = arith.constant 0 : index
    %138 = vector.load %arg7[%c4, %c0_104, %c0_105] : memref<16x32x64xbf16, #tpu.memory_space<vmem>>, vector<1x32x64xbf16>
    %139 = vector.shape_cast %138 : vector<1x32x64xbf16> to vector<32x64xbf16>
    %cst_106 = arith.constant dense<0.000000e+00> : vector<97x64xf32>
    %140 = tpu.matmul %137, %139, %cst_106 {dimension_numbers = #tpu.dot_dimension_numbers<[1], [0], [0], [1], [0, 0, 1, 1], [], []>} : vector<97x32xbf16>, vector<32x64xbf16>, vector<97x64xf32> -> vector<97x64xf32>
    %141 = arith.addf %136, %140 : vector<97x64xf32>
    %142 = vector.extract_strided_slice %61 {offsets = [1, 0], sizes = [97, 32], strides = [1, 1]} : vector<109x32xbf16> to vector<97x32xbf16>
    %c5 = arith.constant 5 : index
    %c0_107 = arith.constant 0 : index
    %c0_108 = arith.constant 0 : index
    %143 = vector.load %arg7[%c5, %c0_107, %c0_108] : memref<16x32x64xbf16, #tpu.memory_space<vmem>>, vector<1x32x64xbf16>
    %144 = vector.shape_cast %143 : vector<1x32x64xbf16> to vector<32x64xbf16>
    %cst_109 = arith.constant dense<0.000000e+00> : vector<97x64xf32>
    %145 = tpu.matmul %142, %144, %cst_109 {dimension_numbers = #tpu.dot_dimension_numbers<[1], [0], [0], [1], [0, 0, 1, 1], [], []>} : vector<97x32xbf16>, vector<32x64xbf16>, vector<97x64xf32> -> vector<97x64xf32>
    %146 = arith.addf %141, %145 : vector<97x64xf32>
    %147 = vector.extract_strided_slice %61 {offsets = [11, 0], sizes = [97, 32], strides = [1, 1]} : vector<109x32xbf16> to vector<97x32xbf16>
    %c6 = arith.constant 6 : index
    %c0_110 = arith.constant 0 : index
    %c0_111 = arith.constant 0 : index
    %148 = vector.load %arg7[%c6, %c0_110, %c0_111] : memref<16x32x64xbf16, #tpu.memory_space<vmem>>, vector<1x32x64xbf16>
    %149 = vector.shape_cast %148 : vector<1x32x64xbf16> to vector<32x64xbf16>
    %cst_112 = arith.constant dense<0.000000e+00> : vector<97x64xf32>
    %150 = tpu.matmul %147, %149, %cst_112 {dimension_numbers = #tpu.dot_dimension_numbers<[1], [0], [0], [1], [0, 0, 1, 1], [], []>} : vector<97x32xbf16>, vector<32x64xbf16>, vector<97x64xf32> -> vector<97x64xf32>
    %151 = arith.addf %146, %150 : vector<97x64xf32>
    %152 = vector.extract_strided_slice %61 {offsets = [12, 0], sizes = [97, 32], strides = [1, 1]} : vector<109x32xbf16> to vector<97x32xbf16>
    %c7 = arith.constant 7 : index
    %c0_113 = arith.constant 0 : index
    %c0_114 = arith.constant 0 : index
    %153 = vector.load %arg7[%c7, %c0_113, %c0_114] : memref<16x32x64xbf16, #tpu.memory_space<vmem>>, vector<1x32x64xbf16>
    %154 = vector.shape_cast %153 : vector<1x32x64xbf16> to vector<32x64xbf16>
    %cst_115 = arith.constant dense<0.000000e+00> : vector<97x64xf32>
    %155 = tpu.matmul %152, %154, %cst_115 {dimension_numbers = #tpu.dot_dimension_numbers<[1], [0], [0], [1], [0, 0, 1, 1], [], []>} : vector<97x32xbf16>, vector<32x64xbf16>, vector<97x64xf32> -> vector<97x64xf32>
    %156 = arith.addf %151, %155 : vector<97x64xf32>
    %157 = vector.extract_strided_slice %88 {offsets = [0, 0], sizes = [97, 32], strides = [1, 1]} : vector<109x32xbf16> to vector<97x32xbf16>
    %c8 = arith.constant 8 : index
    %c0_116 = arith.constant 0 : index
    %c0_117 = arith.constant 0 : index
    %158 = vector.load %arg7[%c8, %c0_116, %c0_117] : memref<16x32x64xbf16, #tpu.memory_space<vmem>>, vector<1x32x64xbf16>
    %159 = vector.shape_cast %158 : vector<1x32x64xbf16> to vector<32x64xbf16>
    %cst_118 = arith.constant dense<0.000000e+00> : vector<97x64xf32>
    %160 = tpu.matmul %157, %159, %cst_118 {dimension_numbers = #tpu.dot_dimension_numbers<[1], [0], [0], [1], [0, 0, 1, 1], [], []>} : vector<97x32xbf16>, vector<32x64xbf16>, vector<97x64xf32> -> vector<97x64xf32>
    %161 = arith.addf %156, %160 : vector<97x64xf32>
    %162 = vector.extract_strided_slice %88 {offsets = [1, 0], sizes = [97, 32], strides = [1, 1]} : vector<109x32xbf16> to vector<97x32xbf16>
    %c9 = arith.constant 9 : index
    %c0_119 = arith.constant 0 : index
    %c0_120 = arith.constant 0 : index
    %163 = vector.load %arg7[%c9, %c0_119, %c0_120] : memref<16x32x64xbf16, #tpu.memory_space<vmem>>, vector<1x32x64xbf16>
    %164 = vector.shape_cast %163 : vector<1x32x64xbf16> to vector<32x64xbf16>
    %cst_121 = arith.constant dense<0.000000e+00> : vector<97x64xf32>
    %165 = tpu.matmul %162, %164, %cst_121 {dimension_numbers = #tpu.dot_dimension_numbers<[1], [0], [0], [1], [0, 0, 1, 1], [], []>} : vector<97x32xbf16>, vector<32x64xbf16>, vector<97x64xf32> -> vector<97x64xf32>
    %166 = arith.addf %161, %165 : vector<97x64xf32>
    %167 = vector.extract_strided_slice %88 {offsets = [11, 0], sizes = [97, 32], strides = [1, 1]} : vector<109x32xbf16> to vector<97x32xbf16>
    %c10 = arith.constant 10 : index
    %c0_122 = arith.constant 0 : index
    %c0_123 = arith.constant 0 : index
    %168 = vector.load %arg7[%c10, %c0_122, %c0_123] : memref<16x32x64xbf16, #tpu.memory_space<vmem>>, vector<1x32x64xbf16>
    %169 = vector.shape_cast %168 : vector<1x32x64xbf16> to vector<32x64xbf16>
    %cst_124 = arith.constant dense<0.000000e+00> : vector<97x64xf32>
    %170 = tpu.matmul %167, %169, %cst_124 {dimension_numbers = #tpu.dot_dimension_numbers<[1], [0], [0], [1], [0, 0, 1, 1], [], []>} : vector<97x32xbf16>, vector<32x64xbf16>, vector<97x64xf32> -> vector<97x64xf32>
    %171 = arith.addf %166, %170 : vector<97x64xf32>
    %172 = vector.extract_strided_slice %88 {offsets = [12, 0], sizes = [97, 32], strides = [1, 1]} : vector<109x32xbf16> to vector<97x32xbf16>
    %c11 = arith.constant 11 : index
    %c0_125 = arith.constant 0 : index
    %c0_126 = arith.constant 0 : index
    %173 = vector.load %arg7[%c11, %c0_125, %c0_126] : memref<16x32x64xbf16, #tpu.memory_space<vmem>>, vector<1x32x64xbf16>
    %174 = vector.shape_cast %173 : vector<1x32x64xbf16> to vector<32x64xbf16>
    %cst_127 = arith.constant dense<0.000000e+00> : vector<97x64xf32>
    %175 = tpu.matmul %172, %174, %cst_127 {dimension_numbers = #tpu.dot_dimension_numbers<[1], [0], [0], [1], [0, 0, 1, 1], [], []>} : vector<97x32xbf16>, vector<32x64xbf16>, vector<97x64xf32> -> vector<97x64xf32>
    %176 = arith.addf %171, %175 : vector<97x64xf32>
    %177 = vector.extract_strided_slice %115 {offsets = [0, 0], sizes = [97, 32], strides = [1, 1]} : vector<109x32xbf16> to vector<97x32xbf16>
    %c12 = arith.constant 12 : index
    %c0_128 = arith.constant 0 : index
    %c0_129 = arith.constant 0 : index
    %178 = vector.load %arg7[%c12, %c0_128, %c0_129] : memref<16x32x64xbf16, #tpu.memory_space<vmem>>, vector<1x32x64xbf16>
    %179 = vector.shape_cast %178 : vector<1x32x64xbf16> to vector<32x64xbf16>
    %cst_130 = arith.constant dense<0.000000e+00> : vector<97x64xf32>
    %180 = tpu.matmul %177, %179, %cst_130 {dimension_numbers = #tpu.dot_dimension_numbers<[1], [0], [0], [1], [0, 0, 1, 1], [], []>} : vector<97x32xbf16>, vector<32x64xbf16>, vector<97x64xf32> -> vector<97x64xf32>
    %181 = arith.addf %176, %180 : vector<97x64xf32>
    %182 = vector.extract_strided_slice %115 {offsets = [1, 0], sizes = [97, 32], strides = [1, 1]} : vector<109x32xbf16> to vector<97x32xbf16>
    %c13 = arith.constant 13 : index
    %c0_131 = arith.constant 0 : index
    %c0_132 = arith.constant 0 : index
    %183 = vector.load %arg7[%c13, %c0_131, %c0_132] : memref<16x32x64xbf16, #tpu.memory_space<vmem>>, vector<1x32x64xbf16>
    %184 = vector.shape_cast %183 : vector<1x32x64xbf16> to vector<32x64xbf16>
    %cst_133 = arith.constant dense<0.000000e+00> : vector<97x64xf32>
    %185 = tpu.matmul %182, %184, %cst_133 {dimension_numbers = #tpu.dot_dimension_numbers<[1], [0], [0], [1], [0, 0, 1, 1], [], []>} : vector<97x32xbf16>, vector<32x64xbf16>, vector<97x64xf32> -> vector<97x64xf32>
    %186 = arith.addf %181, %185 : vector<97x64xf32>
    %187 = vector.extract_strided_slice %115 {offsets = [11, 0], sizes = [97, 32], strides = [1, 1]} : vector<109x32xbf16> to vector<97x32xbf16>
    %c14 = arith.constant 14 : index
    %c0_134 = arith.constant 0 : index
    %c0_135 = arith.constant 0 : index
    %188 = vector.load %arg7[%c14, %c0_134, %c0_135] : memref<16x32x64xbf16, #tpu.memory_space<vmem>>, vector<1x32x64xbf16>
    %189 = vector.shape_cast %188 : vector<1x32x64xbf16> to vector<32x64xbf16>
    %cst_136 = arith.constant dense<0.000000e+00> : vector<97x64xf32>
    %190 = tpu.matmul %187, %189, %cst_136 {dimension_numbers = #tpu.dot_dimension_numbers<[1], [0], [0], [1], [0, 0, 1, 1], [], []>} : vector<97x32xbf16>, vector<32x64xbf16>, vector<97x64xf32> -> vector<97x64xf32>
    %191 = arith.addf %186, %190 : vector<97x64xf32>
    %192 = vector.extract_strided_slice %115 {offsets = [12, 0], sizes = [97, 32], strides = [1, 1]} : vector<109x32xbf16> to vector<97x32xbf16>
    %c15 = arith.constant 15 : index
    %c0_137 = arith.constant 0 : index
    %c0_138 = arith.constant 0 : index
    %193 = vector.load %arg7[%c15, %c0_137, %c0_138] : memref<16x32x64xbf16, #tpu.memory_space<vmem>>, vector<1x32x64xbf16>
    %194 = vector.shape_cast %193 : vector<1x32x64xbf16> to vector<32x64xbf16>
    %cst_139 = arith.constant dense<0.000000e+00> : vector<97x64xf32>
    %195 = tpu.matmul %192, %194, %cst_139 {dimension_numbers = #tpu.dot_dimension_numbers<[1], [0], [0], [1], [0, 0, 1, 1], [], []>} : vector<97x32xbf16>, vector<32x64xbf16>, vector<97x64xf32> -> vector<97x64xf32>
    %196 = arith.addf %191, %195 : vector<97x64xf32>
    %c0_140 = arith.constant 0 : index
    %c0_141 = arith.constant 0 : index
    %197 = vector.load %arg8[%c0_140, %c0_141] : memref<1x64xf32, #tpu.memory_space<vmem>>, vector<1x64xf32>
    %198 = vector.broadcast %197 : vector<1x64xf32> to vector<97x64xf32>
    %199 = arith.addf %196, %198 : vector<97x64xf32>
    %cst_142 = arith.constant 0.000000e+00 : f32
    %200 = vector.broadcast %cst_142 : f32 to vector<97x64xf32>
    %201 = arith.maximumf %199, %200 : vector<97x64xf32>
    %202 = arith.truncf %201 : vector<97x64xf32> to vector<97x64xbf16>
    %cst_143 = arith.constant 0.000000e+00 : f32
    %203 = vector.broadcast %cst_143 : f32 to vector<73x32xf32>
    %204 = vector.extract_strided_slice %202 {offsets = [0, 0], sizes = [73, 64], strides = [1, 1]} : vector<97x64xbf16> to vector<73x64xbf16>
    %c0_144 = arith.constant 0 : index
    %c0_145 = arith.constant 0 : index
    %c0_146 = arith.constant 0 : index
    %205 = vector.load %arg9[%c0_144, %c0_145, %c0_146] : memref<9x64x32xbf16, #tpu.memory_space<vmem>>, vector<1x64x32xbf16>
    %206 = vector.shape_cast %205 : vector<1x64x32xbf16> to vector<64x32xbf16>
    %cst_147 = arith.constant dense<0.000000e+00> : vector<73x32xf32>
    %207 = tpu.matmul %204, %206, %cst_147 {dimension_numbers = #tpu.dot_dimension_numbers<[1], [0], [0], [1], [0, 0, 1, 1], [], []>} : vector<73x64xbf16>, vector<64x32xbf16>, vector<73x32xf32> -> vector<73x32xf32>
    %208 = arith.addf %203, %207 : vector<73x32xf32>
    %209 = vector.extract_strided_slice %202 {offsets = [1, 0], sizes = [73, 64], strides = [1, 1]} : vector<97x64xbf16> to vector<73x64xbf16>
    %c1_148 = arith.constant 1 : index
    %c0_149 = arith.constant 0 : index
    %c0_150 = arith.constant 0 : index
    %210 = vector.load %arg9[%c1_148, %c0_149, %c0_150] : memref<9x64x32xbf16, #tpu.memory_space<vmem>>, vector<1x64x32xbf16>
    %211 = vector.shape_cast %210 : vector<1x64x32xbf16> to vector<64x32xbf16>
    %cst_151 = arith.constant dense<0.000000e+00> : vector<73x32xf32>
    %212 = tpu.matmul %209, %211, %cst_151 {dimension_numbers = #tpu.dot_dimension_numbers<[1], [0], [0], [1], [0, 0, 1, 1], [], []>} : vector<73x64xbf16>, vector<64x32xbf16>, vector<73x32xf32> -> vector<73x32xf32>
    %213 = arith.addf %208, %212 : vector<73x32xf32>
    %214 = vector.extract_strided_slice %202 {offsets = [2, 0], sizes = [73, 64], strides = [1, 1]} : vector<97x64xbf16> to vector<73x64xbf16>
    %c2_152 = arith.constant 2 : index
    %c0_153 = arith.constant 0 : index
    %c0_154 = arith.constant 0 : index
    %215 = vector.load %arg9[%c2_152, %c0_153, %c0_154] : memref<9x64x32xbf16, #tpu.memory_space<vmem>>, vector<1x64x32xbf16>
    %216 = vector.shape_cast %215 : vector<1x64x32xbf16> to vector<64x32xbf16>
    %cst_155 = arith.constant dense<0.000000e+00> : vector<73x32xf32>
    %217 = tpu.matmul %214, %216, %cst_155 {dimension_numbers = #tpu.dot_dimension_numbers<[1], [0], [0], [1], [0, 0, 1, 1], [], []>} : vector<73x64xbf16>, vector<64x32xbf16>, vector<73x32xf32> -> vector<73x32xf32>
    %218 = arith.addf %213, %217 : vector<73x32xf32>
    %219 = vector.extract_strided_slice %202 {offsets = [11, 0], sizes = [73, 64], strides = [1, 1]} : vector<97x64xbf16> to vector<73x64xbf16>
    %c3_156 = arith.constant 3 : index
    %c0_157 = arith.constant 0 : index
    %c0_158 = arith.constant 0 : index
    %220 = vector.load %arg9[%c3_156, %c0_157, %c0_158] : memref<9x64x32xbf16, #tpu.memory_space<vmem>>, vector<1x64x32xbf16>
    %221 = vector.shape_cast %220 : vector<1x64x32xbf16> to vector<64x32xbf16>
    %cst_159 = arith.constant dense<0.000000e+00> : vector<73x32xf32>
    %222 = tpu.matmul %219, %221, %cst_159 {dimension_numbers = #tpu.dot_dimension_numbers<[1], [0], [0], [1], [0, 0, 1, 1], [], []>} : vector<73x64xbf16>, vector<64x32xbf16>, vector<73x32xf32> -> vector<73x32xf32>
    %223 = arith.addf %218, %222 : vector<73x32xf32>
    %224 = vector.extract_strided_slice %202 {offsets = [12, 0], sizes = [73, 64], strides = [1, 1]} : vector<97x64xbf16> to vector<73x64xbf16>
    %c4_160 = arith.constant 4 : index
    %c0_161 = arith.constant 0 : index
    %c0_162 = arith.constant 0 : index
    %225 = vector.load %arg9[%c4_160, %c0_161, %c0_162] : memref<9x64x32xbf16, #tpu.memory_space<vmem>>, vector<1x64x32xbf16>
    %226 = vector.shape_cast %225 : vector<1x64x32xbf16> to vector<64x32xbf16>
    %cst_163 = arith.constant dense<0.000000e+00> : vector<73x32xf32>
    %227 = tpu.matmul %224, %226, %cst_163 {dimension_numbers = #tpu.dot_dimension_numbers<[1], [0], [0], [1], [0, 0, 1, 1], [], []>} : vector<73x64xbf16>, vector<64x32xbf16>, vector<73x32xf32> -> vector<73x32xf32>
    %228 = arith.addf %223, %227 : vector<73x32xf32>
    %229 = vector.extract_strided_slice %202 {offsets = [13, 0], sizes = [73, 64], strides = [1, 1]} : vector<97x64xbf16> to vector<73x64xbf16>
    %c5_164 = arith.constant 5 : index
    %c0_165 = arith.constant 0 : index
    %c0_166 = arith.constant 0 : index
    %230 = vector.load %arg9[%c5_164, %c0_165, %c0_166] : memref<9x64x32xbf16, #tpu.memory_space<vmem>>, vector<1x64x32xbf16>
    %231 = vector.shape_cast %230 : vector<1x64x32xbf16> to vector<64x32xbf16>
    %cst_167 = arith.constant dense<0.000000e+00> : vector<73x32xf32>
    %232 = tpu.matmul %229, %231, %cst_167 {dimension_numbers = #tpu.dot_dimension_numbers<[1], [0], [0], [1], [0, 0, 1, 1], [], []>} : vector<73x64xbf16>, vector<64x32xbf16>, vector<73x32xf32> -> vector<73x32xf32>
    %233 = arith.addf %228, %232 : vector<73x32xf32>
    %234 = vector.extract_strided_slice %202 {offsets = [22, 0], sizes = [73, 64], strides = [1, 1]} : vector<97x64xbf16> to vector<73x64xbf16>
    %c6_168 = arith.constant 6 : index
    %c0_169 = arith.constant 0 : index
    %c0_170 = arith.constant 0 : index
    %235 = vector.load %arg9[%c6_168, %c0_169, %c0_170] : memref<9x64x32xbf16, #tpu.memory_space<vmem>>, vector<1x64x32xbf16>
    %236 = vector.shape_cast %235 : vector<1x64x32xbf16> to vector<64x32xbf16>
    %cst_171 = arith.constant dense<0.000000e+00> : vector<73x32xf32>
    %237 = tpu.matmul %234, %236, %cst_171 {dimension_numbers = #tpu.dot_dimension_numbers<[1], [0], [0], [1], [0, 0, 1, 1], [], []>} : vector<73x64xbf16>, vector<64x32xbf16>, vector<73x32xf32> -> vector<73x32xf32>
    %238 = arith.addf %233, %237 : vector<73x32xf32>
    %239 = vector.extract_strided_slice %202 {offsets = [23, 0], sizes = [73, 64], strides = [1, 1]} : vector<97x64xbf16> to vector<73x64xbf16>
    %c7_172 = arith.constant 7 : index
    %c0_173 = arith.constant 0 : index
    %c0_174 = arith.constant 0 : index
    %240 = vector.load %arg9[%c7_172, %c0_173, %c0_174] : memref<9x64x32xbf16, #tpu.memory_space<vmem>>, vector<1x64x32xbf16>
    %241 = vector.shape_cast %240 : vector<1x64x32xbf16> to vector<64x32xbf16>
    %cst_175 = arith.constant dense<0.000000e+00> : vector<73x32xf32>
    %242 = tpu.matmul %239, %241, %cst_175 {dimension_numbers = #tpu.dot_dimension_numbers<[1], [0], [0], [1], [0, 0, 1, 1], [], []>} : vector<73x64xbf16>, vector<64x32xbf16>, vector<73x32xf32> -> vector<73x32xf32>
    %243 = arith.addf %238, %242 : vector<73x32xf32>
    %244 = vector.extract_strided_slice %202 {offsets = [24, 0], sizes = [73, 64], strides = [1, 1]} : vector<97x64xbf16> to vector<73x64xbf16>
    %c8_176 = arith.constant 8 : index
    %c0_177 = arith.constant 0 : index
    %c0_178 = arith.constant 0 : index
    %245 = vector.load %arg9[%c8_176, %c0_177, %c0_178] : memref<9x64x32xbf16, #tpu.memory_space<vmem>>, vector<1x64x32xbf16>
    %246 = vector.shape_cast %245 : vector<1x64x32xbf16> to vector<64x32xbf16>
    %cst_179 = arith.constant dense<0.000000e+00> : vector<73x32xf32>
    %247 = tpu.matmul %244, %246, %cst_179 {dimension_numbers = #tpu.dot_dimension_numbers<[1], [0], [0], [1], [0, 0, 1, 1], [], []>} : vector<73x64xbf16>, vector<64x32xbf16>, vector<73x32xf32> -> vector<73x32xf32>
    %248 = arith.addf %243, %247 : vector<73x32xf32>
    %c0_180 = arith.constant 0 : index
    %c0_181 = arith.constant 0 : index
    %249 = vector.load %arg10[%c0_180, %c0_181] : memref<1x32xf32, #tpu.memory_space<vmem>>, vector<1x32xf32>
    %250 = vector.broadcast %249 : vector<1x32xf32> to vector<73x32xf32>
    %251 = arith.addf %248, %250 : vector<73x32xf32>
    %cst_182 = arith.constant 0.000000e+00 : f32
    %252 = vector.broadcast %cst_182 : f32 to vector<73x32xf32>
    %253 = arith.maximumf %251, %252 : vector<73x32xf32>
    %254 = arith.truncf %253 : vector<73x32xf32> to vector<73x32xbf16>
    %c0_183 = arith.constant 0 : index
    %c0_184 = arith.constant 0 : index
    %c0_185 = arith.constant 0 : index
    %255 = vector.load %arg11[%c0_183, %c0_184, %c0_185] : memref<1x73x32xbf16, #tpu.memory_space<vmem>>, vector<1x73x32xbf16>
    %256 = vector.shape_cast %255 : vector<1x73x32xbf16> to vector<73x32xbf16>
    %257 = vector.shape_cast %254 : vector<73x32xbf16> to vector<1x73x32xbf16>
    tpu.vector_store %arg11[%c0_183, %c0_184, %c0_185], %257 {strides = array<i32>} : memref<1x73x32xbf16, #tpu.memory_space<vmem>>, vector<1x73x32xbf16>,
    return
  }
  func.func @transform_0(%arg0: i32) -> (i32, i32, i32) {
    %c0_i32 = arith.constant 0 : i32
    %c0_i32_0 = arith.constant 0 : i32
    %c0_i32_1 = arith.constant 0 : i32
    return %arg0, %c0_i32, %c0_i32_0 : i32, i32, i32
  }
  func.func @transform_1(%arg0: i32) -> (i32, i32, i32) {
    %c0_i32 = arith.constant 0 : i32
    %c0_i32_0 = arith.constant 0 : i32
    %c0_i32_1 = arith.constant 0 : i32
    return %arg0, %c0_i32, %c0_i32_0 : i32, i32, i32
  }
  func.func @transform_2(%arg0: i32) -> (i32, i32, i32) {
    %c0_i32 = arith.constant 0 : i32
    %c0_i32_0 = arith.constant 0 : i32
    %c0_i32_1 = arith.constant 0 : i32
    return %arg0, %c0_i32, %c0_i32_0 : i32, i32, i32
  }
  func.func @transform_3(%arg0: i32) -> (i32, i32, i32) {
    %c0_i32 = arith.constant 0 : i32
    %c0_i32_0 = arith.constant 0 : i32
    %c0_i32_1 = arith.constant 0 : i32
    return %arg0, %c0_i32, %c0_i32_0 : i32, i32, i32
  }
  func.func @transform_4(%arg0: i32) -> (i32, i32, i32) {
    %c0_i32 = arith.constant 0 : i32
    %c0_i32_0 = arith.constant 0 : i32
    %c0_i32_1 = arith.constant 0 : i32
    %c0_i32_2 = arith.constant 0 : i32
    return %c0_i32, %c0_i32_0, %c0_i32_1 : i32, i32, i32
  }
  func.func @transform_5(%arg0: i32) -> (i32, i32) {
    %c0_i32 = arith.constant 0 : i32
    %c0_i32_0 = arith.constant 0 : i32
    %c0_i32_1 = arith.constant 0 : i32
    return %c0_i32, %c0_i32_0 : i32, i32
  }
  func.func @transform_6(%arg0: i32) -> (i32, i32, i32) {
    %c0_i32 = arith.constant 0 : i32
    %c0_i32_0 = arith.constant 0 : i32
    %c0_i32_1 = arith.constant 0 : i32
    %c0_i32_2 = arith.constant 0 : i32
    return %c0_i32, %c0_i32_0, %c0_i32_1 : i32, i32, i32
  }
  func.func @transform_7(%arg0: i32) -> (i32, i32) {
    %c0_i32 = arith.constant 0 : i32
    %c0_i32_0 = arith.constant 0 : i32
    %c0_i32_1 = arith.constant 0 : i32
    return %c0_i32, %c0_i32_0 : i32, i32
  }
  func.func @transform_8(%arg0: i32) -> (i32, i32, i32) {
    %c0_i32 = arith.constant 0 : i32
    %c0_i32_0 = arith.constant 0 : i32
    %c0_i32_1 = arith.constant 0 : i32
    %c0_i32_2 = arith.constant 0 : i32
    return %c0_i32, %c0_i32_0, %c0_i32_1 : i32, i32, i32
  }
  func.func @transform_9(%arg0: i32) -> (i32, i32) {
    %c0_i32 = arith.constant 0 : i32
    %c0_i32_0 = arith.constant 0 : i32
    %c0_i32_1 = arith.constant 0 : i32
    return %c0_i32, %c0_i32_0 : i32, i32
  }
  func.func @transform_10(%arg0: i32) -> (i32, i32, i32) {
    %c0_i32 = arith.constant 0 : i32
    %c0_i32_0 = arith.constant 0 : i32
    %c0_i32_1 = arith.constant 0 : i32
    return %arg0, %c0_i32, %c0_i32_0 : i32, i32, i32
  }
}

module attributes {stable_mosaic.version = 11 : i64} {
  func.func @fc_heads_kernel(%arg0: i32, %arg1: memref<2x1568xbf16, #tpu.memory_space<vmem>>, %arg2: memref<1568x512xbf16, #tpu.memory_space<vmem>>, %arg3: memref<1x512xf32, #tpu.memory_space<vmem>>, %arg4: memref<512x128xbf16, #tpu.memory_space<vmem>>, %arg5: memref<1x128xf32, #tpu.memory_space<vmem>>, %arg6: memref<2x128xf32, #tpu.memory_space<vmem>>) attributes {dimension_semantics = [#tpu.dimension_semantics<parallel>], iteration_bounds = array<i64: 1>, scalar_prefetch = 0 : i64, scratch_operands = 0 : i64, tpu.core_type = #tpu.core_type<tc>, window_params = [{transform_indices = @transform_0, window_bounds = array<i64: 2, 1568>}, {pipeline_mode = #tpu.pipeline_mode<synchronous>, transform_indices = @transform_1, window_bounds = array<i64: 1568, 512>}, {pipeline_mode = #tpu.pipeline_mode<synchronous>, transform_indices = @transform_2, window_bounds = array<i64: 1, 512>}, {pipeline_mode = #tpu.pipeline_mode<synchronous>, transform_indices = @transform_3, window_bounds = array<i64: 512, 128>}, {pipeline_mode = #tpu.pipeline_mode<synchronous>, transform_indices = @transform_4, window_bounds = array<i64: 1, 128>}, {transform_indices = @transform_5, window_bounds = array<i64: 2, 128>}]} {
    %c0 = arith.constant 0 : index
    %c0_0 = arith.constant 0 : index
    %0 = vector.load %arg1[%c0, %c0_0] : memref<2x1568xbf16, #tpu.memory_space<vmem>>, vector<2x1568xbf16>
    %c0_1 = arith.constant 0 : index
    %c0_2 = arith.constant 0 : index
    %1 = vector.load %arg2[%c0_1, %c0_2] : memref<1568x512xbf16, #tpu.memory_space<vmem>>, vector<1568x512xbf16>
    %cst = arith.constant dense<0.000000e+00> : vector<2x512xf32>
    %2 = tpu.matmul %0, %1, %cst {dimension_numbers = #tpu.dot_dimension_numbers<[1], [0], [0], [1], [0, 0, 1, 1], [], []>} : vector<2x1568xbf16>, vector<1568x512xbf16>, vector<2x512xf32> -> vector<2x512xf32>
    %c0_3 = arith.constant 0 : index
    %c0_4 = arith.constant 0 : index
    %3 = vector.load %arg3[%c0_3, %c0_4] : memref<1x512xf32, #tpu.memory_space<vmem>>, vector<1x512xf32>
    %4 = vector.broadcast %3 : vector<1x512xf32> to vector<2x512xf32>
    %5 = arith.addf %2, %4 : vector<2x512xf32>
    %cst_5 = arith.constant 0.000000e+00 : f32
    %6 = vector.broadcast %cst_5 : f32 to vector<2x512xf32>
    %7 = arith.maximumf %5, %6 : vector<2x512xf32>
    %8 = arith.truncf %7 : vector<2x512xf32> to vector<2x512xbf16>
    %c0_6 = arith.constant 0 : index
    %c0_7 = arith.constant 0 : index
    %9 = vector.load %arg4[%c0_6, %c0_7] : memref<512x128xbf16, #tpu.memory_space<vmem>>, vector<512x128xbf16>
    %cst_8 = arith.constant dense<0.000000e+00> : vector<2x128xf32>
    %10 = tpu.matmul %8, %9, %cst_8 {dimension_numbers = #tpu.dot_dimension_numbers<[1], [0], [0], [1], [0, 0, 1, 1], [], []>} : vector<2x512xbf16>, vector<512x128xbf16>, vector<2x128xf32> -> vector<2x128xf32>
    %c0_9 = arith.constant 0 : index
    %c0_10 = arith.constant 0 : index
    %11 = vector.load %arg5[%c0_9, %c0_10] : memref<1x128xf32, #tpu.memory_space<vmem>>, vector<1x128xf32>
    %12 = vector.broadcast %11 : vector<1x128xf32> to vector<2x128xf32>
    %13 = arith.addf %10, %12 : vector<2x128xf32>
    %c0_11 = arith.constant 0 : index
    %c0_12 = arith.constant 0 : index
    %14 = vector.load %arg6[%c0_11, %c0_12] : memref<2x128xf32, #tpu.memory_space<vmem>>, vector<2x128xf32>
    tpu.vector_store %arg6[%c0_11, %c0_12], %13 {strides = array<i32>} : memref<2x128xf32, #tpu.memory_space<vmem>>, vector<2x128xf32>,
    return
  }
  func.func @transform_0(%arg0: i32) -> (i32, i32) {
    %c0_i32 = arith.constant 0 : i32
    %c0_i32_0 = arith.constant 0 : i32
    return %arg0, %c0_i32 : i32, i32
  }
  func.func @transform_1(%arg0: i32) -> (i32, i32) {
    %c0_i32 = arith.constant 0 : i32
    %c0_i32_0 = arith.constant 0 : i32
    %c0_i32_1 = arith.constant 0 : i32
    return %c0_i32, %c0_i32_0 : i32, i32
  }
  func.func @transform_2(%arg0: i32) -> (i32, i32) {
    %c0_i32 = arith.constant 0 : i32
    %c0_i32_0 = arith.constant 0 : i32
    %c0_i32_1 = arith.constant 0 : i32
    return %c0_i32, %c0_i32_0 : i32, i32
  }
  func.func @transform_3(%arg0: i32) -> (i32, i32) {
    %c0_i32 = arith.constant 0 : i32
    %c0_i32_0 = arith.constant 0 : i32
    %c0_i32_1 = arith.constant 0 : i32
    return %c0_i32, %c0_i32_0 : i32, i32
  }
  func.func @transform_4(%arg0: i32) -> (i32, i32) {
    %c0_i32 = arith.constant 0 : i32
    %c0_i32_0 = arith.constant 0 : i32
    %c0_i32_1 = arith.constant 0 : i32
    return %c0_i32, %c0_i32_0 : i32, i32
  }
  func.func @transform_5(%arg0: i32) -> (i32, i32) {
    %c0_i32 = arith.constant 0 : i32
    %c0_i32_0 = arith.constant 0 : i32
    return %arg0, %c0_i32 : i32, i32
  }
}

</mosaic_0001>

<bundles_post_ra>
// kernel: cnn_forward.3
= control target key start
LH: loop header
LB: loop body
LE: loop exit
PB: predicated region body
PF: predicated region fallthrough
CT: control target
= control target key end

     0   :  { %v417_v36 = vlaneseq  ;;  %v4580_v37 = vmov 1966171168   ;;  %vm2499_vm0 = vcmask 261120   ;;  %s5969_s1 = inlined_call_operand.vmem [shape: bf16[1568,512], index: 1, kind: input, shape index: {}]   ;;  %s5970_s0 = inlined_call_operand.vmem [shape: bf16[2,1568], index: 0, kind: input, shape index: {}]   ;;  %s5971_s3 = inlined_call_operand.vmem [shape: bf16[512,128], index: 3, kind: input, shape index: {}]   ;;  %s5972_s2 = inlined_call_operand.vmem [shape: f32[1,512], index: 2, kind: input, shape index: {}]   ;;  %s5973_s4 = inlined_call_operand.vmem [shape: f32[1,128], index: 4, kind: input, shape index: {}]   ;;  %s5974_s5 = inlined_call_operand.vmem [shape: f32[2,128], index: 5, kind: output, shape index: {}]  }
   0x1   :  { %v3958_v0 = vld [vmem:[%s5969_s1 + $0x4] ss:$16 sps:$4 sm:$0xff]   ;;  %v3960_v1 = vld [vmem:[%s5969_s1 + $0xc] ss:$16 sps:$4 sm:$0xff]   ;;  %v3962_v2 = vld [vmem:[%s5969_s1] ss:$16 sps:$4 sm:$0xff]   ;;  %v441_v38 = vunpack.c.l.s4 %v4580_v37 }
   0x2   :  { %2503 = vmatprep.subr.bf16.mxu0 %v3958_v0  ;;  %v3963_v3 = vld [vmem:[%s5969_s1 + $0x8] ss:$16 sps:$4 sm:$0xff]   ;;  %2790 = vmatprep.subr.bf16.mxu1 %v3960_v1  ;;  %v3964_v4 = vld [vmem:[%s5969_s1 + $0x24] ss:$16 sps:$4 sm:$0xff]   ;;  %v3966_v5 = vld [vmem:[%s5969_s1 + $0x2c] ss:$16 sps:$4 sm:$0xff]  }
   0x3   :  { %2504 = vmatpush1.bf16.msra.mxu0 %v3962_v2  ;;  %2791 = vmatpush1.bf16.msra.mxu1 %v3963_v3  ;;  %v3968_v6 = vld [vmem:[%s5969_s1 + $0x20] ss:$16 sps:$4 sm:$0xff]   ;;  %v3969_v7 = vld [vmem:[%s5969_s1 + $0x28] ss:$16 sps:$4 sm:$0xff]   ;;  %v3970_v8 = vld [vmem:[%s5969_s1 + $0x44] ss:$16 sps:$4 sm:$0xff]   ;;  %v442_v43 = vunpack.c.0.s8 %v441_v38 }
   0x4   :  { %2505 = vmatprep.subr.bf16.mxu0 %v3964_v4  ;;  %2792 = vmatprep.subr.bf16.mxu1 %v3966_v5  ;;  %v3972_v9 = vld [vmem:[%s5969_s1 + $0x4c] ss:$16 sps:$4 sm:$0xff]   ;;  %v3974_v10 = vld [vmem:[%s5969_s1 + $0x40] ss:$16 sps:$4 sm:$0xff]   ;;  %v3975_v11 = vld [vmem:[%s5969_s1 + $0x48] ss:$16 sps:$4 sm:$0xff]  }
   0x5   :  { %v3976_v12 = vld [vmem:[%s5969_s1 + $0x64] ss:$16 sps:$4 sm:$0xff]   ;;  %v3978_v13 = vld [vmem:[%s5969_s1 + $0x6c] ss:$16 sps:$4 sm:$0xff]   ;;  %v3980_v14 = vld [vmem:[%s5969_s1 + $0x60] ss:$16 sps:$4 sm:$0xff]  }
   0x6   :  { %v3981_v15 = vld [vmem:[%s5969_s1 + $0x68] ss:$16 sps:$4 sm:$0xff]   ;;  %v3982_v16 = vld [vmem:[%s5969_s1 + $0x84] ss:$16 sps:$4 sm:$0xff]   ;;  %v3984_v17 = vld [vmem:[%s5969_s1 + $0x8c] ss:$16 sps:$4 sm:$0xff]  }
   0x7   :  { %2506 = vmatpush1.bf16.msra.mxu0 %v3968_v6  ;;  %2793 = vmatpush1.bf16.msra.mxu1 %v3969_v7  ;;  %v3986_v18 = vld [vmem:[%s5969_s1 + $0x80] ss:$16 sps:$4 sm:$0xff]   ;;  %v3987_v19 = vld [vmem:[%s5969_s1 + $0x88] ss:$16 sps:$4 sm:$0xff]   ;;  %v3988_v20 = vld [vmem:[%s5969_s1 + $0xa4] ss:$16 sps:$4 sm:$0xff]  }
   0x8   :  { %2507 = vmatprep.subr.bf16.mxu0 %v3970_v8  ;;  %2794 = vmatprep.subr.bf16.mxu1 %v3972_v9  ;;  %v3990_v21 = vld [vmem:[%s5969_s1 + $0xac] ss:$16 sps:$4 sm:$0xff]   ;;  %v3992_v22 = vld [vmem:[%s5969_s1 + $0xa0] ss:$16 sps:$4 sm:$0xff]   ;;  %v3993_v23 = vld [vmem:[%s5969_s1 + $0xa8] ss:$16 sps:$4 sm:$0xff]  }
   0x9   :  { %v3994_v24 = vld [vmem:[%s5969_s1 + $0xc4] ss:$16 sps:$4 sm:$0xff]   ;;  %v3996_v25 = vld [vmem:[%s5969_s1 + $0xcc] ss:$16 sps:$4 sm:$0xff]   ;;  %v3998_v26 = vld [vmem:[%s5969_s1 + $0xc0] ss:$16 sps:$4 sm:$0xff]  }
   0xa   :  { %v3999_v27 = vld [vmem:[%s5969_s1 + $0xc8] ss:$16 sps:$4 sm:$0xff]   ;;  %v4000_v28 = vld [vmem:[%s5969_s1 + $0xe4] ss:$16 sps:$4 sm:$0xff]   ;;  %v4002_v29 = vld [vmem:[%s5969_s1 + $0xec] ss:$16 sps:$4 sm:$0xff]  }
   0xb   :  { %2508 = vmatpush1.bf16.msra.mxu0 %v3974_v10  ;;  %2795 = vmatpush1.bf16.msra.mxu1 %v3975_v11  ;;  %v4004_v30 = vld [vmem:[%s5969_s1 + $0xe0] ss:$16 sps:$4 sm:$0xff]   ;;  %v4005_v31 = vld [vmem:[%s5969_s1 + $0xe8] ss:$16 sps:$4 sm:$0xff]   ;;  %v4006_v32 = vld [vmem:[%s5969_s1 + $0x104] ss:$16 sps:$4 sm:$0xff]  }
   0xc   :  { %2509 = vmatprep.subr.bf16.mxu0 %v3976_v12  ;;  %2796 = vmatprep.subr.bf16.mxu1 %v3978_v13  ;;  %v4008_v33 = vld [vmem:[%s5969_s1 + $0x10c] ss:$16 sps:$4 sm:$0xff]   ;;  %v4010_v34 = vld [vmem:[%s5969_s1 + $0x100] ss:$16 sps:$4 sm:$0xff]   ;;  %v4011_v35 = vld [vmem:[%s5969_s1 + $0x108] ss:$16 sps:$4 sm:$0xff]  }
   0xd   :  { %v4012_v39 = vld [vmem:[%s5969_s1 + $0x124] ss:$16 sps:$4 sm:$0xff]   ;;  %v4014_v40 = vld [vmem:[%s5969_s1 + $0x12c] ss:$16 sps:$4 sm:$0xff]   ;;  %v4016_v41 = vld [vmem:[%s5969_s1 + $0x120] ss:$16 sps:$4 sm:$0xff]  }
   0xe   :  { %v4729_v42 = vshrl.u32 %v417_v36, 7  ;;  %v4017_v44 = vld [vmem:[%s5969_s1 + $0x128] ss:$16 sps:$4 sm:$0xff]   ;;  %v4018_v45 = vld [vmem:[%s5969_s1 + $0x144] ss:$16 sps:$4 sm:$0xff]  }
   0xf   :  { %2510 = vmatpush1.bf16.msra.mxu0 %v3980_v14  ;;  %2797 = vmatpush1.bf16.msra.mxu1 %v3981_v15  ;;  %v4020_v46 = vld [vmem:[%s5969_s1 + $0x14c] ss:$16 sps:$4 sm:$0xff]   ;;  %v4022_v47 = vld [vmem:[%s5969_s1 + $0x140] ss:$16 sps:$4 sm:$0xff]   ;;  %v4023_v48 = vld [vmem:[%s5969_s1 + $0x148] ss:$16 sps:$4 sm:$0xff]  }
  0x10   :  { %2511 = vmatprep.subr.bf16.mxu0 %v3982_v16  ;;  %2798 = vmatprep.subr.bf16.mxu1 %v3984_v17  ;;  %v4747_v49 = vsub.s32 %v442_v43, %v4729_v42  ;;  %v4024_v50 = vld [vmem:[%s5969_s1 + $0x164] ss:$16 sps:$4 sm:$0xff]   ;;  %v4026_v51 = vld [vmem:[%s5969_s1 + $0x16c] ss:$16 sps:$4 sm:$0xff]   ;;  %v4028_v53 = vld [vmem:[%s5969_s1 + $0x160] ss:$16 sps:$4 sm:$0xff]  }
  0x11   :  { %v4758_v52 = vld [vmem:[%s5970_s0] sm:$0xff]  ;;  %v4029_v55 = vld [vmem:[%s5969_s1 + $0x168] ss:$16 sps:$4 sm:$0xff]   ;;  %v4032_v57 = vld [vmem:[%s5969_s1 + $0x18c] ss:$16 sps:$4 sm:$0xff]  }
  0x12   :  { %v446_v54 = vrot.slane %v4758_v52, %v4747_v49  ;;  %v4030_v56 = vld [vmem:[%s5969_s1 + $0x184] ss:$16 sps:$4 sm:$0xff]   ;;  %v4034_v59 = vld [vmem:[%s5969_s1 + $0x180] ss:$16 sps:$4 sm:$0xff]   ;;  %v4035_v61 = vld [vmem:[%s5969_s1 + $0x188] ss:$16 sps:$4 sm:$0xff]  }
  0x13   :  { %2512 = vmatpush1.bf16.msra.mxu0 %v3986_v18  ;;  %2799 = vmatpush1.bf16.msra.mxu1 %v3987_v19  ;;  %v4036_v62 = vld [vmem:[%s5969_s1 + $0x1a4] ss:$16 sps:$4 sm:$0xff]   ;;  %v4038_v63 = vld [vmem:[%s5969_s1 + $0x1ac] ss:$16 sps:$4 sm:$0xff]   ;;  %v4040_v0 = vld [vmem:[%s5969_s1 + $0x1a0] ss:$16 sps:$4 sm:$0xff]  }
  0x14   :  { %2513 = vmatprep.subr.bf16.mxu0 %v3988_v20  ;;  %2800 = vmatprep.subr.bf16.mxu1 %v3990_v21  ;;  %v454_v58 = vcombine.high %v446_v54, %v446_v54  ;;  %v4041_v1 = vld [vmem:[%s5969_s1 + $0x1a8] ss:$16 sps:$4 sm:$0xff]   ;;  %v4042_v2 = vld [vmem:[%s5969_s1 + $0x1c4] ss:$16 sps:$4 sm:$0xff]   ;;  %v4044_v3 = vld [vmem:[%s5969_s1 + $0x1cc] ss:$16 sps:$4 sm:$0xff]   ;;  %v4827_v13 = vrot.slane %v446_v54, %v4747_v49 }
  0x15   :  { %v4046_v4 = vld [vmem:[%s5969_s1 + $0x1c0] ss:$16 sps:$4 sm:$0xff]   ;;  %v4047_v5 = vld [vmem:[%s5969_s1 + $0x1c8] ss:$16 sps:$4 sm:$0xff]   ;;  %v4048_v6 = vld [vmem:[%s5969_s1 + $0x1e4] ss:$16 sps:$4 sm:$0xff]  }
  0x16   :  { %v476_v60 = vrot.slane %v454_v58, %v4747_v49  ;;  %v4050_v7 = vld [vmem:[%s5969_s1 + $0x1ec] ss:$16 sps:$4 sm:$0xff]   ;;  %v4052_v8 = vld [vmem:[%s5969_s1 + $0x1e0] ss:$16 sps:$4 sm:$0xff]   ;;  %v4053_v9 = vld [vmem:[%s5969_s1 + $0x1e8] ss:$16 sps:$4 sm:$0xff]  }
  0x17   :  { %2514 = vmatpush1.bf16.msra.mxu0 %v3992_v22  ;;  %2801 = vmatpush1.bf16.msra.mxu1 %v3993_v23  ;;  %v4056_v10 = vld [vmem:[%s5969_s1 + $0x204] ss:$16 sps:$4 sm:$0xff]   ;;  %v4059_v11 = vld [vmem:[%s5969_s1 + $0x20c] ss:$16 sps:$4 sm:$0xff]   ;;  %v4054_v12 = vld [vmem:[%s5969_s1 + $0x200] ss:$16 sps:$4 sm:$0xff]  }
  0x18   :  { %2515 = vmatprep.subr.bf16.mxu0 %v3994_v24  ;;  %2802 = vmatprep.subr.bf16.mxu1 %v3996_v25  ;;  %v4057_v14 = vld [vmem:[%s5969_s1 + $0x208] ss:$16 sps:$4 sm:$0xff]   ;;  %v4062_v15 = vld [vmem:[%s5969_s1 + $0x224] ss:$16 sps:$4 sm:$0xff]   ;;  %v4065_v16 = vld [vmem:[%s5969_s1 + $0x22c] ss:$16 sps:$4 sm:$0xff]   ;;  %v486_v17 = vcombine.high %v476_v60, %v476_v60 }
  0x19   :  { %2535 = vmatprep.mubr.bf16.mxu0 %v476_v60  ;;  %2822 = vmatprep.mubr.bf16.mxu1 %v476_v60  ;;  %v4060_v18 = vld [vmem:[%s5969_s1 + $0x220] ss:$16 sps:$4 sm:$0xff]   ;;  %v4063_v19 = vld [vmem:[%s5969_s1 + $0x228] ss:$16 sps:$4 sm:$0xff]   ;;  %v4068_v20 = vld [vmem:[%s5969_s1 + $0x244] ss:$16 sps:$4 sm:$0xff]  }
  0x1a   :  { %v4071_v21 = vld [vmem:[%s5969_s1 + $0x24c] ss:$16 sps:$4 sm:$0xff]   ;;  %v4066_v22 = vld [vmem:[%s5969_s1 + $0x240] ss:$16 sps:$4 sm:$0xff]   ;;  %v4069_v23 = vld [vmem:[%s5969_s1 + $0x248] ss:$16 sps:$4 sm:$0xff]  }
  0x1b   :  { %2516 = vmatpush1.bf16.msra.mxu0 %v3998_v26  ;;  %2803 = vmatpush1.bf16.msra.mxu1 %v3999_v27  ;;  %v4074_v24 = vld [vmem:[%s5969_s1 + $0x264] ss:$16 sps:$4 sm:$0xff]   ;;  %v4077_v25 = vld [vmem:[%s5969_s1 + $0x26c] ss:$16 sps:$4 sm:$0xff]   ;;  %v4072_v26 = vld [vmem:[%s5969_s1 + $0x260] ss:$16 sps:$4 sm:$0xff]  }
  0x1c   :  { %2517 = vmatprep.subr.bf16.mxu0 %v4000_v28  ;;  %2804 = vmatprep.subr.bf16.mxu1 %v4002_v29  ;;  %v4075_v27 = vld [vmem:[%s5969_s1 + $0x268] ss:$16 sps:$4 sm:$0xff]   ;;  %v4080_v28 = vld [vmem:[%s5969_s1 + $0x284] ss:$16 sps:$4 sm:$0xff]   ;;  %v4083_v29 = vld [vmem:[%s5969_s1 + $0x28c] ss:$16 sps:$4 sm:$0xff]  }
  0x1d   :  { %v4092_v36 = vld [vmem:[%s5969_s1 + $0x2c4] ss:$16 sps:$4 sm:$0xff]   ;;  %v4095_v37 = vld [vmem:[%s5969_s1 + $0x2cc] ss:$16 sps:$4 sm:$0xff]   ;;  %v4090_v38 = vld [vmem:[%s5969_s1 + $0x2c0] ss:$16 sps:$4 sm:$0xff]  }
  0x1e   :  { %v4096_v43 = vld [vmem:[%s5969_s1 + $0x2e0] ss:$16 sps:$4 sm:$0xff]   ;;  %v4111_v54 = vld [vmem:[%s5969_s1 + $0x328] ss:$16 sps:$4 sm:$0xff]   ;;  %v4125_v60 = vld [vmem:[%s5969_s1 + $0x36c] ss:$16 sps:$4 sm:$0xff]  }
  0x1f   :  { %2518 = vmatpush1.bf16.msra.mxu0 %v4004_v30  ;;  %2805 = vmatpush1.bf16.msra.mxu1 %v4005_v31  ;;  %v4078_v30 = vld [vmem:[%s5969_s1 + $0x280] ss:$16 sps:$4 sm:$0xff]   ;;  %v4081_v31 = vld [vmem:[%s5969_s1 + $0x288] ss:$16 sps:$4 sm:$0xff]  }
  0x20   :  { %2519 = vmatprep.subr.bf16.mxu0 %v4006_v32  ;;  %2806 = vmatprep.subr.bf16.mxu1 %v4008_v33  ;;  %v4086_v32 = vld [vmem:[%s5969_s1 + $0x2a4] ss:$16 sps:$4 sm:$0xff]   ;;  %v4089_v33 = vld [vmem:[%s5969_s1 + $0x2ac] ss:$16 sps:$4 sm:$0xff]   ;;  %v4117_v58 = vld [vmem:[%s5969_s1 + $0x348] ss:$16 sps:$4 sm:$0xff]  }
  0x23   :  { %2520 = vmatpush1.bf16.msra.mxu0 %v4010_v34  ;;  %2807 = vmatpush1.bf16.msra.mxu1 %v4011_v35  ;;  %v4084_v34 = vld [vmem:[%s5969_s1 + $0x2a0] ss:$16 sps:$4 sm:$0xff]   ;;  %v4087_v35 = vld [vmem:[%s5969_s1 + $0x2a8] ss:$16 sps:$4 sm:$0xff]  }
  0x24   :  { %2521 = vmatprep.subr.bf16.mxu0 %v4012_v39  ;;  %2808 = vmatprep.subr.bf16.mxu1 %v4014_v40  ;;  %v4093_v39 = vld [vmem:[%s5969_s1 + $0x2c8] ss:$16 sps:$4 sm:$0xff]   ;;  %v4098_v40 = vld [vmem:[%s5969_s1 + $0x2e4] ss:$16 sps:$4 sm:$0xff]  }
  0x27   :  { %2522 = vmatpush1.bf16.msra.mxu0 %v4016_v41  ;;  %2809 = vmatpush1.bf16.msra.mxu1 %v4017_v44  ;;  %v4101_v41 = vld [vmem:[%s5969_s1 + $0x2ec] ss:$16 sps:$4 sm:$0xff]   ;;  %v4099_v44 = vld [vmem:[%s5969_s1 + $0x2e8] ss:$16 sps:$4 sm:$0xff]  }
  0x28   :  { %2523 = vmatprep.subr.bf16.mxu0 %v4018_v45  ;;  %2810 = vmatprep.subr.bf16.mxu1 %v4020_v46  ;;  %v4104_v45 = vld [vmem:[%s5969_s1 + $0x304] ss:$16 sps:$4 sm:$0xff]   ;;  %v4107_v46 = vld [vmem:[%s5969_s1 + $0x30c] ss:$16 sps:$4 sm:$0xff]  }
  0x2b   :  { %2524 = vmatpush1.bf16.msra.mxu0 %v4022_v47  ;;  %2811 = vmatpush1.bf16.msra.mxu1 %v4023_v48  ;;  %v4102_v47 = vld [vmem:[%s5969_s1 + $0x300] ss:$16 sps:$4 sm:$0xff]   ;;  %v4105_v48 = vld [vmem:[%s5969_s1 + $0x308] ss:$16 sps:$4 sm:$0xff]  }
  0x2c   :  { %2525 = vmatprep.subr.bf16.mxu0 %v4024_v50  ;;  %2812 = vmatprep.subr.bf16.mxu1 %v4026_v51  ;;  %v4110_v50 = vld [vmem:[%s5969_s1 + $0x324] ss:$16 sps:$4 sm:$0xff]   ;;  %v4113_v51 = vld [vmem:[%s5969_s1 + $0x32c] ss:$16 sps:$4 sm:$0xff]  }
  0x2f   :  { %2526 = vmatpush1.bf16.msra.mxu0 %v4028_v53  ;;  %2813 = vmatpush1.bf16.msra.mxu1 %v4029_v55  ;;  %v4108_v53 = vld [vmem:[%s5969_s1 + $0x320] ss:$16 sps:$4 sm:$0xff]   ;;  %v4116_v55 = vld [vmem:[%s5969_s1 + $0x344] ss:$16 sps:$4 sm:$0xff]  }
  0x30   :  { %2527 = vmatprep.subr.bf16.mxu0 %v4030_v56  ;;  %2814 = vmatprep.subr.bf16.mxu1 %v4032_v57  ;;  %v4119_v56 = vld [vmem:[%s5969_s1 + $0x34c] ss:$16 sps:$4 sm:$0xff]   ;;  %v4114_v57 = vld [vmem:[%s5969_s1 + $0x340] ss:$16 sps:$4 sm:$0xff]  }
  0x33   :  { %2528 = vmatpush1.bf16.msra.mxu0 %v4034_v59  ;;  %2815 = vmatpush1.bf16.msra.mxu1 %v4035_v61  ;;  %v4122_v59 = vld [vmem:[%s5969_s1 + $0x364] ss:$16 sps:$4 sm:$0xff]   ;;  %v4120_v61 = vld [vmem:[%s5969_s1 + $0x360] ss:$16 sps:$4 sm:$0xff]  }
  0x34   :  { %2529 = vmatprep.subr.bf16.mxu0 %v4036_v62  ;;  %2816 = vmatprep.subr.bf16.mxu1 %v4038_v63  ;;  %v4123_v62 = vld [vmem:[%s5969_s1 + $0x368] ss:$16 sps:$4 sm:$0xff]   ;;  %v4128_v63 = vld [vmem:[%s5969_s1 + $0x384] ss:$16 sps:$4 sm:$0xff]  }
  0x37   :  { %2530 = vmatpush1.bf16.msra.mxu0 %v4040_v0  ;;  %2817 = vmatpush1.bf16.msra.mxu1 %v4041_v1  ;;  %v4131_v0 = vld [vmem:[%s5969_s1 + $0x38c] ss:$16 sps:$4 sm:$0xff]   ;;  %v4126_v1 = vld [vmem:[%s5969_s1 + $0x380] ss:$16 sps:$4 sm:$0xff]  }
  0x38   :  { %2531 = vmatprep.subr.bf16.mxu0 %v4042_v2  ;;  %2818 = vmatprep.subr.bf16.mxu1 %v4044_v3  ;;  %v4129_v2 = vld [vmem:[%s5969_s1 + $0x388] ss:$16 sps:$4 sm:$0xff]   ;;  %v4134_v3 = vld [vmem:[%s5969_s1 + $0x3a4] ss:$16 sps:$4 sm:$0xff]  }
  0x3b   :  { %2532 = vmatpush1.bf16.msra.mxu0 %v4046_v4  ;;  %2819 = vmatpush1.bf16.msra.mxu1 %v4047_v5  ;;  %v4137_v4 = vld [vmem:[%s5969_s1 + $0x3ac] ss:$16 sps:$4 sm:$0xff]   ;;  %v4132_v5 = vld [vmem:[%s5969_s1 + $0x3a0] ss:$16 sps:$4 sm:$0xff]  }
  0x3c   :  { %2533 = vmatprep.subr.bf16.mxu0 %v4048_v6  ;;  %2820 = vmatprep.subr.bf16.mxu1 %v4050_v7  ;;  %v4135_v6 = vld [vmem:[%s5969_s1 + $0x3a8] ss:$16 sps:$4 sm:$0xff]   ;;  %v4140_v7 = vld [vmem:[%s5969_s1 + $0x3c4] ss:$16 sps:$4 sm:$0xff]  }
  0x3f   :  { %2534 = vmatpush1.bf16.msra.mxu0 %v4052_v8  ;;  %2821 = vmatpush1.bf16.msra.mxu1 %v4053_v9  ;;  %v4143_v8 = vld [vmem:[%s5969_s1 + $0x3cc] ss:$16 sps:$4 sm:$0xff]   ;;  %v439_v9 = vcombine.high %v4758_v52, %v4758_v52 }
  0x40   :  { %2544 = vmatprep.subr.bf16.mxu0 %v4056_v10  ;;  %2831 = vmatprep.subr.bf16.mxu1 %v4059_v11  ;;  %v4138_v10 = vld [vmem:[%s5969_s1 + $0x3c0] ss:$16 sps:$4 sm:$0xff]   ;;  %v4141_v11 = vld [vmem:[%s5969_s1 + $0x3c8] ss:$16 sps:$4 sm:$0xff]   ;;  %v4149_v52 = vld [vmem:[%s5969_s1 + $0x3ec] ss:$16 sps:$4 sm:$0xff]  }
  0x42   :  { %2536 = vmatmul.mubr.bf16.vlgmr.msra.gmra.mrb[0].mxu0 %v4827_v13  ;;  %2823 = vmatmul.mubr.bf16.vlgmr.msra.gmra.mrb[0].mxu1 %v4827_v13 }
  0x43   :  { %2545 = vmatpush1.bf16.msra.mxu0 %v4054_v12  ;;  %2832 = vmatpush1.bf16.msra.mxu1 %v4057_v14  ;;  %v4146_v12 = vld [vmem:[%s5969_s1 + $0x3e4] ss:$16 sps:$4 sm:$0xff]   ;;  %v5011_v14 = vrot.slane %v439_v9, %v4747_v49  ;;  %v4225_v9 = vld [vmem:[%s5969_s1 + $0x588] ss:$16 sps:$4 sm:$0xff]  }
  0x44   :  { %2546 = vmatprep.subr.bf16.mxu0 %v4062_v15  ;;  %2833 = vmatprep.subr.bf16.mxu1 %v4065_v16  ;;  %v4144_v15 = vld [vmem:[%s5969_s1 + $0x3e0] ss:$16 sps:$4 sm:$0xff]   ;;  %v4147_v16 = vld [vmem:[%s5969_s1 + $0x3e8] ss:$16 sps:$4 sm:$0xff]  }
  0x45   :  { %2576 = vmatprep.mubr.bf16.mxu0 %v486_v17  ;;  %2863 = vmatprep.mubr.bf16.mxu1 %v486_v17  ;;  %v4152_v17 = vld [vmem:[%s5969_s1 + $0x404] ss:$16 sps:$4 sm:$0xff]  }
  0x47   :  { %2547 = vmatpush1.bf16.msra.mxu0 %v4060_v18  ;;  %2834 = vmatpush1.bf16.msra.mxu1 %v4063_v19  ;;  %v4155_v18 = vld [vmem:[%s5969_s1 + $0x40c] ss:$16 sps:$4 sm:$0xff]   ;;  %v455_v19 = vcombine.high %v5011_v14, %v5011_v14 }
  0x48   :  { %2548 = vmatprep.subr.bf16.mxu0 %v4068_v20  ;;  %2835 = vmatprep.subr.bf16.mxu1 %v4071_v21  ;;  %v4150_v20 = vld [vmem:[%s5969_s1 + $0x400] ss:$16 sps:$4 sm:$0xff]   ;;  %v484_v21 = vcombine.high %v4827_v13, %v4827_v13 }
  0x49   :  { %v4156_v13 = vld [vmem:[%s5969_s1 + $0x420] ss:$16 sps:$4 sm:$0xff]  }
  0x4b   :  { %2549 = vmatpush1.bf16.msra.mxu0 %v4066_v22  ;;  %2836 = vmatpush1.bf16.msra.mxu1 %v4069_v23  ;;  %v4153_v22 = vld [vmem:[%s5969_s1 + $0x408] ss:$16 sps:$4 sm:$0xff]   ;;  %v4158_v23 = vld [vmem:[%s5969_s1 + $0x424] ss:$16 sps:$4 sm:$0xff]  }
  0x4c   :  { %2550 = vmatprep.subr.bf16.mxu0 %v4074_v24  ;;  %2837 = vmatprep.subr.bf16.mxu1 %v4077_v25  ;;  %v4161_v24 = vld [vmem:[%s5969_s1 + $0x42c] ss:$16 sps:$4 sm:$0xff]   ;;  %v5042_v25 = vrot.slane %v455_v19, %v4747_v49  ;;  %v4242_v19 = vld [vmem:[%s5969_s1 + $0x5e4] ss:$16 sps:$4 sm:$0xff]  }
  0x4f   :  { %2551 = vmatpush1.bf16.msra.mxu0 %v4072_v26  ;;  %2838 = vmatpush1.bf16.msra.mxu1 %v4075_v27  ;;  %v4159_v26 = vld [vmem:[%s5969_s1 + $0x428] ss:$16 sps:$4 sm:$0xff]   ;;  %v4164_v27 = vld [vmem:[%s5969_s1 + $0x444] ss:$16 sps:$4 sm:$0xff]  }
  0x50   :  { %2552 = vmatprep.subr.bf16.mxu0 %v4080_v28  ;;  %2839 = vmatprep.subr.bf16.mxu1 %v4083_v29  ;;  %v4167_v28 = vld [vmem:[%s5969_s1 + $0x44c] ss:$16 sps:$4 sm:$0xff]   ;;  %v4162_v29 = vld [vmem:[%s5969_s1 + $0x440] ss:$16 sps:$4 sm:$0xff]  }
  0x53   :  { %2553 = vmatpush1.bf16.msra.mxu0 %v4078_v30  ;;  %2840 = vmatpush1.bf16.msra.mxu1 %v4081_v31  ;;  %v4165_v30 = vld [vmem:[%s5969_s1 + $0x448] ss:$16 sps:$4 sm:$0xff]   ;;  %v4170_v31 = vld [vmem:[%s5969_s1 + $0x464] ss:$16 sps:$4 sm:$0xff]  }
  0x54   :  { %2554 = vmatprep.subr.bf16.mxu0 %v4086_v32  ;;  %2841 = vmatprep.subr.bf16.mxu1 %v4089_v33  ;;  %v4173_v32 = vld [vmem:[%s5969_s1 + $0x46c] ss:$16 sps:$4 sm:$0xff]   ;;  %v4168_v33 = vld [vmem:[%s5969_s1 + $0x460] ss:$16 sps:$4 sm:$0xff]  }
  0x57   :  { %2555 = vmatpush1.bf16.msra.mxu0 %v4084_v34  ;;  %2842 = vmatpush1.bf16.msra.mxu1 %v4087_v35  ;;  %v4171_v34 = vld [vmem:[%s5969_s1 + $0x468] ss:$16 sps:$4 sm:$0xff]   ;;  %v4176_v35 = vld [vmem:[%s5969_s1 + $0x484] ss:$16 sps:$4 sm:$0xff]  }
  0x58   :  { %2556 = vmatprep.subr.bf16.mxu0 %v4092_v36  ;;  %2843 = vmatprep.subr.bf16.mxu1 %v4095_v37  ;;  %v4179_v36 = vld [vmem:[%s5969_s1 + $0x48c] ss:$16 sps:$4 sm:$0xff]   ;;  %v4174_v37 = vld [vmem:[%s5969_s1 + $0x480] ss:$16 sps:$4 sm:$0xff]  }
  0x5b   :  { %2557 = vmatpush1.bf16.msra.mxu0 %v4090_v38  ;;  %2844 = vmatpush1.bf16.msra.mxu1 %v4093_v39  ;;  %v4177_v38 = vld [vmem:[%s5969_s1 + $0x488] ss:$16 sps:$4 sm:$0xff]   ;;  %v4182_v39 = vld [vmem:[%s5969_s1 + $0x4a4] ss:$16 sps:$4 sm:$0xff]  }
  0x5c   :  { %2558 = vmatprep.subr.bf16.mxu0 %v4098_v40  ;;  %2845 = vmatprep.subr.bf16.mxu1 %v4101_v41  ;;  %v4185_v40 = vld [vmem:[%s5969_s1 + $0x4ac] ss:$16 sps:$4 sm:$0xff]   ;;  %v4180_v41 = vld [vmem:[%s5969_s1 + $0x4a0] ss:$16 sps:$4 sm:$0xff]  }
  0x5f   :  { %2559 = vmatpush1.bf16.msra.mxu0 %v4096_v43  ;;  %2846 = vmatpush1.bf16.msra.mxu1 %v4099_v44  ;;  %v4183_v43 = vld [vmem:[%s5969_s1 + $0x4a8] ss:$16 sps:$4 sm:$0xff]   ;;  %v4188_v44 = vld [vmem:[%s5969_s1 + $0x4c4] ss:$16 sps:$4 sm:$0xff]  }
  0x60   :  { %2560 = vmatprep.subr.bf16.mxu0 %v4104_v45  ;;  %2847 = vmatprep.subr.bf16.mxu1 %v4107_v46  ;;  %v4191_v45 = vld [vmem:[%s5969_s1 + $0x4cc] ss:$16 sps:$4 sm:$0xff]   ;;  %v4186_v46 = vld [vmem:[%s5969_s1 + $0x4c0] ss:$16 sps:$4 sm:$0xff]  }
  0x63   :  { %2561 = vmatpush1.bf16.msra.mxu0 %v4102_v47  ;;  %2848 = vmatpush1.bf16.msra.mxu1 %v4105_v48  ;;  %v4189_v47 = vld [vmem:[%s5969_s1 + $0x4c8] ss:$16 sps:$4 sm:$0xff]   ;;  %v4194_v48 = vld [vmem:[%s5969_s1 + $0x4e4] ss:$16 sps:$4 sm:$0xff]  }
  0x64   :  { %2562 = vmatprep.subr.bf16.mxu0 %v4110_v50  ;;  %2849 = vmatprep.subr.bf16.mxu1 %v4113_v51  ;;  %v4197_v50 = vld [vmem:[%s5969_s1 + $0x4ec] ss:$16 sps:$4 sm:$0xff]   ;;  %v4192_v51 = vld [vmem:[%s5969_s1 + $0x4e0] ss:$16 sps:$4 sm:$0xff]  }
  0x67   :  { %2563 = vmatpush1.bf16.msra.mxu0 %v4108_v53  ;;  %2850 = vmatpush1.bf16.msra.mxu1 %v4111_v54  ;;  %v4195_v53 = vld [vmem:[%s5969_s1 + $0x4e8] ss:$16 sps:$4 sm:$0xff]   ;;  %v4200_v54 = vld [vmem:[%s5969_s1 + $0x504] ss:$16 sps:$4 sm:$0xff]  }
  0x68   :  { %2564 = vmatprep.subr.bf16.mxu0 %v4116_v55  ;;  %2851 = vmatprep.subr.bf16.mxu1 %v4119_v56  ;;  %v4203_v55 = vld [vmem:[%s5969_s1 + $0x50c] ss:$16 sps:$4 sm:$0xff]   ;;  %v4198_v56 = vld [vmem:[%s5969_s1 + $0x500] ss:$16 sps:$4 sm:$0xff]  }
  0x6b   :  { %2565 = vmatpush1.bf16.msra.mxu0 %v4114_v57  ;;  %2852 = vmatpush1.bf16.msra.mxu1 %v4117_v58  ;;  %v4201_v57 = vld [vmem:[%s5969_s1 + $0x508] ss:$16 sps:$4 sm:$0xff]   ;;  %v4206_v58 = vld [vmem:[%s5969_s1 + $0x524] ss:$16 sps:$4 sm:$0xff]  }
  0x6c   :  { %2566 = vmatprep.subr.bf16.mxu0 %v4122_v59  ;;  %2853 = vmatprep.subr.bf16.mxu1 %v4125_v60  ;;  %v4209_v59 = vld [vmem:[%s5969_s1 + $0x52c] ss:$16 sps:$4 sm:$0xff]   ;;  %v4204_v60 = vld [vmem:[%s5969_s1 + $0x520] ss:$16 sps:$4 sm:$0xff]  }
  0x6f   :  { %2567 = vmatpush1.bf16.msra.mxu0 %v4120_v61  ;;  %2854 = vmatpush1.bf16.msra.mxu1 %v4123_v62  ;;  %v4207_v61 = vld [vmem:[%s5969_s1 + $0x528] ss:$16 sps:$4 sm:$0xff]   ;;  %v4212_v62 = vld [vmem:[%s5969_s1 + $0x544] ss:$16 sps:$4 sm:$0xff]  }
  0x70   :  { %2568 = vmatprep.subr.bf16.mxu0 %v4128_v63  ;;  %2855 = vmatprep.subr.bf16.mxu1 %v4131_v0  ;;  %v4215_v63 = vld [vmem:[%s5969_s1 + $0x54c] ss:$16 sps:$4 sm:$0xff]   ;;  %v4210_v0 = vld [vmem:[%s5969_s1 + $0x540] ss:$16 sps:$4 sm:$0xff]  }
  0x73   :  { %2569 = vmatpush1.bf16.msra.mxu0 %v4126_v1  ;;  %2856 = vmatpush1.bf16.msra.mxu1 %v4129_v2  ;;  %v4213_v1 = vld [vmem:[%s5969_s1 + $0x548] ss:$16 sps:$4 sm:$0xff]   ;;  %v4218_v2 = vld [vmem:[%s5969_s1 + $0x564] ss:$16 sps:$4 sm:$0xff]  }
  0x74   :  { %2570 = vmatprep.subr.bf16.mxu0 %v4134_v3  ;;  %2857 = vmatprep.subr.bf16.mxu1 %v4137_v4  ;;  %v4221_v3 = vld [vmem:[%s5969_s1 + $0x56c] ss:$16 sps:$4 sm:$0xff]   ;;  %v4216_v4 = vld [vmem:[%s5969_s1 + $0x560] ss:$16 sps:$4 sm:$0xff]  }
  0x77   :  { %2571 = vmatpush1.bf16.msra.mxu0 %v4132_v5  ;;  %2858 = vmatpush1.bf16.msra.mxu1 %v4135_v6  ;;  %v4219_v5 = vld [vmem:[%s5969_s1 + $0x568] ss:$16 sps:$4 sm:$0xff]   ;;  %v4224_v6 = vld [vmem:[%s5969_s1 + $0x584] ss:$16 sps:$4 sm:$0xff]  }
  0x78   :  { %2572 = vmatprep.subr.bf16.mxu0 %v4140_v7  ;;  %2859 = vmatprep.subr.bf16.mxu1 %v4143_v8  ;;  %v4227_v7 = vld [vmem:[%s5969_s1 + $0x58c] ss:$16 sps:$4 sm:$0xff]   ;;  %v4222_v8 = vld [vmem:[%s5969_s1 + $0x580] ss:$16 sps:$4 sm:$0xff]  }
  0x7b   :  { %2573 = vmatpush1.bf16.msra.mxu0 %v4138_v10  ;;  %2860 = vmatpush1.bf16.msra.mxu1 %v4141_v11  ;;  %v4230_v10 = vld [vmem:[%s5969_s1 + $0x5a4] ss:$16 sps:$4 sm:$0xff]   ;;  %v4233_v11 = vld [vmem:[%s5969_s1 + $0x5ac] ss:$16 sps:$4 sm:$0xff]  }
  0x7c   :  { %2574 = vmatprep.subr.bf16.mxu0 %v4146_v12  ;;  %2861 = vmatprep.subr.bf16.mxu1 %v4149_v52  ;;  %v4228_v12 = vld [vmem:[%s5969_s1 + $0x5a0] ss:$16 sps:$4 sm:$0xff]   ;;  %v4231_v52 = vld [vmem:[%s5969_s1 + $0x5a8] ss:$16 sps:$4 sm:$0xff]  }
  0x7f   :  { %2575 = vmatpush1.bf16.msra.mxu0 %v4144_v15  ;;  %2862 = vmatpush1.bf16.msra.mxu1 %v4147_v16  ;;  %v4236_v15 = vld [vmem:[%s5969_s1 + $0x5c4] ss:$16 sps:$4 sm:$0xff]   ;;  %v4239_v16 = vld [vmem:[%s5969_s1 + $0x5cc] ss:$16 sps:$4 sm:$0xff]  }
  0x80   :  { %2585 = vmatprep.subr.bf16.mxu0 %v4152_v17  ;;  %2872 = vmatprep.subr.bf16.mxu1 %v4155_v18  ;;  %v4234_v17 = vld [vmem:[%s5969_s1 + $0x5c0] ss:$16 sps:$4 sm:$0xff]   ;;  %v4237_v18 = vld [vmem:[%s5969_s1 + $0x5c8] ss:$16 sps:$4 sm:$0xff]  }
  0x82   :  { %2577 = vmatmul.mubr.bf16.vlgmr.msra.gmra.mrb[0].mxu0 %v484_v21  ;;  %2864 = vmatmul.mubr.bf16.vlgmr.msra.gmra.mrb[0].mxu1 %v484_v21  ;;  %v4240_v21 = vld [vmem:[%s5969_s1 + $0x5e0] ss:$16 sps:$4 sm:$0xff]  }
  0x83   :  { %2586 = vmatpush1.bf16.msra.mxu0 %v4150_v20  ;;  %2873 = vmatpush1.bf16.msra.mxu1 %v4153_v22  ;;  %v4245_v20 = vld [vmem:[%s5969_s1 + $0x5ec] ss:$16 sps:$4 sm:$0xff]   ;;  %v4243_v22 = vld [vmem:[%s5969_s1 + $0x5e8] ss:$16 sps:$4 sm:$0xff]  }
  0x84   :  { %2587 = vmatprep.subr.bf16.mxu0 %v4158_v23  ;;  %2874 = vmatprep.subr.bf16.mxu1 %v4161_v24  ;;  %v4249_v23 = vld [vmem:[%s5969_s1 + $0x604] ss:$16 sps:$4 sm:$0xff]   ;;  %v4252_v24 = vld [vmem:[%s5969_s1 + $0x60c] ss:$16 sps:$4 sm:$0xff]  }
  0x85   :  { %2617 = vmatprep.mubr.bf16.mxu0 %v5042_v25  ;;  %2904 = vmatprep.mubr.bf16.mxu1 %v5042_v25 }
  0x87   :  { %2588 = vmatpush1.bf16.msra.mxu0 %v4156_v13  ;;  %2875 = vmatpush1.bf16.msra.mxu1 %v4159_v26  ;;  %v4247_v13 = vld [vmem:[%s5969_s1 + $0x600] ss:$16 sps:$4 sm:$0xff]   ;;  %v5231_v26 = vrot.slane %v5011_v14, %v4747_v49  ;;  %v487_v14 = vcombine.high %v5042_v25, %v5042_v25  ;;  %v4261_v25 = vld [vmem:[%s5969_s1 + $0x644] ss:$16 sps:$4 sm:$0xff]  }
  0x88   :  { %2589 = vmatprep.subr.bf16.mxu0 %v4164_v27  ;;  %2876 = vmatprep.subr.bf16.mxu1 %v4167_v28  ;;  %v4250_v27 = vld [vmem:[%s5969_s1 + $0x608] ss:$16 sps:$4 sm:$0xff]   ;;  %v4255_v28 = vld [vmem:[%s5969_s1 + $0x624] ss:$16 sps:$4 sm:$0xff]  }
  0x8b   :  { %2590 = vmatpush1.bf16.msra.mxu0 %v4162_v29  ;;  %2877 = vmatpush1.bf16.msra.mxu1 %v4165_v30  ;;  %v4258_v29 = vld [vmem:[%s5969_s1 + $0x62c] ss:$16 sps:$4 sm:$0xff]   ;;  %v4253_v30 = vld [vmem:[%s5969_s1 + $0x620] ss:$16 sps:$4 sm:$0xff]  }
  0x8c   :  { %2591 = vmatprep.subr.bf16.mxu0 %v4170_v31  ;;  %2878 = vmatprep.subr.bf16.mxu1 %v4173_v32  ;;  %v4256_v31 = vld [vmem:[%s5969_s1 + $0x628] ss:$16 sps:$4 sm:$0xff]   ;;  %v4264_v32 = vld [vmem:[%s5969_s1 + $0x64c] ss:$16 sps:$4 sm:$0xff]  }
  0x8f   :  { %2592 = vmatpush1.bf16.msra.mxu0 %v4168_v33  ;;  %2879 = vmatpush1.bf16.msra.mxu1 %v4171_v34  ;;  %v4259_v33 = vld [vmem:[%s5969_s1 + $0x640] ss:$16 sps:$4 sm:$0xff]   ;;  %v4262_v34 = vld [vmem:[%s5969_s1 + $0x648] ss:$16 sps:$4 sm:$0xff]  }
  0x90   :  { %2593 = vmatprep.subr.bf16.mxu0 %v4176_v35  ;;  %2880 = vmatprep.subr.bf16.mxu1 %v4179_v36  ;;  %v4267_v35 = vld [vmem:[%s5969_s1 + $0x664] ss:$16 sps:$4 sm:$0xff]   ;;  %v4270_v36 = vld [vmem:[%s5969_s1 + $0x66c] ss:$16 sps:$4 sm:$0xff]  }
  0x93   :  { %2594 = vmatpush1.bf16.msra.mxu0 %v4174_v37  ;;  %2881 = vmatpush1.bf16.msra.mxu1 %v4177_v38  ;;  %v4265_v37 = vld [vmem:[%s5969_s1 + $0x660] ss:$16 sps:$4 sm:$0xff]   ;;  %v4268_v38 = vld [vmem:[%s5969_s1 + $0x668] ss:$16 sps:$4 sm:$0xff]  }
  0x94   :  { %2595 = vmatprep.subr.bf16.mxu0 %v4182_v39  ;;  %2882 = vmatprep.subr.bf16.mxu1 %v4185_v40  ;;  %v4273_v39 = vld [vmem:[%s5969_s1 + $0x684] ss:$16 sps:$4 sm:$0xff]   ;;  %v4276_v40 = vld [vmem:[%s5969_s1 + $0x68c] ss:$16 sps:$4 sm:$0xff]  }
  0x97   :  { %2596 = vmatpush1.bf16.msra.mxu0 %v4180_v41  ;;  %2883 = vmatpush1.bf16.msra.mxu1 %v4183_v43  ;;  %v4271_v41 = vld [vmem:[%s5969_s1 + $0x680] ss:$16 sps:$4 sm:$0xff]   ;;  %v4274_v43 = vld [vmem:[%s5969_s1 + $0x688] ss:$16 sps:$4 sm:$0xff]  }
  0x98   :  { %2597 = vmatprep.subr.bf16.mxu0 %v4188_v44  ;;  %2884 = vmatprep.subr.bf16.mxu1 %v4191_v45  ;;  %v4279_v44 = vld [vmem:[%s5969_s1 + $0x6a4] ss:$16 sps:$4 sm:$0xff]   ;;  %v4282_v45 = vld [vmem:[%s5969_s1 + $0x6ac] ss:$16 sps:$4 sm:$0xff]  }
  0x9b   :  { %2598 = vmatpush1.bf16.msra.mxu0 %v4186_v46  ;;  %2885 = vmatpush1.bf16.msra.mxu1 %v4189_v47  ;;  %v4277_v46 = vld [vmem:[%s5969_s1 + $0x6a0] ss:$16 sps:$4 sm:$0xff]   ;;  %v4280_v47 = vld [vmem:[%s5969_s1 + $0x6a8] ss:$16 sps:$4 sm:$0xff]  }
  0x9c   :  { %2599 = vmatprep.subr.bf16.mxu0 %v4194_v48  ;;  %2886 = vmatprep.subr.bf16.mxu1 %v4197_v50  ;;  %v4285_v48 = vld [vmem:[%s5969_s1 + $0x6c4] ss:$16 sps:$4 sm:$0xff]   ;;  %v4288_v50 = vld [vmem:[%s5969_s1 + $0x6cc] ss:$16 sps:$4 sm:$0xff]  }
  0x9f   :  { %2600 = vmatpush1.bf16.msra.mxu0 %v4192_v51  ;;  %2887 = vmatpush1.bf16.msra.mxu1 %v4195_v53  ;;  %v4283_v51 = vld [vmem:[%s5969_s1 + $0x6c0] ss:$16 sps:$4 sm:$0xff]   ;;  %v4286_v53 = vld [vmem:[%s5969_s1 + $0x6c8] ss:$16 sps:$4 sm:$0xff]  }
  0xa0   :  { %2601 = vmatprep.subr.bf16.mxu0 %v4200_v54  ;;  %2888 = vmatprep.subr.bf16.mxu1 %v4203_v55  ;;  %v4291_v54 = vld [vmem:[%s5969_s1 + $0x6e4] ss:$16 sps:$4 sm:$0xff]   ;;  %v4294_v55 = vld [vmem:[%s5969_s1 + $0x6ec] ss:$16 sps:$4 sm:$0xff]  }
  0xa3   :  { %2602 = vmatpush1.bf16.msra.mxu0 %v4198_v56  ;;  %2889 = vmatpush1.bf16.msra.mxu1 %v4201_v57  ;;  %v4289_v56 = vld [vmem:[%s5969_s1 + $0x6e0] ss:$16 sps:$4 sm:$0xff]   ;;  %v4292_v57 = vld [vmem:[%s5969_s1 + $0x6e8] ss:$16 sps:$4 sm:$0xff]  }
  0xa4   :  { %2603 = vmatprep.subr.bf16.mxu0 %v4206_v58  ;;  %2890 = vmatprep.subr.bf16.mxu1 %v4209_v59  ;;  %v4297_v58 = vld [vmem:[%s5969_s1 + $0x704] ss:$16 sps:$4 sm:$0xff]   ;;  %v4300_v59 = vld [vmem:[%s5969_s1 + $0x70c] ss:$16 sps:$4 sm:$0xff]  }
  0xa7   :  { %2604 = vmatpush1.bf16.msra.mxu0 %v4204_v60  ;;  %2891 = vmatpush1.bf16.msra.mxu1 %v4207_v61  ;;  %v4295_v60 = vld [vmem:[%s5969_s1 + $0x700] ss:$16 sps:$4 sm:$0xff]   ;;  %v4298_v61 = vld [vmem:[%s5969_s1 + $0x708] ss:$16 sps:$4 sm:$0xff]  }
  0xa8   :  { %2605 = vmatprep.subr.bf16.mxu0 %v4212_v62  ;;  %2892 = vmatprep.subr.bf16.mxu1 %v4215_v63  ;;  %v4303_v62 = vld [vmem:[%s5969_s1 + $0x724] ss:$16 sps:$4 sm:$0xff]   ;;  %v4306_v63 = vld [vmem:[%s5969_s1 + $0x72c] ss:$16 sps:$4 sm:$0xff]  }
  0xab   :  { %2606 = vmatpush1.bf16.msra.mxu0 %v4210_v0  ;;  %2893 = vmatpush1.bf16.msra.mxu1 %v4213_v1  ;;  %v4301_v0 = vld [vmem:[%s5969_s1 + $0x720] ss:$16 sps:$4 sm:$0xff]   ;;  %v4304_v1 = vld [vmem:[%s5969_s1 + $0x728] ss:$16 sps:$4 sm:$0xff]  }
  0xac   :  { %2607 = vmatprep.subr.bf16.mxu0 %v4218_v2  ;;  %2894 = vmatprep.subr.bf16.mxu1 %v4221_v3  ;;  %v4309_v2 = vld [vmem:[%s5969_s1 + $0x744] ss:$16 sps:$4 sm:$0xff]   ;;  %v4312_v3 = vld [vmem:[%s5969_s1 + $0x74c] ss:$16 sps:$4 sm:$0xff]  }
  0xaf   :  { %2608 = vmatpush1.bf16.msra.mxu0 %v4216_v4  ;;  %2895 = vmatpush1.bf16.msra.mxu1 %v4219_v5  ;;  %v4307_v4 = vld [vmem:[%s5969_s1 + $0x740] ss:$16 sps:$4 sm:$0xff]   ;;  %v4310_v5 = vld [vmem:[%s5969_s1 + $0x748] ss:$16 sps:$4 sm:$0xff]  }
  0xb0   :  { %2609 = vmatprep.subr.bf16.mxu0 %v4224_v6  ;;  %2896 = vmatprep.subr.bf16.mxu1 %v4227_v7  ;;  %v4315_v6 = vld [vmem:[%s5969_s1 + $0x764] ss:$16 sps:$4 sm:$0xff]   ;;  %v4318_v7 = vld [vmem:[%s5969_s1 + $0x76c] ss:$16 sps:$4 sm:$0xff]  }
  0xb3   :  { %2610 = vmatpush1.bf16.msra.mxu0 %v4222_v8  ;;  %2897 = vmatpush1.bf16.msra.mxu1 %v4225_v9  ;;  %v4313_v8 = vld [vmem:[%s5969_s1 + $0x760] ss:$16 sps:$4 sm:$0xff]   ;;  %v4316_v9 = vld [vmem:[%s5969_s1 + $0x768] ss:$16 sps:$4 sm:$0xff]  }
  0xb4   :  { %2611 = vmatprep.subr.bf16.mxu0 %v4230_v10  ;;  %2898 = vmatprep.subr.bf16.mxu1 %v4233_v11  ;;  %v4321_v10 = vld [vmem:[%s5969_s1 + $0x784] ss:$16 sps:$4 sm:$0xff]   ;;  %v4324_v11 = vld [vmem:[%s5969_s1 + $0x78c] ss:$16 sps:$4 sm:$0xff]  }
  0xb7   :  { %2612 = vmatpush1.bf16.msra.mxu0 %v4228_v12  ;;  %2899 = vmatpush1.bf16.msra.mxu1 %v4231_v52  ;;  %v4319_v12 = vld [vmem:[%s5969_s1 + $0x780] ss:$16 sps:$4 sm:$0xff]   ;;  %v4322_v52 = vld [vmem:[%s5969_s1 + $0x788] ss:$16 sps:$4 sm:$0xff]  }
  0xb8   :  { %2613 = vmatprep.subr.bf16.mxu0 %v4236_v15  ;;  %2900 = vmatprep.subr.bf16.mxu1 %v4239_v16  ;;  %v4327_v15 = vld [vmem:[%s5969_s1 + $0x7a4] ss:$16 sps:$4 sm:$0xff]   ;;  %v4330_v16 = vld [vmem:[%s5969_s1 + $0x7ac] ss:$16 sps:$4 sm:$0xff]  }
  0xbb   :  { %2614 = vmatpush1.bf16.msra.mxu0 %v4234_v17  ;;  %2901 = vmatpush1.bf16.msra.mxu1 %v4237_v18  ;;  %v4325_v17 = vld [vmem:[%s5969_s1 + $0x7a0] ss:$16 sps:$4 sm:$0xff]   ;;  %v4328_v18 = vld [vmem:[%s5969_s1 + $0x7a8] ss:$16 sps:$4 sm:$0xff]  }
  0xbc   :  { %2615 = vmatprep.subr.bf16.mxu0 %v4242_v19  ;;  %2902 = vmatprep.subr.bf16.mxu1 %v4245_v20  ;;  %v4333_v19 = vld [vmem:[%s5969_s1 + $0x7c4] ss:$16 sps:$4 sm:$0xff]   ;;  %v4336_v20 = vld [vmem:[%s5969_s1 + $0x7cc] ss:$16 sps:$4 sm:$0xff]  }
  0xbf   :  { %2616 = vmatpush1.bf16.msra.mxu0 %v4240_v21  ;;  %2903 = vmatpush1.bf16.msra.mxu1 %v4243_v22  ;;  %v5405_v21 = vld [vmem:[%s5970_s0 + $0x8] sm:$0x1f]  ;;  %v4331_v22 = vld [vmem:[%s5969_s1 + $0x7c0] ss:$16 sps:$4 sm:$0xff]  }
  0xc0   :  { %2626 = vmatprep.subr.bf16.mxu0 %v4249_v23  ;;  %2913 = vmatprep.subr.bf16.mxu1 %v4252_v24  ;;  %v4334_v23 = vld [vmem:[%s5969_s1 + $0x7c8] ss:$16 sps:$4 sm:$0xff]   ;;  %v4339_v24 = vld [vmem:[%s5969_s1 + $0x7e4] ss:$16 sps:$4 sm:$0xff]  }
  0xc2   :  { %2618 = vmatmul.mubr.bf16.vlgmr.msra.gmra.mrb[0].mxu0 %v5231_v26  ;;  %2905 = vmatmul.mubr.bf16.vlgmr.msra.gmra.mrb[0].mxu1 %v5231_v26 }
  0xc3   :  { %2627 = vmatpush1.bf16.msra.mxu0 %v4247_v13  ;;  %2914 = vmatpush1.bf16.msra.mxu1 %v4250_v27  ;;  %v4342_v13 = vld [vmem:[%s5969_s1 + $0x7ec] ss:$16 sps:$4 sm:$0xff]   ;;  %v5421_v27 = vrot.slane %v5405_v21, %v4747_v49 }
  0xc4   :  { %2628 = vmatprep.subr.bf16.mxu0 %v4255_v28  ;;  %2915 = vmatprep.subr.bf16.mxu1 %v4258_v29  ;;  %v4337_v28 = vld [vmem:[%s5969_s1 + $0x7e0] ss:$16 sps:$4 sm:$0xff]   ;;  %v4340_v29 = vld [vmem:[%s5969_s1 + $0x7e8] ss:$16 sps:$4 sm:$0xff]  }
  0xc5   :  { %2658 = vmatprep.mubr.bf16.mxu0 %v487_v14  ;;  %2945 = vmatprep.mubr.bf16.mxu1 %v487_v14  ;;  %v4345_v14 = vld [vmem:[%s5969_s1 + $0x804] ss:$16 sps:$4 sm:$0xff]  }
  0xc7   :  { %2629 = vmatpush1.bf16.msra.mxu0 %v4253_v30  ;;  %2916 = vmatpush1.bf16.msra.mxu1 %v4256_v31  ;;  %v4348_v30 = vld [vmem:[%s5969_s1 + $0x80c] ss:$16 sps:$4 sm:$0xff]   ;;  %v4343_v31 = vld [vmem:[%s5969_s1 + $0x800] ss:$16 sps:$4 sm:$0xff]  }
  0xc8   :  { %2630 = vmatprep.subr.bf16.mxu0 %v4261_v25  ;;  %2917 = vmatprep.subr.bf16.mxu1 %v4264_v32  ;;  %v503_v25 = vcombine.high %v5421_v27, %v5421_v27  ;;  %v4346_v32 = vld [vmem:[%s5969_s1 + $0x808] ss:$16 sps:$4 sm:$0xff]  }
  0xcb   :  { %2631 = vmatpush1.bf16.msra.mxu0 %v4259_v33  ;;  %2918 = vmatpush1.bf16.msra.mxu1 %v4262_v34  ;;  %v485_v33 = vcombine.high %v5231_v26, %v5231_v26  ;;  %v4351_v34 = vld [vmem:[%s5969_s1 + $0x824] ss:$16 sps:$4 sm:$0xff]   ;;  %v4349_v26 = vld [vmem:[%s5969_s1 + $0x820] ss:$16 sps:$4 sm:$0xff]  }
  0xcc   :  { %2632 = vmatprep.subr.bf16.mxu0 %v4267_v35  ;;  %2919 = vmatprep.subr.bf16.mxu1 %v4270_v36  ;;  %v4354_v35 = vld [vmem:[%s5969_s1 + $0x82c] ss:$16 sps:$4 sm:$0xff]   ;;  %v5452_v36 = vrot.slane %v503_v25, %v4747_v49  ;;  %v4435_v25 = vld [vmem:[%s5969_s1 + $0x9e4] ss:$16 sps:$4 sm:$0xff]  }
  0xcf   :  { %2633 = vmatpush1.bf16.msra.mxu0 %v4265_v37  ;;  %2920 = vmatpush1.bf16.msra.mxu1 %v4268_v38  ;;  %v4352_v37 = vld [vmem:[%s5969_s1 + $0x828] ss:$16 sps:$4 sm:$0xff]   ;;  %v4357_v38 = vld [vmem:[%s5969_s1 + $0x844] ss:$16 sps:$4 sm:$0xff]  }
  0xd0   :  { %2634 = vmatprep.subr.bf16.mxu0 %v4273_v39  ;;  %2921 = vmatprep.subr.bf16.mxu1 %v4276_v40  ;;  %v4360_v39 = vld [vmem:[%s5969_s1 + $0x84c] ss:$16 sps:$4 sm:$0xff]   ;;  %v4355_v40 = vld [vmem:[%s5969_s1 + $0x840] ss:$16 sps:$4 sm:$0xff]  }
  0xd3   :  { %2635 = vmatpush1.bf16.msra.mxu0 %v4271_v41  ;;  %2922 = vmatpush1.bf16.msra.mxu1 %v4274_v43  ;;  %v4358_v41 = vld [vmem:[%s5969_s1 + $0x848] ss:$16 sps:$4 sm:$0xff]   ;;  %v4363_v43 = vld [vmem:[%s5969_s1 + $0x864] ss:$16 sps:$4 sm:$0xff]  }
  0xd4   :  { %2636 = vmatprep.subr.bf16.mxu0 %v4279_v44  ;;  %2923 = vmatprep.subr.bf16.mxu1 %v4282_v45  ;;  %v4366_v44 = vld [vmem:[%s5969_s1 + $0x86c] ss:$16 sps:$4 sm:$0xff]   ;;  %v4361_v45 = vld [vmem:[%s5969_s1 + $0x860] ss:$16 sps:$4 sm:$0xff]  }
  0xd7   :  { %2637 = vmatpush1.bf16.msra.mxu0 %v4277_v46  ;;  %2924 = vmatpush1.bf16.msra.mxu1 %v4280_v47  ;;  %v4364_v46 = vld [vmem:[%s5969_s1 + $0x868] ss:$16 sps:$4 sm:$0xff]   ;;  %v4369_v47 = vld [vmem:[%s5969_s1 + $0x884] ss:$16 sps:$4 sm:$0xff]  }
  0xd8   :  { %2638 = vmatprep.subr.bf16.mxu0 %v4285_v48  ;;  %2925 = vmatprep.subr.bf16.mxu1 %v4288_v50  ;;  %v4372_v48 = vld [vmem:[%s5969_s1 + $0x88c] ss:$16 sps:$4 sm:$0xff]   ;;  %v4367_v50 = vld [vmem:[%s5969_s1 + $0x880] ss:$16 sps:$4 sm:$0xff]  }
  0xdb   :  { %2639 = vmatpush1.bf16.msra.mxu0 %v4283_v51  ;;  %2926 = vmatpush1.bf16.msra.mxu1 %v4286_v53  ;;  %v4370_v51 = vld [vmem:[%s5969_s1 + $0x888] ss:$16 sps:$4 sm:$0xff]   ;;  %v4375_v53 = vld [vmem:[%s5969_s1 + $0x8a4] ss:$16 sps:$4 sm:$0xff]  }
  0xdc   :  { %2640 = vmatprep.subr.bf16.mxu0 %v4291_v54  ;;  %2927 = vmatprep.subr.bf16.mxu1 %v4294_v55  ;;  %v4378_v54 = vld [vmem:[%s5969_s1 + $0x8ac] ss:$16 sps:$4 sm:$0xff]   ;;  %v4373_v55 = vld [vmem:[%s5969_s1 + $0x8a0] ss:$16 sps:$4 sm:$0xff]  }
  0xdf   :  { %2641 = vmatpush1.bf16.msra.mxu0 %v4289_v56  ;;  %2928 = vmatpush1.bf16.msra.mxu1 %v4292_v57  ;;  %v4376_v56 = vld [vmem:[%s5969_s1 + $0x8a8] ss:$16 sps:$4 sm:$0xff]   ;;  %v4381_v57 = vld [vmem:[%s5969_s1 + $0x8c4] ss:$16 sps:$4 sm:$0xff]  }
  0xe0   :  { %2642 = vmatprep.subr.bf16.mxu0 %v4297_v58  ;;  %2929 = vmatprep.subr.bf16.mxu1 %v4300_v59  ;;  %v4384_v58 = vld [vmem:[%s5969_s1 + $0x8cc] ss:$16 sps:$4 sm:$0xff]   ;;  %v4379_v59 = vld [vmem:[%s5969_s1 + $0x8c0] ss:$16 sps:$4 sm:$0xff]  }
  0xe3   :  { %2643 = vmatpush1.bf16.msra.mxu0 %v4295_v60  ;;  %2930 = vmatpush1.bf16.msra.mxu1 %v4298_v61  ;;  %v4382_v60 = vld [vmem:[%s5969_s1 + $0x8c8] ss:$16 sps:$4 sm:$0xff]   ;;  %v4387_v61 = vld [vmem:[%s5969_s1 + $0x8e4] ss:$16 sps:$4 sm:$0xff]  }
  0xe4   :  { %2644 = vmatprep.subr.bf16.mxu0 %v4303_v62  ;;  %2931 = vmatprep.subr.bf16.mxu1 %v4306_v63  ;;  %v4390_v62 = vld [vmem:[%s5969_s1 + $0x8ec] ss:$16 sps:$4 sm:$0xff]   ;;  %v4385_v63 = vld [vmem:[%s5969_s1 + $0x8e0] ss:$16 sps:$4 sm:$0xff]  }
  0xe7   :  { %2645 = vmatpush1.bf16.msra.mxu0 %v4301_v0  ;;  %2932 = vmatpush1.bf16.msra.mxu1 %v4304_v1  ;;  %v4388_v0 = vld [vmem:[%s5969_s1 + $0x8e8] ss:$16 sps:$4 sm:$0xff]   ;;  %v4393_v1 = vld [vmem:[%s5969_s1 + $0x904] ss:$16 sps:$4 sm:$0xff]  }
  0xe8   :  { %2646 = vmatprep.subr.bf16.mxu0 %v4309_v2  ;;  %2933 = vmatprep.subr.bf16.mxu1 %v4312_v3  ;;  %v4396_v2 = vld [vmem:[%s5969_s1 + $0x90c] ss:$16 sps:$4 sm:$0xff]   ;;  %v4391_v3 = vld [vmem:[%s5969_s1 + $0x900] ss:$16 sps:$4 sm:$0xff]  }
  0xeb   :  { %2647 = vmatpush1.bf16.msra.mxu0 %v4307_v4  ;;  %2934 = vmatpush1.bf16.msra.mxu1 %v4310_v5  ;;  %v4394_v4 = vld [vmem:[%s5969_s1 + $0x908] ss:$16 sps:$4 sm:$0xff]   ;;  %v4399_v5 = vld [vmem:[%s5969_s1 + $0x924] ss:$16 sps:$4 sm:$0xff]  }
  0xec   :  { %2648 = vmatprep.subr.bf16.mxu0 %v4315_v6  ;;  %2935 = vmatprep.subr.bf16.mxu1 %v4318_v7  ;;  %v4402_v6 = vld [vmem:[%s5969_s1 + $0x92c] ss:$16 sps:$4 sm:$0xff]   ;;  %v4397_v7 = vld [vmem:[%s5969_s1 + $0x920] ss:$16 sps:$4 sm:$0xff]  }
  0xef   :  { %2649 = vmatpush1.bf16.msra.mxu0 %v4313_v8  ;;  %2936 = vmatpush1.bf16.msra.mxu1 %v4316_v9  ;;  %v4400_v8 = vld [vmem:[%s5969_s1 + $0x928] ss:$16 sps:$4 sm:$0xff]   ;;  %v4405_v9 = vld [vmem:[%s5969_s1 + $0x944] ss:$16 sps:$4 sm:$0xff]  }
  0xf0   :  { %2650 = vmatprep.subr.bf16.mxu0 %v4321_v10  ;;  %2937 = vmatprep.subr.bf16.mxu1 %v4324_v11  ;;  %v4408_v10 = vld [vmem:[%s5969_s1 + $0x94c] ss:$16 sps:$4 sm:$0xff]   ;;  %v4403_v11 = vld [vmem:[%s5969_s1 + $0x940] ss:$16 sps:$4 sm:$0xff]  }
  0xf3   :  { %2651 = vmatpush1.bf16.msra.mxu0 %v4319_v12  ;;  %2938 = vmatpush1.bf16.msra.mxu1 %v4322_v52  ;;  %v4406_v12 = vld [vmem:[%s5969_s1 + $0x948] ss:$16 sps:$4 sm:$0xff]   ;;  %v4411_v52 = vld [vmem:[%s5969_s1 + $0x964] ss:$16 sps:$4 sm:$0xff]  }
  0xf4   :  { %2652 = vmatprep.subr.bf16.mxu0 %v4327_v15  ;;  %2939 = vmatprep.subr.bf16.mxu1 %v4330_v16  ;;  %v4414_v15 = vld [vmem:[%s5969_s1 + $0x96c] ss:$16 sps:$4 sm:$0xff]   ;;  %v4409_v16 = vld [vmem:[%s5969_s1 + $0x960] ss:$16 sps:$4 sm:$0xff]  }
  0xf7   :  { %2653 = vmatpush1.bf16.msra.mxu0 %v4325_v17  ;;  %2940 = vmatpush1.bf16.msra.mxu1 %v4328_v18  ;;  %v4412_v17 = vld [vmem:[%s5969_s1 + $0x968] ss:$16 sps:$4 sm:$0xff]   ;;  %v4417_v18 = vld [vmem:[%s5969_s1 + $0x984] ss:$16 sps:$4 sm:$0xff]  }
  0xf8   :  { %2654 = vmatprep.subr.bf16.mxu0 %v4333_v19  ;;  %2941 = vmatprep.subr.bf16.mxu1 %v4336_v20  ;;  %v4420_v19 = vld [vmem:[%s5969_s1 + $0x98c] ss:$16 sps:$4 sm:$0xff]   ;;  %v4415_v20 = vld [vmem:[%s5969_s1 + $0x980] ss:$16 sps:$4 sm:$0xff]  }
  0xfb   :  { %2655 = vmatpush1.bf16.msra.mxu0 %v4331_v22  ;;  %2942 = vmatpush1.bf16.msra.mxu1 %v4334_v23  ;;  %v4418_v22 = vld [vmem:[%s5969_s1 + $0x988] ss:$16 sps:$4 sm:$0xff]   ;;  %v4423_v23 = vld [vmem:[%s5969_s1 + $0x9a4] ss:$16 sps:$4 sm:$0xff]  }
  0xfc   :  { %2656 = vmatprep.subr.bf16.mxu0 %v4339_v24  ;;  %2943 = vmatprep.subr.bf16.mxu1 %v4342_v13  ;;  %v4426_v24 = vld [vmem:[%s5969_s1 + $0x9ac] ss:$16 sps:$4 sm:$0xff]   ;;  %v4421_v13 = vld [vmem:[%s5969_s1 + $0x9a0] ss:$16 sps:$4 sm:$0xff]  }
  0xff   :  { %2657 = vmatpush1.bf16.msra.mxu0 %v4337_v28  ;;  %2944 = vmatpush1.bf16.msra.mxu1 %v4340_v29  ;;  %v4424_v28 = vld [vmem:[%s5969_s1 + $0x9a8] ss:$16 sps:$4 sm:$0xff]   ;;  %v4429_v29 = vld [vmem:[%s5969_s1 + $0x9c4] ss:$16 sps:$4 sm:$0xff]  }
 0x100   :  { %2667 = vmatprep.subr.bf16.mxu0 %v4345_v14  ;;  %2954 = vmatprep.subr.bf16.mxu1 %v4348_v30  ;;  %v4432_v14 = vld [vmem:[%s5969_s1 + $0x9cc] ss:$16 sps:$4 sm:$0xff]   ;;  %v4427_v30 = vld [vmem:[%s5969_s1 + $0x9c0] ss:$16 sps:$4 sm:$0xff]  }
 0x102   :  { %2659 = vmatmul.mubr.bf16.vlgmr.msra.gmra.mrb[0].mxu0 %v485_v33  ;;  %2946 = vmatmul.mubr.bf16.vlgmr.msra.gmra.mrb[0].mxu1 %v485_v33  ;;  %v4433_v33 = vld [vmem:[%s5969_s1 + $0x9e0] ss:$16 sps:$4 sm:$0xff]  }
 0x103   :  { %2668 = vmatpush1.bf16.msra.mxu0 %v4343_v31  ;;  %2955 = vmatpush1.bf16.msra.mxu1 %v4346_v32  ;;  %v4430_v31 = vld [vmem:[%s5969_s1 + $0x9c8] ss:$16 sps:$4 sm:$0xff]   ;;  %v4438_v32 = vld [vmem:[%s5969_s1 + $0x9ec] ss:$16 sps:$4 sm:$0xff]  }
 0x104   :  { %2669 = vmatprep.subr.bf16.mxu0 %v4351_v34  ;;  %2956 = vmatprep.subr.bf16.mxu1 %v4354_v35  ;;  %v4436_v34 = vld [vmem:[%s5969_s1 + $0x9e8] ss:$16 sps:$4 sm:$0xff]   ;;  %v4442_v35 = vld [vmem:[%s5969_s1 + $0xa04] ss:$16 sps:$4 sm:$0xff]  }
 0x105   :  { %2699 = vmatprep.mubr.bf16.mxu0 %v5452_v36  ;;  %2986 = vmatprep.mubr.bf16.mxu1 %v5452_v36 }
 0x107   :  { %2670 = vmatpush1.bf16.msra.mxu0 %v4349_v26  ;;  %2957 = vmatpush1.bf16.msra.mxu1 %v4352_v37  ;;  %v4445_v26 = vld [vmem:[%s5969_s1 + $0xa0c] ss:$16 sps:$4 sm:$0xff]   ;;  %v5638_v37 = vrot.slane %v5421_v27, %v4747_v49 }
 0x108   :  { %2671 = vmatprep.subr.bf16.mxu0 %v4357_v38  ;;  %2958 = vmatprep.subr.bf16.mxu1 %v4360_v39  ;;  %v4440_v38 = vld [vmem:[%s5969_s1 + $0xa00] ss:$16 sps:$4 sm:$0xff]   ;;  %v4443_v39 = vld [vmem:[%s5969_s1 + $0xa08] ss:$16 sps:$4 sm:$0xff]   ;;  %v4451_v27 = vld [vmem:[%s5969_s1 + $0xa2c] ss:$16 sps:$4 sm:$0xff]  }
 0x10b   :  { %2672 = vmatpush1.bf16.msra.mxu0 %v4355_v40  ;;  %2959 = vmatpush1.bf16.msra.mxu1 %v4358_v41  ;;  %v4448_v40 = vld [vmem:[%s5969_s1 + $0xa24] ss:$16 sps:$4 sm:$0xff]   ;;  %v526_v41 = vcombine.high %v5452_v36, %v5452_v36 }
 0x10c   :  { %2673 = vmatprep.subr.bf16.mxu0 %v4363_v43  ;;  %2960 = vmatprep.subr.bf16.mxu1 %v4366_v44  ;;  %v4446_v43 = vld [vmem:[%s5969_s1 + $0xa20] ss:$16 sps:$4 sm:$0xff]   ;;  %v4449_v44 = vld [vmem:[%s5969_s1 + $0xa28] ss:$16 sps:$4 sm:$0xff]   ;;  %v4454_v36 = vld [vmem:[%s5969_s1 + $0xa44] ss:$16 sps:$4 sm:$0xff]  }
 0x10f   :  { %2674 = vmatpush1.bf16.msra.mxu0 %v4361_v45  ;;  %2961 = vmatpush1.bf16.msra.mxu1 %v4364_v46  ;;  %v4457_v45 = vld [vmem:[%s5969_s1 + $0xa4c] ss:$16 sps:$4 sm:$0xff]   ;;  %v4452_v46 = vld [vmem:[%s5969_s1 + $0xa40] ss:$16 sps:$4 sm:$0xff]  }
 0x110   :  { %2675 = vmatprep.subr.bf16.mxu0 %v4369_v47  ;;  %2962 = vmatprep.subr.bf16.mxu1 %v4372_v48  ;;  %v4455_v47 = vld [vmem:[%s5969_s1 + $0xa48] ss:$16 sps:$4 sm:$0xff]   ;;  %v4460_v48 = vld [vmem:[%s5969_s1 + $0xa64] ss:$16 sps:$4 sm:$0xff]  }
 0x113   :  { %2676 = vmatpush1.bf16.msra.mxu0 %v4367_v50  ;;  %2963 = vmatpush1.bf16.msra.mxu1 %v4370_v51  ;;  %v4463_v50 = vld [vmem:[%s5969_s1 + $0xa6c] ss:$16 sps:$4 sm:$0xff]   ;;  %v4458_v51 = vld [vmem:[%s5969_s1 + $0xa60] ss:$16 sps:$4 sm:$0xff]  }
 0x114   :  { %2677 = vmatprep.subr.bf16.mxu0 %v4375_v53  ;;  %2964 = vmatprep.subr.bf16.mxu1 %v4378_v54  ;;  %v4461_v53 = vld [vmem:[%s5969_s1 + $0xa68] ss:$16 sps:$4 sm:$0xff]   ;;  %v4466_v54 = vld [vmem:[%s5969_s1 + $0xa84] ss:$16 sps:$4 sm:$0xff]  }
 0x117   :  { %2678 = vmatpush1.bf16.msra.mxu0 %v4373_v55  ;;  %2965 = vmatpush1.bf16.msra.mxu1 %v4376_v56  ;;  %v4469_v55 = vld [vmem:[%s5969_s1 + $0xa8c] ss:$16 sps:$4 sm:$0xff]   ;;  %v4464_v56 = vld [vmem:[%s5969_s1 + $0xa80] ss:$16 sps:$4 sm:$0xff]  }
 0x118   :  { %2679 = vmatprep.subr.bf16.mxu0 %v4381_v57  ;;  %2966 = vmatprep.subr.bf16.mxu1 %v4384_v58  ;;  %v4467_v57 = vld [vmem:[%s5969_s1 + $0xa88] ss:$16 sps:$4 sm:$0xff]   ;;  %v4472_v58 = vld [vmem:[%s5969_s1 + $0xaa4] ss:$16 sps:$4 sm:$0xff]  }
 0x11b   :  { %2680 = vmatpush1.bf16.msra.mxu0 %v4379_v59  ;;  %2967 = vmatpush1.bf16.msra.mxu1 %v4382_v60  ;;  %v4475_v59 = vld [vmem:[%s5969_s1 + $0xaac] ss:$16 sps:$4 sm:$0xff]   ;;  %v4470_v60 = vld [vmem:[%s5969_s1 + $0xaa0] ss:$16 sps:$4 sm:$0xff]  }
 0x11c   :  { %2681 = vmatprep.subr.bf16.mxu0 %v4387_v61  ;;  %2968 = vmatprep.subr.bf16.mxu1 %v4390_v62  ;;  %v4473_v61 = vld [vmem:[%s5969_s1 + $0xaa8] ss:$16 sps:$4 sm:$0xff]   ;;  %v4478_v62 = vld [vmem:[%s5969_s1 + $0xac4] ss:$16 sps:$4 sm:$0xff]  }
 0x11f   :  { %2682 = vmatpush1.bf16.msra.mxu0 %v4385_v63  ;;  %2969 = vmatpush1.bf16.msra.mxu1 %v4388_v0  ;;  %v4481_v63 = vld [vmem:[%s5969_s1 + $0xacc] ss:$16 sps:$4 sm:$0xff]   ;;  %v4476_v0 = vld [vmem:[%s5969_s1 + $0xac0] ss:$16 sps:$4 sm:$0xff]  }
 0x120   :  { %2683 = vmatprep.subr.bf16.mxu0 %v4393_v1  ;;  %2970 = vmatprep.subr.bf16.mxu1 %v4396_v2  ;;  %v4479_v1 = vld [vmem:[%s5969_s1 + $0xac8] ss:$16 sps:$4 sm:$0xff]   ;;  %v4484_v2 = vld [vmem:[%s5969_s1 + $0xae4] ss:$16 sps:$4 sm:$0xff]  }
 0x123   :  { %2684 = vmatpush1.bf16.msra.mxu0 %v4391_v3  ;;  %2971 = vmatpush1.bf16.msra.mxu1 %v4394_v4  ;;  %v4487_v3 = vld [vmem:[%s5969_s1 + $0xaec] ss:$16 sps:$4 sm:$0xff]   ;;  %v4482_v4 = vld [vmem:[%s5969_s1 + $0xae0] ss:$16 sps:$4 sm:$0xff]  }
 0x124   :  { %2685 = vmatprep.subr.bf16.mxu0 %v4399_v5  ;;  %2972 = vmatprep.subr.bf16.mxu1 %v4402_v6  ;;  %v4485_v5 = vld [vmem:[%s5969_s1 + $0xae8] ss:$16 sps:$4 sm:$0xff]   ;;  %v4490_v6 = vld [vmem:[%s5969_s1 + $0xb04] ss:$16 sps:$4 sm:$0xff]  }
 0x127   :  { %2686 = vmatpush1.bf16.msra.mxu0 %v4397_v7  ;;  %2973 = vmatpush1.bf16.msra.mxu1 %v4400_v8  ;;  %v4493_v7 = vld [vmem:[%s5969_s1 + $0xb0c] ss:$16 sps:$4 sm:$0xff]   ;;  %v4488_v8 = vld [vmem:[%s5969_s1 + $0xb00] ss:$16 sps:$4 sm:$0xff]  }
 0x128   :  { %2687 = vmatprep.subr.bf16.mxu0 %v4405_v9  ;;  %2974 = vmatprep.subr.bf16.mxu1 %v4408_v10  ;;  %v4491_v9 = vld [vmem:[%s5969_s1 + $0xb08] ss:$16 sps:$4 sm:$0xff]   ;;  %v4496_v10 = vld [vmem:[%s5969_s1 + $0xb24] ss:$16 sps:$4 sm:$0xff]  }
 0x12b   :  { %2688 = vmatpush1.bf16.msra.mxu0 %v4403_v11  ;;  %2975 = vmatpush1.bf16.msra.mxu1 %v4406_v12  ;;  %v4499_v11 = vld [vmem:[%s5969_s1 + $0xb2c] ss:$16 sps:$4 sm:$0xff]   ;;  %v4494_v12 = vld [vmem:[%s5969_s1 + $0xb20] ss:$16 sps:$4 sm:$0xff]  }
 0x12c   :  { %2689 = vmatprep.subr.bf16.mxu0 %v4411_v52  ;;  %2976 = vmatprep.subr.bf16.mxu1 %v4414_v15  ;;  %v4497_v52 = vld [vmem:[%s5969_s1 + $0xb28] ss:$16 sps:$4 sm:$0xff]   ;;  %v4502_v15 = vld [vmem:[%s5969_s1 + $0xb44] ss:$16 sps:$4 sm:$0xff]  }
 0x12f   :  { %2690 = vmatpush1.bf16.msra.mxu0 %v4409_v16  ;;  %2977 = vmatpush1.bf16.msra.mxu1 %v4412_v17  ;;  %v4505_v16 = vld [vmem:[%s5969_s1 + $0xb4c] ss:$16 sps:$4 sm:$0xff]   ;;  %v4500_v17 = vld [vmem:[%s5969_s1 + $0xb40] ss:$16 sps:$4 sm:$0xff]  }
 0x130   :  { %2691 = vmatprep.subr.bf16.mxu0 %v4417_v18  ;;  %2978 = vmatprep.subr.bf16.mxu1 %v4420_v19  ;;  %v4503_v18 = vld [vmem:[%s5969_s1 + $0xb48] ss:$16 sps:$4 sm:$0xff]   ;;  %v4508_v19 = vld [vmem:[%s5969_s1 + $0xb64] ss:$16 sps:$4 sm:$0xff]  }
 0x133   :  { %2692 = vmatpush1.bf16.msra.mxu0 %v4415_v20  ;;  %2979 = vmatpush1.bf16.msra.mxu1 %v4418_v22  ;;  %v4511_v20 = vld [vmem:[%s5969_s1 + $0xb6c] ss:$16 sps:$4 sm:$0xff]   ;;  %v4506_v22 = vld [vmem:[%s5969_s1 + $0xb60] ss:$16 sps:$4 sm:$0xff]  }
 0x134   :  { %2693 = vmatprep.subr.bf16.mxu0 %v4423_v23  ;;  %2980 = vmatprep.subr.bf16.mxu1 %v4426_v24  ;;  %v4509_v23 = vld [vmem:[%s5969_s1 + $0xb68] ss:$16 sps:$4 sm:$0xff]   ;;  %v4514_v24 = vld [vmem:[%s5969_s1 + $0xb84] ss:$16 sps:$4 sm:$0xff]  }
 0x137   :  { %2694 = vmatpush1.bf16.msra.mxu0 %v4421_v13  ;;  %2981 = vmatpush1.bf16.msra.mxu1 %v4424_v28  ;;  %v4517_v13 = vld [vmem:[%s5969_s1 + $0xb8c] ss:$16 sps:$4 sm:$0xff]   ;;  %v4512_v28 = vld [vmem:[%s5969_s1 + $0xb80] ss:$16 sps:$4 sm:$0xff]  }
 0x138   :  { %2695 = vmatprep.subr.bf16.mxu0 %v4429_v29  ;;  %2982 = vmatprep.subr.bf16.mxu1 %v4432_v14  ;;  %v4515_v29 = vld [vmem:[%s5969_s1 + $0xb88] ss:$16 sps:$4 sm:$0xff]   ;;  %v4520_v14 = vld [vmem:[%s5969_s1 + $0xba4] ss:$16 sps:$4 sm:$0xff]  }
 0x13b   :  { %2696 = vmatpush1.bf16.msra.mxu0 %v4427_v30  ;;  %2983 = vmatpush1.bf16.msra.mxu1 %v4430_v31  ;;  %v4523_v30 = vld [vmem:[%s5969_s1 + $0xbac] ss:$16 sps:$4 sm:$0xff]   ;;  %v4518_v31 = vld [vmem:[%s5969_s1 + $0xba0] ss:$16 sps:$4 sm:$0xff]  }
 0x13c   :  { %2697 = vmatprep.subr.bf16.mxu0 %v4435_v25  ;;  %2984 = vmatprep.subr.bf16.mxu1 %v4438_v32  ;;  %v4521_v25 = vld [vmem:[%s5969_s1 + $0xba8] ss:$16 sps:$4 sm:$0xff]   ;;  %v4526_v32 = vld [vmem:[%s5969_s1 + $0xbc4] ss:$16 sps:$4 sm:$0xff]  }
 0x13f   :  { %2698 = vmatpush1.bf16.msra.mxu0 %v4433_v33  ;;  %2985 = vmatpush1.bf16.msra.mxu1 %v4436_v34  ;;  %v4529_v33 = vld [vmem:[%s5969_s1 + $0xbcc] ss:$16 sps:$4 sm:$0xff]   ;;  %v4524_v34 = vld [vmem:[%s5969_s1 + $0xbc0] ss:$16 sps:$4 sm:$0xff]  }
 0x140   :  { %2708 = vmatprep.subr.bf16.mxu0 %v4442_v35  ;;  %2995 = vmatprep.subr.bf16.mxu1 %v4445_v26  ;;  %v4527_v35 = vld [vmem:[%s5969_s1 + $0xbc8] ss:$16 sps:$4 sm:$0xff]   ;;  %v4532_v26 = vld [vmem:[%s5969_s1 + $0xbe4] ss:$16 sps:$4 sm:$0xff]  }
 0x142   :  { %2700 = vmatmul.mubr.bf16.vlgmr.msra.gmra.mrb[0].mxu0 %v5638_v37  ;;  %2987 = vmatmul.mubr.bf16.vlgmr.msra.gmra.mrb[0].mxu1 %v5638_v37 }
 0x143   :  { %2709 = vmatpush1.bf16.msra.mxu0 %v4440_v38  ;;  %2996 = vmatpush1.bf16.msra.mxu1 %v4443_v39  ;;  %v4535_v38 = vld [vmem:[%s5969_s1 + $0xbec] ss:$16 sps:$4 sm:$0xff]   ;;  %v4530_v39 = vld [vmem:[%s5969_s1 + $0xbe0] ss:$16 sps:$4 sm:$0xff]  }
 0x144   :  { %2710 = vmatprep.subr.bf16.mxu0 %v4448_v40  ;;  %2997 = vmatprep.subr.bf16.mxu1 %v4451_v27  ;;  %v4533_v40 = vld [vmem:[%s5969_s1 + $0xbe8] ss:$16 sps:$4 sm:$0xff]   ;;  %v4538_v27 = vld [vmem:[%s5969_s1 + $0xc04] ss:$16 sps:$4 sm:$0xff]  }
 0x145   :  { %2740 = vmatprep.mubr.bf16.mxu0 %v526_v41  ;;  %3027 = vmatprep.mubr.bf16.mxu1 %v526_v41  ;;  %v4541_v41 = vld [vmem:[%s5969_s1 + $0xc0c] ss:$16 sps:$4 sm:$0xff]  }
 0x147   :  { %2711 = vmatpush1.bf16.msra.mxu0 %v4446_v43  ;;  %2998 = vmatpush1.bf16.msra.mxu1 %v4449_v44  ;;  %v525_v43 = vcombine.high %v5638_v37, %v5638_v37  ;;  %v4536_v44 = vld [vmem:[%s5969_s1 + $0xc00] ss:$16 sps:$4 sm:$0xff]   ;;  %v4547_v37 = vld [vmem:[%s5969_s1 + $0xc2c] ss:$16 sps:$4 sm:$0xff]  }
 0x148   :  { %2712 = vmatprep.subr.bf16.mxu0 %v4454_v36  ;;  %2999 = vmatprep.subr.bf16.mxu1 %v4457_v45  ;;  %v4539_v36 = vld [vmem:[%s5969_s1 + $0xc08] ss:$16 sps:$4 sm:$0xff]   ;;  %v4544_v45 = vld [vmem:[%s5969_s1 + $0xc24] ss:$16 sps:$4 sm:$0xff]  }
 0x14b   :  { %2713 = vmatpush1.bf16.msra.mxu0 %v4452_v46  ;;  %3000 = vmatpush1.bf16.msra.mxu1 %v4455_v47  ;;  %v488_v46 = vcombine.high %v5405_v21, %v5405_v21  ;;  %v4542_v47 = vld [vmem:[%s5969_s1 + $0xc20] ss:$16 sps:$4 sm:$0xff]  }
 0x14c   :  { %2714 = vmatprep.subr.bf16.mxu0 %v4460_v48  ;;  %3001 = vmatprep.subr.bf16.mxu1 %v4463_v50  ;;  %v4545_v48 = vld [vmem:[%s5969_s1 + $0xc28] ss:$16 sps:$4 sm:$0xff]   ;;  %v4548_v50 = vld [vmem:[%s5971_s3 + $0x40] sm:$0xff]  }
 0x14d   :  { %v4549_v21 = vld [vmem:[%s5971_s3 + $0xc0] sm:$0xff]  }
 0x14f   :  { %2715 = vmatpush1.bf16.msra.mxu0 %v4458_v51  ;;  %3002 = vmatpush1.bf16.msra.mxu1 %v4461_v53  ;;  %v4581_v51 = vmov 0   ;;  %v502_v53 = vrot.slane %v488_v46, %v4747_v49 }
 0x150   :  { %2716 = vmatprep.subr.bf16.mxu0 %v4466_v54  ;;  %3003 = vmatprep.subr.bf16.mxu1 %v4469_v55  ;;  %v4550_v55 = vld [vmem:[%s5971_s3] sm:$0xff]  }
 0x151   :  { %v517_v54 = vrot.slane %v502_v53, %v4747_v49  ;;  %v4554_v49 = vld [vmem:[%s5971_s3 + $0x8] sm:$0xff]  }
 0x153   :  { %2717 = vmatpush1.bf16.msra.mxu0 %v4464_v56  ;;  %3004 = vmatpush1.bf16.msra.mxu1 %v4467_v57  ;;  %v4551_v56 = vld [vmem:[%s5971_s3 + $0x80] sm:$0xff]   ;;  %v4552_v57 = vld [vmem:[%s5971_s3 + $0x48] sm:$0xff]  }
 0x154   :  { %2718 = vmatprep.subr.bf16.mxu0 %v4472_v58  ;;  %3005 = vmatprep.subr.bf16.mxu1 %v4475_v59  ;;  %v4553_v58 = vld [vmem:[%s5971_s3 + $0xc8] sm:$0xff]  }
 0x155   :  { %v4555_v59 = vld [vmem:[%s5971_s3 + $0x88] sm:$0xff]  }
 0x157   :  { %2719 = vmatpush1.bf16.msra.mxu0 %v4470_v60  ;;  %3006 = vmatpush1.bf16.msra.mxu1 %v4473_v61  ;;  %v4556_v60 = vld [vmem:[%s5971_s3 + $0x50] sm:$0xff]  }
 0x158   :  { %2720 = vmatprep.subr.bf16.mxu0 %v4478_v62  ;;  %3007 = vmatprep.subr.bf16.mxu1 %v4481_v63  ;;  %v4557_v61 = vld [vmem:[%s5971_s3 + $0xd0] sm:$0xff]  }
 0x159   :  { %v4558_v62 = vld [vmem:[%s5971_s3 + $0x10] sm:$0xff]  }
 0x15a   :  { %v4559_v63 = vld [vmem:[%s5971_s3 + $0x90] sm:$0xff]  }
 0x15b   :  { %2721 = vmatpush1.bf16.msra.mxu0 %v4476_v0  ;;  %3008 = vmatpush1.bf16.msra.mxu1 %v4479_v1  ;;  %v4560_v0 = vld [vmem:[%s5971_s3 + $0x58] sm:$0xff]  }
 0x15c   :  { %2722 = vmatprep.subr.bf16.mxu0 %v4484_v2  ;;  %3009 = vmatprep.subr.bf16.mxu1 %v4487_v3  ;;  %v4561_v1 = vld [vmem:[%s5971_s3 + $0xd8] sm:$0xff]  }
 0x15d   :  { %v4562_v2 = vld [vmem:[%s5971_s3 + $0x18] sm:$0xff]  }
 0x15e   :  { %v4563_v3 = vld [vmem:[%s5971_s3 + $0x98] sm:$0xff]  }
 0x15f   :  { %2723 = vmatpush1.bf16.msra.mxu0 %v4482_v4  ;;  %3010 = vmatpush1.bf16.msra.mxu1 %v4485_v5  ;;  %v4564_v4 = vld [vmem:[%s5971_s3 + $0x60] sm:$0xff]  }
 0x160   :  { %2724 = vmatprep.subr.bf16.mxu0 %v4490_v6  ;;  %3011 = vmatprep.subr.bf16.mxu1 %v4493_v7  ;;  %v4565_v5 = vld [vmem:[%s5971_s3 + $0xe0] sm:$0xff]  }
 0x161   :  { %v4566_v6 = vld [vmem:[%s5971_s3 + $0x20] sm:$0xff]  }
 0x162   :  { %v4567_v7 = vld [vmem:[%s5971_s3 + $0xa0] sm:$0xff]  }
 0x163   :  { %2725 = vmatpush1.bf16.msra.mxu0 %v4488_v8  ;;  %3012 = vmatpush1.bf16.msra.mxu1 %v4491_v9  ;;  %v4568_v8 = vld [vmem:[%s5971_s3 + $0x68] sm:$0xff]  }
 0x164   :  { %2726 = vmatprep.subr.bf16.mxu0 %v4496_v10  ;;  %3013 = vmatprep.subr.bf16.mxu1 %v4499_v11  ;;  %v4569_v9 = vld [vmem:[%s5971_s3 + $0xe8] sm:$0xff]  }
 0x165   :  { %v4570_v10 = vld [vmem:[%s5971_s3 + $0x28] sm:$0xff]  }
 0x166   :  { %v4571_v11 = vld [vmem:[%s5971_s3 + $0xa8] sm:$0xff]  }
 0x167   :  { %2727 = vmatpush1.bf16.msra.mxu0 %v4494_v12  ;;  %3014 = vmatpush1.bf16.msra.mxu1 %v4497_v52  ;;  %v4572_v12 = vld [vmem:[%s5971_s3 + $0x70] sm:$0xff]  }
 0x168   :  { %2728 = vmatprep.subr.bf16.mxu0 %v4502_v15  ;;  %3015 = vmatprep.subr.bf16.mxu1 %v4505_v16  ;;  %v4573_v52 = vld [vmem:[%s5971_s3 + $0xf0] sm:$0xff]  }
 0x169   :  { %v4574_v15 = vld [vmem:[%s5971_s3 + $0x30] sm:$0xff]  }
 0x16a   :  { %v4575_v16 = vld [vmem:[%s5971_s3 + $0xb0] sm:$0xff]  }
 0x16b   :  { %2729 = vmatpush1.bf16.msra.mxu0 %v4500_v17  ;;  %3016 = vmatpush1.bf16.msra.mxu1 %v4503_v18  ;;  %v4576_v17 = vld [vmem:[%s5971_s3 + $0x78] sm:$0xff]  }
 0x16c   :  { %2730 = vmatprep.subr.bf16.mxu0 %v4508_v19  ;;  %3017 = vmatprep.subr.bf16.mxu1 %v4511_v20  ;;  %v4577_v18 = vld [vmem:[%s5971_s3 + $0xf8] sm:$0xff]  }
 0x16d   :  { %v4578_v19 = vld [vmem:[%s5971_s3 + $0x38] sm:$0xff]  }
 0x16e   :  { %v4579_v20 = vld [vmem:[%s5971_s3 + $0xb8] sm:$0xff]  }
 0x16f   :  { %2731 = vmatpush1.bf16.msra.mxu0 %v4506_v22  ;;  %3018 = vmatpush1.bf16.msra.mxu1 %v4509_v23  ;;  %v419_v22 = vsub.s32 0, %v4729_v42  ;;  %v427_v23 = vsub.s32 2, %v4729_v42 }
 0x170   :  { %2732 = vmatprep.subr.bf16.mxu0 %v4514_v24  ;;  %3019 = vmatprep.subr.bf16.mxu1 %v4517_v13  ;;  %v415_v24 = vld [vmem:[%s5972_s2] sm:$0xf]  ;;  %v423_v13 = vsub.s32 1, %v4729_v42 }
 0x173   :  { %2733 = vmatpush1.bf16.msra.mxu0 %v4512_v28  ;;  %3020 = vmatpush1.bf16.msra.mxu1 %v4515_v29  ;;  %v431_v28 = vsub.s32 3, %v4729_v42  ;;  %v420_v29 = vrot.slane %v415_v24, %v419_v22 }
 0x174   :  { %2734 = vmatprep.subr.bf16.mxu0 %v4520_v14  ;;  %3021 = vmatprep.subr.bf16.mxu1 %v4523_v30  ;;  %v428_v14 = vrot.slane %v415_v24, %v427_v23  ;;  %v424_v30 = vrot.slane %v415_v24, %v423_v13 }
 0x177   :  { %2735 = vmatpush1.bf16.msra.mxu0 %v4518_v31  ;;  %3022 = vmatpush1.bf16.msra.mxu1 %v4521_v25  ;;  %v432_v31 = vrot.slane %v415_v24, %v431_v28 }
 0x178   :  { %2736 = vmatprep.subr.bf16.mxu0 %v4526_v32  ;;  %3023 = vmatprep.subr.bf16.mxu1 %v4529_v33 }
 0x17b   :  { %2737 = vmatpush1.bf16.msra.mxu0 %v4524_v34  ;;  %3024 = vmatpush1.bf16.msra.mxu1 %v4527_v35 }
 0x17c   :  { %2738 = vmatprep.subr.bf16.mxu0 %v4532_v26  ;;  %3025 = vmatprep.subr.bf16.mxu1 %v4535_v38 }
 0x17f   :  { %2739 = vmatpush1.bf16.msra.mxu0 %v4530_v39  ;;  %3026 = vmatpush1.bf16.msra.mxu1 %v4533_v40 }
 0x180   :  { %2749 = vmatprep.subr.bf16.mxu0 %v4538_v27  ;;  %3036 = vmatprep.subr.bf16.mxu1 %v4541_v41 }
 0x182   :  { %2741 = vmatmul.mubr.bf16.vlgmr.msra.gmra.mrb[0].mxu0 %v525_v43  ;;  %3028 = vmatmul.mubr.bf16.vlgmr.msra.gmra.mrb[0].mxu1 %v525_v43 }
 0x183   :  { %2750 = vmatpush1.bf16.msra.mxu0 %v4536_v44  ;;  %3037 = vmatpush1.bf16.msra.mxu1 %v4539_v36 }
 0x184   :  { %2751 = vmatprep.subr.bf16.mxu0 %v4544_v45  ;;  %3038 = vmatprep.subr.bf16.mxu1 %v4547_v37 }
 0x185   :  { %2781 = vmatprep.mubr.bf16.mxu0 %v4581_v51  ;;  %3068 = vmatprep.mubr.bf16.mxu1 %v4581_v51  ;;  %v3827_v51 = vld [vmem:[%s5973_s4] ss:$0 sm:$0xff] }
 0x187   :  { %2752 = vmatpush1.bf16.msra.mxu0 %v4542_v47  ;;  %3039 = vmatpush1.bf16.msra.mxu1 %v4545_v48 }
 0x188   :  { %3860 = vmatprep.subr.bf16.mxu0 %v4548_v50  ;;  %3882 = vmatprep.subr.bf16.mxu1 %v4549_v21 }
 0x18e   :  { %3825 = vmatmul.mubr.msk.bf16.vlgmr.msra.gmra.mrb[0].mxu0 %vm2499_vm0, %v517_v54  ;;  %3826 = vmatmul.mubr.msk.bf16.vlgmr.msra.gmra.mrb[0].mxu1 %vm2499_vm0, %v517_v54 }
 0x18f   :  { %3861 = vmatpush3.bf16.msra.mxu0 %v4550_v55  ;;  %3883 = vmatpush3.bf16.msra.mxu1 %v4551_v56 }
 0x190   :  { %3862 = vmatprep.subr.bf16.mxu0 %v4552_v57  ;;  %3884 = vmatprep.subr.bf16.mxu1 %v4553_v58 }
 0x193   :  { %3863 = vmatpush3.bf16.msra.mxu0 %v4554_v49  ;;  %3885 = vmatpush3.bf16.msra.mxu1 %v4555_v59 }
 0x194   :  { %3864 = vmatprep.subr.bf16.mxu0 %v4556_v60  ;;  %3886 = vmatprep.subr.bf16.mxu1 %v4557_v61 }
 0x197   :  { %3865 = vmatpush3.bf16.msra.mxu0 %v4558_v62  ;;  %3887 = vmatpush3.bf16.msra.mxu1 %v4559_v63 }
 0x198   :  { %3866 = vmatprep.subr.bf16.mxu0 %v4560_v0  ;;  %3888 = vmatprep.subr.bf16.mxu1 %v4561_v1 }
 0x19b   :  { %3867 = vmatpush3.bf16.msra.mxu0 %v4562_v2  ;;  %3889 = vmatpush3.bf16.msra.mxu1 %v4563_v3 }
 0x19c   :  { %3868 = vmatprep.subr.bf16.mxu0 %v4564_v4  ;;  %3890 = vmatprep.subr.bf16.mxu1 %v4565_v5 }
 0x19f   :  { %3869 = vmatpush3.bf16.msra.mxu0 %v4566_v6  ;;  %3891 = vmatpush3.bf16.msra.mxu1 %v4567_v7 }
 0x1a0   :  { %3870 = vmatprep.subr.bf16.mxu0 %v4568_v8  ;;  %3892 = vmatprep.subr.bf16.mxu1 %v4569_v9 }
 0x1a3   :  { %3871 = vmatpush3.bf16.msra.mxu0 %v4570_v10  ;;  %3893 = vmatpush3.bf16.msra.mxu1 %v4571_v11 }
 0x1a4   :  { %3872 = vmatprep.subr.bf16.mxu0 %v4572_v12  ;;  %3894 = vmatprep.subr.bf16.mxu1 %v4573_v52 }
 0x1a7   :  { %3873 = vmatpush3.bf16.msra.mxu0 %v4574_v15  ;;  %3895 = vmatpush3.bf16.msra.mxu1 %v4575_v16 }
 0x1a8   :  { %3874 = vmatprep.subr.bf16.mxu0 %v4576_v17  ;;  %3896 = vmatprep.subr.bf16.mxu1 %v4577_v18 }
 0x1ab   :  { %3875 = vmatpush3.bf16.msra.mxu0 %v4578_v19  ;;  %3897 = vmatpush3.bf16.msra.mxu1 %v4579_v20 }
 0x261   :  { %v2783_v25 = vpop.f32.mrb[0].mxu0  ;;  %v3070_v32 = vpop.f32.mrb[0].mxu1 }
 0x262   :  { %v3904_v33 = vadd.f32 %v2783_v25, %v420_v29  ;;  %v3906_v34 = vadd.f32 %v3070_v32, %v428_v14  ;;  %v2785_v35 = vpop.f32.mrb[1].mxu0  ;;  %v3072_v26 = vpop.f32.mrb[1].mxu1 }
 0x263   :  { %v3905_v38 = vadd.f32 %v2785_v35, %v424_v30  ;;  %v3907_v39 = vadd.f32 %v3072_v26, %v432_v31  ;;  %v2787_v40 = vpop.f32.mrb[2].mxu0  ;;  %v3074_v27 = vpop.f32.mrb[2].mxu1 }
 0x264   :  { %v3077_v41 = vmax.f32 %v3904_v33, 0.0  ;;  %v3079_v43 = vmax.f32 %v3906_v34, 0.0  ;;  %v2788_v44 = vpop.f32.mrb[3].mxu0  ;;  %v3075_v36 = vpop.f32.mrb[3].mxu1 }
 0x265   :  { %v3078_v45 = vmax.f32 %v3905_v38, 0.0  ;;  %v3080_v42 = vmax.f32 %v3907_v39, 0.0 }
 0x266   :  { %v3081_v47 = vpack.c.bf16 %v3077_v41, %v3077_v41  ;;  %v3083_v48 = vpack.c.bf16 %v3079_v43, %v3079_v43 }
 0x267   :  { %v3082_v37 = vpack.c.bf16 %v3078_v45, %v3078_v45  ;;  %v3084_v46 = vpack.c.bf16 %v3080_v42, %v3080_v42 }
 0x269   :  { %3380 = vmatprep.mubr.bf16.mxu0 %v3082_v37  ;;  %3420 = vmatprep.mubr.bf16.mxu1 %v3084_v46 }
 0x26a   :  { %3381 = vmatmul.mubr.bf16.vlgmr.msra.gmra.mrb[4].mxu0 %v3081_v47  ;;  %3421 = vmatmul.mubr.bf16.vlgmr.msra.gmra.mrb[4].mxu1 %v3083_v48 }
 0x33d   :  { %v3876_v50 = vpop.f32.mrb[4].mxu0  ;;  %v3898_v21 = vpop.f32.mrb[4].mxu1 }
 0x33e   :  { %v3877_v53 = vpop.f32.mrb[5].mxu0  ;;  %v3899_v54 = vpop.f32.mrb[5].mxu1 }
 0x33f   :  { %v3878_v55 = vadd.f32 %v3877_v53, %v3876_v50  ;;  %v3900_v56 = vadd.f32 %v3899_v54, %v3898_v21  ;;  %v3879_v57 = vpop.f32.mrb[6].mxu0  ;;  %v3901_v58 = vpop.f32.mrb[6].mxu1 }
 0x340   :  { %v3880_v49 = vpop.f32.mrb[7].mxu0  ;;  %v3902_v59 = vpop.f32.mrb[7].mxu1 }
 0x341   :  { %v3383_v60 = vadd.f32 %v3878_v55, %v3827_v51 }
 0x343   :  { %v3423_v61 = vadd.f32 %v3900_v56, %v3383_v60 }
 0x345   :  { %3428 = vst [vmem:[%s5974_s5] sm:$0x3] %v3423_v61 }

// kernel: cnn_forward.2
= control target key start
LH: loop header
LB: loop body
LE: loop exit
PB: predicated region body
PF: predicated region fallthrough
CT: control target
= control target key end

     0   :  { %s9551_s13 = smov 0   ;;  %s12768_s0 = inlined_call_operand.vmem [shape: bf16[2,121,64], index: 0, kind: input, shape index: {}]   ;;  %s12769_s1 = inlined_call_operand.vmem [shape: bf16[2,121,64], index: 1, kind: input, shape index: {}]   ;;  %s12770_s2 = inlined_call_operand.vmem [shape: bf16[2,121,64], index: 2, kind: input, shape index: {}]   ;;  %s12771_s3 = inlined_call_operand.vmem [shape: bf16[2,121,64], index: 3, kind: input, shape index: {}]   ;;  %s12772_s4 = inlined_call_operand.vmem [shape: bf16[4,64,32], index: 4, kind: input, shape index: {}]   ;;  %s12773_s5 = inlined_call_operand.vmem [shape: f32[1,32], index: 5, kind: input, shape index: {}]   ;;  %s12774_s6 = inlined_call_operand.vmem [shape: bf16[16,32,64], index: 6, kind: input, shape index: {}]   ;;  %s12775_s7 = inlined_call_operand.vmem [shape: f32[1,64], index: 7, kind: input, shape index: {}]   ;;  %s12776_s8 = inlined_call_operand.vmem [shape: bf16[9,64,32], index: 8, kind: input, shape index: {}]   ;;  %s12777_s9 = inlined_call_operand.vmem [shape: f32[1,32], index: 9, kind: input, shape index: {}]   ;;  %s12778_s10 = inlined_call_operand.vmem [shape: bf16[2,73,32], index: 10, kind: output, shape index: {}]  }
   0x1 LB: > { %s6987_s14 = sadd.s32 4294967295, %s9492_s13   ;;  %p6991_p0 = scmp.ge.s32.totalorder %s9492_s13, 1  ;;  %s9492_s13 = sphi %s9551_s13, %s20_s13  }
   0x2   : > { %p342_p1 = scmp.lt.s32.totalorder %s9492_s13, 3 }
   0x4   : > { %p343_p2 = pnand %p6991_p0, %p342_p1 }
   0x6   : > { %346 = sbr.rel (%p343_p2) target bundleno = 1538 (0x602), region = 60 }
   0xd   : > { %v9562_v0 = vld [vmem:[%s12772_s4 + $0x20] sm:$0xff]   ;;  %v9494_v1 = vmov 0.0   ;;  %v9571_v2 = vld [vmem:[%s12772_s4 + $0x28] sm:$0xff]   ;;  %p395_p3 = scmp.lt.s32.totalorder %s6987_s14, 1  ;;  %vm9495_vm0 = vmmov 0   ;;  %v9586_v3 = vld [vmem:[%s12772_s4 + $0x30] sm:$0xff]  }
   0xe   : > { %7975 = vmatprep.subr.bf16.mxu0 %v9494_v1  ;;  %9315 = vmatprep.subr.bf16.mxu1 %v9494_v1  ;;  %v9602_v4 = vld [vmem:[%s12772_s4 + $0x38] sm:$0xff]   ;;  %vm556_vm1 = vcmask 523264   ;;  %v9644_v21 = vld [vmem:[%s12772_s4] sm:$0xff]   ;;  %v9672_v29 = vld [vmem:[%s12772_s4 + $0x8] sm:$0xff]   ;;  %vm1262_vm2 = vsmask.f32 7424 }
   0xf   : > { %7976 = vmatpush3.bf16.msra.mxu0 %v9562_v0  ;;  %9319 = vmatpush3.bf16.msra.mxu1 %v9562_v0  ;;  %s12783_s14 = smov (!%p395_p3, %s6987_s14), 1  ;;  %v9662_v28 = vld [vmem:[%s12772_s4 + $0x40] sm:$0xff]   ;;  %v9687_v33 = vld [vmem:[%s12772_s4 + $0x48] sm:$0xff]   ;;  %v9694_v35 = vld [vmem:[%s12772_s4 + $0x10] sm:$0xff]   ;;  %vm2007_vm3 = vsmask.f32 6400 }
  0x10   : > { %7977 = vmatprep.subr.bf16.mxu0 %v9494_v1  ;;  %9316 = vmatprep.subr.bf16.mxu1 %v9494_v1  ;;  %s9589_s21 = sshll.u32 %s12783_s14, 6  ;;  %v9736_v47 = vld [vmem:[%s12772_s4 + $0x50] sm:$0xff]   ;;  %v9743_v49 = vld [vmem:[%s12772_s4 + $0x18] sm:$0xff]   ;;  %v9764_v58 = vld [vmem:[%s12772_s4 + $0x60] sm:$0xff]   ;;  %vm2708_vm4 = vcmask 1045504   ;;  %vm2958_vm5 = vcmask 261120  }
  0x11   : > { %7983 = vmatprep.mubr.msk.bf16.mxu0 %vm9495_vm0, %v9494_v1  ;;  %8003 = vmatprep.mubr.msk.bf16.mxu1 %vm9495_vm0, %v9494_v1  ;;  %s9597_s24 = scalar_lea.vmem %s12769_s1, %s9589_s21  ;;  %s9630_s29 = scalar_lea.vmem %s12768_s0, %s9589_s21  ;;  %v9774_v61 = vld [vmem:[%s12772_s4 + $0x58] sm:$0xff]   ;;  %vm3187_vm6 = vsmask.f32 2304  ;;  %vm3361_vm7 = vcmask 1041408   ;;  %vm5788_vm8 = vcmask 1046528   ;;  %vm6679_vm10 = vcmask 1043456  }
  0x12   : > { %v437_v5 = vld [vmem:[%s9597_s24] sm:$0xf]  ;;  %v438_v6 = vld [vmem:[%s9597_s24 + $0x4] sm:$0xf]  ;;  %v447_v7 = vld [vmem:[%s9597_s24 + $0x28] sm:$0xf]  ;;  %s9723_s25 = scalar_lea.vmem %s12770_s2, %s9589_s21  ;;  %s9785_s19 = scalar_lea.vmem %s12771_s3, %s9589_s21 }
  0x13   : > { %7978 = vmatpush3.bf16.msra.mxu0 %v9571_v2  ;;  %9320 = vmatpush3.bf16.msra.mxu1 %v9571_v2  ;;  %v448_v8 = vld [vmem:[%s9597_s24 + $0x2c] sm:$0xf]  ;;  %v439_v9 = vld [vmem:[%s9597_s24 + $0x8] sm:$0xf]  ;;  %v449_v11 = vld [vmem:[%s9597_s24 + $0x30] sm:$0xf]  ;;  %v9635_v19 = vcombine.low %v437_v5, %v438_v6 }
  0x14   : > { %7979 = vmatprep.subr.bf16.mxu0 %v9494_v1  ;;  %9317 = vmatprep.subr.bf16.mxu1 %v9494_v1  ;;  %v9611_v10 = vcombine.low %v438_v6, %v439_v9  ;;  %v450_v12 = vld [vmem:[%s9597_s24 + $0x34] sm:$0xf]  ;;  %v451_v13 = vld [vmem:[%s9597_s24 + $0x38] sm:$0xf]  ;;  %v440_v14 = vld [vmem:[%s9597_s24 + $0xc] sm:$0xf]  ;;  %v9619_v15 = vcombine.low %v448_v8, %v449_v11  ;;  %v9637_v20 = vcombine.low %v447_v7, %v448_v8 }
  0x15   : > { %v9621_v16 = vcombine.low %v450_v12, %v451_v13  ;;  %v9624_v17 = vld [vmem:[%s9597_s24 + $0x10] sm:$0xf]  ;;  %v442_v22 = vld [vmem:[%s9597_s24 + $0x14] sm:$0xf]  ;;  %v9648_v23 = vld [vmem:[%s9597_s24 + $0x18] sm:$0xf]  ;;  %v9689_v34 = vcombine.low %v439_v9, %v440_v14  ;;  %v9704_v39 = vcombine.low %v449_v11, %v450_v12 }
  0x16   : > { %v9633_v18 = vcombine.low %v440_v14, %v9624_v17  ;;  %v422_v24 = vld [vmem:[%s9630_s29 + $0x4] sm:$0xf]  ;;  %v9653_v25 = vcombine.low %v442_v22, %v9648_v23  ;;  %v423_v26 = vld [vmem:[%s9630_s29 + $0x8] sm:$0xf]  ;;  %v421_v30 = vld [vmem:[%s9630_s29] sm:$0xf]  ;;  %v9759_v57 = vcombine.low %v9624_v17, %v442_v22 }
  0x17   : > { %7980 = vmatpush3.bf16.msra.mxu0 %v9586_v3  ;;  %9321 = vmatpush3.bf16.msra.mxu1 %v9586_v3  ;;  %v9657_v27 = vcombine.low %v422_v24, %v423_v26  ;;  %v9681_v31 = vld [vmem:[%s9597_s24 + $0x1c] sm:$0xf]  ;;  %v424_v32 = vld [vmem:[%s9630_s29 + $0xc] sm:$0xf]  ;;  %v9698_v36 = vld [vmem:[%s9597_s24 + $0x20] sm:$0xf]  ;;  %v7027_v46 = vcombine.low %v421_v30, %v422_v24 }
  0x18   : > { %7981 = vmatprep.subr.bf16.mxu0 %v9494_v1  ;;  %9318 = vmatprep.subr.bf16.mxu1 %v9494_v1  ;;  %v9701_v37 = vld [vmem:[%s9597_s24 + $0x24] sm:$0xf]  ;;  %v425_v38 = vld [vmem:[%s9630_s29 + $0x10] sm:$0xf]  ;;  %v9709_v40 = vcombine.low %v9681_v31, %v9698_v36  ;;  %v426_v43 = vld [vmem:[%s9630_s29 + $0x14] sm:$0xf]  ;;  %v7028_v55 = vcombine.low %v423_v26, %v424_v32 }
  0x19   : > { %v9712_v41 = vcombine.low %v9701_v37, %v447_v7  ;;  %v9714_v42 = vcombine.low %v424_v32, %v425_v38  ;;  %v427_v44 = vld [vmem:[%s9630_s29 + $0x18] sm:$0xf]  ;;  %v428_v48 = vld [vmem:[%s9630_s29 + $0x1c] sm:$0xf]  ;;  %v429_v50 = vld [vmem:[%s9630_s29 + $0x20] sm:$0xf]  ;;  %v9768_v60 = vcombine.low %v425_v38, %v426_v43 }
  0x1a   : > { %v9726_v45 = vcombine.low %v426_v43, %v427_v44  ;;  %v1265_v51 = vshll.u32 %v7027_v46, 16  ;;  %v430_v52 = vld [vmem:[%s9630_s29 + $0x24] sm:$0xf]  ;;  %v9752_v53 = vcombine.low %v428_v48, %v429_v50  ;;  %v431_v54 = vld [vmem:[%s9630_s29 + $0x28] sm:$0xf]  ;;  %v1269_v59 = vshll.u32 %v7028_v55, 16 }
  0x1b   : > { %7982 = vmatpush3.bf16.msra.mxu0 %v9602_v4  ;;  %9322 = vmatpush3.bf16.msra.mxu1 %v9602_v4  ;;  %12780 = vst [vmem:[#allocation2_spill] sm:$0xff] %v9714_v42  ;;  %v9756_v56 = vcombine.low %v430_v52, %v431_v54  ;;  %v432_v62 = vld [vmem:[%s9630_s29 + $0x2c] sm:$0xf]  ;;  %v433_v63 = vld [vmem:[%s9630_s29 + $0x30] sm:$0xf]  ;;  %v1263_v6 = vshrl.u32 %v7027_v46, 16  ;;  %v7030_v12 = vcombine.low %v427_v44, %v428_v48 }
  0x1c   : > { %8011 = vmatprep.subr.bf16.mxu1 %v9494_v1  ;;  %8047 = vmatprep.subr.bf16.mxu0 %v9494_v1  ;;  %v9779_v5 = vcombine.low %v432_v62, %v433_v63  ;;  %v1267_v7 = vrot.slane %v1265_v51, 1  ;;  %v1273_v8 = vshrl.u32 %v7028_v55, 16  ;;  %v1276_v9 = vshll.u32 %v9768_v60, 16  ;;  %v9794_v11 = vld [vmem:[%s12772_s4 + $0x68] sm:$0xff]   ;;  %v434_v17 = vld [vmem:[%s9630_s29 + $0x34] sm:$0xf] }
  0x1d   : > { %v1280_v13 = vshrl.u32 %v9768_v60, 16  ;;  %v1271_v14 = vrot.slane %v1269_v59, 1  ;;  %v7031_v24 = vcombine.low %v429_v50, %v430_v52  ;;  %v1283_v26 = vshll.u32 %v7030_v12, 16  ;;  %v9814_v48 = vld [vmem:[%s12772_s4 + $0x70] sm:$0xff]  }
  0x1e   : > { %7984 = vmatmul.mubr.msk.bf16.vlgmr.msra.gmra.mrb[0].mxu0 %vm556_vm1, %v9635_v19  ;;  %8004 = vmatmul.mubr.msk.bf16.vlgmr.msra.gmra.mrb[0].mxu1 %vm556_vm1, %v9637_v20  ;;  %v1278_v22 = vrot.slane %v1276_v9, 1  ;;  %v1268_v30 = vor.u32 %v1267_v7, %v1263_v6  ;;  %v1287_v43 = vshrl.u32 %v7030_v12, 16  ;;  %v9807_v44 = vcombine.low %v9648_v23, %v9681_v31 }
  0x1f   : > { %8012 = vmatpush3.bf16.msra.mxu1 %v9644_v21  ;;  %7987 = vmatprep.mubr.msk.bf16.mxu0 %vm9495_vm0, %v9494_v1  ;;  %v1275_v32 = vor.u32 %v1273_v8, %v1271_v14  ;;  %v1290_v50 = vshll.u32 %v7031_v24, 16  ;;  %v7032_v51 = vcombine.low %v431_v54, %v432_v62  ;;  %v9817_v52 = vcombine.low %v433_v63, %v434_v17 }
  0x20   : > { %8013 = vmatprep.subr.bf16.mxu1 %v9494_v1  ;;  %8007 = vmatprep.mubr.msk.bf16.mxu1 %vm9495_vm0, %v9494_v1  ;;  %v1282_v38 = vor.u32 %v1280_v13, %v1278_v22  ;;  %v9820_v23 = vsel %vm1262_vm2, %v1268_v30, %v1271_v14  ;;  %v1294_v54 = vshrl.u32 %v7031_v24, 16  ;;  %vm6231_vm9 = vsmask.f32 1280 }
  0x21   : > { %8048 = vmatpush3.bf16.msra.mxu0 %v9662_v28  ;;  %v9823_v31 = vsel %vm1262_vm2, %v1275_v32, %v1278_v22  ;;  %v1292_v7 = vrot.slane %v1290_v50, 1  ;;  %v1297_v63 = vshll.u32 %v7032_v51, 16  ;;  %v1301_v8 = vshrl.u32 %v7032_v51, 16  ;;  %v9953_v50 = vld [vmem:[%s9723_s25 + $0x30] sm:$0xff]  }
  0x22   : > { %8049 = vmatprep.subr.bf16.mxu0 %v9494_v1  ;;  %v1304_v9 = vshll.u32 %v9817_v52, 16  ;;  %v9850_v22 = vcombine.low %v9698_v36, %v9701_v37  ;;  %v9870_v36 = vld [vmem:[%s9723_s25] sm:$0xff]   ;;  %v9880_v37 = vld [vmem:[%s9723_s25 + $0x8] sm:$0xff]   ;;  %vm6527_vm11 = vsmask.f32 4352  ;;  %vm6386_vm12 = vcmask 1044480  }
  0x23   : > { %8014 = vmatpush3.bf16.msra.mxu1 %v9672_v29  ;;  %v1296_v13 = vor.u32 %v1294_v54, %v1292_v7  ;;  %v1299_v14 = vrot.slane %v1297_v63, 1  ;;  %v2224_v54 = vshll.u32 %v9653_v25, 16  ;;  %v1613_v63 = vshrl.u32 %v9870_v36, 16 }
  0x24   : > { %8015 = vmatprep.subr.bf16.mxu1 %v9494_v1  ;;  %v9846_v17 = vrot.slane %v1304_v9, 1  ;;  %v1619_v9 = vshll.u32 %v9880_v37, 16  ;;  %vm6880_vm13 = vcmask 257024   ;;  %vm6890_vm14 = vcmask 253952  }
  0x25   : > { %8050 = vmatpush3.bf16.msra.mxu0 %v9687_v33  ;;  %v1303_v30 = vor.u32 %v1301_v8, %v1299_v14  ;;  %vm6891_vm15 = vsmask.f32 256 }
  0x26   : > { %7988 = vmatmul.mubr.msk.bf16.gmra.mrb[4].mxu0 %vm556_vm1, %v9689_v34  ;;  %8008 = vmatmul.mubr.msk.bf16.gmra.mrb[4].mxu1 %vm556_vm1, %v9704_v39 }
  0x27   : > { %8016 = vmatpush3.bf16.msra.mxu1 %v9694_v35  ;;  %7991 = vmatprep.mubr.msk.bf16.mxu0 %vm9495_vm0, %v9494_v1  ;;  %v9859_v32 = vsel %vm1262_vm2, %v1303_v30, %v9846_v17 }
  0x28   : > { %8017 = vmatprep.subr.bf16.mxu1 %v9494_v1  ;;  %8019 = vmatprep.mubr.msk.bf16.mxu1 %vm9495_vm0, %v9494_v1 }
  0x29   : > { %8051 = vmatprep.subr.bf16.mxu0 %v9494_v1 }
  0x2a   : > { %8052 = vmatpush3.bf16.msra.mxu0 %v9736_v47 }
  0x2b   : > { %8018 = vmatpush3.bf16.msra.mxu1 %v9743_v49  ;;  %8053 = vmatprep.subr.bf16.mxu0 %v9494_v1 }
  0x2c   : > { %8083 = vmatprep.subr.bf16.mxu1 %v9494_v1 }
  0x2e   : > { %7992 = vmatmul.mubr.msk.bf16.gmra.mrb[8].mxu0 %vm556_vm1, %v9759_v57  ;;  %8020 = vmatmul.mubr.msk.bf16.vlgmr.msra.gmra.mrb[8].mxu1 %vm556_vm1, %v7027_v46  ;;  %v1285_v46 = vrot.slane %v1283_v26, 1  ;;  %v9853_v26 = vsel %vm1262_vm2, %v1296_v13, %v1299_v14 }
  0x2f   : > { %8084 = vmatpush3.bf16.msra.mxu1 %v9764_v58  ;;  %7995 = vmatprep.mubr.msk.bf16.mxu0 %vm9495_vm0, %v9494_v1 }
  0x30   : > { %8023 = vmatprep.mubr.msk.bf16.mxu1 %vm9495_vm0, %v9494_v1  ;;  %8085 = vmatprep.subr.bf16.mxu1 %v9494_v1  ;;  %v1289_v59 = vor.u32 %v1287_v43, %v1285_v46  ;;  %v9826_v6 = vsel %vm1262_vm2, %v1282_v38, %v1285_v46  ;;  %v9922_v38 = vld [vmem:[%s9785_s19] sm:$0xff]   ;;  %v9935_v43 = vld [vmem:[%s9723_s25 + $0x28] sm:$0xff]  }
  0x31   : > { %8054 = vmatpush3.bf16.msra.mxu0 %v9774_v61  ;;  %v9938_v46 = vld [vmem:[%s9785_s19 + $0x8] sm:$0xff]  }
  0x32   : > { %8119 = vmatprep.subr.bf16.mxu0 %v9494_v1  ;;  %v9836_v62 = vsel %vm1262_vm2, %v1289_v59, %v1292_v7  ;;  %v9969_v59 = vld [vmem:[%s9785_s19 + $0x18] sm:$0xff]   ;;  %v9982_v7 = vld [vmem:[%s9785_s19 + $0x20] sm:$0xff]  }
  0x33   : > { %8086 = vmatpush3.bf16.msra.mxu1 %v9794_v11 }
  0x34   : > { %8087 = vmatprep.subr.bf16.mxu1 %v9494_v1 }
  0x36   : > { %7996 = vmatmul.mubr.msk.bf16.gmra.mrb[12].mxu0 %vm556_vm1, %v9807_v44  ;;  %8024 = vmatmul.mubr.msk.bf16.gmra.mrb[12].mxu1 %vm556_vm1, %v7028_v55  ;;  %v9843_v55 = vld [vmem:[%s12772_s4 + $0x78] sm:$0xff]  }
  0x37   : > { %7999 = vmatprep.mubr.msk.bf16.mxu0 %vm9495_vm0, %v9494_v1  ;;  %8027 = vmatprep.mubr.msk.bf16.mxu1 %vm9495_vm0, %v9494_v1 }
  0x38   : > { %8088 = vmatpush3.bf16.msra.mxu1 %v9814_v48 }
  0x39   : > { %8089 = vmatprep.subr.bf16.mxu1 %v9494_v1 }
  0x3c   : > { %8090 = vmatpush3.bf16.msra.mxu1 %v9843_v55 }
  0x3d   : > { %8155 = vmatprep.subr.bf16.mxu1 %v9494_v1 }
  0x3e   : > { %8000 = vmatmul.mubr.msk.bf16.gmra.mrb[16].mxu0 %vm556_vm1, %v9850_v22  ;;  %8028 = vmatmul.mubr.msk.bf16.gmra.mrb[16].mxu1 %vm556_vm1, %v9768_v60  ;;  %v9895_v60 = vld [vmem:[%s9723_s25 + $0x10] sm:$0xff]  }
  0x3f   : > { %8031 = vmatprep.mubr.msk.bf16.mxu1 %vm9495_vm0, %v9494_v1  ;;  %8055 = vmatprep.mubr.msk.bf16.mxu0 %vm9495_vm0, %v9494_v1 }
  0x46   : > { %8032 = vmatmul.mubr.msk.bf16.gmra.mrb[20].mxu1 %vm556_vm1, %v7030_v12  ;;  %8056 = vmatmul.mubr.msk.bf16.vlgmr.msra.gmra.mrb[20].mxu0 %vm556_vm1, %v9870_v36  ;;  %v9908_v12 = vld [vmem:[%s9723_s25 + $0x18] sm:$0xff]  }
  0x47   : > { %8035 = vmatprep.mubr.msk.bf16.mxu1 %vm9495_vm0, %v9494_v1  ;;  %8059 = vmatprep.mubr.msk.bf16.mxu0 %vm9495_vm0, %v9494_v1 }
  0x48   : > { %8120 = vmatpush3.bf16.msra.mxu0 %v9562_v0 }
  0x49   : > { %8121 = vmatprep.subr.bf16.mxu0 %v9494_v1 }
  0x4c   : > { %8122 = vmatpush3.bf16.msra.mxu0 %v9571_v2 }
  0x4d   : > { %8123 = vmatprep.subr.bf16.mxu0 %v9494_v1 }
  0x4e   : > { %8036 = vmatmul.mubr.msk.bf16.gmra.mrb[24].mxu1 %vm556_vm1, %v7031_v24  ;;  %8060 = vmatmul.mubr.msk.bf16.gmra.mrb[24].mxu0 %vm556_vm1, %v9880_v37  ;;  %v9919_v24 = vld [vmem:[%s9723_s25 + $0x20] sm:$0xff]   ;;  %s9323_s25 = smul.u32 40, %s12783_s14 }
  0x4f   : > { %8039 = vmatprep.mubr.msk.bf16.mxu1 %vm9495_vm0, %v9494_v1  ;;  %8063 = vmatprep.mubr.msk.bf16.mxu0 %vm9495_vm0, %v9494_v1 }
  0x50   : > { %8124 = vmatpush3.bf16.msra.mxu0 %v9586_v3  ;;  %s12734_s30 = scalar_lea.vmem %s12778_s10, %s9323_s25 }
  0x51   : > { %8125 = vmatprep.subr.bf16.mxu0 %v9494_v1 }
  0x54   : > { %8126 = vmatpush3.bf16.msra.mxu0 %v9602_v4 }
  0x55   : > { %8191 = vmatprep.subr.bf16.mxu0 %v9494_v1 }
  0x56   : > { %8040 = vmatmul.mubr.msk.bf16.gmra.mrb[28].mxu1 %vm556_vm1, %v7032_v51  ;;  %8064 = vmatmul.mubr.msk.bf16.gmra.mrb[28].mxu0 %vm556_vm1, %v9895_v60  ;;  %v9956_v51 = vld [vmem:[%s9785_s19 + $0x10] sm:$0xff]  }
  0x57   : > { %8043 = vmatprep.mubr.msk.bf16.mxu1 %vm9495_vm0, %v9494_v1  ;;  %8067 = vmatprep.mubr.msk.bf16.mxu0 %vm9495_vm0, %v9494_v1 }
  0x5e   : > { %8044 = vmatmul.mubr.msk.bf16.gmra.mrb[32].mxu1 %vm556_vm1, %v9817_v52  ;;  %8068 = vmatmul.mubr.msk.bf16.gmra.mrb[32].mxu0 %vm556_vm1, %v9908_v12 }
  0x5f   : > { %8071 = vmatprep.mubr.msk.bf16.mxu0 %vm9495_vm0, %v9494_v1  ;;  %8091 = vmatprep.mubr.msk.bf16.mxu1 %vm9495_vm0, %v9494_v1 }
  0x66   : > { %8072 = vmatmul.mubr.msk.bf16.gmra.mrb[36].mxu0 %vm556_vm1, %v9919_v24  ;;  %8092 = vmatmul.mubr.msk.bf16.vlgmr.msra.gmra.mrb[36].mxu1 %vm556_vm1, %v9922_v38 }
  0x67   : > { %8156 = vmatpush3.bf16.msra.mxu1 %v9644_v21  ;;  %8075 = vmatprep.mubr.msk.bf16.mxu0 %vm9495_vm0, %v9494_v1 }
  0x68   : > { %8095 = vmatprep.mubr.msk.bf16.mxu1 %vm9495_vm0, %v9494_v1  ;;  %8157 = vmatprep.subr.bf16.mxu1 %v9494_v1 }
  0x6b   : > { %8158 = vmatpush3.bf16.msra.mxu1 %v9672_v29 }
  0x6c   : > { %8159 = vmatprep.subr.bf16.mxu1 %v9494_v1 }
  0x6e   : > { %8076 = vmatmul.mubr.msk.bf16.gmra.mrb[40].mxu0 %vm556_vm1, %v9935_v43  ;;  %8096 = vmatmul.mubr.msk.bf16.gmra.mrb[40].mxu1 %vm556_vm1, %v9938_v46 }
  0x6f   : > { %8079 = vmatprep.mubr.msk.bf16.mxu0 %vm9495_vm0, %v9494_v1  ;;  %8099 = vmatprep.mubr.msk.bf16.mxu1 %vm9495_vm0, %v9494_v1 }
  0x70   : > { %8160 = vmatpush3.bf16.msra.mxu1 %v9694_v35 }
  0x71   : > { %8161 = vmatprep.subr.bf16.mxu1 %v9494_v1 }
  0x74   : > { %8162 = vmatpush3.bf16.msra.mxu1 %v9743_v49 }
  0x75   : > { %8227 = vmatprep.subr.bf16.mxu1 %v9494_v1 }
  0x76   : > { %8080 = vmatmul.mubr.msk.bf16.gmra.mrb[44].mxu0 %vm556_vm1, %v9953_v50  ;;  %8100 = vmatmul.mubr.msk.bf16.gmra.mrb[44].mxu1 %vm556_vm1, %v9956_v51 }
  0x77   : > { %8103 = vmatprep.mubr.msk.bf16.mxu1 %vm9495_vm0, %v9494_v1  ;;  %8127 = vmatprep.mubr.msk.bf16.mxu0 %vm9495_vm0, %v9494_v1 }
  0x7e   : > { %8104 = vmatmul.mubr.msk.bf16.gmra.mrb[48].mxu1 %vm556_vm1, %v9969_v59  ;;  %8128 = vmatmul.mubr.msk.bf16.vlgmr.msra.gmra.mrb[48].mxu0 %vm556_vm1, %v9820_v23 }
  0x7f   : > { %8107 = vmatprep.mubr.msk.bf16.mxu1 %vm9495_vm0, %v9494_v1  ;;  %8131 = vmatprep.mubr.msk.bf16.mxu0 %vm9495_vm0, %v9494_v1 }
  0x80   : > { %8192 = vmatpush3.bf16.msra.mxu0 %v9662_v28  ;;  %v9997_v28 = vld [vmem:[%s9785_s19 + $0x28] sm:$0xff]  }
  0x81   : > { %8193 = vmatprep.subr.bf16.mxu0 %v9494_v1 }
  0x84   : > { %8194 = vmatpush3.bf16.msra.mxu0 %v9687_v33  ;;  %v10010_v33 = vld [vmem:[%s9785_s19 + $0x30] sm:$0xff]  }
  0x85   : > { %8195 = vmatprep.subr.bf16.mxu0 %v9494_v1 }
  0x86   : > { %8108 = vmatmul.mubr.msk.bf16.gmra.mrb[52].mxu1 %vm556_vm1, %v9982_v7  ;;  %8132 = vmatmul.mubr.msk.bf16.gmra.mrb[52].mxu0 %vm556_vm1, %v9823_v31 }
  0x87   : > { %8111 = vmatprep.mubr.msk.bf16.mxu1 %vm9495_vm0, %v9494_v1  ;;  %8135 = vmatprep.mubr.msk.bf16.mxu0 %vm9495_vm0, %v9494_v1 }
  0x88   : > { %8196 = vmatpush3.bf16.msra.mxu0 %v9736_v47 }
  0x89   : > { %8197 = vmatprep.subr.bf16.mxu0 %v9494_v1 }
  0x8c   : > { %8198 = vmatpush3.bf16.msra.mxu0 %v9774_v61 }
  0x8d   : > { %8263 = vmatprep.subr.bf16.mxu0 %v9494_v1 }
  0x8e   : > { %8112 = vmatmul.mubr.msk.bf16.gmra.mrb[56].mxu1 %vm556_vm1, %v9997_v28  ;;  %8136 = vmatmul.mubr.msk.bf16.gmra.mrb[56].mxu0 %vm556_vm1, %v9826_v6 }
  0x8f   : > { %8115 = vmatprep.mubr.msk.bf16.mxu1 %vm9495_vm0, %v9494_v1  ;;  %8139 = vmatprep.mubr.msk.bf16.mxu0 %vm9495_vm0, %v9494_v1 }
  0x96   : > { %8116 = vmatmul.mubr.msk.bf16.gmra.mrb[60].mxu1 %vm556_vm1, %v10010_v33  ;;  %8140 = vmatmul.mubr.msk.bf16.gmra.mrb[60].mxu0 %vm556_vm1, %v9836_v62 }
  0x97   : > { %8143 = vmatprep.mubr.msk.bf16.mxu0 %vm9495_vm0, %v9494_v1  ;;  %8163 = vmatprep.mubr.msk.bf16.mxu1 %vm9495_vm0, %v9494_v1 }
  0x9e   : > { %8144 = vmatmul.mubr.msk.bf16.gmra.mrb[64].mxu0 %vm556_vm1, %v9853_v26  ;;  %8164 = vmatmul.mubr.msk.bf16.vlgmr.msra.gmra.mrb[64].mxu1 %vm556_vm1, %v9635_v19  ;;  %v1308_v19 = vshrl.u32 %v9817_v52, 16  ;;  %v2212_v52 = vshrl.u32 %v9633_v18, 16  ;;  %v2233_v26 = vshll.u32 %v9709_v40, 16 }
  0x9f   : > { %8228 = vmatpush3.bf16.msra.mxu1 %v9764_v58  ;;  %8147 = vmatprep.mubr.msk.bf16.mxu0 %vm9495_vm0, %v9494_v1 }
  0xa0   : > { %8167 = vmatprep.mubr.msk.bf16.mxu1 %vm9495_vm0, %v9494_v1  ;;  %8229 = vmatprep.subr.bf16.mxu1 %v9494_v1  ;;  %v1310_v58 = vor.u32 %v1308_v19, %v9846_v17  ;;  %v2214_v23 = vrot.slane %v2212_v52, 1  ;;  %v1621_v17 = vrot.slane %v1619_v9, 1  ;;  %v1623_v19 = vshrl.u32 %v9880_v37, 16 }
  0xa1   : > { %v1640_v9 = vshll.u32 %v9919_v24, 16 }
  0xa3   : > { %8230 = vmatpush3.bf16.msra.mxu1 %v9794_v11 }
  0xa4   : > { %8231 = vmatprep.subr.bf16.mxu1 %v9494_v1 }
  0xa6   : > { %8148 = vmatmul.mubr.msk.bf16.gmra.mrb[68].mxu0 %vm556_vm1, %v9859_v32  ;;  %8168 = vmatmul.mubr.msk.bf16.gmra.mrb[68].mxu1 %vm556_vm1, %v9689_v34  ;;  %v2204_v34 = vshrl.u32 %v9611_v10, 16 }
  0xa7   : > { %8151 = vmatprep.mubr.msk.bf16.mxu0 %vm9495_vm0, %v9494_v1  ;;  %8171 = vmatprep.mubr.msk.bf16.mxu1 %vm9495_vm0, %v9494_v1 }
  0xa8   : > { %8232 = vmatpush3.bf16.msra.mxu1 %v9814_v48 }
  0xa9   : > { %8233 = vmatprep.subr.bf16.mxu1 %v9494_v1 }
  0xac   : > { %8234 = vmatpush3.bf16.msra.mxu1 %v9843_v55 }
  0xad   : > { %8299 = vmatprep.subr.bf16.mxu1 %v9494_v1 }
  0xae   : > { %8152 = vmatmul.mubr.msk.bf16.gmra.mrb[72].mxu0 %vm556_vm1, %v1310_v58  ;;  %8172 = vmatmul.mubr.msk.bf16.gmra.mrb[72].mxu1 %vm556_vm1, %v9759_v57  ;;  %v2207_v57 = vshll.u32 %v9611_v10, 16  ;;  %v1626_v58 = vshll.u32 %v9895_v60, 16 }
  0xaf   : > { %8175 = vmatprep.mubr.msk.bf16.mxu1 %vm9495_vm0, %v9494_v1  ;;  %8199 = vmatprep.mubr.msk.bf16.mxu0 %vm9495_vm0, %v9494_v1 }
  0xb0   : > { %v2209_v10 = vrot.slane %v2207_v57, 2  ;;  %v1628_v52 = vrot.slane %v1626_v58, 1 }
  0xb6   : > { %8176 = vmatmul.mubr.msk.bf16.gmra.mrb[76].mxu1 %vm556_vm1, %v9807_v44  ;;  %8200 = vmatmul.mubr.msk.bf16.vlgmr.msra.gmra.mrb[76].mxu0 %vm556_vm1, %v9922_v38  ;;  %v2215_v44 = vshll.u32 %v9633_v18, 16 }
  0xb7   : > { %8179 = vmatprep.mubr.msk.bf16.mxu1 %vm9495_vm0, %v9494_v1  ;;  %8203 = vmatprep.mubr.msk.bf16.mxu0 %vm9495_vm0, %v9494_v1 }
  0xb8   : > { %8264 = vmatpush3.bf16.msra.mxu0 %v9562_v0  ;;  %v2206_v0 = vrot.slane %v2204_v34, 1  ;;  %v2217_v18 = vrot.slane %v2215_v44, 2  ;;  %v2239_v44 = vshrl.u32 %v9712_v41, 16 }
  0xb9   : > { %8265 = vmatprep.subr.bf16.mxu0 %v9494_v1 }
  0xba   : > { %v2218_v31 = vor.u32 %v2217_v18, %v2214_v23 }
  0xbc   : > { %8266 = vmatpush3.bf16.msra.mxu0 %v9571_v2  ;;  %v2210_v2 = vor.u32 %v2209_v10, %v2206_v0  ;;  %v2242_v0 = vshll.u32 %v9712_v41, 16  ;;  %v2241_v10 = vrot.slane %v2239_v44, 1  ;;  %v1651_v44 = vshrl.u32 %v9935_v43, 16 }
  0xbd   : > { %8267 = vmatprep.subr.bf16.mxu0 %v9494_v1 }
  0xbe   : > { %8180 = vmatmul.mubr.msk.bf16.gmra.mrb[80].mxu1 %vm556_vm1, %v9850_v22  ;;  %8204 = vmatmul.mubr.msk.bf16.gmra.mrb[80].mxu0 %vm556_vm1, %v9938_v46  ;;  %v10086_v6 = vsel %vm2007_vm3, %v2210_v2, %v2218_v31  ;;  %v2230_v22 = vshrl.u32 %v9709_v40, 16  ;;  %v1625_v40 = vor.u32 %v1623_v19, %v1621_v17  ;;  %v2244_v23 = vrot.slane %v2242_v0, 2 }
  0xbf   : > { %8183 = vmatprep.mubr.msk.bf16.mxu1 %vm9495_vm0, %v9494_v1  ;;  %8207 = vmatprep.mubr.msk.bf16.mxu0 %vm9495_vm0, %v9494_v1  ;;  %v1633_v2 = vshll.u32 %v9908_v12, 16  ;;  %v1654_v0 = vshll.u32 %v9953_v50, 16 }
  0xc0   : > { %8268 = vmatpush3.bf16.msra.mxu0 %v9586_v3  ;;  %v1615_v3 = vshll.u32 %v9870_v36, 16  ;;  %v2232_v30 = vrot.slane %v2230_v22, 1  ;;  %v10131_v18 = vsel %vm1262_vm2, %v1625_v40, %v1628_v52  ;;  %v1647_v22 = vshll.u32 %v9935_v43, 16 }
  0xc1   : > { %8269 = vmatprep.subr.bf16.mxu0 %v9494_v1 }
  0xc2   : > { %v1617_v8 = vrot.slane %v1615_v3, 1  ;;  %v1635_v3 = vrot.slane %v1633_v2, 1  ;;  %v10205_v2 = vld [vmem:[%s12772_s4 + $0x48] sm:$0xff]  }
  0xc4   : > { %8270 = vmatpush3.bf16.msra.mxu0 %v9602_v4  ;;  %v2221_v4 = vshrl.u32 %v9653_v25, 16  ;;  %v1618_v25 = vor.u32 %v1617_v8, %v1613_v63  ;;  %v1637_v8 = vshrl.u32 %v9908_v12, 16 }
  0xc5   : > { %8335 = vmatprep.subr.bf16.mxu0 %v9494_v1 }
  0xc6   : > { %8184 = vmatmul.mubr.msk.bf16.gmra.mrb[84].mxu1 %vm556_vm1, %v9637_v20  ;;  %8208 = vmatmul.mubr.msk.bf16.gmra.mrb[84].mxu0 %vm556_vm1, %v9956_v51  ;;  %v2223_v62 = vrot.slane %v2221_v4, 1  ;;  %v2226_v20 = vrot.slane %v2224_v54, 2  ;;  %v10111_v32 = vsel %vm1262_vm2, %v1618_v25, %v1621_v17  ;;  %v2248_v4 = vshrl.u32 %v9619_v15, 16 }
  0xc7   : > { %8187 = vmatprep.mubr.msk.bf16.mxu1 %vm9495_vm0, %v9494_v1  ;;  %8211 = vmatprep.mubr.msk.bf16.mxu0 %vm9495_vm0, %v9494_v1  ;;  %v2251_v54 = vshll.u32 %v9619_v15, 16  ;;  %v1644_v17 = vshrl.u32 %v9919_v24, 16 }
  0xc8   : > { %v2227_v13 = vor.u32 %v2226_v20, %v2223_v62  ;;  %v2250_v62 = vrot.slane %v2248_v4, 1 }
  0xc9   : > { %v2253_v20 = vrot.slane %v2251_v54, 2 }
  0xca   : > { %v10102_v14 = vsel %vm2007_vm3, %v2218_v31, %v2227_v13  ;;  %v2245_v31 = vor.u32 %v2244_v23, %v2241_v10 }
  0xce   : > { %8188 = vmatmul.mubr.msk.bf16.gmra.mrb[88].mxu1 %vm556_vm1, %v9704_v39  ;;  %8212 = vmatmul.mubr.msk.bf16.gmra.mrb[88].mxu0 %vm556_vm1, %v9969_v59  ;;  %v2235_v39 = vrot.slane %v2233_v26, 2 }
  0xcf   : > { %8215 = vmatprep.mubr.msk.bf16.mxu0 %vm9495_vm0, %v9494_v1  ;;  %8235 = vmatprep.mubr.msk.bf16.mxu1 %vm9495_vm0, %v9494_v1 }
  0xd0   : > { %v2236_v34 = vor.u32 %v2235_v39, %v2232_v30  ;;  %v1649_v30 = vrot.slane %v1647_v22, 1  ;;  %v10189_v39 = vld [vmem:[%s12772_s4 + $0x40] sm:$0xff]  }
  0xd2   : > { %v10120_v57 = vsel %vm2007_vm3, %v2227_v13, %v2236_v34  ;;  %v10142_v41 = vsel %vm2007_vm3, %v2236_v34, %v2245_v31  ;;  %v10158_v13 = vor.u32 %v2253_v20, %v2250_v62 }
  0xd4   : > { %v10167_v15 = vsel %vm2007_vm3, %v2245_v31, %v10158_v13  ;;  %v1653_v31 = vor.u32 %v1651_v44, %v1649_v30 }
  0xd6   : > { %8216 = vmatmul.mubr.msk.bf16.gmra.mrb[92].mxu0 %vm556_vm1, %v9982_v7  ;;  %8236 = vmatmul.mubr.msk.bf16.vlgmr.msra.gmra.mrb[92].mxu1 %vm556_vm1, %v10111_v32 }
  0xd7   : > { %8300 = vmatpush3.bf16.msra.mxu1 %v9644_v21  ;;  %8219 = vmatprep.mubr.msk.bf16.mxu0 %vm9495_vm0, %v9494_v1  ;;  %v1630_v21 = vshrl.u32 %v9895_v60, 16 }
  0xd8   : > { %8239 = vmatprep.mubr.msk.bf16.mxu1 %vm9495_vm0, %v9494_v1  ;;  %8301 = vmatprep.subr.bf16.mxu1 %v9494_v1 }
  0xdb   : > { %8302 = vmatpush3.bf16.msra.mxu1 %v9672_v29  ;;  %v1632_v29 = vor.u32 %v1630_v21, %v1628_v52 }
  0xdc   : > { %8303 = vmatprep.subr.bf16.mxu1 %v9494_v1 }
  0xdd   : > { %v10153_v63 = vsel %vm1262_vm2, %v1632_v29, %v1635_v3  ;;  %v1656_v29 = vrot.slane %v1654_v0, 1 }
  0xde   : > { %8220 = vmatmul.mubr.msk.bf16.gmra.mrb[96].mxu0 %vm556_vm1, %v9997_v28  ;;  %8240 = vmatmul.mubr.msk.bf16.gmra.mrb[96].mxu1 %vm556_vm1, %v10131_v18 }
  0xdf   : > { %8223 = vmatprep.mubr.msk.bf16.mxu0 %vm9495_vm0, %v9494_v1  ;;  %8243 = vmatprep.mubr.msk.bf16.mxu1 %vm9495_vm0, %v9494_v1 }
  0xe0   : > { %8304 = vmatpush3.bf16.msra.mxu1 %v9694_v35  ;;  %v1639_v35 = vor.u32 %v1637_v8, %v1635_v3 }
  0xe1   : > { %8305 = vmatprep.subr.bf16.mxu1 %v9494_v1 }
  0xe4   : > { %8306 = vmatpush3.bf16.msra.mxu1 %v9743_v49  ;;  %v1642_v49 = vrot.slane %v1640_v9, 1 }
  0xe5   : > { %8371 = vmatprep.subr.bf16.mxu1 %v9494_v1 }
  0xe6   : > { %8224 = vmatmul.mubr.msk.bf16.gmra.mrb[100].mxu0 %vm556_vm1, %v10010_v33  ;;  %8244 = vmatmul.mubr.msk.bf16.gmra.mrb[100].mxu1 %vm556_vm1, %v10153_v63  ;;  %v10174_v25 = vsel %vm1262_vm2, %v1639_v35, %v1642_v49  ;;  %v1646_v26 = vor.u32 %v1644_v17, %v1642_v49 }
  0xe7   : > { %8247 = vmatprep.mubr.msk.bf16.mxu1 %vm9495_vm0, %v9494_v1  ;;  %8271 = vmatprep.mubr.msk.bf16.mxu0 %vm9495_vm0, %v9494_v1 }
  0xe8   : > { %v10198_v52 = vsel %vm1262_vm2, %v1646_v26, %v1649_v30 }
  0xee   : > { %8248 = vmatmul.mubr.msk.bf16.gmra.mrb[104].mxu1 %vm556_vm1, %v10174_v25  ;;  %8272 = vmatmul.mubr.msk.bf16.vlgmr.msra.gmra.mrb[104].mxu0 %vm556_vm1, %v9922_v38 }
  0xef   : > { %8251 = vmatprep.mubr.msk.bf16.mxu1 %vm9495_vm0, %v9494_v1  ;;  %8275 = vmatprep.mubr.msk.bf16.mxu0 %vm9495_vm0, %v9494_v1 }
  0xf0   : > { %8336 = vmatpush3.bf16.msra.mxu0 %v10189_v39 }
  0xf1   : > { %v10192_v19 = vpop.f32.mrb[0].mxu1  ;;  %v612_v58 = vpop.f32.mrb[0].mxu0  ;;  %8337 = vmatprep.subr.bf16.mxu0 %v9494_v1 }
  0xf2   : > { %v8005_v38 = vpop.f32.mrb[1].mxu1  ;;  %v7985_v34 = vpop.f32.mrb[1].mxu0 }
  0xf3   : > { %v10195_v40 = vpop.f32.mrb[2].mxu1  ;;  %v615_v10 = vpop.f32.mrb[2].mxu0 }
  0xf4   : > { %v8006_v23 = vpop.f32.mrb[3].mxu1  ;;  %v7986_v21 = vpop.f32.mrb[3].mxu0  ;;  %8338 = vmatpush3.bf16.msra.mxu0 %v10205_v2 }
  0xf5   : > { %8339 = vmatprep.subr.bf16.mxu0 %v9494_v1 }
  0xf6   : > { %8252 = vmatmul.mubr.msk.bf16.gmra.mrb[108].mxu1 %vm556_vm1, %v10198_v52  ;;  %8276 = vmatmul.mubr.msk.bf16.gmra.mrb[108].mxu0 %vm556_vm1, %v9938_v46  ;;  %v10224_v46 = vsel %vm1262_vm2, %v1653_v31, %v1656_v29 }
  0xf7   : > { %8255 = vmatprep.mubr.msk.bf16.mxu1 %vm9495_vm0, %v9494_v1  ;;  %8279 = vmatprep.mubr.msk.bf16.mxu0 %vm9495_vm0, %v9494_v1 }
  0xf8   : > { %8340 = vmatpush3.bf16.msra.mxu0 %v9736_v47  ;;  %v1658_v47 = vshrl.u32 %v9953_v50, 16 }
  0xf9   : > { %v10218_v3 = vpop.f32.mrb[4].mxu1  ;;  %v620_v4 = vpop.f32.mrb[4].mxu0  ;;  %8341 = vmatprep.subr.bf16.mxu0 %v9494_v1 }
  0xfa   : > { %v8009_v54 = vpop.f32.mrb[5].mxu1  ;;  %v7989_v62 = vpop.f32.mrb[5].mxu0  ;;  %v10237_v26 = vor.u32 %v1658_v47, %v1656_v29 }
  0xfb   : > { %v10221_v20 = vpop.f32.mrb[6].mxu1  ;;  %v623_v8 = vpop.f32.mrb[6].mxu0 }
  0xfc   : > { %v8010_v9 = vpop.f32.mrb[7].mxu1  ;;  %v7990_v35 = vpop.f32.mrb[7].mxu0  ;;  %8342 = vmatpush3.bf16.msra.mxu0 %v9774_v61 }
  0xfd   : > { %8407 = vmatprep.subr.bf16.mxu0 %v9494_v1 }
  0xfe   : > { %8256 = vmatmul.mubr.msk.bf16.gmra.mrb[112].mxu1 %vm556_vm1, %v10224_v46  ;;  %8280 = vmatmul.mubr.msk.bf16.gmra.mrb[112].mxu0 %vm556_vm1, %v9956_v51 }
  0xff   : > { %8259 = vmatprep.mubr.msk.bf16.mxu1 %vm9495_vm0, %v9494_v1  ;;  %8283 = vmatprep.mubr.msk.bf16.mxu0 %vm9495_vm0, %v9494_v1 }
 0x101   : > { %v781_v49 = vpop.f32.mrb[8].mxu1  ;;  %v628_v17 = vpop.f32.mrb[8].mxu0 }
 0x102   : > { %v782_v22 = vadd.f32 %v781_v49, %v612_v58  ;;  %v8021_v61 = vpop.f32.mrb[9].mxu1  ;;  %v7993_v30 = vpop.f32.mrb[9].mxu0 }
 0x103   : > { %v784_v38 = vpop.f32.mrb[10].mxu1  ;;  %v631_v34 = vpop.f32.mrb[10].mxu0 }
 0x104   : > { %v785_v44 = vadd.f32 %v784_v38, %v615_v10  ;;  %v8022_v0 = vpop.f32.mrb[11].mxu1  ;;  %v7994_v51 = vpop.f32.mrb[11].mxu0 }
 0x105   : > { %v2012_v51 = vshll.u32 %v9657_v27, 16 }
 0x106   : > { %8260 = vmatmul.mubr.msk.bf16.gmra.mrb[116].mxu1 %vm556_vm1, %v10237_v26  ;;  %8284 = vmatmul.mubr.msk.bf16.gmra.mrb[116].mxu0 %vm556_vm1, %v9969_v59  ;;  %v10258_v59 = vld [vmem:[%s12772_s4 + $0x60] sm:$0xff]  }
 0x107   : > { %8287 = vmatprep.mubr.msk.bf16.mxu0 %vm9495_vm0, %v9494_v1  ;;  %8307 = vmatprep.mubr.msk.bf16.mxu1 %vm9495_vm0, %v9494_v1 }
 0x109   : > { %v789_v58 = vpop.f32.mrb[12].mxu1  ;;  %v636_v23 = vpop.f32.mrb[12].mxu0 }
 0x10a   : > { %v10247_v21 = vadd.f32 %v789_v58, %v620_v4  ;;  %v8025_v31 = vpop.f32.mrb[13].mxu1  ;;  %v7997_v10 = vpop.f32.mrb[13].mxu0  ;;  %v2017_v58 = vshrl.u32 %v9714_v42, 16 }
 0x10b   : > { %v792_v29 = vpop.f32.mrb[14].mxu1  ;;  %v639_v54 = vpop.f32.mrb[14].mxu0 }
 0x10c   : > { %v10249_v62 = vadd.f32 %v792_v29, %v623_v8  ;;  %v8026_v9 = vpop.f32.mrb[15].mxu1  ;;  %v7998_v35 = vpop.f32.mrb[15].mxu0 }
 0x10d   : > { %v2014_v35 = vrot.slane %v2012_v51, 2 }
 0x10e   : > { %8288 = vmatmul.mubr.msk.bf16.gmra.mrb[120].mxu0 %vm556_vm1, %v9982_v7  ;;  %8308 = vmatmul.mubr.msk.bf16.vlgmr.msra.gmra.mrb[120].mxu1 %vm556_vm1, %v9870_v36 }
 0x10f   : > { %8372 = vmatpush3.bf16.msra.mxu1 %v10258_v59  ;;  %8291 = vmatprep.mubr.msk.bf16.mxu0 %vm9495_vm0, %v9494_v1 }
 0x110   : > { %8311 = vmatprep.mubr.msk.bf16.mxu1 %vm9495_vm0, %v9494_v1  ;;  %8373 = vmatprep.subr.bf16.mxu1 %v9494_v1 }
 0x111   : > { %v797_v4 = vpop.f32.mrb[16].mxu1  ;;  %v644_v7 = vpop.f32.mrb[16].mxu0 }
 0x112   : > { %v10266_v8 = vadd.f32 %v797_v4, %v628_v17  ;;  %v8029_v36 = vpop.f32.mrb[17].mxu1  ;;  %v8001_v47 = vpop.f32.mrb[17].mxu0  ;;  %v2009_v17 = vshrl.u32 %v9657_v27, 16  ;;  %v2019_v4 = vrot.slane %v2017_v58, 1 }
 0x113   : > { %v800_v49 = vpop.f32.mrb[18].mxu1  ;;  %v647_v61 = vpop.f32.mrb[18].mxu0  ;;  %8374 = vmatpush3.bf16.msra.mxu1 %v9794_v11  ;;  %v2020_v11 = vshll.u32 %v9714_v42, 16 }
 0x114   : > { %v10269_v30 = vadd.f32 %v800_v49, %v631_v34  ;;  %v8030_v38 = vpop.f32.mrb[19].mxu1  ;;  %v8002_v0 = vpop.f32.mrb[19].mxu0  ;;  %8375 = vmatprep.subr.bf16.mxu1 %v9494_v1  ;;  %v2011_v9 = vrot.slane %v2009_v17, 1 }
 0x115   : > { %v2022_v36 = vrot.slane %v2020_v11, 2 }
 0x116   : > { %8292 = vmatmul.mubr.msk.bf16.gmra.mrb[124].mxu0 %vm556_vm1, %v9997_v28  ;;  %8312 = vmatmul.mubr.msk.bf16.gmra.mrb[124].mxu1 %vm556_vm1, %v9880_v37 }
 0x117   : > { %8295 = vmatprep.mubr.msk.bf16.mxu0 %vm9495_vm0, %v9494_v1  ;;  %8315 = vmatprep.mubr.msk.bf16.mxu1 %vm9495_vm0, %v9494_v1 }
 0x118   : > { %8376 = vmatpush3.bf16.msra.mxu1 %v9814_v48 }
 0x119   : > { %v805_v28 = vpop.f32.mrb[20].mxu1  ;;  %v959_v34 = vpop.f32.mrb[20].mxu0  ;;  %8377 = vmatprep.subr.bf16.mxu1 %v9494_v1 }
 0x11a   : > { %v10286_v37 = vadd.f32 %v805_v28, %v636_v23  ;;  %v10288_v31 = vadd.f32 %v959_v34, %v782_v22  ;;  %v8033_v10 = vpop.f32.mrb[21].mxu1  ;;  %v8057_v29 = vpop.f32.mrb[21].mxu0  ;;  %v2015_v22 = vor.u32 %v2014_v35, %v2011_v9 }
 0x11b   : > { %v808_v47 = vpop.f32.mrb[22].mxu1  ;;  %v962_v49 = vpop.f32.mrb[22].mxu0 }
 0x11c   : > { %v10290_v38 = vadd.f32 %v808_v47, %v639_v54  ;;  %v10292_v0 = vadd.f32 %v962_v49, %v785_v44  ;;  %v8034_v48 = vpop.f32.mrb[23].mxu1  ;;  %v8058_v42 = vpop.f32.mrb[23].mxu0  ;;  %8378 = vmatpush3.bf16.msra.mxu1 %v9843_v55  ;;  %v2023_v44 = vor.u32 %v2022_v36, %v2019_v4  ;;  %v2029_v55 = vshll.u32 %v9726_v45, 16 }
 0x11d   : > { %8443 = vmatprep.subr.bf16.mxu1 %v9494_v1  ;;  %v2026_v42 = vshrl.u32 %v9726_v45, 16 }
 0x11e   : > { %8296 = vmatmul.mubr.msk.bf16.gmra.mrb[128].mxu0 %vm556_vm1, %v10010_v33  ;;  %8316 = vmatmul.mubr.msk.bf16.gmra.mrb[128].mxu1 %vm556_vm1, %v9895_v60  ;;  %v2024_v28 = vsel %vm2007_vm3, %v2015_v22, %v2023_v44  ;;  %v2031_v10 = vrot.slane %v2029_v55, 2 }
 0x11f   : > { %8319 = vmatprep.mubr.msk.bf16.mxu1 %vm9495_vm0, %v9494_v1  ;;  %8343 = vmatprep.mubr.msk.bf16.mxu0 %vm9495_vm0, %v9494_v1  ;;  %v2028_v34 = vrot.slane %v2026_v42, 1 }
 0x121   : > { %v813_v23 = vpop.f32.mrb[24].mxu1  ;;  %v967_v54 = vpop.f32.mrb[24].mxu0 }
 0x122   : > { %v10306_v17 = vadd.f32 %v813_v23, %v644_v7  ;;  %v10309_v33 = vadd.f32 %v967_v54, %v10247_v21  ;;  %v8037_v60 = vpop.f32.mrb[25].mxu1  ;;  %v8061_v51 = vpop.f32.mrb[25].mxu0  ;;  %v2032_v21 = vor.u32 %v2031_v10, %v2028_v34  ;;  %v2035_v7 = vshrl.u32 %v9752_v53, 16 }
 0x123   : > { %v816_v58 = vpop.f32.mrb[26].mxu1  ;;  %v970_v11 = vpop.f32.mrb[26].mxu0 }
 0x124   : > { %v10312_v29 = vadd.f32 %v816_v58, %v647_v61  ;;  %v10315_v9 = vadd.f32 %v970_v11, %v10249_v62  ;;  %v8038_v35 = vpop.f32.mrb[27].mxu1  ;;  %v8062_v4 = vpop.f32.mrb[27].mxu0  ;;  %v2038_v61 = vshll.u32 %v9752_v53, 16  ;;  %v9464_v62 = vld [vmem:[%s12772_s4 + $0x20] sm:$0xff]   ;;  %v2033_v23 = vsel %vm2007_vm3, %v2023_v44, %v2032_v21 }
 0x125   : > { %v2037_v54 = vrot.slane %v2035_v7, 1  ;;  %v2047_v44 = vshll.u32 %v9756_v56, 16 }
 0x126   : > { %8320 = vmatmul.mubr.msk.bf16.gmra.mrb[132].mxu1 %vm556_vm1, %v9908_v12  ;;  %8344 = vmatmul.mubr.msk.bf16.vlgmr.msra.gmra.mrb[132].mxu0 %vm556_vm1, %v2024_v28  ;;  %v2040_v60 = vrot.slane %v2038_v61, 2  ;;  %v9466_v28 = vld [vmem:[%s12772_s4 + $0x30] sm:$0xff]  }
 0x127   : > { %8323 = vmatprep.mubr.msk.bf16.mxu1 %vm9495_vm0, %v9494_v1  ;;  %8347 = vmatprep.mubr.msk.bf16.mxu0 %vm9495_vm0, %v9494_v1 }
 0x128   : > { %8408 = vmatpush3.bf16.msra.mxu0 %v9464_v62 }
 0x129   : > { %v821_v36 = vpop.f32.mrb[28].mxu1  ;;  %v975_v12 = vpop.f32.mrb[28].mxu0  ;;  %8409 = vmatprep.subr.bf16.mxu0 %v9494_v1 }
 0x12a   : > { %v10331_v47 = vadd.f32 %v821_v36, %v10192_v19  ;;  %v10334_v49 = vadd.f32 %v975_v12, %v10266_v8  ;;  %v8041_v48 = vpop.f32.mrb[29].mxu1  ;;  %v8065_v22 = vpop.f32.mrb[29].mxu0  ;;  %v9465_v8 = vld [vmem:[%s12772_s4 + $0x28] sm:$0xff]  }
 0x12b   : > { %v824_v42 = vpop.f32.mrb[30].mxu1  ;;  %v978_v55 = vpop.f32.mrb[30].mxu0  ;;  %v2049_v48 = vrot.slane %v2047_v44, 2  ;;  %v9468_v44 = vld [vmem:[%s9630_s29 + $0x34] sm:$0xf] }
 0x12c   : > { %v10338_v51 = vadd.f32 %v824_v42, %v10195_v40  ;;  %v10341_v58 = vadd.f32 %v978_v55, %v10269_v30  ;;  %v8042_v11 = vpop.f32.mrb[31].mxu1  ;;  %v8066_v19 = vpop.f32.mrb[31].mxu0  ;;  %8410 = vmatpush3.bf16.msra.mxu0 %v9465_v8  ;;  %v2041_v40 = vor.u32 %v2040_v60, %v2037_v54  ;;  %v2044_v30 = vshrl.u32 %v9756_v56, 16 }
 0x12d   : > { %8411 = vmatprep.subr.bf16.mxu0 %v9494_v1 }
 0x12e   : > { %8324 = vmatmul.mubr.msk.bf16.gmra.mrb[136].mxu1 %vm556_vm1, %v9919_v24  ;;  %8348 = vmatmul.mubr.msk.bf16.gmra.mrb[136].mxu0 %vm556_vm1, %v2033_v23  ;;  %v2042_v36 = vsel %vm2007_vm3, %v2032_v21, %v2041_v40  ;;  %v2046_v12 = vrot.slane %v2044_v30, 1  ;;  %v2056_v21 = vshll.u32 %v9779_v5, 16  ;;  %v435_v23 = vld [vmem:[%s9630_s29 + $0x38] sm:$0xf] }
 0x12f   : > { %8327 = vmatprep.mubr.msk.bf16.mxu1 %vm9495_vm0, %v9494_v1  ;;  %8351 = vmatprep.mubr.msk.bf16.mxu0 %vm9495_vm0, %v9494_v1 }
 0x130   : > { %8412 = vmatpush3.bf16.msra.mxu0 %v9466_v28  ;;  %v10397_v28 = vcombine.low %v9468_v44, %v435_v23 }
 0x131   : > { %v829_v34 = vpop.f32.mrb[32].mxu1  ;;  %v983_v24 = vpop.f32.mrb[32].mxu0  ;;  %8413 = vmatprep.subr.bf16.mxu0 %v9494_v1 }
 0x132   : > { %v10361_v10 = vadd.f32 %v829_v34, %v10218_v3  ;;  %v10364_v35 = vadd.f32 %v983_v24, %v10286_v37  ;;  %v8045_v4 = vpop.f32.mrb[33].mxu1  ;;  %v8069_v7 = vpop.f32.mrb[33].mxu0  ;;  %v9467_v37 = vld [vmem:[%s12772_s4 + $0x38] sm:$0xff]  }
 0x133   : > { %v832_v61 = vpop.f32.mrb[34].mxu1  ;;  %v986_v62 = vpop.f32.mrb[34].mxu0 }
 0x134   : > { %v10368_v22 = vadd.f32 %v832_v61, %v10221_v20  ;;  %v10371_v42 = vadd.f32 %v986_v62, %v10290_v38  ;;  %v8046_v3 = vpop.f32.mrb[35].mxu1  ;;  %v8070_v55 = vpop.f32.mrb[35].mxu0  ;;  %8414 = vmatpush3.bf16.msra.mxu0 %v9467_v37  ;;  %v2050_v20 = vor.u32 %v2049_v48, %v2046_v12  ;;  %v2053_v38 = vshrl.u32 %v9779_v5, 16 }
 0x135   : > { %8479 = vmatprep.subr.bf16.mxu0 %v9494_v1  ;;  %v2058_v61 = vrot.slane %v2056_v21, 2 }
 0x136   : > { %8328 = vmatmul.mubr.msk.bf16.gmra.mrb[140].mxu1 %vm556_vm1, %v9935_v43  ;;  %8352 = vmatmul.mubr.msk.bf16.gmra.mrb[140].mxu0 %vm556_vm1, %v2042_v36  ;;  %v10390_v43 = vld [vmem:[%s12773_s5] ss:$0 sm:$0xff]  ;;  %v2051_v4 = vsel %vm2007_vm3, %v2041_v40, %v2050_v20  ;;  %v2055_v7 = vrot.slane %v2053_v38, 1 }
 0x137   : > { %8331 = vmatprep.mubr.msk.bf16.mxu1 %vm9495_vm0, %v9494_v1  ;;  %8355 = vmatprep.mubr.msk.bf16.mxu0 %vm9495_vm0, %v9494_v1 }
 0x138   : > { %v2059_v40 = vor.u32 %v2058_v61, %v2055_v7 }
 0x139   : > { %v991_v54 = vpop.f32.mrb[36].mxu0  ;;  %v1151_v60 = vpop.f32.mrb[36].mxu1 }
 0x13a   : > { %v10393_v11 = vadd.f32 %v991_v54, %v10306_v17  ;;  %v1206_v19 = vadd.f32 %v1151_v60, %v10288_v31  ;;  %v8073_v8 = vpop.f32.mrb[37].mxu0  ;;  %v8093_v30 = vpop.f32.mrb[37].mxu1 }
 0x13b   : > { %v994_v34 = vpop.f32.mrb[38].mxu0  ;;  %v1154_v24 = vpop.f32.mrb[38].mxu1  ;;  %v2060_v30 = vsel %vm2007_vm3, %v2050_v20, %v2059_v40  ;;  %v9469_v20 = vld [vmem:[%s12772_s4] sm:$0xff]  }
 0x13c   : > { %v1227_v62 = vadd.f32 %v10390_v43, %v1206_v19  ;;  %v10402_v36 = vadd.f32 %v994_v34, %v10312_v29  ;;  %v1207_v17 = vadd.f32 %v1154_v24, %v10292_v0  ;;  %v8094_v12 = vpop.f32.mrb[39].mxu1  ;;  %v8074_v31 = vpop.f32.mrb[39].mxu0  ;;  %v2062_v29 = vshrl.u32 %v10397_v28, 16 }
 0x13d   : > { %v2065_v0 = vshll.u32 %v10397_v28, 16 }
 0x13e   : > { %v1228_v48 = vadd.f32 %v10390_v43, %v1207_v17  ;;  %8332 = vmatmul.mubr.msk.bf16.gmra.mrb[144].mxu1 %vm556_vm1, %v9953_v50  ;;  %8356 = vmatmul.mubr.msk.bf16.gmra.mrb[144].mxu0 %vm556_vm1, %v2051_v4  ;;  %v1241_v3 = vmax.f32 %v1227_v62, 0.0  ;;  %v2064_v44 = vrot.slane %v2062_v29, 1 }
 0x13f   : > { %8359 = vmatprep.mubr.msk.bf16.mxu0 %vm9495_vm0, %v9494_v1  ;;  %8379 = vmatprep.mubr.msk.bf16.mxu1 %vm9495_vm0, %v9494_v1  ;;  %v2067_v34 = vrot.slane %v2065_v0, 2 }
 0x140   : > { %v1242_v55 = vmax.f32 %v1228_v48, 0.0 }
 0x141   : > { %v999_v37 = vpop.f32.mrb[40].mxu0  ;;  %v1159_v38 = vpop.f32.mrb[40].mxu1 }
 0x142   : > { %v10415_v21 = vpack.c.bf16 %v1242_v55, %v1241_v3  ;;  %v10418_v50 = vadd.f32 %v999_v37, %v10331_v47  ;;  %v1208_v23 = vadd.f32 %v1159_v38, %v10309_v33  ;;  %v8077_v54 = vpop.f32.mrb[41].mxu0  ;;  %v8097_v60 = vpop.f32.mrb[41].mxu1 }
 0x143   : > { %v1002_v19 = vpop.f32.mrb[42].mxu0  ;;  %v1162_v8 = vpop.f32.mrb[42].mxu1 }
 0x144   : > { %v10423_v24 = vadd.f32 %v1002_v19, %v10338_v51  ;;  %v8098_v4 = vpop.f32.mrb[43].mxu1  ;;  %v8078_v7 = vpop.f32.mrb[43].mxu0  ;;  %v1229_v61 = vadd.f32 %v10390_v43, %v1208_v23  ;;  %v1209_v47 = vadd.f32 %v1162_v8, %v10315_v9  ;;  %v2068_v51 = vor.u32 %v2067_v34, %v2064_v44  ;;  %v9470_v23 = vld [vmem:[%s12772_s4 + $0x8] sm:$0xff]  }
 0x146   : > { %8360 = vmatmul.mubr.msk.bf16.gmra.mrb[148].mxu0 %vm556_vm1, %v2060_v30  ;;  %8380 = vmatmul.mubr.msk.bf16.vlgmr.msra.gmra.mrb[148].mxu1 %vm556_vm1, %v10086_v6  ;;  %v1230_v33 = vadd.f32 %v10390_v43, %v1209_v47  ;;  %v1243_v9 = vmax.f32 %v1229_v61, 0.0  ;;  %v2069_v38 = vsel %vm2007_vm3, %v2059_v40, %v2068_v51 }
 0x147   : > { %8444 = vmatpush3.bf16.msra.mxu1 %v9469_v20  ;;  %8363 = vmatprep.mubr.msk.bf16.mxu0 %vm9495_vm0, %v9494_v1 }
 0x148   : > { %8383 = vmatprep.mubr.msk.bf16.mxu1 %vm9495_vm0, %v9494_v1  ;;  %8445 = vmatprep.subr.bf16.mxu1 %v9494_v1  ;;  %v1244_v62 = vmax.f32 %v1230_v33, 0.0 }
 0x149   : > { %v1007_v17 = vpop.f32.mrb[44].mxu0  ;;  %v1167_v12 = vpop.f32.mrb[44].mxu1 }
 0x14a   : > { %v10440_v31 = vadd.f32 %v1007_v17, %v10361_v10  ;;  %v1210_v48 = vadd.f32 %v1167_v12, %v10334_v49  ;;  %v8081_v29 = vpop.f32.mrb[45].mxu0  ;;  %v8101_v0 = vpop.f32.mrb[45].mxu1  ;;  %v10443_v3 = vpack.c.bf16 %v1244_v62, %v1243_v9  ;;  %v9472_v12 = vld [vmem:[%s12772_s4 + $0x18] sm:$0xff]  }
 0x14b   : > { %v1010_v55 = vpop.f32.mrb[46].mxu0  ;;  %v1170_v37 = vpop.f32.mrb[46].mxu1  ;;  %8446 = vmatpush3.bf16.msra.mxu1 %v9470_v23 }
 0x14c   : > { %v1231_v54 = vadd.f32 %v10390_v43, %v1210_v48  ;;  %v10451_v10 = vadd.f32 %v1010_v55, %v10368_v22  ;;  %v1211_v49 = vadd.f32 %v1170_v37, %v10341_v58  ;;  %v8102_v60 = vpop.f32.mrb[47].mxu1  ;;  %8447 = vmatprep.subr.bf16.mxu1 %v9494_v1  ;;  %v8082_v19 = vpop.f32.mrb[47].mxu0  ;;  %v9471_v58 = vld [vmem:[%s12772_s4 + $0x10] sm:$0xff]  }
 0x14e   : > { %v1232_v8 = vadd.f32 %v10390_v43, %v1211_v49  ;;  %8364 = vmatmul.mubr.msk.bf16.gmra.mrb[152].mxu0 %vm556_vm1, %v2069_v38  ;;  %8384 = vmatmul.mubr.msk.bf16.gmra.mrb[152].mxu1 %vm556_vm1, %v10102_v14  ;;  %v1245_v22 = vmax.f32 %v1231_v54, 0.0 }
 0x14f   : > { %8367 = vmatprep.mubr.msk.bf16.mxu0 %vm9495_vm0, %v9494_v1  ;;  %8387 = vmatprep.mubr.msk.bf16.mxu1 %vm9495_vm0, %v9494_v1 }
 0x150   : > { %v1246_v40 = vmax.f32 %v1232_v8, 0.0  ;;  %8448 = vmatpush3.bf16.msra.mxu1 %v9471_v58 }
 0x151   : > { %v1175_v30 = vpop.f32.mrb[48].mxu1  ;;  %v10466_v44 = vpop.f32.mrb[48].mxu0  ;;  %8449 = vmatprep.subr.bf16.mxu1 %v9494_v1 }
 0x152   : > { %v10469_v34 = vpack.c.bf16 %v1246_v40, %v1245_v22  ;;  %v1212_v4 = vadd.f32 %v1175_v30, %v10364_v35  ;;  %v8105_v7 = vpop.f32.mrb[49].mxu1  ;;  %v8129_v61 = vpop.f32.mrb[49].mxu0 }
 0x153   : > { %v1178_v47 = vpop.f32.mrb[50].mxu1  ;;  %v10472_v33 = vpop.f32.mrb[50].mxu0 }
 0x154   : > { %v1233_v20 = vadd.f32 %v10390_v43, %v1212_v4  ;;  %v1213_v9 = vadd.f32 %v1178_v47, %v10371_v42  ;;  %v8106_v62 = vpop.f32.mrb[51].mxu1  ;;  %v8130_v17 = vpop.f32.mrb[51].mxu0  ;;  %8450 = vmatpush3.bf16.msra.mxu1 %v9472_v12 }
 0x155   : > { %8515 = vmatprep.subr.bf16.mxu1 %v9494_v1 }
 0x156   : > { %v1234_v35 = vadd.f32 %v10390_v43, %v1213_v9  ;;  %8368 = vmatmul.mubr.msk.bf16.gmra.mrb[156].mxu0 %vm556_vm1, %v2068_v51  ;;  %8388 = vmatmul.mubr.msk.bf16.gmra.mrb[156].mxu1 %vm556_vm1, %v10120_v57  ;;  %v1247_v42 = vmax.f32 %v1233_v20, 0.0 }
 0x157   : > { %8391 = vmatprep.mubr.msk.bf16.mxu1 %vm9495_vm0, %v9494_v1  ;;  %8415 = vmatprep.mubr.msk.bf16.mxu0 %vm9495_vm0, %v9494_v1 }
 0x158   : > { %v1248_v48 = vmax.f32 %v1234_v35, 0.0 }
 0x159   : > { %v1183_v29 = vpop.f32.mrb[52].mxu1  ;;  %v10488_v0 = vpop.f32.mrb[52].mxu0 }
 0x15a   : > { %v10490_v55 = vpack.c.bf16 %v1248_v48, %v1247_v42  ;;  %v1214_v37 = vadd.f32 %v1183_v29, %v10393_v11  ;;  %v8109_v38 = vpop.f32.mrb[53].mxu1  ;;  %v8133_v51 = vpop.f32.mrb[53].mxu0  ;;  %v2257_v11 = vshrl.u32 %v9621_v16, 16  ;;  %v9473_v48 = vld [vmem:[%s12772_s4 + $0x50] sm:$0xff]  }
 0x15b   : > { %v1186_v23 = vpop.f32.mrb[54].mxu1  ;;  %v10493_v54 = vpop.f32.mrb[54].mxu0 }
 0x15c   : > { %v1235_v49 = vadd.f32 %v10390_v43, %v1214_v37  ;;  %v1215_v60 = vadd.f32 %v1186_v23, %v10402_v36  ;;  %v8110_v19 = vpop.f32.mrb[55].mxu1  ;;  %v8134_v8 = vpop.f32.mrb[55].mxu0  ;;  %v2260_v36 = vshll.u32 %v9621_v16, 16  ;;  %v2259_v9 = vrot.slane %v2257_v11, 1 }
 0x15e   : > { %v1236_v22 = vadd.f32 %v10390_v43, %v1215_v60  ;;  %8392 = vmatmul.mubr.msk.bf16.gmra.mrb[160].mxu1 %vm556_vm1, %v10142_v41  ;;  %8416 = vmatmul.mubr.msk.bf16.vlgmr.msra.gmra.mrb[160].mxu0 %vm556_vm1, %v10111_v32  ;;  %v1249_v40 = vmax.f32 %v1235_v49, 0.0  ;;  %v2262_v62 = vrot.slane %v2260_v36, 2 }
 0x15f   : > { %8395 = vmatprep.mubr.msk.bf16.mxu1 %vm9495_vm0, %v9494_v1  ;;  %8419 = vmatprep.mubr.msk.bf16.mxu0 %vm9495_vm0, %v9494_v1 }
 0x160   : > { %v1250_v58 = vmax.f32 %v1236_v22, 0.0  ;;  %8480 = vmatpush3.bf16.msra.mxu0 %v10189_v39 }
 0x161   : > { %v1191_v30 = vpop.f32.mrb[56].mxu1  ;;  %v10509_v4 = vpop.f32.mrb[56].mxu0  ;;  %8481 = vmatprep.subr.bf16.mxu0 %v9494_v1 }
 0x162   : > { %v10512_v32 = vpack.c.bf16 %v1250_v58, %v1249_v40  ;;  %v1216_v7 = vadd.f32 %v1191_v30, %v10418_v50  ;;  %v8113_v61 = vpop.f32.mrb[57].mxu1  ;;  %v8137_v47 = vpop.f32.mrb[57].mxu0  ;;  %v10530_v50 = vor.u32 %v2262_v62, %v2259_v9 }
 0x163   : > { %v1194_v20 = vpop.f32.mrb[58].mxu1  ;;  %v10515_v17 = vpop.f32.mrb[58].mxu0 }
 0x164   : > { %v1237_v16 = vadd.f32 %v10390_v43, %v1216_v7  ;;  %v1217_v39 = vadd.f32 %v1194_v20, %v10423_v24  ;;  %v8114_v12 = vpop.f32.mrb[59].mxu1  ;;  %v8138_v35 = vpop.f32.mrb[59].mxu0  ;;  %8482 = vmatpush3.bf16.msra.mxu0 %v10205_v2  ;;  %v10544_v60 = vsel %vm2007_vm3, %v10158_v13, %v10530_v50 }
 0x165   : > { %8483 = vmatprep.subr.bf16.mxu0 %v9494_v1 }
 0x166   : > { %v1238_v42 = vadd.f32 %v10390_v43, %v1217_v39  ;;  %8396 = vmatmul.mubr.msk.bf16.gmra.mrb[164].mxu1 %vm556_vm1, %v10167_v15  ;;  %8420 = vmatmul.mubr.msk.bf16.gmra.mrb[164].mxu0 %vm556_vm1, %v10131_v18  ;;  %v1251_v24 = vmax.f32 %v1237_v16, 0.0 }
 0x167   : > { %8399 = vmatprep.mubr.msk.bf16.mxu1 %vm9495_vm0, %v9494_v1  ;;  %8423 = vmatprep.mubr.msk.bf16.mxu0 %vm9495_vm0, %v9494_v1 }
 0x168   : > { %v1252_v2 = vmax.f32 %v1238_v42, 0.0  ;;  %8484 = vmatpush3.bf16.msra.mxu0 %v9473_v48 }
 0x169   : > { %v1199_v29 = vpop.f32.mrb[60].mxu1  ;;  %v10535_v37 = vpop.f32.mrb[60].mxu0  ;;  %8485 = vmatprep.subr.bf16.mxu0 %v9494_v1 }
 0x16a   : > { %v10538_v18 = vpack.c.bf16 %v1252_v2, %v1251_v24  ;;  %v1218_v38 = vadd.f32 %v1199_v29, %v10440_v31  ;;  %v8117_v51 = vpop.f32.mrb[61].mxu1  ;;  %v8141_v23 = vpop.f32.mrb[61].mxu0  ;;  %v9474_v31 = vld [vmem:[%s12772_s4 + $0x58] sm:$0xff]  }
 0x16b   : > { %v1202_v49 = vpop.f32.mrb[62].mxu1  ;;  %v10546_v19 = vpop.f32.mrb[62].mxu0 }
 0x16c   : > { %v1239_v8 = vadd.f32 %v10390_v43, %v1218_v38  ;;  %v1219_v22 = vadd.f32 %v1202_v49, %v10451_v10  ;;  %v8118_v11 = vpop.f32.mrb[63].mxu1  ;;  %v8142_v36 = vpop.f32.mrb[63].mxu0  ;;  %8486 = vmatpush3.bf16.msra.mxu0 %v9474_v31  ;;  %v9475_v38 = vld [vmem:[%s9785_s19] sm:$0xff]  }
 0x16d   : > { %8551 = vmatprep.subr.bf16.mxu0 %v9494_v1 }
 0x16e   : > { %v1240_v40 = vadd.f32 %v10390_v43, %v1219_v22  ;;  %8400 = vmatmul.mubr.msk.bf16.gmra.mrb[168].mxu1 %vm556_vm1, %v10544_v60  ;;  %8424 = vmatmul.mubr.msk.bf16.gmra.mrb[168].mxu0 %vm556_vm1, %v10153_v63  ;;  %v1253_v13 = vmax.f32 %v1239_v8, 0.0 }
 0x16f   : > { %8403 = vmatprep.mubr.msk.bf16.mxu1 %vm9495_vm0, %v9494_v1  ;;  %8427 = vmatprep.mubr.msk.bf16.mxu0 %vm9495_vm0, %v9494_v1 }
 0x170   : > { %v1254_v10 = vmax.f32 %v1240_v40, 0.0 }
 0x171   : > { %v1455_v58 = vpop.f32.mrb[64].mxu1  ;;  %v10563_v30 = vpop.f32.mrb[64].mxu0 }
 0x172   : > { %v10565_v7 = vpack.c.bf16 %v1254_v10, %v1253_v13  ;;  %v1456_v61 = vadd.f32 %v1455_v58, %v10466_v44  ;;  %v8165_v47 = vpop.f32.mrb[65].mxu1  ;;  %v8145_v20 = vpop.f32.mrb[65].mxu0 }
 0x173   : > { %v1458_v9 = vpop.f32.mrb[66].mxu1  ;;  %v10568_v62 = vpop.f32.mrb[66].mxu0 }
 0x174   : > { %v1459_v63 = vadd.f32 %v1458_v9, %v10472_v33  ;;  %v8166_v16 = vpop.f32.mrb[67].mxu1  ;;  %v8146_v39 = vpop.f32.mrb[67].mxu0 }
 0x176   : > { %8404 = vmatmul.mubr.msk.bf16.gmra.mrb[172].mxu1 %vm556_vm1, %v10530_v50  ;;  %8428 = vmatmul.mubr.msk.bf16.gmra.mrb[172].mxu0 %vm556_vm1, %v10174_v25 }
 0x177   : > { %8431 = vmatprep.mubr.msk.bf16.mxu0 %vm9495_vm0, %v9494_v1  ;;  %8451 = vmatprep.mubr.msk.bf16.mxu1 %vm9495_vm0, %v9494_v1 }
 0x179   : > { %v1463_v44 = vpop.f32.mrb[68].mxu1  ;;  %v10579_v12 = vpop.f32.mrb[68].mxu0 }
 0x17a   : > { %v1464_v33 = vadd.f32 %v1463_v44, %v10488_v0  ;;  %v8169_v35 = vpop.f32.mrb[69].mxu1  ;;  %v8149_v42 = vpop.f32.mrb[69].mxu0 }
 0x17b   : > { %v1466_v24 = vpop.f32.mrb[70].mxu1  ;;  %v10582_v2 = vpop.f32.mrb[70].mxu0  ;;  %v9479_v35 = vld [vmem:[%s12772_s4 + $0x78] sm:$0xff]  }
 0x17c   : > { %v1467_v48 = vadd.f32 %v1466_v24, %v10493_v54  ;;  %v8170_v29 = vpop.f32.mrb[71].mxu1  ;;  %v8150_v25 = vpop.f32.mrb[71].mxu0 }
 0x17e   : > { %8432 = vmatmul.mubr.msk.bf16.gmra.mrb[176].mxu0 %vm556_vm1, %v10198_v52  ;;  %8452 = vmatmul.mubr.msk.bf16.vlgmr.msra.gmra.mrb[176].mxu1 %vm556_vm1, %v9475_v38 }
 0x17f   : > { %8516 = vmatpush3.bf16.msra.mxu1 %v10258_v59  ;;  %8435 = vmatprep.mubr.msk.bf16.mxu0 %vm9495_vm0, %v9494_v1  ;;  %v9476_v59 = vld [vmem:[%s12772_s4 + $0x68] sm:$0xff]  }
 0x180   : > { %8455 = vmatprep.mubr.msk.bf16.mxu1 %vm9495_vm0, %v9494_v1  ;;  %8517 = vmatprep.subr.bf16.mxu1 %v9494_v1 }
 0x181   : > { %v1471_v0 = vpop.f32.mrb[72].mxu1  ;;  %v10595_v54 = vpop.f32.mrb[72].mxu0 }
 0x182   : > { %v10598_v51 = vadd.f32 %v1471_v0, %v10509_v4  ;;  %v8173_v52 = vpop.f32.mrb[73].mxu1  ;;  %v8153_v23 = vpop.f32.mrb[73].mxu0  ;;  %v9477_v4 = vld [vmem:[%s9785_s19 + $0x8] sm:$0xff]  }
 0x183   : > { %v1474_v49 = vpop.f32.mrb[74].mxu1  ;;  %v10600_v8 = vpop.f32.mrb[74].mxu0  ;;  %8518 = vmatpush3.bf16.msra.mxu1 %v9476_v59  ;;  %v9481_v59 = vld [vmem:[%s9785_s19 + $0x18] sm:$0xff]  }
 0x184   : > { %v1475_v22 = vadd.f32 %v1474_v49, %v10515_v17  ;;  %v8174_v11 = vpop.f32.mrb[75].mxu1  ;;  %v8154_v36 = vpop.f32.mrb[75].mxu0  ;;  %8519 = vmatprep.subr.bf16.mxu1 %v9494_v1  ;;  %v9478_v17 = vld [vmem:[%s12772_s4 + $0x70] sm:$0xff]  }
 0x185   : > { %v9392_v49 = vld [vmem:[%s12774_s6 + $0x10] sm:$0xff]  }
 0x186   : > { %8436 = vmatmul.mubr.msk.bf16.gmra.mrb[180].mxu0 %vm556_vm1, %v10224_v46  ;;  %8456 = vmatmul.mubr.msk.bf16.gmra.mrb[180].mxu1 %vm556_vm1, %v9477_v4 }
 0x187   : > { %8439 = vmatprep.mubr.msk.bf16.mxu0 %vm9495_vm0, %v9494_v1  ;;  %8459 = vmatprep.mubr.msk.bf16.mxu1 %vm9495_vm0, %v9494_v1 }
 0x188   : > { %8520 = vmatpush3.bf16.msra.mxu1 %v9478_v17 }
 0x189   : > { %v1479_v31 = vpop.f32.mrb[76].mxu1  ;;  %v1544_v40 = vpop.f32.mrb[76].mxu0  ;;  %8521 = vmatprep.subr.bf16.mxu1 %v9494_v1 }
 0x18a   : > { %v1480_v46 = vadd.f32 %v1479_v31, %v10535_v37  ;;  %v10620_v13 = vadd.f32 %v1544_v40, %v1456_v61  ;;  %v8177_v10 = vpop.f32.mrb[77].mxu1  ;;  %v8201_v58 = vpop.f32.mrb[77].mxu0  ;;  %v9480_v37 = vld [vmem:[%s9785_s19 + $0x10] sm:$0xff]  }
 0x18b   : > { %v1482_v47 = vpop.f32.mrb[78].mxu1  ;;  %v1547_v20 = vpop.f32.mrb[78].mxu0 }
 0x18c   : > { %v1483_v9 = vadd.f32 %v1482_v47, %v10546_v19  ;;  %v10623_v16 = vadd.f32 %v1547_v20, %v1459_v63  ;;  %v8178_v39 = vpop.f32.mrb[79].mxu1  ;;  %v8202_v44 = vpop.f32.mrb[79].mxu0  ;;  %8522 = vmatpush3.bf16.msra.mxu1 %v9479_v35  ;;  %v9482_v47 = vld [vmem:[%s9785_s19 + $0x20] sm:$0xff]  }
 0x18d   : > { %8583 = vmatprep.subr.bf16.mxu1 %v9494_v1 }
 0x18e   : > { %8440 = vmatmul.mubr.msk.bf16.gmra.mrb[184].mxu0 %vm556_vm1, %v10237_v26  ;;  %8460 = vmatmul.mubr.msk.bf16.gmra.mrb[184].mxu1 %vm556_vm1, %v9480_v37 }
 0x18f   : > { %8463 = vmatprep.mubr.msk.bf16.mxu1 %vm9495_vm0, %v9494_v1  ;;  %8487 = vmatprep.mubr.msk.bf16.mxu0 %vm9495_vm0, %v9494_v1 }
 0x191   : > { %v1487_v19 = vpop.f32.mrb[80].mxu1  ;;  %v1552_v61 = vpop.f32.mrb[80].mxu0 }
 0x192   : > { %v1488_v63 = vadd.f32 %v1487_v19, %v10563_v30  ;;  %v10638_v42 = vadd.f32 %v1552_v61, %v1464_v33  ;;  %v8181_v24 = vpop.f32.mrb[81].mxu1  ;;  %v8205_v29 = vpop.f32.mrb[81].mxu0  ;;  %v9394_v30 = vld [vmem:[%s12774_s6 + $0x18] sm:$0xff]  }
 0x193   : > { %v1490_v25 = vpop.f32.mrb[82].mxu1  ;;  %v1555_v26 = vpop.f32.mrb[82].mxu0  ;;  %v9483_v24 = vld [vmem:[%s9785_s19 + $0x28] sm:$0xff]  }
 0x194   : > { %v1491_v38 = vadd.f32 %v1490_v25, %v10568_v62  ;;  %v10641_v0 = vadd.f32 %v1555_v26, %v1467_v48  ;;  %v8182_v52 = vpop.f32.mrb[83].mxu1  ;;  %v8206_v23 = vpop.f32.mrb[83].mxu0 }
 0x196   : > { %8464 = vmatmul.mubr.msk.bf16.gmra.mrb[188].mxu1 %vm556_vm1, %v9481_v59  ;;  %8488 = vmatmul.mubr.msk.bf16.vlgmr.msra.gmra.mrb[188].mxu0 %vm556_vm1, %v10086_v6 }
 0x197   : > { %8467 = vmatprep.mubr.msk.bf16.mxu1 %vm9495_vm0, %v9494_v1  ;;  %8491 = vmatprep.mubr.msk.bf16.mxu0 %vm9495_vm0, %v9494_v1 }
 0x198   : > { %8552 = vmatpush3.bf16.msra.mxu0 %v9392_v49 }
 0x199   : > { %v1495_v62 = vpop.f32.mrb[84].mxu1  ;;  %v1560_v33 = vpop.f32.mrb[84].mxu0  ;;  %8553 = vmatprep.subr.bf16.mxu0 %v9494_v1 }
 0x19a   : > { %v1496_v48 = vadd.f32 %v1495_v62, %v10579_v12  ;;  %v10660_v6 = vadd.f32 %v1560_v33, %v10598_v51  ;;  %v8185_v11 = vpop.f32.mrb[85].mxu1  ;;  %v8209_v36 = vpop.f32.mrb[85].mxu0  ;;  %v9484_v33 = vld [vmem:[%s9785_s19 + $0x30] sm:$0xff]  }
 0x19b   : > { %v1498_v4 = vpop.f32.mrb[86].mxu1  ;;  %v1563_v17 = vpop.f32.mrb[86].mxu0 }
 0x19c   : > { %v10663_v31 = vadd.f32 %v1498_v4, %v10582_v2  ;;  %v10665_v40 = vadd.f32 %v1563_v17, %v1475_v22  ;;  %v8186_v10 = vpop.f32.mrb[87].mxu1  ;;  %v8210_v58 = vpop.f32.mrb[87].mxu0  ;;  %8554 = vmatpush3.bf16.msra.mxu0 %v9394_v30 }
 0x19d   : > { %8615 = vmatprep.subr.bf16.mxu0 %v9494_v1 }
 0x19e   : > { %8468 = vmatmul.mubr.msk.bf16.gmra.mrb[192].mxu1 %vm556_vm1, %v9482_v47  ;;  %8492 = vmatmul.mubr.msk.bf16.gmra.mrb[192].mxu0 %vm556_vm1, %v10102_v14 }
 0x19f   : > { %8471 = vmatprep.mubr.msk.bf16.mxu1 %vm9495_vm0, %v9494_v1  ;;  %8495 = vmatprep.mubr.msk.bf16.mxu0 %vm9495_vm0, %v9494_v1 }
 0x1a1   : > { %v1503_v12 = vpop.f32.mrb[88].mxu1  ;;  %v1568_v2 = vpop.f32.mrb[88].mxu0 }
 0x1a2   : > { %v10677_v51 = vadd.f32 %v1503_v12, %v10595_v54  ;;  %v10679_v22 = vadd.f32 %v1568_v2, %v1480_v46  ;;  %v8189_v20 = vpop.f32.mrb[89].mxu1  ;;  %v8213_v39 = vpop.f32.mrb[89].mxu0 }
 0x1a3   : > { %v1506_v44 = vpop.f32.mrb[90].mxu1  ;;  %v1571_v35 = vpop.f32.mrb[90].mxu0 }
 0x1a4   : > { %v10682_v37 = vadd.f32 %v1506_v44, %v10600_v8  ;;  %v10684_v14 = vadd.f32 %v1571_v35, %v1483_v9  ;;  %v8190_v19 = vpop.f32.mrb[91].mxu1  ;;  %v8214_v61 = vpop.f32.mrb[91].mxu0 }
 0x1a5   : > { %v2712_v61 = vrot.slane %v9726_v45, 2 }
 0x1a6   : > { %8472 = vmatmul.mubr.msk.bf16.gmra.mrb[196].mxu1 %vm556_vm1, %v9483_v24  ;;  %8496 = vmatmul.mubr.msk.bf16.gmra.mrb[196].mxu0 %vm556_vm1, %v10120_v57 }
 0x1a7   : > { %8475 = vmatprep.mubr.msk.bf16.mxu1 %vm9495_vm0, %v9494_v1  ;;  %8499 = vmatprep.mubr.msk.bf16.mxu0 %vm9495_vm0, %v9494_v1 }
 0x1a9   : > { %v1576_v54 = vpop.f32.mrb[92].mxu0  ;;  %v1716_v8 = vpop.f32.mrb[92].mxu1 }
 0x1aa   : > { %v10694_v46 = vadd.f32 %v1576_v54, %v1488_v63  ;;  %v1771_v9 = vadd.f32 %v1716_v8, %v10620_v13  ;;  %v8217_v29 = vpop.f32.mrb[93].mxu0  ;;  %v8237_v25 = vpop.f32.mrb[93].mxu1  ;;  %v2709_v13 = vrot.slane %v9657_v27, 2  ;;  %v12781_v63 = vld [vmem:[#allocation2_spill] sm:$0xff] }
 0x1ab   : > { %v1579_v26 = vpop.f32.mrb[94].mxu0  ;;  %v1719_v52 = vpop.f32.mrb[94].mxu1  ;;  %v9393_v27 = vld [vmem:[%s12774_s6] sm:$0xff]  }
 0x1ac   : > { %v1785_v23 = vadd.f32 %v10390_v43, %v1771_v9  ;;  %v10698_v57 = vadd.f32 %v1579_v26, %v1491_v38  ;;  %v1772_v49 = vadd.f32 %v1719_v52, %v10623_v16  ;;  %v8238_v59 = vpop.f32.mrb[95].mxu1  ;;  %v8218_v30 = vpop.f32.mrb[95].mxu0  ;;  %v2710_v16 = vrot.slane %v12781_v63, 2 }
 0x1ae   : > { %v1786_v62 = vadd.f32 %v10390_v43, %v1772_v49  ;;  %8476 = vmatmul.mubr.msk.bf16.gmra.mrb[200].mxu1 %vm556_vm1, %v9484_v33  ;;  %8500 = vmatmul.mubr.msk.bf16.gmra.mrb[200].mxu0 %vm556_vm1, %v10142_v41  ;;  %v1799_v38 = vmax.f32 %v1785_v23, 0.0  ;;  %v2711_v20 = vsel %vm2708_vm4, %v2709_v13, %v2710_v16  ;;  %v2713_v23 = vsel %vm2708_vm4, %v2710_v16, %v2712_v61 }
 0x1af   : > { %8503 = vmatprep.mubr.msk.bf16.mxu0 %vm9495_vm0, %v9494_v1  ;;  %8523 = vmatprep.mubr.msk.bf16.mxu1 %vm9495_vm0, %v9494_v1 }
 0x1b0   : > { %v1800_v11 = vmax.f32 %v1786_v62, 0.0 }
 0x1b1   : > { %v1584_v36 = vpop.f32.mrb[96].mxu0  ;;  %v1724_v4 = vpop.f32.mrb[96].mxu1 }
 0x1b2   : > { %v10712_v17 = vpack.c.bf16 %v1800_v11, %v1799_v38  ;;  %v10714_v10 = vadd.f32 %v1584_v36, %v1496_v48  ;;  %v1773_v41 = vadd.f32 %v1724_v4, %v10638_v42  ;;  %v8221_v58 = vpop.f32.mrb[97].mxu0  ;;  %v8241_v47 = vpop.f32.mrb[97].mxu1  ;;  %v2895_v36 = vshll.u32 %v10415_v21, 16 }
 0x1b3   : > { %v1587_v12 = vpop.f32.mrb[98].mxu0  ;;  %v1727_v2 = vpop.f32.mrb[98].mxu1 }
 0x1b4   : > { %v8242_v39 = vpop.f32.mrb[99].mxu1  ;;  %v8222_v44 = vpop.f32.mrb[99].mxu0  ;;  %v1787_v35 = vadd.f32 %v10390_v43, %v1773_v41  ;;  %v10723_v19 = vadd.f32 %v1587_v12, %v10663_v31  ;;  %v1774_v48 = vadd.f32 %v1727_v2, %v10641_v0  ;;  %v9395_v31 = vld [vmem:[%s12774_s6 + $0x8] sm:$0xff]  }
 0x1b6   : > { %8504 = vmatmul.mubr.msk.bf16.gmra.mrb[204].mxu0 %vm556_vm1, %v10167_v15  ;;  %8524 = vmatmul.mubr.msk.bf16.vlgmr.msra.gmra.mrb[204].mxu1 %vm556_vm1, %v2711_v20  ;;  %v1788_v42 = vadd.f32 %v10390_v43, %v1774_v48  ;;  %v1801_v15 = vmax.f32 %v1787_v35, 0.0  ;;  %v2900_v20 = vshll.u32 %v10443_v3, 16 }
 0x1b7   : > { %8584 = vmatpush3.bf16.msra.mxu1 %v9393_v27  ;;  %8507 = vmatprep.mubr.msk.bf16.mxu0 %vm9495_vm0, %v9494_v1  ;;  %v2716_v27 = vrot.slane %v9756_v56, 2 }
 0x1b8   : > { %8527 = vmatprep.mubr.msk.bf16.mxu1 %vm9495_vm0, %v9494_v1  ;;  %8585 = vmatprep.subr.bf16.mxu1 %v9494_v1  ;;  %v1802_v0 = vmax.f32 %v1788_v42, 0.0  ;;  %v2902_v48 = vrot.slane %v2900_v20, 1 }
 0x1b9   : > { %v1592_v24 = vpop.f32.mrb[100].mxu0  ;;  %v1732_v54 = vpop.f32.mrb[100].mxu1 }
 0x1ba   : > { %v10740_v8 = vadd.f32 %v1592_v24, %v10677_v51  ;;  %v1775_v9 = vadd.f32 %v1732_v54, %v10660_v6  ;;  %v8225_v29 = vpop.f32.mrb[101].mxu0  ;;  %v8245_v45 = vpop.f32.mrb[101].mxu1  ;;  %v10743_v25 = vpack.c.bf16 %v1802_v0, %v1801_v15 }
 0x1bb   : > { %v1595_v26 = vpop.f32.mrb[102].mxu0  ;;  %v1735_v52 = vpop.f32.mrb[102].mxu1  ;;  %8586 = vmatpush3.bf16.msra.mxu1 %v9395_v31 }
 0x1bc   : > { %v1789_v49 = vadd.f32 %v10390_v43, %v1775_v9  ;;  %v10748_v59 = vadd.f32 %v1595_v26, %v10682_v37  ;;  %v1776_v30 = vadd.f32 %v1735_v52, %v10665_v40  ;;  %v8246_v51 = vpop.f32.mrb[103].mxu1  ;;  %v8226_v62 = vpop.f32.mrb[103].mxu0  ;;  %8647 = vmatprep.subr.bf16.mxu1 %v9494_v1  ;;  %v2714_v37 = vrot.slane %v9752_v53, 2 }
 0x1be   : > { %v1790_v6 = vadd.f32 %v10390_v43, %v1776_v30  ;;  %8508 = vmatmul.mubr.msk.bf16.gmra.mrb[208].mxu0 %vm556_vm1, %v10544_v60  ;;  %8528 = vmatmul.mubr.msk.bf16.gmra.mrb[208].mxu1 %vm556_vm1, %v2713_v23  ;;  %v1803_v40 = vmax.f32 %v1789_v49, 0.0  ;;  %v2715_v41 = vsel %vm2708_vm4, %v2712_v61, %v2714_v37  ;;  %v2717_v24 = vsel %vm2708_vm4, %v2714_v37, %v2716_v27 }
 0x1bf   : > { %8511 = vmatprep.mubr.msk.bf16.mxu0 %vm9495_vm0, %v9494_v1  ;;  %8531 = vmatprep.mubr.msk.bf16.mxu1 %vm9495_vm0, %v9494_v1  ;;  %v2908_v49 = vshll.u32 %v10469_v34, 16 }
 0x1c0   : > { %v1804_v33 = vmax.f32 %v1790_v6, 0.0  ;;  %v9399_v6 = vld [vmem:[%s12774_s6 + $0x28] sm:$0xff]  }
 0x1c1   : > { %v1740_v13 = vpop.f32.mrb[104].mxu1  ;;  %v10761_v63 = vpop.f32.mrb[104].mxu0 }
 0x1c2   : > { %v10763_v16 = vpack.c.bf16 %v1804_v33, %v1803_v40  ;;  %v1777_v38 = vadd.f32 %v1740_v13, %v10679_v22  ;;  %v8249_v60 = vpop.f32.mrb[105].mxu1  ;;  %v8273_v11 = vpop.f32.mrb[105].mxu0  ;;  %v2904_v40 = vshrl.u32 %v10443_v3, 16  ;;  %v2910_v33 = vrot.slane %v2908_v49, 1 }
 0x1c3   : > { %v1743_v4 = vpop.f32.mrb[106].mxu1  ;;  %v10768_v58 = vpop.f32.mrb[106].mxu0 }
 0x1c4   : > { %v8250_v47 = vpop.f32.mrb[107].mxu1  ;;  %v8274_v53 = vpop.f32.mrb[107].mxu0  ;;  %v1791_v12 = vadd.f32 %v10390_v43, %v1777_v38  ;;  %v1778_v2 = vadd.f32 %v1743_v4, %v10684_v14  ;;  %v2897_v14 = vrot.slane %v2895_v36, 1 }
 0x1c5   : > { %v2906_v47 = vor.u32 %v2904_v40, %v2902_v48 }
 0x1c6   : > { %8512 = vmatmul.mubr.msk.bf16.gmra.mrb[212].mxu0 %vm556_vm1, %v10530_v50  ;;  %8532 = vmatmul.mubr.msk.bf16.gmra.mrb[212].mxu1 %vm556_vm1, %v2715_v41  ;;  %v1792_v22 = vadd.f32 %v10390_v43, %v1778_v2  ;;  %v1805_v39 = vmax.f32 %v1791_v12, 0.0  ;;  %v2893_v50 = vshrl.u32 %v10415_v21, 16 }
 0x1c7   : > { %8535 = vmatprep.mubr.msk.bf16.mxu1 %vm9495_vm0, %v9494_v1  ;;  %8555 = vmatprep.mubr.msk.bf16.mxu0 %vm9495_vm0, %v9494_v1 }
 0x1c8   : > { %v1806_v44 = vmax.f32 %v1792_v22, 0.0  ;;  %v2898_v54 = vor.u32 %v2897_v14, %v2893_v50 }
 0x1c9   : > { %v1748_v35 = vpop.f32.mrb[108].mxu1  ;;  %v10787_v42 = vpop.f32.mrb[108].mxu0 }
 0x1ca   : > { %v1779_v61 = vadd.f32 %v1748_v35, %v10694_v46  ;;  %v8253_v31 = vpop.f32.mrb[109].mxu1  ;;  %v8277_v15 = vpop.f32.mrb[109].mxu0  ;;  %v10790_v0 = vpack.c.bf16 %v1806_v44, %v1805_v39  ;;  %v9397_v46 = vld [vmem:[%s12774_s6 + $0x20] sm:$0xff]   ;;  %v2903_v23 = vsel %vm1262_vm2, %v2898_v54, %v2902_v48  ;;  %v2911_v39 = vsel %vm1262_vm2, %v2906_v47, %v2910_v33 }
 0x1cb   : > { %v1751_v56 = vpop.f32.mrb[110].mxu1  ;;  %v10795_v9 = vpop.f32.mrb[110].mxu0 }
 0x1cc   : > { %v1793_v29 = vadd.f32 %v10390_v43, %v1779_v61  ;;  %v1780_v45 = vadd.f32 %v1751_v56, %v10698_v57  ;;  %v8254_v26 = vpop.f32.mrb[111].mxu1  ;;  %v8278_v52 = vpop.f32.mrb[111].mxu0  ;;  %v2718_v57 = vrot.slane %v9779_v5, 2  ;;  %v2912_v61 = vshrl.u32 %v10469_v34, 16 }
 0x1cd   : > { %v9396_v52 = vld [vmem:[%s9630_s29 + $0x3c] ss:$0 sps:$4 sm:$0x11]  }
 0x1ce   : > { %v1794_v30 = vadd.f32 %v10390_v43, %v1780_v45  ;;  %8536 = vmatmul.mubr.msk.bf16.gmra.mrb[216].mxu1 %vm556_vm1, %v2717_v24  ;;  %8556 = vmatmul.mubr.msk.bf16.vlgmr.msra.gmra.mrb[216].mxu0 %vm2958_vm5, %v2903_v23  ;;  %v1807_v51 = vmax.f32 %v1793_v29, 0.0  ;;  %v2719_v41 = vsel %vm2708_vm4, %v2716_v27, %v2718_v57 }
 0x1cf   : > { %8539 = vmatprep.mubr.msk.bf16.mxu1 %vm9495_vm0, %v9494_v1  ;;  %8559 = vmatprep.mubr.msk.bf16.mxu0 %vm9495_vm0, %v9494_v1 }
 0x1d0   : > { %v1808_v62 = vmax.f32 %v1794_v30, 0.0  ;;  %8616 = vmatpush3.bf16.msra.mxu0 %v9397_v46 }
 0x1d1   : > { %v1756_v37 = vpop.f32.mrb[112].mxu1  ;;  %v10818_v13 = vpop.f32.mrb[112].mxu0  ;;  %8617 = vmatprep.subr.bf16.mxu0 %v9494_v1 }
 0x1d2   : > { %v10821_v38 = vpack.c.bf16 %v1808_v62, %v1807_v51  ;;  %v1781_v5 = vadd.f32 %v1756_v37, %v10714_v10  ;;  %v8257_v60 = vpop.f32.mrb[113].mxu1  ;;  %v8281_v11 = vpop.f32.mrb[113].mxu0  ;;  %v2916_v10 = vshll.u32 %v10490_v55, 16 }
 0x1d3   : > { %v1759_v4 = vpop.f32.mrb[114].mxu1  ;;  %v10827_v53 = vpop.f32.mrb[114].mxu0  ;;  %v2920_v60 = vshrl.u32 %v10490_v55, 16 }
 0x1d4   : > { %v8258_v12 = vpop.f32.mrb[115].mxu1  ;;  %v8282_v2 = vpop.f32.mrb[115].mxu0  ;;  %8618 = vmatpush3.bf16.msra.mxu0 %v9399_v6  ;;  %v1795_v22 = vadd.f32 %v10390_v43, %v1781_v5  ;;  %v1782_v14 = vadd.f32 %v1759_v4, %v10723_v19  ;;  %v2720_v19 = vrot.slane %v10397_v28, 2  ;;  %v2918_v31 = vrot.slane %v2916_v10, 1 }
 0x1d5   : > { %8679 = vmatprep.subr.bf16.mxu0 %v9494_v1  ;;  %v2914_v28 = vor.u32 %v2912_v61, %v2910_v33  ;;  %v2924_v6 = vshll.u32 %v10512_v32, 16 }
 0x1d6   : > { %8540 = vmatmul.mubr.msk.bf16.gmra.mrb[220].mxu1 %vm556_vm1, %v2719_v41  ;;  %8560 = vmatmul.mubr.msk.bf16.gmra.mrb[220].mxu0 %vm2958_vm5, %v2911_v39  ;;  %v1796_v27 = vadd.f32 %v10390_v43, %v1782_v14  ;;  %v1809_v44 = vmax.f32 %v1795_v22, 0.0  ;;  %v2721_v26 = vsel %vm2708_vm4, %v2718_v57, %v2720_v19  ;;  %v2722_v57 = vrot.slane %v9396_v52, 2  ;;  %v9398_v52 = vld [vmem:[%s12774_s6 + $0x30] sm:$0xff]  }
 0x1d7   : > { %8543 = vmatprep.mubr.msk.bf16.mxu1 %vm9495_vm0, %v9494_v1  ;;  %8563 = vmatprep.mubr.msk.bf16.mxu0 %vm9495_vm0, %v9494_v1  ;;  %v2926_v11 = vrot.slane %v2924_v6, 1  ;;  %v2922_v14 = vor.u32 %v2920_v60, %v2918_v31 }
 0x1d8   : > { %v1810_v35 = vmax.f32 %v1796_v27, 0.0  ;;  %v2723_v22 = vsel %vm2708_vm4, %v2720_v19, %v2722_v57  ;;  %v2928_v19 = vshrl.u32 %v10512_v32, 16 }
 0x1d9   : > { %v1764_v48 = vpop.f32.mrb[116].mxu1  ;;  %v10845_v15 = vpop.f32.mrb[116].mxu0 }
 0x1da   : > { %v1783_v56 = vadd.f32 %v1764_v48, %v10740_v8  ;;  %v8261_v24 = vpop.f32.mrb[117].mxu1  ;;  %v8285_v54 = vpop.f32.mrb[117].mxu0  ;;  %v10848_v29 = vpack.c.bf16 %v1810_v35, %v1809_v44  ;;  %v2919_v8 = vsel %vm1262_vm2, %v2914_v28, %v2918_v31  ;;  %v2927_v48 = vsel %vm1262_vm2, %v2922_v14, %v2926_v11 }
 0x1db   : > { %v1767_v45 = vpop.f32.mrb[118].mxu1  ;;  %v10854_v46 = vpop.f32.mrb[118].mxu0  ;;  %v2930_v28 = vor.u32 %v2928_v19, %v2926_v11 }
 0x1dc   : > { %v1797_v23 = vadd.f32 %v10390_v43, %v1783_v56  ;;  %v1784_v30 = vadd.f32 %v1767_v45, %v10748_v59  ;;  %v8262_v51 = vpop.f32.mrb[119].mxu1  ;;  %v8286_v62 = vpop.f32.mrb[119].mxu0  ;;  %v2932_v56 = vshll.u32 %v10538_v18, 16 }
 0x1de   : > { %v1798_v37 = vadd.f32 %v10390_v43, %v1784_v30  ;;  %8544 = vmatmul.mubr.msk.bf16.gmra.mrb[224].mxu1 %vm556_vm1, %v2721_v26  ;;  %8564 = vmatmul.mubr.msk.bf16.gmra.mrb[224].mxu0 %vm2958_vm5, %v2919_v8  ;;  %v1811_v59 = vmax.f32 %v1797_v23, 0.0  ;;  %v2940_v8 = vshll.u32 %v10565_v7, 16 }
 0x1df   : > { %8547 = vmatprep.mubr.msk.bf16.mxu1 %vm9495_vm0, %v9494_v1  ;;  %8567 = vmatprep.mubr.msk.bf16.mxu0 %vm9495_vm0, %v9494_v1 }
 0x1e0   : > { %v1812_v33 = vmax.f32 %v1798_v37, 0.0 }
 0x1e1   : > { %v1943_v5 = vpop.f32.mrb[120].mxu1  ;;  %v10870_v43 = vpop.f32.mrb[120].mxu0 }
 0x1e2   : > { %v10872_v4 = vpack.c.bf16 %v1812_v33, %v1811_v59  ;;  %v1944_v41 = vadd.f32 %v1943_v5, %v10761_v63  ;;  %v8309_v47 = vpop.f32.mrb[121].mxu1  ;;  %v8289_v12 = vpop.f32.mrb[121].mxu0  ;;  %v2936_v59 = vshrl.u32 %v10538_v18, 16  ;;  %v2942_v33 = vrot.slane %v2940_v8, 1 }
 0x1e3   : > { %v1946_v2 = vpop.f32.mrb[122].mxu1  ;;  %v10878_v39 = vpop.f32.mrb[122].mxu0 }
 0x1e4   : > { %v1947_v27 = vadd.f32 %v1946_v2, %v10768_v58  ;;  %v8310_v44 = vpop.f32.mrb[123].mxu1  ;;  %v8290_v35 = vpop.f32.mrb[123].mxu0  ;;  %v2934_v58 = vrot.slane %v2932_v56, 1 }
 0x1e6   : > { %8548 = vmatmul.mubr.msk.bf16.gmra.mrb[228].mxu1 %vm556_vm1, %v2723_v22  ;;  %8568 = vmatmul.mubr.msk.bf16.gmra.mrb[228].mxu0 %vm2958_vm5, %v2927_v48  ;;  %v2938_v2 = vor.u32 %v2936_v59, %v2934_v58 }
 0x1e7   : > { %8571 = vmatprep.mubr.msk.bf16.mxu0 %vm9495_vm0, %v9494_v1  ;;  %8587 = vmatprep.mubr.msk.bf16.mxu1 %vm9495_vm0, %v9494_v1 }
 0x1e8   : > { %v2943_v48 = vsel %vm1262_vm2, %v2938_v2, %v2942_v33 }
 0x1e9   : > { %v1951_v63 = vpop.f32.mrb[124].mxu1  ;;  %v10892_v31 = vpop.f32.mrb[124].mxu0 }
 0x1ea   : > { %v10895_v24 = vadd.f32 %v1951_v63, %v10787_v42  ;;  %v8313_v54 = vpop.f32.mrb[125].mxu1  ;;  %v8293_v45 = vpop.f32.mrb[125].mxu0  ;;  %v2935_v42 = vsel %vm1262_vm2, %v2930_v28, %v2934_v58 }
 0x1eb   : > { %v1954_v26 = vpop.f32.mrb[126].mxu1  ;;  %v10902_v23 = vpop.f32.mrb[126].mxu0 }
 0x1ec   : > { %v10905_v30 = vadd.f32 %v1954_v26, %v10795_v9  ;;  %v8314_v51 = vpop.f32.mrb[127].mxu1  ;;  %v8294_v62 = vpop.f32.mrb[127].mxu0  ;;  %v9400_v9 = vld [vmem:[%s12774_s6 + $0x38] sm:$0xff]  }
 0x1ee   : > { %8572 = vmatmul.mubr.msk.bf16.gmra.mrb[232].mxu0 %vm2958_vm5, %v2935_v42  ;;  %8588 = vmatmul.mubr.msk.bf16.vlgmr.msra.gmra.mrb[232].mxu1 %vm2958_vm5, %v10415_v21  ;;  %v2944_v42 = vshrl.u32 %v10565_v7, 16 }
 0x1ef   : > { %8648 = vmatpush3.bf16.msra.mxu1 %v9398_v52  ;;  %8575 = vmatprep.mubr.msk.bf16.mxu0 %vm9495_vm0, %v9494_v1 }
 0x1f0   : > { %8591 = vmatprep.mubr.msk.bf16.mxu1 %vm9495_vm0, %v9494_v1  ;;  %8649 = vmatprep.subr.bf16.mxu1 %v9494_v1 }
 0x1f1   : > { %v1959_v37 = vpop.f32.mrb[128].mxu1  ;;  %v10920_v57 = vpop.f32.mrb[128].mxu0 }
 0x1f2   : > { %v10926_v5 = vadd.f32 %v1959_v37, %v10818_v13  ;;  %v8317_v11 = vpop.f32.mrb[129].mxu1  ;;  %v8297_v47 = vpop.f32.mrb[129].mxu0  ;;  %v3191_v37 = vrot.slane %v2904_v40, 5  ;;  %v3189_v40 = vrot.slane %v2895_v36, 6 }
 0x1f3   : > { %v1962_v12 = vpop.f32.mrb[130].mxu1  ;;  %v10930_v22 = vpop.f32.mrb[130].mxu0  ;;  %8650 = vmatpush3.bf16.msra.mxu1 %v9400_v9 }
 0x1f4   : > { %v10933_v14 = vadd.f32 %v1962_v12, %v10827_v53  ;;  %v8318_v44 = vpop.f32.mrb[131].mxu1  ;;  %v8298_v35 = vpop.f32.mrb[131].mxu0  ;;  %8711 = vmatprep.subr.bf16.mxu1 %v9494_v1 }
 0x1f6   : > { %8576 = vmatmul.mubr.msk.bf16.gmra.mrb[236].mxu0 %vm2958_vm5, %v2943_v48  ;;  %8592 = vmatmul.mubr.msk.bf16.gmra.mrb[236].mxu1 %vm2958_vm5, %v10443_v3 }
 0x1f7   : > { %8579 = vmatprep.mubr.msk.bf16.mxu0 %vm9495_vm0, %v9494_v1  ;;  %8595 = vmatprep.mubr.msk.bf16.mxu1 %vm9495_vm0, %v9494_v1 }
 0x1f9   : > { %v1967_v13 = vpop.f32.mrb[132].mxu1  ;;  %v2125_v53 = vpop.f32.mrb[132].mxu0 }
 0x1fa   : > { %v10945_v63 = vadd.f32 %v1967_v13, %v10845_v15  ;;  %v10947_v58 = vadd.f32 %v2125_v53, %v1944_v41  ;;  %v8321_v54 = vpop.f32.mrb[133].mxu1  ;;  %v8345_v45 = vpop.f32.mrb[133].mxu0  ;;  %v3192_v15 = vrot.slane %v2900_v20, 6  ;;  %v3195_v53 = vrot.slane %v2912_v61, 5 }
 0x1fb   : > { %v1970_v26 = vpop.f32.mrb[134].mxu1  ;;  %v2128_v28 = vpop.f32.mrb[134].mxu0  ;;  %v3196_v54 = vrot.slane %v2908_v49, 6 }
 0x1fc   : > { %v10950_v52 = vadd.f32 %v1970_v26, %v10854_v46  ;;  %v10952_v51 = vadd.f32 %v2128_v28, %v1947_v27  ;;  %v8322_v62 = vpop.f32.mrb[135].mxu1  ;;  %v8346_v9 = vpop.f32.mrb[135].mxu0  ;;  %v3188_v46 = vrot.slane %v2893_v50, 5  ;;  %v3193_v27 = vor.u32 %v3192_v15, %v3191_v37 }
 0x1fd   : > { %v3197_v45 = vor.u32 %v3196_v54, %v3195_v53 }
 0x1fe   : > { %8580 = vmatmul.mubr.msk.bf16.gmra.mrb[240].mxu0 %vm2958_vm5, %v2944_v42  ;;  %8596 = vmatmul.mubr.msk.bf16.gmra.mrb[240].mxu1 %vm2958_vm5, %v10469_v34  ;;  %v3190_v35 = vor.u32 %v3189_v40, %v3188_v46 }
 0x1ff   : > { %8599 = vmatprep.mubr.msk.bf16.mxu1 %vm9495_vm0, %v9494_v1  ;;  %8619 = vmatprep.mubr.msk.bf16.mxu0 %vm9495_vm0, %v9494_v1 }
 0x201   : > { %v1975_v20 = vpop.f32.mrb[136].mxu1  ;;  %v2133_v41 = vpop.f32.mrb[136].mxu0 }
 0x202   : > { %v10973_v33 = vadd.f32 %v1975_v20, %v10870_v43  ;;  %v10976_v11 = vadd.f32 %v2133_v41, %v10895_v24  ;;  %v8325_v47 = vpop.f32.mrb[137].mxu1  ;;  %v8349_v12 = vpop.f32.mrb[137].mxu0  ;;  %v9401_v43 = vld [vmem:[%s12774_s6 + $0x40] sm:$0xff]   ;;  %v3194_v24 = vsel %vm3187_vm6, %v3190_v35, %v3193_v27  ;;  %v3198_v41 = vsel %vm3187_vm6, %v3193_v27, %v3197_v45 }
 0x203   : > { %v1978_v2 = vpop.f32.mrb[138].mxu1  ;;  %v2136_v44 = vpop.f32.mrb[138].mxu0 }
 0x204   : > { %v10979_v50 = vadd.f32 %v1978_v2, %v10878_v39  ;;  %v10982_v36 = vadd.f32 %v2136_v44, %v10905_v30  ;;  %v8326_v48 = vpop.f32.mrb[139].mxu1  ;;  %v8350_v13 = vpop.f32.mrb[139].mxu0  ;;  %v9403_v39 = vld [vmem:[%s12774_s6 + $0x48] sm:$0xff]  }
 0x206   : > { %8600 = vmatmul.mubr.msk.bf16.gmra.mrb[244].mxu1 %vm2958_vm5, %v10490_v55  ;;  %8620 = vmatmul.mubr.msk.bf16.vlgmr.msra.gmra.mrb[244].mxu0 %vm2958_vm5, %v3194_v24  ;;  %v3204_v24 = vrot.slane %v2924_v6, 6 }
 0x207   : > { %8603 = vmatprep.mubr.msk.bf16.mxu1 %vm9495_vm0, %v9494_v1  ;;  %8623 = vmatprep.mubr.msk.bf16.mxu0 %vm9495_vm0, %v9494_v1 }
 0x208   : > { %8680 = vmatpush3.bf16.msra.mxu0 %v9401_v43 }
 0x209   : > { %v1983_v61 = vpop.f32.mrb[140].mxu1  ;;  %v2141_v30 = vpop.f32.mrb[140].mxu0  ;;  %8681 = vmatprep.subr.bf16.mxu0 %v9494_v1 }
 0x20a   : > { %v11004_v49 = vadd.f32 %v1983_v61, %v10892_v31  ;;  %v11007_v26 = vadd.f32 %v2141_v30, %v10926_v5  ;;  %v8329_v28 = vpop.f32.mrb[141].mxu1  ;;  %v8353_v62 = vpop.f32.mrb[141].mxu0  ;;  %v3199_v31 = vrot.slane %v2920_v60, 5  ;;  %v3200_v5 = vrot.slane %v2916_v10, 6 }
 0x20b   : > { %v1986_v9 = vpop.f32.mrb[142].mxu1  ;;  %v2144_v37 = vpop.f32.mrb[142].mxu0  ;;  %v3208_v61 = vrot.slane %v2932_v56, 6  ;;  %v3207_v28 = vrot.slane %v2936_v59, 5  ;;  %v11063_v62 = vld [vmem:[%s12773_s5] ss:$0 sm:$0xff] }
 0x20c   : > { %v11010_v15 = vadd.f32 %v1986_v9, %v10902_v23  ;;  %v11013_v46 = vadd.f32 %v2144_v37, %v10933_v14  ;;  %v8330_v40 = vpop.f32.mrb[143].mxu1  ;;  %v8354_v20 = vpop.f32.mrb[143].mxu0  ;;  %8682 = vmatpush3.bf16.msra.mxu0 %v9403_v39  ;;  %v3201_v27 = vor.u32 %v3200_v5, %v3199_v31  ;;  %v3363_v59 = vrot.slane %v10443_v3, 6  ;;  %v9402_v3 = vld [vmem:[%s12774_s6 + $0x50] sm:$0xff]  }
 0x20d   : > { %8743 = vmatprep.subr.bf16.mxu0 %v9494_v1 }
 0x20e   : > { %8604 = vmatmul.mubr.msk.bf16.gmra.mrb[248].mxu1 %vm2958_vm5, %v10512_v32  ;;  %8624 = vmatmul.mubr.msk.bf16.gmra.mrb[248].mxu0 %vm2958_vm5, %v3198_v41 }
 0x20f   : > { %8607 = vmatprep.mubr.msk.bf16.mxu1 %vm9495_vm0, %v9494_v1  ;;  %8627 = vmatprep.mubr.msk.bf16.mxu0 %vm9495_vm0, %v9494_v1 }
 0x211   : > { %v1991_v23 = vpop.f32.mrb[144].mxu1  ;;  %v2149_v14 = vpop.f32.mrb[144].mxu0 }
 0x212   : > { %v11029_v60 = vadd.f32 %v1991_v23, %v10920_v57  ;;  %v11032_v10 = vadd.f32 %v2149_v14, %v10945_v63  ;;  %v8333_v47 = vpop.f32.mrb[145].mxu1  ;;  %v8357_v12 = vpop.f32.mrb[145].mxu0  ;;  %v3203_v57 = vrot.slane %v2928_v19, 5  ;;  %v3202_v63 = vsel %vm3187_vm6, %v3197_v45, %v3201_v27 }
 0x213   : > { %v1994_v2 = vpop.f32.mrb[146].mxu1  ;;  %v2152_v44 = vpop.f32.mrb[146].mxu0  ;;  %v3362_v23 = vrot.slane %v10415_v21, 6  ;;  %v3212_v21 = vrot.slane %v2940_v8, 6 }
 0x214   : > { %v11035_v35 = vadd.f32 %v1994_v2, %v10930_v22  ;;  %v11038_v48 = vadd.f32 %v2152_v44, %v10950_v52  ;;  %v8334_v13 = vpop.f32.mrb[147].mxu1  ;;  %v8358_v43 = vpop.f32.mrb[147].mxu0  ;;  %v3205_v22 = vor.u32 %v3204_v24, %v3203_v57 }
 0x215   : > { %v3364_v43 = vsel %vm3361_vm7, %v3362_v23, %v3363_v59 }
 0x216   : > { %8608 = vmatmul.mubr.msk.bf16.gmra.mrb[252].mxu1 %vm2958_vm5, %v10538_v18  ;;  %8628 = vmatmul.mubr.msk.bf16.gmra.mrb[252].mxu0 %vm2958_vm5, %v3202_v63  ;;  %v3206_v56 = vsel %vm3187_vm6, %v3201_v27, %v3205_v22 }
 0x217   : > { %8611 = vmatprep.mubr.msk.bf16.mxu1 %vm9495_vm0, %v9494_v1  ;;  %8631 = vmatprep.mubr.msk.bf16.mxu0 %vm9495_vm0, %v9494_v1 }
 0x219   : > { %v2157_v52 = vpop.f32.mrb[148].mxu0  ;;  %v2320_v53 = vpop.f32.mrb[148].mxu1 }
 0x21a   : > { %v11053_v6 = vadd.f32 %v2157_v52, %v10973_v33  ;;  %v2375_v19 = vadd.f32 %v2320_v53, %v10947_v58  ;;  %v8361_v54 = vpop.f32.mrb[149].mxu0  ;;  %v8381_v39 = vpop.f32.mrb[149].mxu1 }
 0x21b   : > { %v2160_v30 = vpop.f32.mrb[150].mxu0  ;;  %v2323_v45 = vpop.f32.mrb[150].mxu1 }
 0x21c   : > { %v2389_v33 = vadd.f32 %v11063_v62, %v2375_v19  ;;  %v11067_v9 = vadd.f32 %v2160_v30, %v10979_v50  ;;  %v2376_v58 = vadd.f32 %v2323_v45, %v10952_v51  ;;  %v8382_v37 = vpop.f32.mrb[151].mxu1  ;;  %v8362_v40 = vpop.f32.mrb[151].mxu0  ;;  %v3209_v51 = vor.u32 %v3208_v61, %v3207_v28 }
 0x21e   : > { %v2390_v20 = vadd.f32 %v11063_v62, %v2376_v58  ;;  %8612 = vmatmul.mubr.msk.bf16.gmra.mrb[0].mxu1 %vm2958_vm5, %v10565_v7  ;;  %8632 = vmatmul.mubr.msk.bf16.gmra.mrb[0].mxu0 %vm2958_vm5, %v3206_v56  ;;  %v2403_v50 = vmax.f32 %v2389_v33, 0.0  ;;  %v3210_v57 = vsel %vm3187_vm6, %v3205_v22, %v3209_v51 }
 0x21f   : > { %8635 = vmatprep.mubr.msk.bf16.mxu0 %vm9495_vm0, %v9494_v1  ;;  %8651 = vmatprep.mubr.msk.bf16.mxu1 %vm9495_vm0, %v9494_v1 }
 0x220   : > { %v2404_v41 = vmax.f32 %v2390_v20, 0.0 }
 0x221   : > { %v2165_v31 = vpop.f32.mrb[152].mxu0  ;;  %v2328_v5 = vpop.f32.mrb[152].mxu1 }
 0x222   : > { %v11081_v14 = vpack.c.bf16 %v2404_v41, %v2403_v50  ;;  %v11084_v27 = vadd.f32 %v2165_v31, %v11004_v49  ;;  %v2377_v47 = vadd.f32 %v2328_v5, %v10976_v11  ;;  %v8365_v12 = vpop.f32.mrb[153].mxu0  ;;  %v8385_v2 = vpop.f32.mrb[153].mxu1  ;;  %v3211_v11 = vrot.slane %v2944_v42, 5  ;;  %v9404_v42 = vld [vmem:[%s12774_s6 + $0x58] sm:$0xff]  }
 0x223   : > { %v2168_v44 = vpop.f32.mrb[154].mxu0  ;;  %v2331_v13 = vpop.f32.mrb[154].mxu1  ;;  %v3367_v31 = vrot.slane %v10490_v55, 6 }
 0x224   : > { %v8386_v24 = vpop.f32.mrb[155].mxu1  ;;  %v8366_v49 = vpop.f32.mrb[155].mxu0  ;;  %v2391_v63 = vadd.f32 %v11063_v62, %v2377_v47  ;;  %v11098_v52 = vadd.f32 %v2168_v44, %v11010_v15  ;;  %v2378_v53 = vadd.f32 %v2331_v13, %v10982_v36  ;;  %v3365_v36 = vrot.slane %v10469_v34, 6 }
 0x225   : > { %v3213_v15 = vor.u32 %v3212_v21, %v3211_v11 }
 0x226   : > { %8636 = vmatmul.mubr.msk.bf16.gmra.mrb[4].mxu0 %vm2958_vm5, %v3210_v57  ;;  %8652 = vmatmul.mubr.msk.bf16.vlgmr.msra.gmra.mrb[4].mxu1 %vm2958_vm5, %v3364_v43  ;;  %v2392_v8 = vadd.f32 %v11063_v62, %v2378_v53  ;;  %v2405_v22 = vmax.f32 %v2391_v63, 0.0  ;;  %v3368_v55 = vsel %vm3361_vm7, %v3365_v36, %v3367_v31 }
 0x227   : > { %8712 = vmatpush3.bf16.msra.mxu1 %v9402_v3  ;;  %8639 = vmatprep.mubr.msk.bf16.mxu0 %vm9495_vm0, %v9494_v1 }
 0x228   : > { %8655 = vmatprep.mubr.msk.bf16.mxu1 %vm9495_vm0, %v9494_v1  ;;  %8713 = vmatprep.subr.bf16.mxu1 %v9494_v1  ;;  %v2406_v19 = vmax.f32 %v2392_v8, 0.0 }
 0x229   : > { %v2173_v54 = vpop.f32.mrb[156].mxu0  ;;  %v2336_v39 = vpop.f32.mrb[156].mxu1 }
 0x22a   : > { %v11114_v61 = vadd.f32 %v2173_v54, %v11029_v60  ;;  %v2379_v30 = vadd.f32 %v2336_v39, %v11007_v26  ;;  %v8369_v45 = vpop.f32.mrb[157].mxu0  ;;  %v8389_v28 = vpop.f32.mrb[157].mxu1  ;;  %v11117_v33 = vpack.c.bf16 %v2406_v19, %v2405_v22  ;;  %v3214_v26 = vsel %vm3187_vm6, %v3209_v51, %v3213_v15  ;;  %v9405_v39 = vld [vmem:[%s12774_s6 + $0x60] sm:$0xff]  }
 0x22b   : > { %v2176_v58 = vpop.f32.mrb[158].mxu0  ;;  %v2339_v37 = vpop.f32.mrb[158].mxu1  ;;  %8714 = vmatpush3.bf16.msra.mxu1 %v9404_v42  ;;  %v3366_v60 = vsel %vm3361_vm7, %v3363_v59, %v3365_v36  ;;  %v9407_v28 = vld [vmem:[%s12774_s6 + $0x68] sm:$0xff]  }
 0x22c   : > { %v2393_v40 = vadd.f32 %v11063_v62, %v2379_v30  ;;  %v11121_v34 = vadd.f32 %v2176_v58, %v11035_v35  ;;  %v2380_v56 = vadd.f32 %v2339_v37, %v11013_v46  ;;  %v8390_v20 = vpop.f32.mrb[159].mxu1  ;;  %v8370_v50 = vpop.f32.mrb[159].mxu0  ;;  %8775 = vmatprep.subr.bf16.mxu1 %v9494_v1  ;;  %v3371_v58 = vrot.slane %v10538_v18, 6 }
 0x22e   : > { %v2394_v41 = vadd.f32 %v11063_v62, %v2380_v56  ;;  %8640 = vmatmul.mubr.msk.bf16.gmra.mrb[8].mxu0 %vm2958_vm5, %v3214_v26  ;;  %8656 = vmatmul.mubr.msk.bf16.gmra.mrb[8].mxu1 %vm2958_vm5, %v3366_v60  ;;  %v2407_v46 = vmax.f32 %v2393_v40, 0.0 }
 0x22f   : > { %8643 = vmatprep.mubr.msk.bf16.mxu0 %vm9495_vm0, %v9494_v1  ;;  %8659 = vmatprep.mubr.msk.bf16.mxu1 %vm9495_vm0, %v9494_v1 }
 0x230   : > { %v2408_v35 = vmax.f32 %v2394_v41, 0.0 }
 0x231   : > { %v2344_v5 = vpop.f32.mrb[160].mxu1  ;;  %v11135_v51 = vpop.f32.mrb[160].mxu0 }
 0x232   : > { %v11137_v59 = vpack.c.bf16 %v2408_v35, %v2407_v46  ;;  %v2381_v23 = vadd.f32 %v2344_v5, %v11032_v10  ;;  %v8393_v47 = vpop.f32.mrb[161].mxu1  ;;  %v8417_v12 = vpop.f32.mrb[161].mxu0  ;;  %v3369_v10 = vrot.slane %v10512_v32, 6 }
 0x233   : > { %v2347_v2 = vpop.f32.mrb[162].mxu1  ;;  %v11140_v44 = vpop.f32.mrb[162].mxu0 }
 0x234   : > { %v8394_v13 = vpop.f32.mrb[163].mxu1  ;;  %v8418_v3 = vpop.f32.mrb[163].mxu0  ;;  %v2395_v43 = vadd.f32 %v11063_v62, %v2381_v23  ;;  %v2382_v21 = vadd.f32 %v2347_v2, %v11038_v48  ;;  %v3370_v30 = vsel %vm3361_vm7, %v3367_v31, %v3369_v10  ;;  %v3372_v5 = vsel %vm3361_vm7, %v3369_v10, %v3371_v58 }
 0x235   : > { %v3373_v23 = vrot.slane %v10565_v7, 6 }
 0x236   : > { %8644 = vmatmul.mubr.msk.bf16.gmra.mrb[12].mxu0 %vm2958_vm5, %v3211_v11  ;;  %8660 = vmatmul.mubr.msk.bf16.gmra.mrb[12].mxu1 %vm2958_vm5, %v3368_v55  ;;  %v2396_v24 = vadd.f32 %v11063_v62, %v2382_v21  ;;  %v2409_v57 = vmax.f32 %v2395_v43, 0.0 }
 0x237   : > { %8663 = vmatprep.mubr.msk.bf16.mxu1 %vm9495_vm0, %v9494_v1  ;;  %8683 = vmatprep.mubr.msk.bf16.mxu0 %vm9495_vm0, %v9494_v1 }
 0x238   : > { %v2410_v49 = vmax.f32 %v2396_v24, 0.0 }
 0x239   : > { %v2352_v63 = vpop.f32.mrb[164].mxu1  ;;  %v11153_v48 = vpop.f32.mrb[164].mxu0 }
 0x23a   : > { %v2383_v53 = vadd.f32 %v2352_v63, %v11053_v6  ;;  %v8397_v11 = vpop.f32.mrb[165].mxu1  ;;  %v8421_v8 = vpop.f32.mrb[165].mxu0  ;;  %v11156_v42 = vpack.c.bf16 %v2410_v49, %v2409_v57  ;;  %v3374_v63 = vsel %vm3361_vm7, %v3371_v58, %v3373_v23 }
 0x23b   : > { %v2355_v36 = vpop.f32.mrb[166].mxu1  ;;  %v11158_v15 = vpop.f32.mrb[166].mxu0 }
 0x23c   : > { %v2397_v22 = vadd.f32 %v11063_v62, %v2383_v53  ;;  %v2384_v19 = vadd.f32 %v2355_v36, %v11067_v9  ;;  %v8398_v54 = vpop.f32.mrb[167].mxu1  ;;  %v8422_v32 = vpop.f32.mrb[167].mxu0 }
 0x23d   : > { %v3655_v32 = vshll.u32 %v10712_v17, 16 }
 0x23e   : > { %v2398_v6 = vadd.f32 %v11063_v62, %v2384_v19  ;;  %8664 = vmatmul.mubr.msk.bf16.gmra.mrb[16].mxu1 %vm2958_vm5, %v3370_v30  ;;  %8684 = vmatmul.mubr.msk.bf16.vlgmr.msra.gmra.mrb[16].mxu0 %vm2958_vm5, %v10712_v17  ;;  %v2411_v9 = vmax.f32 %v2397_v22, 0.0 }
 0x23f   : > { %8667 = vmatprep.mubr.msk.bf16.mxu1 %vm9495_vm0, %v9494_v1  ;;  %8687 = vmatprep.mubr.msk.bf16.mxu0 %vm9495_vm0, %v9494_v1 }
 0x240   : > { %v2412_v45 = vmax.f32 %v2398_v6, 0.0  ;;  %8744 = vmatpush3.bf16.msra.mxu0 %v9405_v39 }
 0x241   : > { %v2360_v37 = vpop.f32.mrb[168].mxu1  ;;  %v11178_v40 = vpop.f32.mrb[168].mxu0  ;;  %8745 = vmatprep.subr.bf16.mxu0 %v9494_v1 }
 0x242   : > { %v11181_v56 = vpack.c.bf16 %v2412_v45, %v2411_v9  ;;  %v2385_v20 = vadd.f32 %v2360_v37, %v11084_v27  ;;  %v8401_v50 = vpop.f32.mrb[169].mxu1  ;;  %v8425_v26 = vpop.f32.mrb[169].mxu0 }
 0x243   : > { %v2363_v60 = vpop.f32.mrb[170].mxu1  ;;  %v11184_v41 = vpop.f32.mrb[170].mxu0 }
 0x244   : > { %v8402_v46 = vpop.f32.mrb[171].mxu1  ;;  %v8426_v35 = vpop.f32.mrb[171].mxu0  ;;  %8746 = vmatpush3.bf16.msra.mxu0 %v9407_v28  ;;  %v2399_v31 = vadd.f32 %v11063_v62, %v2385_v20  ;;  %v2386_v18 = vadd.f32 %v2363_v60, %v11098_v52  ;;  %v3659_v28 = vshll.u32 %v10743_v25, 16 }
 0x245   : > { %8807 = vmatprep.subr.bf16.mxu0 %v9494_v1 }
 0x246   : > { %8668 = vmatmul.mubr.msk.bf16.gmra.mrb[20].mxu1 %vm2958_vm5, %v3372_v5  ;;  %8688 = vmatmul.mubr.msk.bf16.gmra.mrb[20].mxu0 %vm2958_vm5, %v10743_v25  ;;  %v2400_v27 = vadd.f32 %v11063_v62, %v2386_v18  ;;  %v2413_v52 = vmax.f32 %v2399_v31, 0.0  ;;  %v3661_v58 = vrot.slane %v3659_v28, 1  ;;  %v9406_v31 = vld [vmem:[%s12774_s6 + $0x70] sm:$0xff]  }
 0x247   : > { %8671 = vmatprep.mubr.msk.bf16.mxu1 %vm9495_vm0, %v9494_v1  ;;  %8691 = vmatprep.mubr.msk.bf16.mxu0 %vm9495_vm0, %v9494_v1 }
 0x248   : > { %v2414_v47 = vmax.f32 %v2400_v27, 0.0 }
 0x249   : > { %v2368_v12 = vpop.f32.mrb[172].mxu1  ;;  %v11199_v2 = vpop.f32.mrb[172].mxu0 }
 0x24a   : > { %v2387_v13 = vadd.f32 %v2368_v12, %v11114_v61  ;;  %v8405_v3 = vpop.f32.mrb[173].mxu1  ;;  %v8429_v43 = vpop.f32.mrb[173].mxu0  ;;  %v11202_v21 = vpack.c.bf16 %v2414_v47, %v2413_v52  ;;  %v3666_v52 = vshll.u32 %v10763_v16, 16  ;;  %v3663_v47 = vshrl.u32 %v10743_v25, 16 }
 0x24b   : > { %v2371_v55 = vpop.f32.mrb[174].mxu1  ;;  %v11204_v24 = vpop.f32.mrb[174].mxu0 }
 0x24c   : > { %v2401_v10 = vadd.f32 %v11063_v62, %v2387_v13  ;;  %v2388_v57 = vadd.f32 %v2371_v55, %v11121_v34  ;;  %v8406_v49 = vpop.f32.mrb[175].mxu1  ;;  %v8430_v7 = vpop.f32.mrb[175].mxu0  ;;  %v3668_v12 = vrot.slane %v3666_v52, 1 }
 0x24e   : > { %v2402_v53 = vadd.f32 %v11063_v62, %v2388_v57  ;;  %8672 = vmatmul.mubr.msk.bf16.gmra.mrb[24].mxu1 %vm2958_vm5, %v3374_v63  ;;  %8692 = vmatmul.mubr.msk.bf16.gmra.mrb[24].mxu0 %vm2958_vm5, %v10763_v16  ;;  %v2415_v61 = vmax.f32 %v2401_v10, 0.0  ;;  %v3665_v57 = vor.u32 %v3663_v47, %v3661_v58 }
 0x24f   : > { %8675 = vmatprep.mubr.msk.bf16.mxu1 %vm9495_vm0, %v9494_v1  ;;  %8695 = vmatprep.mubr.msk.bf16.mxu0 %vm9495_vm0, %v9494_v1 }
 0x250   : > { %v2416_v11 = vmax.f32 %v2402_v53, 0.0 }
 0x251   : > { %v2547_v34 = vpop.f32.mrb[176].mxu1  ;;  %v11217_v8 = vpop.f32.mrb[176].mxu0 }
 0x252   : > { %v11219_v36 = vpack.c.bf16 %v2416_v11, %v2415_v61  ;;  %v11222_v22 = vadd.f32 %v2547_v34, %v11135_v51  ;;  %v8453_v19 = vpop.f32.mrb[177].mxu1  ;;  %v8433_v54 = vpop.f32.mrb[177].mxu0  ;;  %v3657_v51 = vrot.slane %v3655_v32, 1  ;;  %v3673_v11 = vshll.u32 %v10790_v0, 16 }
 0x253   : > { %v2550_v39 = vpop.f32.mrb[178].mxu1  ;;  %v11225_v30 = vpop.f32.mrb[178].mxu0  ;;  %v3669_v34 = vsel %vm1262_vm2, %v3665_v57, %v3668_v12 }
 0x254   : > { %v11228_v6 = vadd.f32 %v2550_v39, %v11140_v44  ;;  %v8454_v9 = vpop.f32.mrb[179].mxu1  ;;  %v8434_v45 = vpop.f32.mrb[179].mxu0  ;;  %v3653_v44 = vshrl.u32 %v10712_v17, 16 }
 0x256   : > { %8676 = vmatmul.mubr.msk.bf16.gmra.mrb[28].mxu1 %vm2958_vm5, %v3373_v23  ;;  %8696 = vmatmul.mubr.msk.bf16.gmra.mrb[28].mxu0 %vm2958_vm5, %v10790_v0  ;;  %v3658_v46 = vor.u32 %v3657_v51, %v3653_v44 }
 0x257   : > { %8699 = vmatprep.mubr.msk.bf16.mxu0 %vm9495_vm0, %v9494_v1  ;;  %8715 = vmatprep.mubr.msk.bf16.mxu1 %vm9495_vm0, %v9494_v1 }
 0x259   : > { %v2555_v37 = vpop.f32.mrb[180].mxu1  ;;  %v11243_v20 = vpop.f32.mrb[180].mxu0 }
 0x25a   : > { %v11246_v50 = vadd.f32 %v2555_v37, %v11153_v48  ;;  %v8457_v26 = vpop.f32.mrb[181].mxu1  ;;  %v8437_v60 = vpop.f32.mrb[181].mxu0  ;;  %v3662_v48 = vsel %vm1262_vm2, %v3658_v46, %v3661_v58 }
 0x25b   : > { %v2558_v35 = vpop.f32.mrb[182].mxu1  ;;  %v11253_v18 = vpop.f32.mrb[182].mxu0 }
 0x25c   : > { %v11256_v5 = vadd.f32 %v2558_v35, %v11158_v15  ;;  %v8458_v27 = vpop.f32.mrb[183].mxu1  ;;  %v8438_v23 = vpop.f32.mrb[183].mxu0  ;;  %v9408_v15 = vld [vmem:[%s12774_s6 + $0x78] sm:$0xff]  }
 0x25d   : > { %v3842_v27 = vrot.slane %v3663_v47, 5 }
 0x25e   : > { %8700 = vmatmul.mubr.msk.bf16.gmra.mrb[32].mxu0 %vm2958_vm5, %v10821_v38  ;;  %8716 = vmatmul.mubr.msk.bf16.vlgmr.msra.gmra.mrb[32].mxu1 %vm2958_vm5, %v3662_v48  ;;  %v3677_v48 = vshrl.u32 %v10790_v0, 16 }
 0x25f   : > { %8776 = vmatpush3.bf16.msra.mxu1 %v9406_v31  ;;  %8703 = vmatprep.mubr.msk.bf16.mxu0 %vm9495_vm0, %v9494_v1 }
 0x260   : > { %8719 = vmatprep.mubr.msk.bf16.mxu1 %vm9495_vm0, %v9494_v1  ;;  %8777 = vmatprep.subr.bf16.mxu1 %v9494_v1 }
 0x261   : > { %v2563_v13 = vpop.f32.mrb[184].mxu1  ;;  %v11274_v3 = vpop.f32.mrb[184].mxu0 }
 0x262   : > { %v11277_v43 = vadd.f32 %v2563_v13, %v11178_v40  ;;  %v8461_v55 = vpop.f32.mrb[185].mxu1  ;;  %v8441_v10 = vpop.f32.mrb[185].mxu0  ;;  %v3670_v40 = vshrl.u32 %v10763_v16, 16 }
 0x263   : > { %v2566_v49 = vpop.f32.mrb[186].mxu1  ;;  %v11279_v7 = vpop.f32.mrb[186].mxu0  ;;  %8778 = vmatpush3.bf16.msra.mxu1 %v9408_v15 }
 0x264   : > { %v11282_v63 = vadd.f32 %v2566_v49, %v11184_v41  ;;  %v8462_v53 = vpop.f32.mrb[187].mxu1  ;;  %v8442_v61 = vpop.f32.mrb[187].mxu0  ;;  %8839 = vmatprep.subr.bf16.mxu1 %v9494_v1  ;;  %v3675_v41 = vrot.slane %v3673_v11, 1  ;;  %v3672_v58 = vor.u32 %v3670_v40, %v3668_v12 }
 0x265   : > { %v3846_v61 = vrot.slane %v3670_v40, 5 }
 0x266   : > { %8704 = vmatmul.mubr.msk.bf16.gmra.mrb[36].mxu0 %vm2958_vm5, %v10848_v29  ;;  %8720 = vmatmul.mubr.msk.bf16.gmra.mrb[36].mxu1 %vm2958_vm5, %v3669_v34  ;;  %v3676_v23 = vsel %vm1262_vm2, %v3672_v58, %v3675_v41  ;;  %v3679_v57 = vor.u32 %v3677_v48, %v3675_v41  ;;  %v3847_v34 = vrot.slane %v3666_v52, 6  ;;  %v3687_v41 = vshll.u32 %v10848_v29, 16 }
 0x267   : > { %8707 = vmatprep.mubr.msk.bf16.mxu0 %vm9495_vm0, %v9494_v1  ;;  %8723 = vmatprep.mubr.msk.bf16.mxu1 %vm9495_vm0, %v9494_v1  ;;  %v3684_v52 = vshrl.u32 %v10821_v38, 16 }
 0x268   : > { %v3689_v58 = vrot.slane %v3687_v41, 1 }
 0x269   : > { %v2571_v19 = vpop.f32.mrb[188].mxu1  ;;  %v2636_v54 = vpop.f32.mrb[188].mxu0 }
 0x26a   : > { %v11298_v39 = vadd.f32 %v2571_v19, %v11199_v2  ;;  %v11301_v9 = vadd.f32 %v2636_v54, %v11222_v22  ;;  %v8465_v45 = vpop.f32.mrb[189].mxu1  ;;  %v8489_v51 = vpop.f32.mrb[189].mxu0  ;;  %v3843_v2 = vrot.slane %v3659_v28, 6  ;;  %v3680_v22 = vshll.u32 %v10821_v38, 16 }
 0x26b   : > { %v2574_v37 = vpop.f32.mrb[190].mxu1  ;;  %v2639_v26 = vpop.f32.mrb[190].mxu0 }
 0x26c   : > { %v11304_v60 = vadd.f32 %v2574_v37, %v11204_v24  ;;  %v11307_v46 = vadd.f32 %v2639_v26, %v11228_v6  ;;  %v8466_v35 = vpop.f32.mrb[191].mxu1  ;;  %v8490_v31 = vpop.f32.mrb[191].mxu0  ;;  %v3839_v24 = vrot.slane %v3653_v44, 5  ;;  %v3840_v6 = vrot.slane %v3655_v32, 6 }
 0x26d   : > { %v3844_v28 = vor.u32 %v3843_v2, %v3842_v27  ;;  %v3682_v15 = vrot.slane %v3680_v22, 1 }
 0x26e   : > { %8708 = vmatmul.mubr.msk.bf16.gmra.mrb[40].mxu0 %vm2958_vm5, %v10872_v4  ;;  %8724 = vmatmul.mubr.msk.bf16.gmra.mrb[40].mxu1 %vm2958_vm5, %v3676_v23  ;;  %v3841_v10 = vor.u32 %v3840_v6, %v3839_v24 }
 0x26f   : > { %8727 = vmatprep.mubr.msk.bf16.mxu1 %vm9495_vm0, %v9494_v1  ;;  %8747 = vmatprep.mubr.msk.bf16.mxu0 %vm9495_vm0, %v9494_v1  ;;  %v3683_v51 = vsel %vm1262_vm2, %v3679_v57, %v3682_v15  ;;  %v3686_v23 = vor.u32 %v3684_v52, %v3682_v15  ;;  %v3694_v57 = vshll.u32 %v10872_v4, 16 }
 0x270   : > { %v3845_v40 = vsel %vm3187_vm6, %v3841_v10, %v3844_v28 }
 0x271   : > { %v2579_v47 = vpop.f32.mrb[192].mxu1  ;;  %v2644_v12 = vpop.f32.mrb[192].mxu0  ;;  %v3690_v15 = vsel %vm1262_vm2, %v3686_v23, %v3689_v58 }
 0x272   : > { %v11328_v13 = vadd.f32 %v2579_v47, %v11217_v8  ;;  %v11331_v44 = vadd.f32 %v2644_v12, %v11246_v50  ;;  %v8469_v32 = vpop.f32.mrb[193].mxu1  ;;  %v8493_v55 = vpop.f32.mrb[193].mxu0  ;;  %v9409_v50 = vld [vmem:[%s12774_s6 + $0x80] sm:$0xff]  }
 0x273   : > { %v2582_v49 = vpop.f32.mrb[194].mxu1  ;;  %v2647_v53 = vpop.f32.mrb[194].mxu0 }
 0x274   : > { %v11336_v19 = vadd.f32 %v2582_v49, %v11225_v30  ;;  %v11339_v54 = vadd.f32 %v2647_v53, %v11256_v5  ;;  %v8470_v8 = vpop.f32.mrb[195].mxu1  ;;  %v8494_v45 = vpop.f32.mrb[195].mxu0  ;;  %v3848_v30 = vor.u32 %v3847_v34, %v3846_v61  ;;  %v9411_v5 = vld [vmem:[%s12774_s6 + $0x88] sm:$0xff]  }
 0x276   : > { %8728 = vmatmul.mubr.msk.bf16.gmra.mrb[44].mxu1 %vm2958_vm5, %v3683_v51  ;;  %8748 = vmatmul.mubr.msk.bf16.vlgmr.msra.gmra.mrb[44].mxu0 %vm2958_vm5, %v3845_v40  ;;  %v3849_v55 = vsel %vm3187_vm6, %v3844_v28, %v3848_v30 }
 0x277   : > { %8731 = vmatprep.mubr.msk.bf16.mxu1 %vm9495_vm0, %v9494_v1  ;;  %8751 = vmatprep.mubr.msk.bf16.mxu0 %vm9495_vm0, %v9494_v1 }
 0x278   : > { %8808 = vmatpush3.bf16.msra.mxu0 %v9409_v50 }
 0x279   : > { %v2587_v37 = vpop.f32.mrb[196].mxu1  ;;  %v2652_v26 = vpop.f32.mrb[196].mxu0  ;;  %8809 = vmatprep.subr.bf16.mxu0 %v9494_v1 }
 0x27a   : > { %v11361_v35 = vadd.f32 %v2587_v37, %v11243_v20  ;;  %v11364_v31 = vadd.f32 %v2652_v26, %v11277_v43  ;;  %v8473_v27 = vpop.f32.mrb[197].mxu1  ;;  %v8497_v2 = vpop.f32.mrb[197].mxu0  ;;  %v3850_v20 = vrot.slane %v3677_v48, 5  ;;  %v3851_v43 = vrot.slane %v3673_v11, 6 }
 0x27b   : > { %v2590_v24 = vpop.f32.mrb[198].mxu1  ;;  %v2655_v6 = vpop.f32.mrb[198].mxu0  ;;  %v3854_v26 = vrot.slane %v3684_v52, 5 }
 0x27c   : > { %v11367_v47 = vadd.f32 %v2590_v24, %v11253_v18  ;;  %v11370_v12 = vadd.f32 %v2655_v6, %v11282_v63  ;;  %v8474_v32 = vpop.f32.mrb[199].mxu1  ;;  %v8498_v10 = vpop.f32.mrb[199].mxu0  ;;  %8810 = vmatpush3.bf16.msra.mxu0 %v9411_v5  ;;  %v3691_v18 = vshrl.u32 %v10848_v29, 16  ;;  %v3696_v63 = vrot.slane %v3694_v57, 1 }
 0x27d   : > { %8871 = vmatprep.subr.bf16.mxu0 %v9494_v1  ;;  %v3852_v48 = vor.u32 %v3851_v43, %v3850_v20  ;;  %v3859_v24 = vrot.slane %v3687_v41, 6 }
 0x27e   : > { %8732 = vmatmul.mubr.msk.bf16.gmra.mrb[48].mxu1 %vm2958_vm5, %v3690_v15  ;;  %8752 = vmatmul.mubr.msk.bf16.gmra.mrb[48].mxu0 %vm2958_vm5, %v3849_v55  ;;  %v3693_v8 = vor.u32 %v3691_v18, %v3689_v58  ;;  %v3858_v23 = vrot.slane %v3691_v18, 5  ;;  %v3698_v55 = vshrl.u32 %v10872_v4, 16 }
 0x27f   : > { %8735 = vmatprep.mubr.msk.bf16.mxu1 %vm9495_vm0, %v9494_v1  ;;  %8755 = vmatprep.mubr.msk.bf16.mxu0 %vm9495_vm0, %v9494_v1  ;;  %v3853_v27 = vsel %vm3187_vm6, %v3848_v30, %v3852_v48 }
 0x281   : > { %v2595_v11 = vpop.f32.mrb[200].mxu1  ;;  %v2660_v28 = vpop.f32.mrb[200].mxu0 }
 0x282   : > { %v11388_v49 = vadd.f32 %v2595_v11, %v11274_v3  ;;  %v11391_v53 = vadd.f32 %v2660_v28, %v11298_v39  ;;  %v8477_v61 = vpop.f32.mrb[201].mxu1  ;;  %v8501_v34 = vpop.f32.mrb[201].mxu0  ;;  %v3855_v3 = vrot.slane %v3680_v22, 6  ;;  %v3697_v39 = vsel %vm1262_vm2, %v3693_v8, %v3696_v63 }
 0x283   : > { %v2598_v45 = vpop.f32.mrb[202].mxu1  ;;  %v2663_v50 = vpop.f32.mrb[202].mxu0  ;;  %v3860_v63 = vor.u32 %v3859_v24, %v3858_v23 }
 0x284   : > { %v11394_v51 = vadd.f32 %v2598_v45, %v11279_v7  ;;  %v11397_v40 = vadd.f32 %v2663_v50, %v11304_v60  ;;  %v8478_v5 = vpop.f32.mrb[203].mxu1  ;;  %v8502_v37 = vpop.f32.mrb[203].mxu0  ;;  %v3856_v52 = vor.u32 %v3855_v3, %v3854_v26  ;;  %v3862_v3 = vrot.slane %v3698_v55, 5 }
 0x286   : > { %8736 = vmatmul.mubr.msk.bf16.gmra.mrb[52].mxu1 %vm2958_vm5, %v3697_v39  ;;  %8756 = vmatmul.mubr.msk.bf16.gmra.mrb[52].mxu0 %vm2958_vm5, %v3853_v27 }
 0x287   : > { %8739 = vmatprep.mubr.msk.bf16.mxu1 %vm9495_vm0, %v9494_v1  ;;  %8759 = vmatprep.mubr.msk.bf16.mxu0 %vm9495_vm0, %v9494_v1 }
 0x289   : > { %v2668_v7 = vpop.f32.mrb[204].mxu0  ;;  %v2779_v60 = vpop.f32.mrb[204].mxu1 }
 0x28a   : > { %v11410_v58 = vadd.f32 %v2668_v7, %v11328_v13  ;;  %v2834_v22 = vadd.f32 %v2779_v60, %v11301_v9  ;;  %v8505_v2 = vpop.f32.mrb[205].mxu0  ;;  %v8525_v30 = vpop.f32.mrb[205].mxu1  ;;  %v3857_v9 = vsel %vm3187_vm6, %v3852_v48, %v3856_v52  ;;  %v4012_v48 = vrot.slane %v10712_v17, 6 }
 0x28b   : > { %v2671_v6 = vpop.f32.mrb[206].mxu0  ;;  %v2782_v32 = vpop.f32.mrb[206].mxu1  ;;  %v3861_v17 = vsel %vm3187_vm6, %v3856_v52, %v3860_v63 }
 0x28c   : > { %v2848_v10 = vadd.f32 %v11063_v62, %v2834_v22  ;;  %v11418_v20 = vadd.f32 %v2671_v6, %v11336_v19  ;;  %v2835_v13 = vadd.f32 %v2782_v32, %v11307_v46  ;;  %v8526_v43 = vpop.f32.mrb[207].mxu1  ;;  %v8506_v15 = vpop.f32.mrb[207].mxu0  ;;  %v4013_v19 = vrot.slane %v10743_v25, 6  ;;  %v9410_v25 = vld [vmem:[%s12774_s6 + $0x90] sm:$0xff]  }
 0x28e   : > { %v2849_v18 = vadd.f32 %v11063_v62, %v2835_v13  ;;  %8740 = vmatmul.mubr.msk.bf16.gmra.mrb[56].mxu1 %vm2958_vm5, %v3698_v55  ;;  %8760 = vmatmul.mubr.msk.bf16.gmra.mrb[56].mxu0 %vm2958_vm5, %v3857_v9  ;;  %v2862_v41 = vmax.f32 %v2848_v10, 0.0  ;;  %v4014_v26 = vsel %vm3361_vm7, %v4012_v48, %v4013_v19 }
 0x28f   : > { %8763 = vmatprep.mubr.msk.bf16.mxu0 %vm9495_vm0, %v9494_v1  ;;  %8779 = vmatprep.mubr.msk.bf16.mxu1 %vm9495_vm0, %v9494_v1 }
 0x290   : > { %v2863_v46 = vmax.f32 %v2849_v18, 0.0 }
 0x291   : > { %v2676_v11 = vpop.f32.mrb[208].mxu0  ;;  %v2787_v28 = vpop.f32.mrb[208].mxu1 }
 0x292   : > { %v11431_v61 = vpack.c.bf16 %v2863_v46, %v2862_v41  ;;  %v11434_v34 = vadd.f32 %v2676_v11, %v11361_v35  ;;  %v2836_v8 = vadd.f32 %v2787_v28, %v11331_v44  ;;  %v8509_v45 = vpop.f32.mrb[209].mxu0  ;;  %v8529_v50 = vpop.f32.mrb[209].mxu1  ;;  %v3863_v35 = vrot.slane %v3694_v57, 6  ;;  %v9412_v57 = vld [vmem:[%s12774_s6 + $0x98] sm:$0xff]  }
 0x293   : > { %v2679_v5 = vpop.f32.mrb[210].mxu0  ;;  %v2790_v37 = vpop.f32.mrb[210].mxu1  ;;  %v4017_v11 = vrot.slane %v10790_v0, 6 }
 0x294   : > { %v8530_v39 = vpop.f32.mrb[211].mxu1  ;;  %v8510_v27 = vpop.f32.mrb[211].mxu0  ;;  %v2850_v44 = vadd.f32 %v11063_v62, %v2836_v8  ;;  %v11446_v7 = vadd.f32 %v2679_v5, %v11367_v47  ;;  %v2837_v60 = vadd.f32 %v2790_v37, %v11339_v54  ;;  %v4015_v54 = vrot.slane %v10763_v16, 6 }
 0x295   : > { %v3864_v23 = vor.u32 %v3863_v35, %v3862_v3 }
 0x296   : > { %8764 = vmatmul.mubr.msk.bf16.gmra.mrb[60].mxu0 %vm2958_vm5, %v3861_v17  ;;  %8780 = vmatmul.mubr.msk.bf16.vlgmr.msra.gmra.mrb[60].mxu1 %vm2958_vm5, %v4014_v26  ;;  %v2851_v22 = vadd.f32 %v11063_v62, %v2837_v60  ;;  %v2864_v47 = vmax.f32 %v2850_v44, 0.0  ;;  %v4018_v0 = vsel %vm3361_vm7, %v4015_v54, %v4017_v11 }
 0x297   : > { %8840 = vmatpush3.bf16.msra.mxu1 %v9410_v25  ;;  %8767 = vmatprep.mubr.msk.bf16.mxu0 %vm9495_vm0, %v9494_v1 }
 0x298   : > { %8783 = vmatprep.mubr.msk.bf16.mxu1 %vm9495_vm0, %v9494_v1  ;;  %8841 = vmatprep.subr.bf16.mxu1 %v9494_v1  ;;  %v2865_v52 = vmax.f32 %v2851_v22, 0.0 }
 0x299   : > { %v2684_v2 = vpop.f32.mrb[212].mxu0  ;;  %v2795_v30 = vpop.f32.mrb[212].mxu1 }
 0x29a   : > { %v11462_v24 = vadd.f32 %v2684_v2, %v11388_v49  ;;  %v2838_v6 = vadd.f32 %v2795_v30, %v11364_v31  ;;  %v8513_v32 = vpop.f32.mrb[213].mxu0  ;;  %v8533_v55 = vpop.f32.mrb[213].mxu1  ;;  %v11465_v10 = vpack.c.bf16 %v2865_v52, %v2864_v47  ;;  %v3865_v31 = vsel %vm3187_vm6, %v3860_v63, %v3864_v23  ;;  %v9413_v23 = vld [vmem:[%s12774_s6 + $0xa0] sm:$0xff]  }
 0x29b   : > { %v2687_v13 = vpop.f32.mrb[214].mxu0  ;;  %v2798_v43 = vpop.f32.mrb[214].mxu1  ;;  %8842 = vmatpush3.bf16.msra.mxu1 %v9412_v57  ;;  %v4016_v49 = vsel %vm3361_vm7, %v4013_v19, %v4015_v54  ;;  %v9415_v55 = vld [vmem:[%s12774_s6 + $0xa8] sm:$0xff]  }
 0x29c   : > { %v2852_v15 = vadd.f32 %v11063_v62, %v2838_v6  ;;  %v11469_v16 = vadd.f32 %v2687_v13, %v11394_v51  ;;  %v2839_v9 = vadd.f32 %v2798_v43, %v11370_v12  ;;  %v8534_v18 = vpop.f32.mrb[215].mxu1  ;;  %v8514_v41 = vpop.f32.mrb[215].mxu0  ;;  %8903 = vmatprep.subr.bf16.mxu1 %v9494_v1  ;;  %v4021_v13 = vrot.slane %v10848_v29, 6 }
 0x29e   : > { %v2853_v46 = vadd.f32 %v11063_v62, %v2839_v9  ;;  %8768 = vmatmul.mubr.msk.bf16.gmra.mrb[64].mxu0 %vm2958_vm5, %v3865_v31  ;;  %8784 = vmatmul.mubr.msk.bf16.gmra.mrb[64].mxu1 %vm2958_vm5, %v4016_v49  ;;  %v2866_v12 = vmax.f32 %v2852_v15, 0.0 }
 0x29f   : > { %8771 = vmatprep.mubr.msk.bf16.mxu0 %vm9495_vm0, %v9494_v1  ;;  %8787 = vmatprep.mubr.msk.bf16.mxu1 %vm9495_vm0, %v9494_v1 }
 0x2a0   : > { %v2867_v51 = vmax.f32 %v2853_v46, 0.0 }
 0x2a1   : > { %v2803_v28 = vpop.f32.mrb[216].mxu1  ;;  %v11483_v63 = vpop.f32.mrb[216].mxu0 }
 0x2a2   : > { %v11485_v19 = vpack.c.bf16 %v2867_v51, %v2866_v12  ;;  %v2840_v48 = vadd.f32 %v2803_v28, %v11391_v53  ;;  %v8537_v8 = vpop.f32.mrb[217].mxu1  ;;  %v8557_v45 = vpop.f32.mrb[217].mxu0  ;;  %v4019_v53 = vrot.slane %v10821_v38, 6 }
 0x2a3   : > { %v2806_v50 = vpop.f32.mrb[218].mxu1  ;;  %v11488_v5 = vpop.f32.mrb[218].mxu0 }
 0x2a4   : > { %v8538_v37 = vpop.f32.mrb[219].mxu1  ;;  %v8558_v25 = vpop.f32.mrb[219].mxu0  ;;  %v2854_v26 = vadd.f32 %v11063_v62, %v2840_v48  ;;  %v2841_v39 = vadd.f32 %v2806_v50, %v11397_v40  ;;  %v4020_v6 = vsel %vm3361_vm7, %v4017_v11, %v4019_v53  ;;  %v4022_v28 = vsel %vm3361_vm7, %v4019_v53, %v4021_v13 }
 0x2a5   : > { %v4023_v48 = vrot.slane %v10872_v4, 6 }
 0x2a6   : > { %8772 = vmatmul.mubr.msk.bf16.gmra.mrb[68].mxu0 %vm2958_vm5, %v3862_v3  ;;  %8788 = vmatmul.mubr.msk.bf16.gmra.mrb[68].mxu1 %vm2958_vm5, %v4018_v0  ;;  %v2855_v17 = vadd.f32 %v11063_v62, %v2841_v39  ;;  %v2868_v27 = vmax.f32 %v2854_v26, 0.0 }
 0x2a7   : > { %8791 = vmatprep.mubr.msk.bf16.mxu1 %vm9495_vm0, %v9494_v1  ;;  %8811 = vmatprep.mubr.msk.bf16.mxu0 %vm9495_vm0, %v9494_v1 }
 0x2a8   : > { %v2869_v35 = vmax.f32 %v2855_v17, 0.0 }
 0x2a9   : > { %v2811_v44 = vpop.f32.mrb[220].mxu1  ;;  %v11501_v40 = vpop.f32.mrb[220].mxu0 }
 0x2aa   : > { %v2842_v60 = vadd.f32 %v2811_v44, %v11410_v58  ;;  %v8541_v3 = vpop.f32.mrb[221].mxu1  ;;  %v8561_v22 = vpop.f32.mrb[221].mxu0  ;;  %v11504_v57 = vpack.c.bf16 %v2869_v35, %v2868_v27  ;;  %v4024_v44 = vsel %vm3361_vm7, %v4021_v13, %v4023_v48 }
 0x2ab   : > { %v2814_v54 = vpop.f32.mrb[222].mxu1  ;;  %v11506_v47 = vpop.f32.mrb[222].mxu0 }
 0x2ac   : > { %v2856_v52 = vadd.f32 %v11063_v62, %v2842_v60  ;;  %v2843_v2 = vadd.f32 %v2814_v54, %v11418_v20  ;;  %v8542_v30 = vpop.f32.mrb[223].mxu1  ;;  %v8562_v38 = vpop.f32.mrb[223].mxu0 }
 0x2ad   : > { %v4305_v30 = vshll.u32 %v11081_v14, 16 }
 0x2ae   : > { %v2857_v58 = vadd.f32 %v11063_v62, %v2843_v2  ;;  %8792 = vmatmul.mubr.msk.bf16.gmra.mrb[72].mxu1 %vm2958_vm5, %v4020_v6  ;;  %8812 = vmatmul.mubr.msk.bf16.vlgmr.msra.gmra.mrb[72].mxu0 %vm2958_vm5, %v11081_v14  ;;  %v2870_v20 = vmax.f32 %v2856_v52, 0.0 }
 0x2af   : > { %8795 = vmatprep.mubr.msk.bf16.mxu1 %vm9495_vm0, %v9494_v1  ;;  %8815 = vmatprep.mubr.msk.bf16.mxu0 %vm9495_vm0, %v9494_v1 }
 0x2b0   : > { %v2871_v32 = vmax.f32 %v2857_v58, 0.0  ;;  %8872 = vmatpush3.bf16.msra.mxu0 %v9413_v23 }
 0x2b1   : > { %v2819_v43 = vpop.f32.mrb[224].mxu1  ;;  %v11526_v15 = vpop.f32.mrb[224].mxu0  ;;  %8873 = vmatprep.subr.bf16.mxu0 %v9494_v1 }
 0x2b2   : > { %v11529_v9 = vpack.c.bf16 %v2871_v32, %v2870_v20  ;;  %v2844_v18 = vadd.f32 %v2819_v43, %v11434_v34  ;;  %v8545_v41 = vpop.f32.mrb[225].mxu1  ;;  %v8565_v31 = vpop.f32.mrb[225].mxu0  ;;  %v4309_v32 = vshll.u32 %v11117_v33, 16 }
 0x2b3   : > { %v2822_v49 = vpop.f32.mrb[226].mxu1  ;;  %v11532_v46 = vpop.f32.mrb[226].mxu0 }
 0x2b4   : > { %v8546_v12 = vpop.f32.mrb[227].mxu1  ;;  %v8566_v51 = vpop.f32.mrb[227].mxu0  ;;  %8874 = vmatpush3.bf16.msra.mxu0 %v9415_v55  ;;  %v2858_v11 = vadd.f32 %v11063_v62, %v2844_v18  ;;  %v2845_v29 = vadd.f32 %v2822_v49, %v11446_v7  ;;  %v4311_v55 = vrot.slane %v4309_v32, 1 }
 0x2b5   : > { %8935 = vmatprep.subr.bf16.mxu0 %v9494_v1 }
 0x2b6   : > { %8796 = vmatmul.mubr.msk.bf16.gmra.mrb[76].mxu1 %vm2958_vm5, %v4022_v28  ;;  %8816 = vmatmul.mubr.msk.bf16.gmra.mrb[76].mxu0 %vm2958_vm5, %v11117_v33  ;;  %v2859_v34 = vadd.f32 %v11063_v62, %v2845_v29  ;;  %v2872_v7 = vmax.f32 %v2858_v11, 0.0  ;;  %v9414_v11 = vld [vmem:[%s12774_s6 + $0xb0] sm:$0xff]  }
 0x2b7   : > { %8799 = vmatprep.mubr.msk.bf16.mxu1 %vm9495_vm0, %v9494_v1  ;;  %8819 = vmatprep.mubr.msk.bf16.mxu0 %vm9495_vm0, %v9494_v1 }
 0x2b8   : > { %v2873_v8 = vmax.f32 %v2859_v34, 0.0 }
 0x2b9   : > { %v2827_v45 = vpop.f32.mrb[228].mxu1  ;;  %v11547_v50 = vpop.f32.mrb[228].mxu0 }
 0x2ba   : > { %v2846_v37 = vadd.f32 %v2827_v45, %v11462_v24  ;;  %v8549_v25 = vpop.f32.mrb[229].mxu1  ;;  %v8569_v26 = vpop.f32.mrb[229].mxu0  ;;  %v11550_v39 = vpack.c.bf16 %v2873_v8, %v2872_v7  ;;  %v4313_v7 = vshrl.u32 %v11117_v33, 16 }
 0x2bb   : > { %v2830_v0 = vpop.f32.mrb[230].mxu1  ;;  %v11552_v17 = vpop.f32.mrb[230].mxu0 }
 0x2bc   : > { %v2860_v53 = vadd.f32 %v11063_v62, %v2846_v37  ;;  %v2847_v27 = vadd.f32 %v2830_v0, %v11469_v16  ;;  %v8550_v35 = vpop.f32.mrb[231].mxu1  ;;  %v8570_v4 = vpop.f32.mrb[231].mxu0 }
 0x2be   : > { %v2861_v60 = vadd.f32 %v11063_v62, %v2847_v27  ;;  %8800 = vmatmul.mubr.msk.bf16.gmra.mrb[80].mxu1 %vm2958_vm5, %v4024_v44  ;;  %8820 = vmatmul.mubr.msk.bf16.gmra.mrb[80].mxu0 %vm2958_vm5, %v11137_v59  ;;  %v2874_v24 = vmax.f32 %v2860_v53, 0.0  ;;  %v4315_v53 = vor.u32 %v4313_v7, %v4311_v55 }
 0x2bf   : > { %8803 = vmatprep.mubr.msk.bf16.mxu1 %vm9495_vm0, %v9494_v1  ;;  %8823 = vmatprep.mubr.msk.bf16.mxu0 %vm9495_vm0, %v9494_v1 }
 0x2c0   : > { %v2875_v3 = vmax.f32 %v2861_v60, 0.0 }
 0x2c1   : > { %v11565_v16 = vpop.f32.mrb[232].mxu0  ;;  %v3128_v22 = vpop.f32.mrb[232].mxu1 }
 0x2c2   : > { %v11567_v54 = vpack.c.bf16 %v2875_v3, %v2874_v24  ;;  %v11570_v62 = vadd.f32 %v3128_v22, %v11483_v63  ;;  %v8573_v52 = vpop.f32.mrb[233].mxu0  ;;  %v8589_v2 = vpop.f32.mrb[233].mxu1  ;;  %v4307_v63 = vrot.slane %v4305_v30, 1  ;;  %v4323_v24 = vshll.u32 %v11156_v42, 16 }
 0x2c3   : > { %v11573_v38 = vpop.f32.mrb[234].mxu0  ;;  %v3131_v23 = vpop.f32.mrb[234].mxu1 }
 0x2c4   : > { %v11576_v6 = vadd.f32 %v3131_v23, %v11488_v5  ;;  %v8574_v58 = vpop.f32.mrb[235].mxu0  ;;  %v8590_v20 = vpop.f32.mrb[235].mxu1  ;;  %v4303_v5 = vshrl.u32 %v11081_v14, 16 }
 0x2c6   : > { %8804 = vmatmul.mubr.msk.bf16.gmra.mrb[84].mxu1 %vm2958_vm5, %v4023_v48  ;;  %8824 = vmatmul.mubr.msk.bf16.gmra.mrb[84].mxu0 %vm2958_vm5, %v11156_v42  ;;  %v4308_v49 = vor.u32 %v4307_v63, %v4303_v5  ;;  %v4316_v48 = vshll.u32 %v11137_v59, 16 }
 0x2c7   : > { %8827 = vmatprep.mubr.msk.bf16.mxu0 %vm9495_vm0, %v9494_v1  ;;  %8843 = vmatprep.mubr.msk.bf16.mxu1 %vm9495_vm0, %v9494_v1 }
 0x2c8   : > { %v4318_v8 = vrot.slane %v4316_v48, 1 }
 0x2c9   : > { %v11591_v13 = vpop.f32.mrb[236].mxu0  ;;  %v3136_v43 = vpop.f32.mrb[236].mxu1 }
 0x2ca   : > { %v11594_v18 = vadd.f32 %v3136_v43, %v11501_v40  ;;  %v8577_v41 = vpop.f32.mrb[237].mxu0  ;;  %v8593_v31 = vpop.f32.mrb[237].mxu1  ;;  %v4312_v40 = vsel %vm1262_vm2, %v4308_v49, %v4311_v55  ;;  %v4319_v3 = vsel %vm1262_vm2, %v4315_v53, %v4318_v8 }
 0x2cb   : > { %v11598_v12 = vpop.f32.mrb[238].mxu0  ;;  %v3139_v51 = vpop.f32.mrb[238].mxu1 }
 0x2cc   : > { %v11604_v29 = vadd.f32 %v3139_v51, %v11506_v47  ;;  %v8578_v28 = vpop.f32.mrb[239].mxu0  ;;  %v8594_v34 = vpop.f32.mrb[239].mxu1  ;;  %v9416_v47 = vld [vmem:[%s12774_s6 + $0xb8] sm:$0xff]  }
 0x2cd   : > { %v4327_v34 = vshrl.u32 %v11156_v42, 16 }
 0x2ce   : > { %8828 = vmatmul.mubr.msk.bf16.gmra.mrb[88].mxu0 %vm2958_vm5, %v11181_v56  ;;  %8844 = vmatmul.mubr.msk.bf16.vlgmr.msra.gmra.mrb[88].mxu1 %vm2958_vm5, %v4312_v40 }
 0x2cf   : > { %8904 = vmatpush3.bf16.msra.mxu1 %v9414_v11  ;;  %8831 = vmatprep.mubr.msk.bf16.mxu0 %vm9495_vm0, %v9494_v1  ;;  %v4492_v11 = vrot.slane %v4313_v7, 5 }
 0x2d0   : > { %8847 = vmatprep.mubr.msk.bf16.mxu1 %vm9495_vm0, %v9494_v1  ;;  %8905 = vmatprep.subr.bf16.mxu1 %v9494_v1 }
 0x2d1   : > { %v11622_v45 = vpop.f32.mrb[240].mxu0  ;;  %v3144_v37 = vpop.f32.mrb[240].mxu1 }
 0x2d2   : > { %v11625_v25 = vadd.f32 %v3144_v37, %v11526_v15  ;;  %v8581_v26 = vpop.f32.mrb[241].mxu0  ;;  %v8597_v0 = vpop.f32.mrb[241].mxu1  ;;  %v4320_v15 = vshrl.u32 %v11137_v59, 16 }
 0x2d3   : > { %v3065_v27 = vpop.f32.mrb[242].mxu0  ;;  %v3147_v35 = vpop.f32.mrb[242].mxu1  ;;  %8906 = vmatpush3.bf16.msra.mxu1 %v9416_v47 }
 0x2d4   : > { %v11628_v4 = vadd.f32 %v3147_v35, %v11532_v46  ;;  %v8582_v44 = vpop.f32.mrb[243].mxu0  ;;  %v8598_v60 = vpop.f32.mrb[243].mxu1  ;;  %8967 = vmatprep.subr.bf16.mxu1 %v9494_v1  ;;  %v4325_v46 = vrot.slane %v4323_v24, 1  ;;  %v4322_v63 = vor.u32 %v4320_v15, %v4318_v8  ;;  %v4496_v35 = vrot.slane %v4320_v15, 5 }
 0x2d5   : > { %v4497_v44 = vrot.slane %v4316_v48, 6  ;;  %v4334_v48 = vshrl.u32 %v11181_v56, 16 }
 0x2d6   : > { %8832 = vmatmul.mubr.msk.bf16.gmra.mrb[92].mxu0 %vm2958_vm5, %v11202_v21  ;;  %8848 = vmatmul.mubr.msk.bf16.gmra.mrb[92].mxu1 %vm2958_vm5, %v4319_v3  ;;  %v4326_v28 = vsel %vm1262_vm2, %v4322_v63, %v4325_v46  ;;  %v4329_v0 = vor.u32 %v4327_v34, %v4325_v46  ;;  %v4337_v46 = vshll.u32 %v11202_v21, 16 }
 0x2d7   : > { %8835 = vmatprep.mubr.msk.bf16.mxu0 %vm9495_vm0, %v9494_v1  ;;  %8851 = vmatprep.mubr.msk.bf16.mxu1 %vm9495_vm0, %v9494_v1 }
 0x2d9   : > { %v3152_v22 = vpop.f32.mrb[244].mxu1  ;;  %v3282_v52 = vpop.f32.mrb[244].mxu0 }
 0x2da   : > { %v11644_v2 = vadd.f32 %v3152_v22, %v11547_v50  ;;  %v11647_v23 = vadd.f32 %v3282_v52, %v11570_v62  ;;  %v8601_v58 = vpop.f32.mrb[245].mxu1  ;;  %v8621_v20 = vpop.f32.mrb[245].mxu0  ;;  %v4493_v50 = vrot.slane %v4309_v32, 6  ;;  %v4330_v62 = vshll.u32 %v11181_v56, 16 }
 0x2db   : > { %v3155_v55 = vpop.f32.mrb[246].mxu1  ;;  %v3285_v43 = vpop.f32.mrb[246].mxu0  ;;  %v4339_v58 = vrot.slane %v4337_v46, 1 }
 0x2dc   : > { %v11650_v41 = vadd.f32 %v3155_v55, %v11552_v17  ;;  %v11653_v31 = vadd.f32 %v3285_v43, %v11576_v6  ;;  %v8602_v49 = vpop.f32.mrb[247].mxu1  ;;  %v8622_v51 = vpop.f32.mrb[247].mxu0  ;;  %v4489_v17 = vrot.slane %v4303_v5, 5  ;;  %v4490_v6 = vrot.slane %v4305_v30, 6 }
 0x2dd   : > { %v4494_v32 = vor.u32 %v4493_v50, %v4492_v11  ;;  %v4332_v40 = vrot.slane %v4330_v62, 1 }
 0x2de   : > { %8836 = vmatmul.mubr.msk.bf16.gmra.mrb[96].mxu0 %vm2958_vm5, %v11219_v36  ;;  %8852 = vmatmul.mubr.msk.bf16.gmra.mrb[96].mxu1 %vm2958_vm5, %v4326_v28  ;;  %v4491_v26 = vor.u32 %v4490_v6, %v4489_v17 }
 0x2df   : > { %8855 = vmatprep.mubr.msk.bf16.mxu1 %vm9495_vm0, %v9494_v1  ;;  %8875 = vmatprep.mubr.msk.bf16.mxu0 %vm9495_vm0, %v9494_v1  ;;  %v4333_v52 = vsel %vm1262_vm2, %v4329_v0, %v4332_v40  ;;  %v4336_v11 = vor.u32 %v4334_v48, %v4332_v40 }
 0x2e0   : > { %v4495_v15 = vsel %vm3187_vm6, %v4491_v26, %v4494_v32 }
 0x2e1   : > { %v3160_v47 = vpop.f32.mrb[248].mxu1  ;;  %v3290_v7 = vpop.f32.mrb[248].mxu0  ;;  %v4340_v40 = vsel %vm1262_vm2, %v4336_v11, %v4339_v58  ;;  %v4348_v11 = vshrl.u32 %v11219_v36, 16 }
 0x2e2   : > { %v11674_v8 = vadd.f32 %v3160_v47, %v11565_v16  ;;  %v11677_v5 = vadd.f32 %v3290_v7, %v11594_v18  ;;  %v8605_v30 = vpop.f32.mrb[249].mxu1  ;;  %v8625_v37 = vpop.f32.mrb[249].mxu0  ;;  %v9417_v18 = vld [vmem:[%s12774_s6 + $0xc0] sm:$0xff]  }
 0x2e3   : > { %v3163_v53 = vpop.f32.mrb[250].mxu1  ;;  %v3293_v27 = vpop.f32.mrb[250].mxu0  ;;  %v4344_v37 = vshll.u32 %v11219_v36, 16 }
 0x2e4   : > { %v11682_v60 = vadd.f32 %v3163_v53, %v11573_v38  ;;  %v11685_v3 = vadd.f32 %v3293_v27, %v11604_v29  ;;  %v8606_v16 = vpop.f32.mrb[251].mxu1  ;;  %v8626_v22 = vpop.f32.mrb[251].mxu0  ;;  %v4498_v38 = vor.u32 %v4497_v44, %v4496_v35  ;;  %v9419_v29 = vld [vmem:[%s12774_s6 + $0xc8] sm:$0xff]  }
 0x2e6   : > { %8856 = vmatmul.mubr.msk.bf16.gmra.mrb[100].mxu1 %vm2958_vm5, %v4333_v52  ;;  %8876 = vmatmul.mubr.msk.bf16.vlgmr.msra.gmra.mrb[100].mxu0 %vm2958_vm5, %v4495_v15  ;;  %v4499_v30 = vsel %vm3187_vm6, %v4494_v32, %v4498_v38  ;;  %v4504_v15 = vrot.slane %v4334_v48, 5 }
 0x2e7   : > { %8859 = vmatprep.mubr.msk.bf16.mxu1 %vm9495_vm0, %v9494_v1  ;;  %8879 = vmatprep.mubr.msk.bf16.mxu0 %vm9495_vm0, %v9494_v1 }
 0x2e8   : > { %8936 = vmatpush3.bf16.msra.mxu0 %v9417_v18 }
 0x2e9   : > { %v3168_v20 = vpop.f32.mrb[252].mxu1  ;;  %v3298_v63 = vpop.f32.mrb[252].mxu0  ;;  %8937 = vmatprep.subr.bf16.mxu0 %v9494_v1 }
 0x2ea   : > { %v11707_v55 = vadd.f32 %v3168_v20, %v11591_v13  ;;  %v11710_v43 = vadd.f32 %v3298_v63, %v11625_v25  ;;  %v8609_v49 = vpop.f32.mrb[253].mxu1  ;;  %v8629_v51 = vpop.f32.mrb[253].mxu0  ;;  %v4500_v13 = vrot.slane %v4327_v34, 5  ;;  %v4501_v25 = vrot.slane %v4323_v24, 6 }
 0x2eb   : > { %v3171_v50 = vpop.f32.mrb[254].mxu1  ;;  %v3301_v28 = vpop.f32.mrb[254].mxu0 }
 0x2ec   : > { %v11713_v17 = vadd.f32 %v3171_v50, %v11598_v12  ;;  %v11716_v6 = vadd.f32 %v3301_v28, %v11628_v4  ;;  %v8610_v47 = vpop.f32.mrb[255].mxu1  ;;  %v8630_v7 = vpop.f32.mrb[255].mxu0  ;;  %8938 = vmatpush3.bf16.msra.mxu0 %v9419_v29  ;;  %v4341_v12 = vshrl.u32 %v11202_v21, 16  ;;  %v4346_v4 = vrot.slane %v4344_v37, 1 }
 0x2ed   : > { %8999 = vmatprep.subr.bf16.mxu0 %v9494_v1  ;;  %v4502_v34 = vor.u32 %v4501_v25, %v4500_v13  ;;  %v4505_v29 = vrot.slane %v4330_v62, 6 }
 0x2ee   : > { %8860 = vmatmul.mubr.msk.bf16.gmra.mrb[104].mxu1 %vm2958_vm5, %v4340_v40  ;;  %8880 = vmatmul.mubr.msk.bf16.gmra.mrb[104].mxu0 %vm2958_vm5, %v4499_v30  ;;  %v4343_v35 = vor.u32 %v4341_v12, %v4339_v58  ;;  %v4508_v30 = vrot.slane %v4341_v12, 5 }
 0x2ef   : > { %8863 = vmatprep.mubr.msk.bf16.mxu1 %vm9495_vm0, %v9494_v1  ;;  %8883 = vmatprep.mubr.msk.bf16.mxu0 %vm9495_vm0, %v9494_v1  ;;  %v4503_v20 = vsel %vm3187_vm6, %v4498_v38, %v4502_v34  ;;  %v4506_v48 = vor.u32 %v4505_v29, %v4504_v15 }
 0x2f1   : > { %v3176_v24 = vpop.f32.mrb[0].mxu1  ;;  %v3306_v32 = vpop.f32.mrb[0].mxu0 }
 0x2f2   : > { %v11734_v26 = vadd.f32 %v3176_v24, %v11622_v45  ;;  %v11737_v0 = vadd.f32 %v3306_v32, %v11644_v2  ;;  %v8613_v53 = vpop.f32.mrb[1].mxu1  ;;  %v8633_v27 = vpop.f32.mrb[1].mxu0  ;;  %v4347_v45 = vsel %vm1262_vm2, %v4343_v35, %v4346_v4  ;;  %v4662_v24 = vrot.slane %v11081_v14, 6 }
 0x2f3   : > { %v3179_v44 = vpop.f32.mrb[2].mxu1  ;;  %v3309_v16 = vpop.f32.mrb[2].mxu0  ;;  %v9418_v53 = vld [vmem:[%s12774_s6 + $0xd0] sm:$0xff]   ;;  %v4513_v14 = vrot.slane %v4344_v37, 6 }
 0x2f4   : > { %v11740_v22 = vadd.f32 %v3309_v16, %v11650_v41  ;;  %v8614_v18 = vpop.f32.mrb[3].mxu1  ;;  %v8634_v52 = vpop.f32.mrb[3].mxu0 }
 0x2f6   : > { %8864 = vmatmul.mubr.msk.bf16.gmra.mrb[108].mxu1 %vm2958_vm5, %v4347_v45  ;;  %8884 = vmatmul.mubr.msk.bf16.gmra.mrb[108].mxu0 %vm2958_vm5, %v4503_v20 }
 0x2f7   : > { %8867 = vmatprep.mubr.msk.bf16.mxu1 %vm9495_vm0, %v9494_v1  ;;  %8887 = vmatprep.mubr.msk.bf16.mxu0 %vm9495_vm0, %v9494_v1 }
 0x2f9   : > { %v3314_v2 = vpop.f32.mrb[4].mxu0  ;;  %v3442_v41 = vpop.f32.mrb[4].mxu1 }
 0x2fa   : > { %v11753_v58 = vadd.f32 %v3314_v2, %v11674_v8  ;;  %v11756_v62 = vadd.f32 %v3442_v41, %v11647_v23  ;;  %v8637_v38 = vpop.f32.mrb[5].mxu0  ;;  %v8653_v63 = vpop.f32.mrb[5].mxu1  ;;  %v4509_v8 = vrot.slane %v4337_v46, 6  ;;  %v4507_v23 = vsel %vm3187_vm6, %v4502_v34, %v4506_v48 }
 0x2fb   : > { %v3317_v49 = vpop.f32.mrb[6].mxu0  ;;  %v3445_v51 = vpop.f32.mrb[6].mxu1 }
 0x2fc   : > { %v11760_v50 = vadd.f32 %v3317_v49, %v11682_v60  ;;  %v11763_v28 = vadd.f32 %v3445_v51, %v11653_v31  ;;  %v8638_v47 = vpop.f32.mrb[7].mxu0  ;;  %v8654_v7 = vpop.f32.mrb[7].mxu1  ;;  %v4663_v31 = vrot.slane %v11117_v33, 6  ;;  %v4510_v25 = vor.u32 %v4509_v8, %v4508_v30 }
 0x2fe   : > { %8868 = vmatmul.mubr.msk.bf16.gmra.mrb[112].mxu1 %vm2958_vm5, %v4348_v11  ;;  %8888 = vmatmul.mubr.msk.bf16.gmra.mrb[112].mxu0 %vm2958_vm5, %v4507_v23  ;;  %v4664_v44 = vsel %vm3361_vm7, %v4662_v24, %v4663_v31  ;;  %v4511_v16 = vsel %vm3187_vm6, %v4506_v48, %v4510_v25 }
 0x2ff   : > { %8891 = vmatprep.mubr.msk.bf16.mxu0 %vm9495_vm0, %v9494_v1  ;;  %8907 = vmatprep.mubr.msk.bf16.mxu1 %vm9495_vm0, %v9494_v1 }
 0x301   : > { %v3322_v60 = vpop.f32.mrb[8].mxu0  ;;  %v3450_v13 = vpop.f32.mrb[8].mxu1 }
 0x302   : > { %v11776_v40 = vadd.f32 %v3450_v13, %v11677_v5  ;;  %v8641_v46 = vpop.f32.mrb[9].mxu0  ;;  %v8657_v12 = vpop.f32.mrb[9].mxu1  ;;  %v11779_v4 = vadd.f32 %v3322_v60, %v11707_v55  ;;  %v4512_v55 = vrot.slane %v4348_v11, 5 }
 0x303   : > { %v3325_v32 = vpop.f32.mrb[10].mxu0  ;;  %v3453_v34 = vpop.f32.mrb[10].mxu1 }
 0x304   : > { %v11786_v33 = vadd.f32 %v3453_v34, %v11685_v3  ;;  %v8642_v27 = vpop.f32.mrb[11].mxu0  ;;  %v8658_v35 = vpop.f32.mrb[11].mxu1  ;;  %v11789_v5 = vadd.f32 %v3325_v32, %v11713_v17  ;;  %v9420_v3 = vld [vmem:[%s12774_s6 + $0xd8] sm:$0xff]   ;;  %v4665_v17 = vrot.slane %v11137_v59, 6  ;;  %v4514_v52 = vor.u32 %v4513_v14, %v4512_v55 }
 0x306   : > { %8892 = vmatmul.mubr.msk.bf16.gmra.mrb[116].mxu0 %vm2958_vm5, %v4511_v16  ;;  %8908 = vmatmul.mubr.msk.bf16.vlgmr.msra.gmra.mrb[116].mxu1 %vm2958_vm5, %v4664_v44  ;;  %v4515_v59 = vsel %vm3187_vm6, %v4510_v25, %v4514_v52  ;;  %v4666_v49 = vsel %vm3361_vm7, %v4663_v31, %v4665_v17 }
 0x307   : > { %8968 = vmatpush3.bf16.msra.mxu1 %v9418_v53  ;;  %8895 = vmatprep.mubr.msk.bf16.mxu0 %vm9495_vm0, %v9494_v1 }
 0x308   : > { %8911 = vmatprep.mubr.msk.bf16.mxu1 %vm9495_vm0, %v9494_v1  ;;  %8969 = vmatprep.subr.bf16.mxu1 %v9494_v1 }
 0x309   : > { %v3330_v37 = vpop.f32.mrb[12].mxu0  ;;  %v3458_v18 = vpop.f32.mrb[12].mxu1 }
 0x30a   : > { %v11807_v15 = vadd.f32 %v3458_v18, %v11710_v43  ;;  %v8645_v29 = vpop.f32.mrb[13].mxu0  ;;  %v8661_v45 = vpop.f32.mrb[13].mxu1  ;;  %v11810_v20 = vadd.f32 %v3330_v37, %v11734_v26  ;;  %v4667_v43 = vrot.slane %v11156_v42, 6 }
 0x30b   : > { %v3333_v2 = vpop.f32.mrb[14].mxu0  ;;  %v3461_v41 = vpop.f32.mrb[14].mxu1  ;;  %8970 = vmatpush3.bf16.msra.mxu1 %v9420_v3 }
 0x30c   : > { %v3501_v48 = vadd.f32 %v3461_v41, %v11716_v6  ;;  %v8646_v38 = vpop.f32.mrb[15].mxu0  ;;  %v8662_v63 = vpop.f32.mrb[15].mxu1  ;;  %9031 = vmatprep.subr.bf16.mxu1 %v9494_v1  ;;  %v4668_v42 = vsel %vm3361_vm7, %v4665_v17, %v4667_v43 }
 0x30e   : > { %8896 = vmatmul.mubr.msk.bf16.gmra.mrb[120].mxu0 %vm2958_vm5, %v4515_v59  ;;  %8912 = vmatmul.mubr.msk.bf16.gmra.mrb[120].mxu1 %vm2958_vm5, %v4666_v49 }
 0x30f   : > { %8899 = vmatprep.mubr.msk.bf16.mxu0 %vm9495_vm0, %v9494_v1  ;;  %8915 = vmatprep.mubr.msk.bf16.mxu1 %vm9495_vm0, %v9494_v1 }
 0x311   : > { %v3466_v6 = vpop.f32.mrb[16].mxu1  ;;  %v3581_v26 = vpop.f32.mrb[16].mxu0 }
 0x312   : > { %v8665_v51 = vpop.f32.mrb[17].mxu1  ;;  %v8685_v11 = vpop.f32.mrb[17].mxu0  ;;  %v3502_v47 = vadd.f32 %v3466_v6, %v11737_v0  ;;  %v11825_v7 = vadd.f32 %v3581_v26, %v11756_v62  ;;  %v4669_v0 = vrot.slane %v11181_v56, 6  ;;  %v9421_v56 = vld [vmem:[%s12774_s6 + $0xe0] sm:$0xff]  }
 0x313   : > { %v3469_v30 = vpop.f32.mrb[18].mxu1  ;;  %v3584_v8 = vpop.f32.mrb[18].mxu0 }
 0x314   : > { %v8666_v23 = vpop.f32.mrb[19].mxu1  ;;  %v8686_v31 = vpop.f32.mrb[19].mxu0  ;;  %v3503_v60 = vadd.f32 %v3469_v30, %v11740_v22  ;;  %v11829_v13 = vadd.f32 %v3584_v8, %v11763_v28  ;;  %v4670_v44 = vsel %vm3361_vm7, %v4667_v43, %v4669_v0  ;;  %v4955_v8 = vshll.u32 %v11431_v61, 16 }
 0x316   : > { %8900 = vmatmul.mubr.msk.bf16.gmra.mrb[124].mxu0 %vm2958_vm5, %v4512_v55  ;;  %8916 = vmatmul.mubr.msk.bf16.gmra.mrb[124].mxu1 %vm2958_vm5, %v4668_v42 }
 0x317   : > { %8919 = vmatprep.mubr.msk.bf16.mxu1 %vm9495_vm0, %v9494_v1  ;;  %8939 = vmatprep.mubr.msk.bf16.mxu0 %vm9495_vm0, %v9494_v1 }
 0x319   : > { %v3474_v62 = vpop.f32.mrb[20].mxu1  ;;  %v3589_v25 = vpop.f32.mrb[20].mxu0 }
 0x31a   : > { %v8669_v22 = vpop.f32.mrb[21].mxu1  ;;  %v8689_v46 = vpop.f32.mrb[21].mxu0  ;;  %v3504_v28 = vadd.f32 %v3474_v62, %v11753_v58  ;;  %v11841_v12 = vadd.f32 %v3589_v25, %v11776_v40  ;;  %v9423_v58 = vld [vmem:[%s12774_s6 + $0xe8] sm:$0xff]   ;;  %v4959_v25 = vshll.u32 %v11465_v10, 16 }
 0x31b   : > { %v3477_v24 = vpop.f32.mrb[22].mxu1  ;;  %v3592_v32 = vpop.f32.mrb[22].mxu0 }
 0x31c   : > { %v8670_v34 = vpop.f32.mrb[23].mxu1  ;;  %v8690_v53 = vpop.f32.mrb[23].mxu0  ;;  %v3505_v27 = vadd.f32 %v3477_v24, %v11760_v50  ;;  %v11845_v35 = vadd.f32 %v3592_v32, %v11786_v33  ;;  %v4671_v50 = vrot.slane %v11202_v21, 6  ;;  %v4961_v22 = vrot.slane %v4959_v25, 1 }
 0x31e   : > { %8920 = vmatmul.mubr.msk.bf16.gmra.mrb[128].mxu1 %vm2958_vm5, %v4670_v44  ;;  %8940 = vmatmul.mubr.msk.bf16.vlgmr.msra.gmra.mrb[128].mxu0 %vm2958_vm5, %v11431_v61  ;;  %v4672_v21 = vsel %vm3361_vm7, %v4669_v0, %v4671_v50 }
 0x31f   : > { %8923 = vmatprep.mubr.msk.bf16.mxu1 %vm9495_vm0, %v9494_v1  ;;  %8943 = vmatprep.mubr.msk.bf16.mxu0 %vm9495_vm0, %v9494_v1 }
 0x320   : > { %9000 = vmatpush3.bf16.msra.mxu0 %v9421_v56 }
 0x321   : > { %v3482_v40 = vpop.f32.mrb[24].mxu1  ;;  %v3597_v33 = vpop.f32.mrb[24].mxu0  ;;  %9001 = vmatprep.subr.bf16.mxu0 %v9494_v1 }
 0x322   : > { %v3506_v55 = vadd.f32 %v3482_v40, %v11779_v4  ;;  %v8673_v14 = vpop.f32.mrb[25].mxu1  ;;  %v8693_v16 = vpop.f32.mrb[25].mxu0  ;;  %v11865_v3 = vadd.f32 %v3597_v33, %v11807_v15  ;;  %v4673_v4 = vrot.slane %v11219_v36, 6 }
 0x323   : > { %v3485_v17 = vpop.f32.mrb[26].mxu1  ;;  %v3600_v37 = vpop.f32.mrb[26].mxu0  ;;  %v4966_v14 = vshll.u32 %v11485_v19, 16  ;;  %v4963_v16 = vshrl.u32 %v11465_v10, 16 }
 0x324   : > { %v3507_v18 = vadd.f32 %v3485_v17, %v11789_v5  ;;  %v8674_v52 = vpop.f32.mrb[27].mxu1  ;;  %v8694_v29 = vpop.f32.mrb[27].mxu0  ;;  %v11868_v45 = vadd.f32 %v3600_v37, %v3501_v48  ;;  %9002 = vmatpush3.bf16.msra.mxu0 %v9423_v58  ;;  %v4674_v26 = vsel %vm3361_vm7, %v4671_v50, %v4673_v4  ;;  %v9422_v58 = vld [vmem:[%s12774_s6 + $0xf0] sm:$0xff]  }
 0x325   : > { %9063 = vmatprep.subr.bf16.mxu0 %v9494_v1  ;;  %v4968_v17 = vrot.slane %v4966_v14, 1 }
 0x326   : > { %8924 = vmatmul.mubr.msk.bf16.gmra.mrb[132].mxu1 %vm2958_vm5, %v4672_v21  ;;  %8944 = vmatmul.mubr.msk.bf16.gmra.mrb[132].mxu0 %vm2958_vm5, %v11465_v10 }
 0x327   : > { %8927 = vmatprep.mubr.msk.bf16.mxu1 %vm9495_vm0, %v9494_v1  ;;  %8947 = vmatprep.mubr.msk.bf16.mxu0 %vm9495_vm0, %v9494_v1 }
 0x329   : > { %v3490_v5 = vpop.f32.mrb[28].mxu1  ;;  %v3605_v15 = vpop.f32.mrb[28].mxu0 }
 0x32a   : > { %v3508_v2 = vadd.f32 %v3490_v5, %v11810_v20  ;;  %v11881_v41 = vadd.f32 %v3605_v15, %v3502_v47  ;;  %v8677_v48 = vpop.f32.mrb[29].mxu1  ;;  %v8697_v38 = vpop.f32.mrb[29].mxu0  ;;  %v4965_v5 = vor.u32 %v4963_v16, %v4961_v22 }
 0x32b   : > { %v3493_v63 = vpop.f32.mrb[30].mxu1  ;;  %v3608_v59 = vpop.f32.mrb[30].mxu0 }
 0x32c   : > { %v11883_v49 = vadd.f32 %v3608_v59, %v3503_v60  ;;  %v8678_v43 = vpop.f32.mrb[31].mxu1  ;;  %v8698_v6 = vpop.f32.mrb[31].mxu0 }
 0x32d   : > { %v4973_v43 = vshll.u32 %v11504_v57, 16 }
 0x32e   : > { %8928 = vmatmul.mubr.msk.bf16.gmra.mrb[136].mxu1 %vm2958_vm5, %v4674_v26  ;;  %8948 = vmatmul.mubr.msk.bf16.gmra.mrb[136].mxu0 %vm2958_vm5, %v11485_v19 }
 0x32f   : > { %8931 = vmatprep.mubr.msk.bf16.mxu1 %vm9495_vm0, %v9494_v1  ;;  %8951 = vmatprep.mubr.msk.bf16.mxu0 %vm9495_vm0, %v9494_v1 }
 0x331   : > { %v3613_v36 = vpop.f32.mrb[32].mxu0  ;;  %v3767_v20 = vpop.f32.mrb[32].mxu1 }
 0x332   : > { %v11893_v51 = vadd.f32 %v3613_v36, %v3504_v28  ;;  %v11896_v11 = vadd.f32 %v3767_v20, %v11825_v7  ;;  %v8701_v47 = vpop.f32.mrb[33].mxu0  ;;  %v8717_v30 = vpop.f32.mrb[33].mxu1  ;;  %v4957_v7 = vrot.slane %v4955_v8, 1 }
 0x333   : > { %v3616_v23 = vpop.f32.mrb[34].mxu0  ;;  %v3770_v31 = vpop.f32.mrb[34].mxu1 }
 0x334   : > { %v11899_v60 = vadd.f32 %v3616_v23, %v3505_v27  ;;  %v11902_v42 = vadd.f32 %v3770_v31, %v11829_v13  ;;  %v8702_v0 = vpop.f32.mrb[35].mxu0  ;;  %v8718_v62 = vpop.f32.mrb[35].mxu1  ;;  %v4953_v13 = vshrl.u32 %v11431_v61, 16 }
 0x336   : > { %8932 = vmatmul.mubr.msk.bf16.gmra.mrb[140].mxu1 %vm2958_vm5, %v4673_v4  ;;  %8952 = vmatmul.mubr.msk.bf16.gmra.mrb[140].mxu0 %vm2958_vm5, %v11504_v57  ;;  %v4958_v27 = vor.u32 %v4957_v7, %v4953_v13 }
 0x337   : > { %8955 = vmatprep.mubr.msk.bf16.mxu0 %vm9495_vm0, %v9494_v1  ;;  %8971 = vmatprep.mubr.msk.bf16.mxu1 %vm9495_vm0, %v9494_v1 }
 0x339   : > { %v3621_v46 = vpop.f32.mrb[36].mxu0  ;;  %v3775_v28 = vpop.f32.mrb[36].mxu1 }
 0x33a   : > { %v11917_v24 = vadd.f32 %v3621_v46, %v3506_v55  ;;  %v11920_v32 = vadd.f32 %v3775_v28, %v11841_v12  ;;  %v8705_v34 = vpop.f32.mrb[37].mxu0  ;;  %v8721_v53 = vpop.f32.mrb[37].mxu1  ;;  %v4962_v12 = vsel %vm1262_vm2, %v4958_v27, %v4961_v22  ;;  %v5142_v28 = vrot.slane %v4963_v16, 5 }
 0x33b   : > { %v3624_v56 = vpop.f32.mrb[38].mxu0  ;;  %v3778_v44 = vpop.f32.mrb[38].mxu1  ;;  %v4977_v53 = vshrl.u32 %v11504_v57, 16 }
 0x33c   : > { %v11927_v50 = vadd.f32 %v3624_v56, %v3507_v18  ;;  %v11930_v40 = vadd.f32 %v3778_v44, %v11845_v35  ;;  %v8706_v33 = vpop.f32.mrb[39].mxu0  ;;  %v8722_v55 = vpop.f32.mrb[39].mxu1  ;;  %v9424_v35 = vld [vmem:[%s12774_s6 + $0xf8] sm:$0xff]  }
 0x33e   : > { %8956 = vmatmul.mubr.msk.bf16.gmra.mrb[144].mxu0 %vm2958_vm5, %v11529_v9  ;;  %8972 = vmatmul.mubr.msk.bf16.vlgmr.msra.gmra.mrb[144].mxu1 %vm2958_vm5, %v4962_v12 }
 0x33f   : > { %9032 = vmatpush3.bf16.msra.mxu1 %v9422_v58  ;;  %8959 = vmatprep.mubr.msk.bf16.mxu0 %vm9495_vm0, %v9494_v1 }
 0x340   : > { %8975 = vmatprep.mubr.msk.bf16.mxu1 %vm9495_vm0, %v9494_v1  ;;  %9033 = vmatprep.subr.bf16.mxu1 %v9494_v1 }
 0x341   : > { %v3629_v37 = vpop.f32.mrb[40].mxu0  ;;  %v3783_v18 = vpop.f32.mrb[40].mxu1 }
 0x342   : > { %v11948_v52 = vadd.f32 %v3629_v37, %v3508_v2  ;;  %v11951_v29 = vadd.f32 %v3783_v18, %v11865_v3  ;;  %v8709_v21 = vpop.f32.mrb[41].mxu0  ;;  %v8725_v4 = vpop.f32.mrb[41].mxu1  ;;  %v4969_v2 = vsel %vm1262_vm2, %v4965_v5, %v4968_v17  ;;  %v4970_v3 = vshrl.u32 %v11485_v19, 16 }
 0x343   : > { %v3632_v15 = vpop.f32.mrb[42].mxu0  ;;  %v3786_v48 = vpop.f32.mrb[42].mxu1  ;;  %9034 = vmatpush3.bf16.msra.mxu1 %v9424_v35  ;;  %v5147_v37 = vrot.slane %v4966_v14, 6 }
 0x344   : > { %v11954_v38 = vadd.f32 %v3786_v48, %v11868_v45  ;;  %v8710_v63 = vpop.f32.mrb[43].mxu0  ;;  %v8726_v59 = vpop.f32.mrb[43].mxu1  ;;  %9091 = vmatprep.subr.bf16.mxu1 %v9494_v1  ;;  %v4975_v45 = vrot.slane %v4973_v43, 1  ;;  %v4972_v23 = vor.u32 %v4970_v3, %v4968_v17  ;;  %v5146_v17 = vrot.slane %v4970_v3, 5 }
 0x346   : > { %8960 = vmatmul.mubr.msk.bf16.gmra.mrb[148].mxu0 %vm2958_vm5, %v11550_v39  ;;  %8976 = vmatmul.mubr.msk.bf16.gmra.mrb[148].mxu1 %vm2958_vm5, %v4969_v2  ;;  %v4976_v34 = vsel %vm1262_vm2, %v4972_v23, %v4975_v45  ;;  %v4979_v12 = vor.u32 %v4977_v53, %v4975_v45 }
 0x347   : > { %8963 = vmatprep.mubr.msk.bf16.mxu0 %vm9495_vm0, %v9494_v1  ;;  %8979 = vmatprep.mubr.msk.bf16.mxu1 %vm9495_vm0, %v9494_v1 }
 0x349   : > { %v3791_v6 = vpop.f32.mrb[44].mxu1  ;;  %v3933_v26 = vpop.f32.mrb[44].mxu0 }
 0x34a   : > { %v11970_v36 = vadd.f32 %v3791_v6, %v11881_v41  ;;  %v11973_v20 = vadd.f32 %v3933_v26, %v11896_v11  ;;  %v8729_v47 = vpop.f32.mrb[45].mxu1  ;;  %v8749_v30 = vpop.f32.mrb[45].mxu0  ;;  %v5143_v41 = vrot.slane %v4959_v25, 6  ;;  %v4980_v11 = vshll.u32 %v11529_v9, 16 }
 0x34b   : > { %v3794_v31 = vpop.f32.mrb[46].mxu1  ;;  %v3936_v0 = vpop.f32.mrb[46].mxu0 }
 0x34c   : > { %v11976_v62 = vadd.f32 %v3794_v31, %v11883_v49  ;;  %v11979_v7 = vadd.f32 %v3936_v0, %v11902_v42  ;;  %v8730_v22 = vpop.f32.mrb[47].mxu1  ;;  %v8750_v46 = vpop.f32.mrb[47].mxu0  ;;  %v5139_v49 = vrot.slane %v4953_v13, 5  ;;  %v5140_v42 = vrot.slane %v4955_v8, 6 }
 0x34d   : > { %v5144_v25 = vor.u32 %v5143_v41, %v5142_v28  ;;  %v4982_v27 = vrot.slane %v4980_v11, 1  ;;  %v4994_v46 = vshll.u32 %v11567_v54, 16 }
 0x34e   : > { %8964 = vmatmul.mubr.msk.bf16.gmra.mrb[152].mxu0 %vm2958_vm5, %v11567_v54  ;;  %8980 = vmatmul.mubr.msk.bf16.gmra.mrb[152].mxu1 %vm2958_vm5, %v4976_v34  ;;  %v5141_v55 = vor.u32 %v5140_v42, %v5139_v49 }
 0x34f   : > { %8983 = vmatprep.mubr.msk.bf16.mxu1 %vm9495_vm0, %v9494_v1  ;;  %9003 = vmatprep.mubr.msk.bf16.mxu0 %vm9495_vm0, %v9494_v1  ;;  %v4983_v5 = vsel %vm1262_vm2, %v4979_v12, %v4982_v27 }
 0x350   : > { %v5145_v15 = vsel %vm3187_vm6, %v5141_v55, %v5144_v25 }
 0x351   : > { %v3799_v56 = vpop.f32.mrb[48].mxu1  ;;  %v3941_v44 = vpop.f32.mrb[48].mxu0 }
 0x352   : > { %v12000_v58 = vadd.f32 %v3799_v56, %v11893_v51  ;;  %v12003_v13 = vadd.f32 %v3941_v44, %v11920_v32  ;;  %v8733_v8 = vpop.f32.mrb[49].mxu1  ;;  %v8753_v33 = vpop.f32.mrb[49].mxu0  ;;  %v4987_v32 = vshll.u32 %v11550_v39, 16 }
 0x353   : > { %v3802_v35 = vpop.f32.mrb[50].mxu1  ;;  %v3944_v16 = vpop.f32.mrb[50].mxu0 }
 0x354   : > { %v12008_v18 = vadd.f32 %v3802_v35, %v11899_v60  ;;  %v12011_v21 = vadd.f32 %v3944_v16, %v11930_v40  ;;  %v8734_v51 = vpop.f32.mrb[51].mxu1  ;;  %v8754_v4 = vpop.f32.mrb[51].mxu0  ;;  %v5148_v60 = vor.u32 %v5147_v37, %v5146_v17  ;;  %v4984_v40 = vshrl.u32 %v11529_v9, 16 }
 0x355   : > { %v4989_v14 = vrot.slane %v4987_v32, 1  ;;  %v5155_v35 = vrot.slane %v4980_v11, 6 }
 0x356   : > { %8984 = vmatmul.mubr.msk.bf16.gmra.mrb[156].mxu1 %vm2958_vm5, %v4983_v5  ;;  %9004 = vmatmul.mubr.msk.bf16.vlgmr.msra.gmra.mrb[156].mxu0 %vm2958_vm5, %v5145_v15  ;;  %v4986_v6 = vor.u32 %v4984_v40, %v4982_v27  ;;  %v5149_v22 = vsel %vm3187_vm6, %v5144_v25, %v5148_v60  ;;  %v5154_v12 = vrot.slane %v4984_v40, 5 }
 0x357   : > { %8987 = vmatprep.mubr.msk.bf16.mxu1 %vm9495_vm0, %v9494_v1  ;;  %9007 = vmatprep.mubr.msk.bf16.mxu0 %vm9495_vm0, %v9494_v1 }
 0x358   : > { %v4990_v28 = vsel %vm1262_vm2, %v4986_v6, %v4989_v14  ;;  %v5156_v17 = vor.u32 %v5155_v35, %v5154_v12 }
 0x359   : > { %v3807_v48 = vpop.f32.mrb[52].mxu1  ;;  %v3949_v63 = vpop.f32.mrb[52].mxu0 }
 0x35a   : > { %v12026_v59 = vadd.f32 %v3807_v48, %v11917_v24  ;;  %v12029_v2 = vadd.f32 %v3949_v63, %v11951_v29  ;;  %v8737_v3 = vpop.f32.mrb[53].mxu1  ;;  %v8757_v45 = vpop.f32.mrb[53].mxu0  ;;  %v5150_v24 = vrot.slane %v4977_v53, 5  ;;  %v5151_v29 = vrot.slane %v4973_v43, 6 }
 0x35b   : > { %v3810_v26 = vpop.f32.mrb[54].mxu1  ;;  %v3952_v47 = vpop.f32.mrb[54].mxu0 }
 0x35c   : > { %v12032_v30 = vadd.f32 %v3810_v26, %v11927_v50  ;;  %v12035_v23 = vadd.f32 %v3952_v47, %v11954_v38  ;;  %v8738_v31 = vpop.f32.mrb[55].mxu1  ;;  %v8758_v0 = vpop.f32.mrb[55].mxu0  ;;  %v4991_v50 = vshrl.u32 %v11550_v39, 16  ;;  %v4996_v38 = vrot.slane %v4994_v46, 1 }
 0x35d   : > { %v5152_v34 = vor.u32 %v5151_v29, %v5150_v24  ;;  %v5312_v0 = vrot.slane %v11431_v61, 6  ;;  %v5315_v61 = vrot.slane %v11485_v19, 6 }
 0x35e   : > { %8988 = vmatmul.mubr.msk.bf16.gmra.mrb[160].mxu1 %vm2958_vm5, %v4990_v28  ;;  %9008 = vmatmul.mubr.msk.bf16.gmra.mrb[160].mxu0 %vm2958_vm5, %v5149_v22  ;;  %v4993_v27 = vor.u32 %v4991_v50, %v4989_v14  ;;  %v5158_v3 = vrot.slane %v4991_v50, 5 }
 0x35f   : > { %8991 = vmatprep.mubr.msk.bf16.mxu1 %vm9495_vm0, %v9494_v1  ;;  %9011 = vmatprep.mubr.msk.bf16.mxu0 %vm9495_vm0, %v9494_v1  ;;  %v5153_v16 = vsel %vm3187_vm6, %v5148_v60, %v5152_v34  ;;  %v4998_v60 = vshrl.u32 %v11567_v54, 16 }
 0x361   : > { %v3815_v43 = vpop.f32.mrb[56].mxu1  ;;  %v3957_v41 = vpop.f32.mrb[56].mxu0 }
 0x362   : > { %v12052_v49 = vadd.f32 %v3815_v43, %v11948_v52  ;;  %v12055_v42 = vadd.f32 %v3957_v41, %v11970_v36  ;;  %v8741_v25 = vpop.f32.mrb[57].mxu1  ;;  %v8761_v53 = vpop.f32.mrb[57].mxu0  ;;  %v4997_v52 = vsel %vm1262_vm2, %v4993_v27, %v4996_v38  ;;  %v5162_v43 = vrot.slane %v4998_v60, 5 }
 0x363   : > { %v3818_v56 = vpop.f32.mrb[58].mxu1  ;;  %v3960_v44 = vpop.f32.mrb[58].mxu0 }
 0x364   : > { %v12058_v8 = vadd.f32 %v3960_v44, %v11976_v62  ;;  %v8742_v33 = vpop.f32.mrb[59].mxu1  ;;  %v8762_v55 = vpop.f32.mrb[59].mxu0 }
 0x366   : > { %8992 = vmatmul.mubr.msk.bf16.gmra.mrb[164].mxu1 %vm2958_vm5, %v4997_v52  ;;  %9012 = vmatmul.mubr.msk.bf16.gmra.mrb[164].mxu0 %vm2958_vm5, %v5153_v16 }
 0x367   : > { %8995 = vmatprep.mubr.msk.bf16.mxu1 %vm9495_vm0, %v9494_v1  ;;  %9015 = vmatprep.mubr.msk.bf16.mxu0 %vm9495_vm0, %v9494_v1 }
 0x369   : > { %v3965_v36 = vpop.f32.mrb[60].mxu0  ;;  %v4092_v62 = vpop.f32.mrb[60].mxu1 }
 0x36a   : > { %v12071_v37 = vadd.f32 %v3965_v36, %v12000_v58  ;;  %v12074_v11 = vadd.f32 %v4092_v62, %v11973_v20  ;;  %v8765_v51 = vpop.f32.mrb[61].mxu0  ;;  %v8781_v4 = vpop.f32.mrb[61].mxu1  ;;  %v5159_v58 = vrot.slane %v4987_v32, 6  ;;  %v5157_v20 = vsel %vm3187_vm6, %v5152_v34, %v5156_v17 }
 0x36b   : > { %v3968_v5 = vpop.f32.mrb[62].mxu0  ;;  %v4095_v15 = vpop.f32.mrb[62].mxu1 }
 0x36c   : > { %v12078_v40 = vadd.f32 %v3968_v5, %v12008_v18  ;;  %v4147_v14 = vadd.f32 %v4095_v15, %v11979_v7  ;;  %v8766_v48 = vpop.f32.mrb[63].mxu0  ;;  %v8782_v63 = vpop.f32.mrb[63].mxu1  ;;  %v5313_v7 = vrot.slane %v11465_v10, 6  ;;  %v5160_v6 = vor.u32 %v5159_v58, %v5158_v3 }
 0x36e   : > { %8996 = vmatmul.mubr.msk.bf16.gmra.mrb[168].mxu1 %vm2958_vm5, %v4998_v60  ;;  %9016 = vmatmul.mubr.msk.bf16.gmra.mrb[168].mxu0 %vm2958_vm5, %v5157_v20  ;;  %v5314_v38 = vsel %vm3361_vm7, %v5312_v0, %v5313_v7  ;;  %v5316_v19 = vsel %vm3361_vm7, %v5313_v7, %v5315_v61 }
 0x36f   : > { %9019 = vmatprep.mubr.msk.bf16.mxu0 %vm9495_vm0, %v9494_v1  ;;  %9035 = vmatprep.mubr.msk.bf16.mxu1 %vm9495_vm0, %v9494_v1 }
 0x371   : > { %v3973_v18 = vpop.f32.mrb[64].mxu0  ;;  %v4100_v45 = vpop.f32.mrb[64].mxu1 }
 0x372   : > { %v12092_v26 = vadd.f32 %v3973_v18, %v12026_v59  ;;  %v4148_v32 = vadd.f32 %v4100_v45, %v12003_v13  ;;  %v8769_v47 = vpop.f32.mrb[65].mxu0  ;;  %v8785_v31 = vpop.f32.mrb[65].mxu1  ;;  %v5163_v59 = vrot.slane %v4994_v46, 6  ;;  %v5161_v13 = vsel %vm3187_vm6, %v5156_v17, %v5160_v6 }
 0x373   : > { %v3976_v22 = vpop.f32.mrb[66].mxu0  ;;  %v4103_v24 = vpop.f32.mrb[66].mxu1 }
 0x374   : > { %v12097_v29 = vadd.f32 %v3976_v22, %v12032_v30  ;;  %v4149_v28 = vadd.f32 %v4103_v24, %v12011_v21  ;;  %v8770_v10 = vpop.f32.mrb[67].mxu0  ;;  %v8786_v50 = vpop.f32.mrb[67].mxu1  ;;  %v5164_v41 = vor.u32 %v5163_v59, %v5162_v43 }
 0x376   : > { %9020 = vmatmul.mubr.msk.bf16.gmra.mrb[172].mxu0 %vm2958_vm5, %v5161_v13  ;;  %9036 = vmatmul.mubr.msk.bf16.vlgmr.msra.gmra.mrb[172].mxu1 %vm2958_vm5, %v5314_v38  ;;  %v5165_v12 = vsel %vm3187_vm6, %v5160_v6, %v5164_v41 }
 0x377   : > { %9023 = vmatprep.mubr.msk.bf16.mxu0 %vm9495_vm0, %v9494_v1  ;;  %9039 = vmatprep.mubr.msk.bf16.mxu1 %vm9495_vm0, %v9494_v1 }
 0x379   : > { %v3981_v21 = vpop.f32.mrb[68].mxu0  ;;  %v4108_v30 = vpop.f32.mrb[68].mxu1 }
 0x37a   : > { %v12112_v34 = vadd.f32 %v3981_v21, %v12052_v49  ;;  %v4150_v46 = vadd.f32 %v4108_v30, %v12029_v2  ;;  %v8773_v25 = vpop.f32.mrb[69].mxu0  ;;  %v8789_v53 = vpop.f32.mrb[69].mxu1  ;;  %v5317_v2 = vrot.slane %v11504_v57, 6  ;;  %v5319_v57 = vrot.slane %v11529_v9, 6 }
 0x37b   : > { %v3984_v27 = vpop.f32.mrb[70].mxu0  ;;  %v4111_v56 = vpop.f32.mrb[70].mxu1  ;;  %v5321_v9 = vrot.slane %v11550_v39, 6  ;;  %v5323_v39 = vrot.slane %v11567_v54, 6 }
 0x37c   : > { %v4151_v44 = vadd.f32 %v4111_v56, %v12035_v23  ;;  %v8774_v33 = vpop.f32.mrb[71].mxu0  ;;  %v8790_v55 = vpop.f32.mrb[71].mxu1  ;;  %v5318_v60 = vsel %vm3361_vm7, %v5315_v61, %v5317_v2  ;;  %v5320_v6 = vsel %vm3361_vm7, %v5317_v2, %v5319_v57 }
 0x37d   : > { %v5324_v27 = vsel %vm3361_vm7, %v5321_v9, %v5323_v39 }
 0x37e   : > { %9024 = vmatmul.mubr.msk.bf16.gmra.mrb[176].mxu0 %vm2958_vm5, %v5165_v12  ;;  %9040 = vmatmul.mubr.msk.bf16.gmra.mrb[176].mxu1 %vm2958_vm5, %v5316_v19 }
 0x37f   : > { %9027 = vmatprep.mubr.msk.bf16.mxu0 %vm9495_vm0, %v9494_v1  ;;  %9043 = vmatprep.mubr.msk.bf16.mxu1 %vm9495_vm0, %v9494_v1 }
 0x381   : > { %v4116_v49 = vpop.f32.mrb[72].mxu1  ;;  %v4231_v23 = vpop.f32.mrb[72].mxu0 }
 0x382   : > { %v4152_v35 = vadd.f32 %v4116_v49, %v12055_v42  ;;  %v12127_v52 = vadd.f32 %v4231_v23, %v12074_v11  ;;  %v8793_v16 = vpop.f32.mrb[73].mxu1  ;;  %v8813_v36 = vpop.f32.mrb[73].mxu0 }
 0x383   : > { %v4119_v62 = vpop.f32.mrb[74].mxu1  ;;  %v4234_v17 = vpop.f32.mrb[74].mxu0 }
 0x384   : > { %v4153_v51 = vadd.f32 %v4119_v62, %v12058_v8  ;;  %v12130_v4 = vadd.f32 %v4234_v17, %v4147_v14  ;;  %v8794_v5 = vpop.f32.mrb[75].mxu1  ;;  %v8814_v15 = vpop.f32.mrb[75].mxu0 }
 0x385   : > { %v9425_v5 = vld [vmem:[%s12776_s8 + $0x20] sm:$0xff]  }
 0x386   : > { %9028 = vmatmul.mubr.msk.bf16.gmra.mrb[180].mxu0 %vm2958_vm5, %v5162_v43  ;;  %9044 = vmatmul.mubr.msk.bf16.gmra.mrb[180].mxu1 %vm2958_vm5, %v5318_v60  ;;  %v5322_v43 = vsel %vm3361_vm7, %v5319_v57, %v5321_v9 }
 0x387   : > { %9047 = vmatprep.mubr.msk.bf16.mxu1 %vm9495_vm0, %v9494_v1  ;;  %9071 = vmatprep.mubr.msk.bf16.mxu0 %vm9495_vm0, %v9494_v1 }
 0x388   : > { %9064 = vmatpush3.bf16.msra.mxu0 %v9425_v5 }
 0x389   : > { %v4124_v42 = vpop.f32.mrb[76].mxu1  ;;  %v4239_v8 = vpop.f32.mrb[76].mxu0  ;;  %9065 = vmatprep.subr.bf16.mxu0 %v9494_v1 }
 0x38a   : > { %v4154_v11 = vadd.f32 %v4124_v42, %v12071_v37  ;;  %v4287_v14 = vadd.f32 %v4239_v8, %v4148_v32  ;;  %v8797_v48 = vpop.f32.mrb[77].mxu1  ;;  %v8817_v63 = vpop.f32.mrb[77].mxu0 }
 0x38b   : > { %v4127_v3 = vpop.f32.mrb[78].mxu1  ;;  %v4242_v58 = vpop.f32.mrb[78].mxu0 }
 0x38c   : > { %v4155_v20 = vadd.f32 %v4127_v3, %v12078_v40  ;;  %v4288_v7 = vadd.f32 %v4242_v58, %v4149_v28  ;;  %v8798_v18 = vpop.f32.mrb[79].mxu1  ;;  %v8818_v45 = vpop.f32.mrb[79].mxu0 }
 0x38e   : > { %9048 = vmatmul.mubr.msk.bf16.gmra.mrb[184].mxu1 %vm2958_vm5, %v5320_v6 }
 0x38f   : > { %9051 = vmatprep.mubr.msk.bf16.mxu1 %vm9495_vm0, %v9494_v1 }
 0x391   : > { %v4132_v37 = vpop.f32.mrb[80].mxu1  ;;  %v4247_v32 = vpop.f32.mrb[80].mxu0 }
 0x392   : > { %v4156_v47 = vadd.f32 %v4132_v37, %v12092_v26  ;;  %v4289_v31 = vadd.f32 %v4247_v32, %v4150_v46  ;;  %v8801_v0 = vpop.f32.mrb[81].mxu1  ;;  %v8821_v22 = vpop.f32.mrb[81].mxu0 }
 0x393   : > { %v4135_v40 = vpop.f32.mrb[82].mxu1  ;;  %v4250_v24 = vpop.f32.mrb[82].mxu0 }
 0x394   : > { %v4157_v28 = vadd.f32 %v4135_v40, %v12097_v29  ;;  %v4290_v10 = vadd.f32 %v4250_v24, %v4151_v44  ;;  %v8802_v50 = vpop.f32.mrb[83].mxu1  ;;  %v8822_v38 = vpop.f32.mrb[83].mxu0 }
 0x396   : > { %9052 = vmatmul.mubr.msk.bf16.gmra.mrb[188].mxu1 %vm2958_vm5, %v5322_v43 }
 0x397   : > { %9055 = vmatprep.mubr.msk.bf16.mxu1 %vm9495_vm0, %v9494_v1 }
 0x399   : > { %v4140_v26 = vpop.f32.mrb[84].mxu1  ;;  %v4255_v59 = vpop.f32.mrb[84].mxu0 }
 0x39a   : > { %v4158_v13 = vadd.f32 %v4140_v26, %v12112_v34  ;;  %v4291_v61 = vadd.f32 %v4255_v59, %v4152_v35  ;;  %v8805_v21 = vpop.f32.mrb[85].mxu1  ;;  %v8825_v30 = vpop.f32.mrb[85].mxu0 }
 0x39b   : > { %v4143_v29 = vpop.f32.mrb[86].mxu1  ;;  %v4258_v41 = vpop.f32.mrb[86].mxu0 }
 0x39c   : > { %v4292_v46 = vadd.f32 %v4258_v41, %v4153_v51  ;;  %v8806_v25 = vpop.f32.mrb[87].mxu1  ;;  %v8826_v53 = vpop.f32.mrb[87].mxu0 }
 0x39e   : > { %9056 = vmatmul.mubr.msk.bf16.gmra.mrb[192].mxu1 %vm2958_vm5, %v5324_v27  ;;  %v9428_v27 = vld [vmem:[%s12776_s8 + $0x30] sm:$0xff]  }
 0x39f   : > { %9059 = vmatprep.mubr.msk.bf16.mxu1 %vm9495_vm0, %v9494_v1 }
 0x3a1   : > { %v4263_v54 = vpop.f32.mrb[88].mxu0  ;;  %v4417_v56 = vpop.f32.mrb[88].mxu1 }
 0x3a2   : > { %v4293_v44 = vadd.f32 %v4263_v54, %v4154_v11  ;;  %v4471_v34 = vadd.f32 %v4417_v56, %v12127_v52  ;;  %v8829_v33 = vpop.f32.mrb[89].mxu0  ;;  %v8845_v55 = vpop.f32.mrb[89].mxu1  ;;  %v9429_v54 = vld [vmem:[%s12776_s8 + $0x8] sm:$0xff]  }
 0x3a3   : > { %v4266_v12 = vpop.f32.mrb[90].mxu0  ;;  %v4420_v19 = vpop.f32.mrb[90].mxu1 }
 0x3a4   : > { %v4294_v2 = vadd.f32 %v4266_v12, %v4155_v20  ;;  %v4472_v49 = vadd.f32 %v4420_v19, %v12130_v4  ;;  %v8830_v23 = vpop.f32.mrb[91].mxu0  ;;  %v8846_v35 = vpop.f32.mrb[91].mxu1 }
 0x3a6   : > { %9060 = vmatmul.mubr.msk.bf16.gmra.mrb[196].mxu1 %vm2958_vm5, %v5323_v39 }
 0x3a7   : > { %9099 = vmatprep.mubr.msk.bf16.mxu1 %vm9495_vm0, %v9494_v1 }
 0x3a9   : > { %v4271_v16 = vpop.f32.mrb[92].mxu0  ;;  %v4425_v36 = vpop.f32.mrb[92].mxu1 }
 0x3aa   : > { %v4295_v62 = vadd.f32 %v4271_v16, %v4156_v47  ;;  %v4473_v17 = vadd.f32 %v4425_v36, %v4287_v14  ;;  %v8833_v51 = vpop.f32.mrb[93].mxu0  ;;  %v8849_v52 = vpop.f32.mrb[93].mxu1  ;;  %v9430_v36 = vld [vmem:[%s12776_s8 + $0x10] sm:$0xff]  }
 0x3ab   : > { %v4274_v15 = vpop.f32.mrb[94].mxu0  ;;  %v4428_v60 = vpop.f32.mrb[94].mxu1 }
 0x3ac   : > { %v4296_v4 = vadd.f32 %v4274_v15, %v4157_v28  ;;  %v4474_v57 = vadd.f32 %v4428_v60, %v4288_v7  ;;  %v8834_v42 = vpop.f32.mrb[95].mxu0  ;;  %v8850_v8 = vpop.f32.mrb[95].mxu1  ;;  %v9426_v7 = vld [vmem:[%s12776_s8 + $0x28] sm:$0xff]  }
 0x3ad   : > { %9066 = vmatpush3.bf16.msra.mxu0 %v9426_v7 }
 0x3ae   : > { %9067 = vmatprep.subr.bf16.mxu0 %v9494_v1 }
 0x3b1   : > { %v4279_v11 = vpop.f32.mrb[96].mxu0  ;;  %v4433_v48 = vpop.f32.mrb[96].mxu1  ;;  %9068 = vmatpush3.bf16.msra.mxu0 %v9428_v27 }
 0x3b2   : > { %v12168_v63 = vadd.f32 %v4279_v11, %v4158_v13  ;;  %v4475_v14 = vadd.f32 %v4433_v48, %v4289_v31  ;;  %v8837_v3 = vpop.f32.mrb[97].mxu0  ;;  %v8853_v58 = vpop.f32.mrb[97].mxu1  ;;  %9069 = vmatprep.subr.bf16.mxu0 %v9494_v1 }
 0x3b3   : > { %v4282_v20 = vpop.f32.mrb[98].mxu0  ;;  %v4436_v18 = vpop.f32.mrb[98].mxu1 }
 0x3b4   : > { %v4476_v45 = vadd.f32 %v4436_v18, %v4290_v10  ;;  %v8838_v6 = vpop.f32.mrb[99].mxu0  ;;  %v8854_v9 = vpop.f32.mrb[99].mxu1 }
 0x3b9   : > { %v4441_v37 = vpop.f32.mrb[100].mxu1  ;;  %v4583_v32 = vpop.f32.mrb[100].mxu0 }
 0x3ba   : > { %v4477_v47 = vadd.f32 %v4441_v37, %v4291_v61  ;;  %v4637_v0 = vadd.f32 %v4583_v32, %v4471_v34  ;;  %v8857_v22 = vpop.f32.mrb[101].mxu1  ;;  %v8877_v31 = vpop.f32.mrb[101].mxu0  ;;  %v9432_v32 = vld [vmem:[%s12776_s8 + $0x38] sm:$0xff]  }
 0x3bb   : > { %v4444_v40 = vpop.f32.mrb[102].mxu1  ;;  %v4586_v24 = vpop.f32.mrb[102].mxu0  ;;  %9070 = vmatpush3.bf16.msra.mxu0 %v9432_v32 }
 0x3bc   : > { %v4478_v28 = vadd.f32 %v4444_v40, %v4292_v46  ;;  %v4638_v50 = vadd.f32 %v4586_v24, %v4472_v49  ;;  %v8858_v10 = vpop.f32.mrb[103].mxu1  ;;  %v8878_v38 = vpop.f32.mrb[103].mxu0  ;;  %v9427_v46 = vld [vmem:[%s12776_s8] sm:$0xff]   ;;  %9119 = vmatprep.subr.bf16.mxu0 %v9494_v1 }
 0x3bd   : > { %9092 = vmatpush3.bf16.msra.mxu1 %v9427_v46 }
 0x3be   : > { %9093 = vmatprep.subr.bf16.mxu1 %v9494_v1 }
 0x3c1   : > { %v4449_v43 = vpop.f32.mrb[104].mxu1  ;;  %v4591_v39 = vpop.f32.mrb[104].mxu0  ;;  %9094 = vmatpush3.bf16.msra.mxu1 %v9429_v54 }
 0x3c2   : > { %v4479_v26 = vadd.f32 %v4449_v43, %v4293_v44  ;;  %v12174_v59 = vadd.f32 %v4591_v39, %v4473_v17  ;;  %v8861_v13 = vpop.f32.mrb[105].mxu1  ;;  %v8881_v21 = vpop.f32.mrb[105].mxu0  ;;  %9095 = vmatprep.subr.bf16.mxu1 %v9494_v1 }
 0x3c3   : > { %v4452_v30 = vpop.f32.mrb[106].mxu1  ;;  %v4594_v29 = vpop.f32.mrb[106].mxu0 }
 0x3c4   : > { %v4480_v41 = vadd.f32 %v4452_v30, %v4294_v2  ;;  %v12176_v61 = vadd.f32 %v4594_v29, %v4474_v57  ;;  %v8862_v25 = vpop.f32.mrb[107].mxu1  ;;  %v8882_v53 = vpop.f32.mrb[107].mxu0 }
 0x3c5   : > { %9096 = vmatpush3.bf16.msra.mxu1 %v9430_v36 }
 0x3c6   : > { %9097 = vmatprep.subr.bf16.mxu1 %v9494_v1 }
 0x3c9   : > { %v4457_v56 = vpop.f32.mrb[108].mxu1  ;;  %v4599_v44 = vpop.f32.mrb[108].mxu0 }
 0x3ca   : > { %v4481_v34 = vadd.f32 %v4457_v56, %v4295_v62  ;;  %v4641_v33 = vadd.f32 %v4599_v44, %v4475_v14  ;;  %v8865_v55 = vpop.f32.mrb[109].mxu1  ;;  %v8885_v12 = vpop.f32.mrb[109].mxu0  ;;  %v9431_v62 = vld [vmem:[%s12776_s8 + $0x18] sm:$0xff]  }
 0x3cb   : > { %v4460_v19 = vpop.f32.mrb[110].mxu1  ;;  %v4602_v2 = vpop.f32.mrb[110].mxu0  ;;  %9098 = vmatpush3.bf16.msra.mxu1 %v9431_v62 }
 0x3cc   : > { %v4482_v49 = vadd.f32 %v4460_v19, %v4296_v4  ;;  %v4642_v23 = vadd.f32 %v4602_v2, %v4476_v45  ;;  %v8866_v35 = vpop.f32.mrb[111].mxu1  ;;  %v8886_v16 = vpop.f32.mrb[111].mxu0  ;;  %9147 = vmatprep.subr.bf16.mxu1 %v9494_v1 }
 0x3d1   : > { %v4465_v17 = vpop.f32.mrb[112].mxu1  ;;  %v4607_v51 = vpop.f32.mrb[112].mxu0 }
 0x3d2   : > { %v4483_v52 = vadd.f32 %v4465_v17, %v12168_v63  ;;  %v4643_v5 = vadd.f32 %v4607_v51, %v4477_v47  ;;  %v8869_v15 = vpop.f32.mrb[113].mxu1  ;;  %v8889_v60 = vpop.f32.mrb[113].mxu0 }
 0x3d3   : > { %v4468_v4 = vpop.f32.mrb[114].mxu1  ;;  %v4610_v57 = vpop.f32.mrb[114].mxu0 }
 0x3d4   : > { %v4644_v42 = vadd.f32 %v4610_v57, %v4478_v28  ;;  %v8870_v8 = vpop.f32.mrb[115].mxu1  ;;  %v8890_v11 = vpop.f32.mrb[115].mxu0 }
 0x3d9   : > { %v4615_v48 = vpop.f32.mrb[116].mxu0  ;;  %v4742_v14 = vpop.f32.mrb[116].mxu1 }
 0x3da   : > { %v4645_v3 = vadd.f32 %v4615_v48, %v4479_v26  ;;  %v4796_v58 = vadd.f32 %v4742_v14, %v4637_v0  ;;  %v8893_v20 = vpop.f32.mrb[117].mxu0  ;;  %v8909_v18 = vpop.f32.mrb[117].mxu1 }
 0x3db   : > { %v4618_v45 = vpop.f32.mrb[118].mxu0  ;;  %v4745_v6 = vpop.f32.mrb[118].mxu1 }
 0x3dc   : > { %v4646_v63 = vadd.f32 %v4618_v45, %v4480_v41  ;;  %v4797_v9 = vadd.f32 %v4745_v6, %v4638_v50  ;;  %v8894_v7 = vpop.f32.mrb[119].mxu0  ;;  %v8910_v37 = vpop.f32.mrb[119].mxu1 }
 0x3e1   : > { %v4623_v47 = vpop.f32.mrb[120].mxu0  ;;  %v4750_v22 = vpop.f32.mrb[120].mxu1 }
 0x3e2   : > { %v4647_v31 = vadd.f32 %v4623_v47, %v4481_v34  ;;  %v4798_v0 = vadd.f32 %v4750_v22, %v12174_v59  ;;  %v8897_v40 = vpop.f32.mrb[121].mxu0  ;;  %v8913_v24 = vpop.f32.mrb[121].mxu1 }
 0x3e3   : > { %v4626_v28 = vpop.f32.mrb[122].mxu0  ;;  %v4753_v10 = vpop.f32.mrb[122].mxu1 }
 0x3e4   : > { %v4648_v38 = vadd.f32 %v4626_v28, %v4482_v49  ;;  %v4799_v50 = vadd.f32 %v4753_v10, %v12176_v61  ;;  %v8898_v43 = vpop.f32.mrb[123].mxu0  ;;  %v8914_v39 = vpop.f32.mrb[123].mxu1 }
 0x3e9   : > { %v4631_v26 = vpop.f32.mrb[124].mxu0  ;;  %v4758_v13 = vpop.f32.mrb[124].mxu1 }
 0x3ea   : > { %v4649_v21 = vadd.f32 %v4631_v26, %v4483_v52  ;;  %v4800_v30 = vadd.f32 %v4758_v13, %v4641_v33  ;;  %v8901_v29 = vpop.f32.mrb[125].mxu0  ;;  %v8917_v41 = vpop.f32.mrb[125].mxu1 }
 0x3eb   : > { %v4634_v25 = vpop.f32.mrb[126].mxu0  ;;  %v4761_v53 = vpop.f32.mrb[126].mxu1 }
 0x3ec   : > { %v4801_v46 = vadd.f32 %v4761_v53, %v4642_v23  ;;  %v8902_v27 = vpop.f32.mrb[127].mxu0  ;;  %v8918_v59 = vpop.f32.mrb[127].mxu1 }
 0x3f1   : > { %v4766_v54 = vpop.f32.mrb[128].mxu1  ;;  %v4881_v56 = vpop.f32.mrb[128].mxu0 }
 0x3f2   : > { %v4802_v44 = vadd.f32 %v4766_v54, %v4643_v5  ;;  %v4935_v34 = vadd.f32 %v4881_v56, %v4796_v58  ;;  %v8921_v55 = vpop.f32.mrb[129].mxu1  ;;  %v8941_v12 = vpop.f32.mrb[129].mxu0 }
 0x3f3   : > { %v4769_v61 = vpop.f32.mrb[130].mxu1  ;;  %v4884_v19 = vpop.f32.mrb[130].mxu0 }
 0x3f4   : > { %v4803_v2 = vadd.f32 %v4769_v61, %v4644_v42  ;;  %v4936_v49 = vadd.f32 %v4884_v19, %v4797_v9  ;;  %v8922_v35 = vpop.f32.mrb[131].mxu1  ;;  %v8942_v16 = vpop.f32.mrb[131].mxu0 }
 0x3f9   : > { %v4774_v33 = vpop.f32.mrb[132].mxu1  ;;  %v4889_v36 = vpop.f32.mrb[132].mxu0 }
 0x3fa   : > { %v4804_v62 = vadd.f32 %v4774_v33, %v4645_v3  ;;  %v4937_v17 = vadd.f32 %v4889_v36, %v4798_v0  ;;  %v8925_v51 = vpop.f32.mrb[133].mxu1  ;;  %v8945_v23 = vpop.f32.mrb[133].mxu0 }
 0x3fb   : > { %v4777_v52 = vpop.f32.mrb[134].mxu1  ;;  %v4892_v15 = vpop.f32.mrb[134].mxu0 }
 0x3fc   : > { %v4805_v60 = vadd.f32 %v4777_v52, %v4646_v63  ;;  %v4938_v4 = vadd.f32 %v4892_v15, %v4799_v50  ;;  %v8926_v5 = vpop.f32.mrb[135].mxu1  ;;  %v8946_v57 = vpop.f32.mrb[135].mxu0 }
 0x401   : > { %v4782_v8 = vpop.f32.mrb[136].mxu1  ;;  %v4897_v11 = vpop.f32.mrb[136].mxu0 }
 0x402   : > { %v4806_v48 = vadd.f32 %v4782_v8, %v4647_v31  ;;  %v4939_v14 = vadd.f32 %v4897_v11, %v4800_v30  ;;  %v8929_v42 = vpop.f32.mrb[137].mxu1  ;;  %v8949_v58 = vpop.f32.mrb[137].mxu0 }
 0x403   : > { %v4785_v20 = vpop.f32.mrb[138].mxu1  ;;  %v4900_v18 = vpop.f32.mrb[138].mxu0 }
 0x404   : > { %v4807_v45 = vadd.f32 %v4785_v20, %v4648_v38  ;;  %v4940_v6 = vadd.f32 %v4900_v18, %v4801_v46  ;;  %v8930_v3 = vpop.f32.mrb[139].mxu1  ;;  %v8950_v9 = vpop.f32.mrb[139].mxu0 }
 0x409   : > { %v4790_v7 = vpop.f32.mrb[140].mxu1  ;;  %v4905_v37 = vpop.f32.mrb[140].mxu0 }
 0x40a   : > { %v4808_v32 = vadd.f32 %v4790_v7, %v4649_v21  ;;  %v4941_v47 = vadd.f32 %v4905_v37, %v4802_v44  ;;  %v8933_v63 = vpop.f32.mrb[141].mxu1  ;;  %v8953_v22 = vpop.f32.mrb[141].mxu0 }
 0x40b   : > { %v4793_v0 = vpop.f32.mrb[142].mxu1  ;;  %v4908_v40 = vpop.f32.mrb[142].mxu0 }
 0x40c   : > { %v4942_v24 = vadd.f32 %v4908_v40, %v4803_v2  ;;  %v8934_v28 = vpop.f32.mrb[143].mxu1  ;;  %v8954_v31 = vpop.f32.mrb[143].mxu0 }
 0x411   : > { %v4913_v10 = vpop.f32.mrb[144].mxu0  ;;  %v5067_v50 = vpop.f32.mrb[144].mxu1 }
 0x412   : > { %v4943_v43 = vadd.f32 %v4913_v10, %v4804_v62  ;;  %v5121_v39 = vadd.f32 %v5067_v50, %v4935_v34  ;;  %v8957_v26 = vpop.f32.mrb[145].mxu0  ;;  %v8973_v38 = vpop.f32.mrb[145].mxu1 }
 0x413   : > { %v4916_v13 = vpop.f32.mrb[146].mxu0  ;;  %v5070_v30 = vpop.f32.mrb[146].mxu1 }
 0x414   : > { %v4944_v29 = vadd.f32 %v4916_v13, %v4805_v60  ;;  %v5122_v41 = vadd.f32 %v5070_v30, %v4936_v49  ;;  %v8958_v25 = vpop.f32.mrb[147].mxu0  ;;  %v8974_v21 = vpop.f32.mrb[147].mxu1 }
 0x419   : > { %v4921_v53 = vpop.f32.mrb[148].mxu0  ;;  %v5075_v46 = vpop.f32.mrb[148].mxu1 }
 0x41a   : > { %v4945_v27 = vadd.f32 %v4921_v53, %v4806_v48  ;;  %v5123_v59 = vadd.f32 %v5075_v46, %v4937_v17  ;;  %v8961_v54 = vpop.f32.mrb[149].mxu0  ;;  %v8977_v56 = vpop.f32.mrb[149].mxu1 }
 0x41b   : > { %v4924_v44 = vpop.f32.mrb[150].mxu0  ;;  %v5078_v55 = vpop.f32.mrb[150].mxu1 }
 0x41c   : > { %v4946_v12 = vadd.f32 %v4924_v44, %v4807_v45  ;;  %v5124_v61 = vadd.f32 %v5078_v55, %v4938_v4  ;;  %v8962_v19 = vpop.f32.mrb[151].mxu0  ;;  %v8978_v34 = vpop.f32.mrb[151].mxu1 }
 0x421   : > { %v4929_v2 = vpop.f32.mrb[152].mxu0  ;;  %v5083_v35 = vpop.f32.mrb[152].mxu1 }
 0x422   : > { %v4947_v16 = vadd.f32 %v4929_v2, %v4808_v32  ;;  %v5125_v33 = vadd.f32 %v5083_v35, %v4939_v14  ;;  %v8965_v36 = vpop.f32.mrb[153].mxu0  ;;  %v8981_v49 = vpop.f32.mrb[153].mxu1 }
 0x423   : > { %v4932_v62 = vpop.f32.mrb[154].mxu0  ;;  %v5086_v51 = vpop.f32.mrb[154].mxu1 }
 0x424   : > { %v5126_v23 = vadd.f32 %v5086_v51, %v4940_v6  ;;  %v8966_v52 = vpop.f32.mrb[155].mxu0  ;;  %v8982_v15 = vpop.f32.mrb[155].mxu1 }
 0x429   : > { %v5091_v17 = vpop.f32.mrb[156].mxu1  ;;  %v5233_v60 = vpop.f32.mrb[156].mxu0 }
 0x42a   : > { %v5127_v5 = vadd.f32 %v5091_v17, %v4941_v47  ;;  %v5287_v57 = vadd.f32 %v5233_v60, %v5121_v39  ;;  %v8985_v8 = vpop.f32.mrb[157].mxu1  ;;  %v9005_v11 = vpop.f32.mrb[157].mxu0 }
 0x42b   : > { %v5094_v4 = vpop.f32.mrb[158].mxu1  ;;  %v5236_v48 = vpop.f32.mrb[158].mxu0 }
 0x42c   : > { %v5128_v42 = vadd.f32 %v5094_v4, %v4942_v24  ;;  %v5288_v58 = vadd.f32 %v5236_v48, %v5122_v41  ;;  %v8986_v20 = vpop.f32.mrb[159].mxu1  ;;  %v9006_v18 = vpop.f32.mrb[159].mxu0 }
 0x431   : > { %v5099_v14 = vpop.f32.mrb[160].mxu1  ;;  %v5241_v45 = vpop.f32.mrb[160].mxu0 }
 0x432   : > { %v5129_v3 = vadd.f32 %v5099_v14, %v4943_v43  ;;  %v5289_v9 = vadd.f32 %v5241_v45, %v5123_v59  ;;  %v8989_v7 = vpop.f32.mrb[161].mxu1  ;;  %v9009_v6 = vpop.f32.mrb[161].mxu0 }
 0x433   : > { %v5102_v37 = vpop.f32.mrb[162].mxu1  ;;  %v5244_v32 = vpop.f32.mrb[162].mxu0 }
 0x434   : > { %v5130_v63 = vadd.f32 %v5102_v37, %v4944_v29  ;;  %v5290_v22 = vadd.f32 %v5244_v32, %v5124_v61  ;;  %v8990_v47 = vpop.f32.mrb[163].mxu1  ;;  %v9010_v0 = vpop.f32.mrb[163].mxu0 }
 0x439   : > { %v5107_v40 = vpop.f32.mrb[164].mxu1  ;;  %v5249_v28 = vpop.f32.mrb[164].mxu0 }
 0x43a   : > { %v5131_v31 = vadd.f32 %v5107_v40, %v4945_v27  ;;  %v12205_v10 = vadd.f32 %v5249_v28, %v5125_v33  ;;  %v8993_v24 = vpop.f32.mrb[165].mxu1  ;;  %v9013_v50 = vpop.f32.mrb[165].mxu0 }
 0x43b   : > { %v5110_v39 = vpop.f32.mrb[166].mxu1  ;;  %v5252_v26 = vpop.f32.mrb[166].mxu0 }
 0x43c   : > { %v5132_v38 = vadd.f32 %v5110_v39, %v4946_v12  ;;  %v12207_v43 = vadd.f32 %v5252_v26, %v5126_v23  ;;  %v8994_v13 = vpop.f32.mrb[167].mxu1  ;;  %v9014_v30 = vpop.f32.mrb[167].mxu0  ;;  %v12216_v12 = vld [vmem:[%s12775_s7] ss:$0 sm:$0xff] }
 0x43d   : > { %v9437_v13 = vld [vmem:[%s12776_s8 + $0x70] sm:$0xff]  }
 0x441   : > { %v5115_v41 = vpop.f32.mrb[168].mxu1  ;;  %v5257_v25 = vpop.f32.mrb[168].mxu0 }
 0x442   : > { %v5133_v29 = vadd.f32 %v5115_v41, %v4947_v16  ;;  %v12209_v21 = vadd.f32 %v5257_v25, %v5127_v5  ;;  %v8997_v53 = vpop.f32.mrb[169].mxu1  ;;  %v9017_v46 = vpop.f32.mrb[169].mxu0 }
 0x443   : > { %v5118_v59 = vpop.f32.mrb[170].mxu1  ;;  %v5260_v27 = vpop.f32.mrb[170].mxu0 }
 0x444   : > { %v12211_v54 = vadd.f32 %v5260_v27, %v5128_v42  ;;  %v8998_v56 = vpop.f32.mrb[171].mxu1  ;;  %v9018_v44 = vpop.f32.mrb[171].mxu0 }
 0x449   : > { %v5265_v55 = vpop.f32.mrb[172].mxu0  ;;  %v5392_v61 = vpop.f32.mrb[172].mxu1 }
 0x44a   : > { %v12218_v19 = vadd.f32 %v5265_v55, %v5129_v3  ;;  %v5446_v34 = vadd.f32 %v5392_v61, %v5287_v57  ;;  %v9021_v2 = vpop.f32.mrb[173].mxu0  ;;  %v9037_v35 = vpop.f32.mrb[173].mxu1  ;;  %v9435_v57 = vld [vmem:[%s12776_s8 + $0x60] sm:$0xff]  }
 0x44b   : > { %v5268_v16 = vpop.f32.mrb[174].mxu0  ;;  %v5395_v33 = vpop.f32.mrb[174].mxu1 }
 0x44c   : > { %v5466_v36 = vadd.f32 %v12216_v12, %v5446_v34  ;;  %v12221_v49 = vadd.f32 %v5268_v16, %v5130_v63  ;;  %v5447_v62 = vadd.f32 %v5395_v33, %v5288_v58  ;;  %v9022_v51 = vpop.f32.mrb[175].mxu0  ;;  %v9038_v23 = vpop.f32.mrb[175].mxu1 }
 0x44e   : > { %v5467_v52 = vadd.f32 %v12216_v12, %v5447_v62  ;;  %v5479_v15 = vmax.f32 %v5466_v36, 0.0  ;;  %v9433_v62 = vld [vmem:[%s12776_s8 + $0x40] sm:$0xff]  }
 0x450   : > { %v5480_v17 = vmax.f32 %v5467_v52, 0.0 }
 0x451   : > { %v5273_v60 = vpop.f32.mrb[176].mxu0  ;;  %v5400_v5 = vpop.f32.mrb[176].mxu1 }
 0x452   : > { %v12227_v8 = vpack.c.bf16 %v5480_v17, %v5479_v15  ;;  %v12229_v11 = vadd.f32 %v5273_v60, %v5131_v31  ;;  %v5448_v4 = vadd.f32 %v5400_v5, %v5289_v9  ;;  %v9025_v48 = vpop.f32.mrb[177].mxu0  ;;  %v9041_v42 = vpop.f32.mrb[177].mxu1  ;;  %v9436_v9 = vld [vmem:[%s12776_s8 + $0x68] sm:$0xff]  }
 0x453   : > { %v5276_v58 = vpop.f32.mrb[178].mxu0  ;;  %v5403_v20 = vpop.f32.mrb[178].mxu1 }
 0x454   : > { %v5517_v18 = vshrl.u32 %v12227_v8, 16  ;;  %v5519_v14 = vshll.u32 %v12227_v8, 16  ;;  %v9026_v45 = vpop.f32.mrb[179].mxu0  ;;  %v9042_v3 = vpop.f32.mrb[179].mxu1  ;;  %9100 = vmatmul.mubr.msk.bf16.vlgmr.msra.gmra.mrb[200].mxu1 %vm556_vm1, %v12227_v8  ;;  %v5468_v7 = vadd.f32 %v12216_v12, %v5448_v4  ;;  %v12236_v6 = vadd.f32 %v5276_v58, %v5132_v38 }
 0x455   : > { %v5449_v37 = vadd.f32 %v5403_v20, %v5290_v22  ;;  %9103 = vmatprep.mubr.msk.bf16.mxu1 %vm9495_vm0, %v9494_v1  ;;  %9148 = vmatpush3.bf16.msra.mxu1 %v9435_v57  ;;  %v5789_v30 = vrot.slane %v12227_v8, 1  ;;  %v9434_v45 = vld [vmem:[%s12776_s8 + $0x48] sm:$0xff]  }
 0x456   : > { %v6232_v32 = vrot.slane %v5517_v18, 6  ;;  %9149 = vmatprep.subr.bf16.mxu1 %v9494_v1  ;;  %v6233_v63 = vrot.slane %v5519_v14, 7  ;;  %v5481_v40 = vmax.f32 %v5468_v7, 0.0  ;;  %v5521_v24 = vrot.slane %v5519_v14, 1 }
 0x457   : > { %v5469_v47 = vadd.f32 %v12216_v12, %v5449_v37  ;;  %v5929_v46 = vrot.slane %v5517_v18, 5  ;;  %v5930_v44 = vrot.slane %v5519_v14, 6 }
 0x458   : > { %v12245_v0 = vor.u32 %v6233_v63, %v6232_v32  ;;  %v5522_v2 = vor.u32 %v5521_v24, %v5517_v18 }
 0x459   : > { %v5482_v28 = vmax.f32 %v5469_v47, 0.0  ;;  %v5281_v31 = vpop.f32.mrb[180].mxu0  ;;  %v5408_v22 = vpop.f32.mrb[180].mxu1  ;;  %9150 = vmatpush3.bf16.msra.mxu1 %v9436_v9  ;;  %v5931_v57 = vor.u32 %v5930_v44, %v5929_v46 }
 0x45a   : > { %v12247_v50 = vadd.f32 %v5281_v31, %v5133_v29  ;;  %v5450_v39 = vadd.f32 %v5408_v22, %v12205_v10  ;;  %v9029_v26 = vpop.f32.mrb[181].mxu0  ;;  %v9045_v38 = vpop.f32.mrb[181].mxu1  ;;  %9151 = vmatprep.subr.bf16.mxu1 %v9494_v1  ;;  %v6089_v29 = vrot.slane %v12227_v8, 6 }
 0x45b   : > { %v12255_v41 = vpack.c.bf16 %v5482_v28, %v5481_v40  ;;  %v5284_v25 = vpop.f32.mrb[182].mxu0  ;;  %v5411_v53 = vpop.f32.mrb[182].mxu1 }
 0x45c   : > { %v5470_v10 = vadd.f32 %v12216_v12, %v5450_v39  ;;  %v5451_v59 = vadd.f32 %v5411_v53, %v12207_v43  ;;  %v9030_v27 = vpop.f32.mrb[183].mxu0  ;;  %v9046_v56 = vpop.f32.mrb[183].mxu1  ;;  %v9439_v43 = vld [vmem:[%s12776_s8 + $0x78] sm:$0xff]  }
 0x45d   : > { %v12261_v55 = vshll.u32 %v12255_v41, 16  ;;  %9104 = vmatmul.mubr.msk.bf16.gmra.mrb[204].mxu1 %vm556_vm1, %v12255_v41  ;;  %v12266_v61 = vshrl.u32 %v12255_v41, 16  ;;  %v5790_v34 = vrot.slane %v12255_v41, 1  ;;  %v6090_v33 = vrot.slane %v12255_v41, 6 }
 0x45e   : > { %v5483_v35 = vmax.f32 %v5470_v10, 0.0  ;;  %v5471_v16 = vadd.f32 %v12216_v12, %v5451_v59  ;;  %9107 = vmatprep.mubr.msk.bf16.mxu1 %vm9495_vm0, %v9494_v1  ;;  %9152 = vmatpush3.bf16.msra.mxu1 %v9437_v13  ;;  %v6680_v3 = vrot.slane %v12255_v41, 4  ;;  %v9438_v13 = vld [vmem:[%s12776_s8 + $0x50] sm:$0xff]  }
 0x45f   : > { %v5526_v36 = vrot.slane %v12261_v55, 1  ;;  %9153 = vmatprep.subr.bf16.mxu1 %v9494_v1  ;;  %v5932_v51 = vrot.slane %v12266_v61, 5  ;;  %v5933_v23 = vrot.slane %v12261_v55, 6  ;;  %v12284_v52 = vsel %vm5788_vm8, %v5789_v30, %v5790_v34 }
 0x460   : > { %v5484_v15 = vmax.f32 %v5471_v16, 0.0  ;;  %v6235_v17 = vrot.slane %v12266_v61, 6  ;;  %v6236_v60 = vrot.slane %v12261_v55, 7  ;;  %v12291_v5 = vsel %vm3361_vm7, %v6089_v29, %v6090_v33 }
 0x461   : > { %v5416_v8 = vpop.f32.mrb[184].mxu1  ;;  %v5527_v4 = vsel %vm1262_vm2, %v5522_v2, %v5526_v36  ;;  %v12294_v48 = vor.u32 %v5933_v23, %v5932_v51  ;;  %v6528_v7 = vrot.slane %v12266_v61, 3  ;;  %v6529_v37 = vrot.slane %v12261_v55, 4 }
 0x462   : > { %v12296_v42 = vpack.c.bf16 %v5484_v15, %v5483_v35  ;;  %v5452_v58 = vadd.f32 %v5416_v8, %v12209_v21  ;;  %9072 = vmatmul.mubr.msk.bf16.vlgmr.msra.gmra.mrb[184].mxu0 %vm556_vm1, %v5527_v4  ;;  %v9049_v20 = vpop.f32.mrb[185].mxu1  ;;  %9154 = vmatpush3.bf16.msra.mxu1 %v9439_v43  ;;  %v12300_v18 = vor.u32 %v6236_v60, %v6235_v17 }
 0x463   : > { %9120 = vmatpush3.bf16.msra.mxu0 %v9433_v62  ;;  %v5419_v14 = vpop.f32.mrb[186].mxu1  ;;  %9075 = vmatprep.mubr.msk.bf16.mxu0 %vm9495_vm0, %v9494_v1  ;;  %v12310_v21 = vsel %vm3187_vm6, %v5931_v57, %v12294_v48  ;;  %v5530_v39 = vor.u32 %v12266_v61, %v5526_v36  ;;  %v6530_v55 = vor.u32 %v6529_v37, %v6528_v7 }
 0x464   : > { %v5472_v9 = vadd.f32 %v12216_v12, %v5452_v58  ;;  %v5453_v32 = vadd.f32 %v5419_v14, %v12211_v54  ;;  %v9050_v63 = vpop.f32.mrb[187].mxu1  ;;  %v5532_v47 = vshll.u32 %v12296_v42, 16  ;;  %9121 = vmatprep.subr.bf16.mxu0 %v9494_v1  ;;  %v5536_v40 = vshrl.u32 %v12296_v42, 16  ;;  %9203 = vmatprep.subr.bf16.mxu1 %v9494_v1 }
 0x465   : > { %9108 = vmatmul.mubr.msk.bf16.gmra.mrb[208].mxu1 %vm556_vm1, %v12296_v42  ;;  %v6681_v28 = vrot.slane %v12296_v42, 4  ;;  %v5792_v31 = vrot.slane %v12296_v42, 1  ;;  %v12327_v54 = vsel %vm6231_vm9, %v12245_v0, %v12300_v18  ;;  %v6092_v22 = vrot.slane %v12296_v42, 6 }
 0x466   : > { %v5473_v24 = vadd.f32 %v12216_v12, %v5453_v32  ;;  %v5534_v26 = vrot.slane %v5532_v47, 1  ;;  %9111 = vmatprep.mubr.msk.bf16.mxu1 %vm9495_vm0, %v9494_v1  ;;  %v5936_v38 = vrot.slane %v5536_v40, 5  ;;  %v5937_v30 = vrot.slane %v5532_v47, 6 }
 0x467   : > { %9122 = vmatpush3.bf16.msra.mxu0 %v9434_v45  ;;  %v12340_v0 = vsel %vm6679_vm10, %v6680_v3, %v6681_v28  ;;  %v12343_v25 = vsel %vm5788_vm8, %v5790_v34, %v5792_v31  ;;  %v6239_v53 = vrot.slane %v5536_v40, 6  ;;  %v5485_v46 = vmax.f32 %v5472_v9, 0.0 }
 0x468   : > { %v5486_v29 = vmax.f32 %v5473_v24, 0.0  ;;  %v5535_v10 = vsel %vm1262_vm2, %v5530_v39, %v5534_v26  ;;  %9123 = vmatprep.subr.bf16.mxu0 %v9494_v1  ;;  %v6240_v59 = vrot.slane %v5532_v47, 7  ;;  %v5938_v56 = vor.u32 %v5937_v30, %v5936_v38 }
 0x469   : > { %v5424_v27 = vpop.f32.mrb[188].mxu1  ;;  %v12352_v44 = vsel %vm3361_vm7, %v6090_v33, %v6092_v22  ;;  %v6531_v61 = vrot.slane %v5536_v40, 3  ;;  %v6532_v43 = vrot.slane %v5532_v47, 4  ;;  %v5538_v62 = vor.u32 %v5536_v40, %v5534_v26  ;;  %v9440_v33 = vld [vmem:[%s12776_s8 + $0x58] sm:$0xff]  }
 0x46a   : > { %v12354_v34 = vpack.c.bf16 %v5486_v29, %v5485_v46  ;;  %v5454_v2 = vadd.f32 %v5424_v27, %v12218_v19  ;;  %9076 = vmatmul.mubr.msk.bf16.gmra.mrb[188].mxu0 %vm556_vm1, %v5535_v10  ;;  %v9053_v35 = vpop.f32.mrb[189].mxu1  ;;  %v6241_v16 = vor.u32 %v6240_v59, %v6239_v53  ;;  %v12365_v51 = vsel %vm3187_vm6, %v12294_v48, %v5938_v56 }
 0x46b   : > { %v5427_v36 = vpop.f32.mrb[190].mxu1  ;;  %9079 = vmatprep.mubr.msk.bf16.mxu0 %vm9495_vm0, %v9494_v1  ;;  %9124 = vmatpush3.bf16.msra.mxu0 %v9438_v13  ;;  %v6387_v19 = vrot.slane %v12255_v41, 3  ;;  %v6388_v23 = vrot.slane %v12296_v42, 3  ;;  %v6533_v58 = vor.u32 %v6532_v43, %v6531_v61 }
 0x46c   : > { %v5474_v15 = vadd.f32 %v12216_v12, %v5454_v2  ;;  %v5455_v17 = vadd.f32 %v5427_v36, %v12221_v49  ;;  %v9054_v60 = vpop.f32.mrb[191].mxu1  ;;  %v5540_v57 = vshll.u32 %v12354_v34, 16  ;;  %v5544_v8 = vshrl.u32 %v12354_v34, 16  ;;  %9125 = vmatprep.subr.bf16.mxu0 %v9494_v1 }
 0x46d   : > { %9112 = vmatmul.mubr.msk.bf16.gmra.mrb[212].mxu1 %vm556_vm1, %v12354_v34  ;;  %v5794_v4 = vrot.slane %v12354_v34, 1  ;;  %v12379_v41 = vsel %vm6231_vm9, %v12300_v18, %v6241_v16  ;;  %v6094_v48 = vrot.slane %v12354_v34, 6  ;;  %v12396_v26 = vsel %vm6527_vm11, %v6530_v55, %v6533_v58 }
 0x46e   : > { %v5487_v49 = vmax.f32 %v5474_v15, 0.0  ;;  %v5475_v20 = vadd.f32 %v12216_v12, %v5455_v17  ;;  %v5542_v14 = vrot.slane %v5540_v57, 1  ;;  %9115 = vmatprep.mubr.msk.bf16.mxu1 %vm9495_vm0, %v9494_v1  ;;  %v5940_v45 = vrot.slane %v5544_v8, 5 }
 0x46f   : > { %9126 = vmatpush3.bf16.msra.mxu0 %v9440_v33  ;;  %v5941_v3 = vrot.slane %v5540_v57, 6  ;;  %v12386_v7 = vsel %vm5788_vm8, %v5792_v31, %v5794_v4  ;;  %v6243_v37 = vrot.slane %v5544_v8, 6  ;;  %v6244_v9 = vrot.slane %v5540_v57, 7 }
 0x470   : > { %v5488_v18 = vmax.f32 %v5475_v20, 0.0  ;;  %v5543_v32 = vsel %vm1262_vm2, %v5538_v62, %v5542_v14  ;;  %v5546_v63 = vor.u32 %v5544_v8, %v5542_v14  ;;  %9175 = vmatprep.subr.bf16.mxu0 %v9494_v1  ;;  %v12393_v47 = vsel %vm3361_vm7, %v6092_v22, %v6094_v48 }
 0x471   : > { %v5432_v40 = vpop.f32.mrb[192].mxu1  ;;  %v5942_v24 = vor.u32 %v5941_v3, %v5940_v45  ;;  %v6245_v39 = vor.u32 %v6244_v9, %v6243_v37  ;;  %v6535_v31 = vrot.slane %v5544_v8, 3  ;;  %v6536_v53 = vrot.slane %v5540_v57, 4 }
 0x472   : > { %v12398_v38 = vpack.c.bf16 %v5488_v18, %v5487_v49  ;;  %v5456_v13 = vadd.f32 %v5432_v40, %v12229_v11  ;;  %9080 = vmatmul.mubr.msk.bf16.gmra.mrb[192].mxu0 %vm556_vm1, %v5543_v32  ;;  %v9057_v30 = vpop.f32.mrb[193].mxu1  ;;  %v12403_v46 = vsel %vm6386_vm12, %v6387_v19, %v6388_v23  ;;  %v6390_v59 = vrot.slane %v12354_v34, 3 }
 0x473   : > { %v5435_v22 = vpop.f32.mrb[194].mxu1  ;;  %9083 = vmatprep.mubr.msk.bf16.mxu0 %vm9495_vm0, %v9494_v1  ;;  %v12408_v29 = vsel %vm3187_vm6, %v5938_v56, %v5942_v24  ;;  %v12411_v10 = vsel %vm6231_vm9, %v6241_v16, %v6245_v39  ;;  %v6683_v11 = vrot.slane %v12354_v34, 4  ;;  %v6537_v43 = vor.u32 %v6536_v53, %v6535_v31 }
 0x474   : > { %v5552_v27 = vshrl.u32 %v12398_v38, 16  ;;  %v5476_v55 = vadd.f32 %v12216_v12, %v5456_v13  ;;  %v5457_v61 = vadd.f32 %v5435_v22, %v12236_v6  ;;  %v9058_v2 = vpop.f32.mrb[195].mxu1  ;;  %v5548_v35 = vshll.u32 %v12398_v38, 16 }
 0x475   : > { %9116 = vmatmul.mubr.msk.bf16.gmra.mrb[216].mxu1 %vm556_vm1, %v12398_v38  ;;  %v5796_v56 = vrot.slane %v12398_v38, 1  ;;  %v6096_v16 = vrot.slane %v12398_v38, 6  ;;  %v12424_v36 = vsel %vm6386_vm12, %v6388_v23, %v6390_v59  ;;  %v12439_v37 = vsel %vm6527_vm11, %v6533_v58, %v6537_v43  ;;  %v9444_v2 = vld [vmem:[%s12776_s8 + $0xa8] sm:$0xff]  }
 0x476   : > { %v5489_v62 = vmax.f32 %v5476_v55, 0.0  ;;  %v5477_v33 = vadd.f32 %v12216_v12, %v5457_v61  ;;  %v5550_v19 = vrot.slane %v5548_v35, 1  ;;  %9155 = vmatprep.mubr.msk.bf16.mxu1 %vm9495_vm0, %v9494_v1  ;;  %v5944_v6 = vrot.slane %v5552_v27, 5 }
 0x477   : > { %v5945_v15 = vrot.slane %v5548_v35, 6  ;;  %v12432_v17 = vsel %vm5788_vm8, %v5794_v4, %v5796_v56  ;;  %v6247_v60 = vrot.slane %v5552_v27, 6  ;;  %v6248_v57 = vrot.slane %v5548_v35, 7 }
 0x478   : > { %v5490_v8 = vmax.f32 %v5477_v33, 0.0  ;;  %v5551_v23 = vsel %vm1262_vm2, %v5546_v63, %v5550_v19  ;;  %v5554_v49 = vor.u32 %v5552_v27, %v5550_v19  ;;  %v12436_v20 = vsel %vm3361_vm7, %v6094_v48, %v6096_v16  ;;  %v9443_v63 = vld [vmem:[%s12776_s8 + $0xa0] sm:$0xff]  }
 0x479   : > { %v5440_v14 = vpop.f32.mrb[196].mxu1  ;;  %v5946_v45 = vor.u32 %v5945_v15, %v5944_v6  ;;  %v6249_v3 = vor.u32 %v6248_v57, %v6247_v60  ;;  %v6539_v9 = vrot.slane %v5552_v27, 3  ;;  %v6540_v48 = vrot.slane %v5548_v35, 4 }
 0x47a   : > { %v12441_v18 = vpack.c.bf16 %v5490_v8, %v5489_v62  ;;  %v5458_v4 = vadd.f32 %v5440_v14, %v12247_v50  ;;  %9084 = vmatmul.mubr.msk.bf16.gmra.mrb[196].mxu0 %vm556_vm1, %v5551_v23  ;;  %v9061_v32 = vpop.f32.mrb[197].mxu1  ;;  %v6392_v40 = vrot.slane %v12398_v38, 3  ;;  %v12462_v50 = vsel %vm6679_vm10, %v6681_v28, %v6683_v11 }
 0x47b   : > { %v5443_v31 = vpop.f32.mrb[198].mxu1  ;;  %9087 = vmatprep.mubr.msk.bf16.mxu0 %vm9495_vm0, %v9494_v1  ;;  %v12452_v58 = vsel %vm3187_vm6, %v5942_v24, %v5946_v45  ;;  %v12455_v13 = vsel %vm6231_vm9, %v6245_v39, %v6249_v3  ;;  %v6685_v30 = vrot.slane %v12398_v38, 4  ;;  %v6541_v42 = vor.u32 %v6540_v48, %v6539_v9  ;;  %v9445_v9 = vld [vmem:[%s12776_s8 + $0xb0] sm:$0xff]   ;;  %v9449_v38 = vld [vmem:[%s12776_s8 + $0xc0] sm:$0xff]  }
 0x47c   : > { %v5949_v53 = vshrl.u32 %v12441_v18, 16  ;;  %v5952_v22 = vshll.u32 %v12441_v18, 16  ;;  %v6098_v27 = vrot.slane %v12441_v18, 6  ;;  %v6394_v24 = vrot.slane %v12441_v18, 3  ;;  %v9062_v55 = vpop.f32.mrb[199].mxu1 }
 0x47d   : > { %v5478_v39 = vadd.f32 %v12216_v12, %v5458_v4  ;;  %v6687_v61 = vrot.slane %v12441_v18, 4  ;;  %9156 = vmatmul.mubr.msk.bf16.vlgmr.msra.gmra.mrb[220].mxu1 %vm556_vm1, %v12310_v21  ;;  %v12474_v28 = vsel %vm6386_vm12, %v6390_v59, %v6392_v40  ;;  %v12486_v59 = vsel %vm6527_vm11, %v6537_v43, %v6541_v42 }
 0x47e   : > { %9159 = vmatprep.mubr.msk.bf16.mxu1 %vm9495_vm0, %v9494_v1  ;;  %9204 = vmatpush3.bf16.msra.mxu1 %v9443_v63  ;;  %v5951_v35 = vrot.slane %v5949_v53, 5  ;;  %v5954_v62 = vrot.slane %v5952_v22, 6  ;;  %v6251_v12 = vrot.slane %v5949_v53, 6  ;;  %v6252_v33 = vrot.slane %v5952_v22, 7 }
 0x47f   : > { %v5491_v19 = vmax.f32 %v5478_v39, 0.0  ;;  %9205 = vmatprep.subr.bf16.mxu1 %v9494_v1  ;;  %v12483_v21 = vsel %vm3361_vm7, %v6096_v16, %v6098_v27  ;;  %v6543_v6 = vrot.slane %v5949_v53, 3  ;;  %v6544_v57 = vrot.slane %v5952_v22, 4 }
 0x480   : > { %v5955_v15 = vor.u32 %v5954_v62, %v5951_v35  ;;  %v6253_v60 = vor.u32 %v6252_v33, %v6251_v12  ;;  %v12491_v8 = vsel %vm6386_vm12, %v6392_v40, %v6394_v24  ;;  %v12496_v14 = vsel %vm6679_vm10, %v6683_v11, %v6685_v30 }
 0x481   : > { %v5498_v23 = vpack.c.bf16 %v5491_v19, %v5491_v19  ;;  %v12499_v16 = vsel %vm6679_vm10, %v6685_v30, %v6687_v61  ;;  %v12509_v32 = vor.u32 %v6544_v57, %v6543_v6 }
 0x482   : > { %9088 = vmatmul.mubr.msk.bf16.gmra.mrb[200].mxu0 %vm556_vm1, %v5554_v49  ;;  %9206 = vmatpush3.bf16.msra.mxu1 %v9444_v2  ;;  %v5956_v43 = vsel %vm3187_vm6, %v5946_v45, %v5955_v15  ;;  %v12507_v4 = vsel %vm6231_vm9, %v6249_v3, %v6253_v60  ;;  %v9447_v45 = vld [vmem:[%s12776_s8 + $0xb8] sm:$0xff]   ;;  %v9441_v3 = vld [vmem:[%s12776_s8 + $0x80] sm:$0xff]  }
 0x483   : > { %v6689_v34 = vrot.slane %v5498_v23, 4  ;;  %9127 = vmatprep.mubr.msk.bf16.mxu0 %vm9495_vm0, %v9494_v1  ;;  %9207 = vmatprep.subr.bf16.mxu1 %v9494_v1  ;;  %v12516_v11 = vsel %vm6527_vm11, %v6541_v42, %v12509_v32 }
 0x485   : > { %v12519_v49 = vsel %vm6679_vm10, %v6687_v61, %v6689_v34  ;;  %9160 = vmatmul.mubr.msk.bf16.gmra.mrb[224].mxu1 %vm556_vm1, %v12365_v51  ;;  %v9442_v51 = vld [vmem:[%s12776_s8 + $0x88] sm:$0xff]  }
 0x486   : > { %9163 = vmatprep.mubr.msk.bf16.mxu1 %vm9495_vm0, %v9494_v1  ;;  %9208 = vmatpush3.bf16.msra.mxu1 %v9445_v9 }
 0x487   : > { %9209 = vmatprep.subr.bf16.mxu1 %v9494_v1 }
 0x48a   : > { %9128 = vmatmul.mubr.msk.bf16.vlgmr.msra.gmra.mrb[204].mxu0 %vm556_vm1, %v12284_v52  ;;  %9210 = vmatpush3.bf16.msra.mxu1 %v9447_v45  ;;  %v9446_v52 = vld [vmem:[%s12776_s8 + $0x90] sm:$0xff]  }
 0x48b   : > { %9176 = vmatpush3.bf16.msra.mxu0 %v9441_v3  ;;  %9131 = vmatprep.mubr.msk.bf16.mxu0 %vm9495_vm0, %v9494_v1 }
 0x48c   : > { %9177 = vmatprep.subr.bf16.mxu0 %v9494_v1  ;;  %9259 = vmatprep.subr.bf16.mxu1 %v9494_v1 }
 0x48d   : > { %9164 = vmatmul.mubr.msk.bf16.gmra.mrb[228].mxu1 %vm556_vm1, %v12408_v29  ;;  %v9448_v29 = vld [vmem:[%s12776_s8 + $0x98] sm:$0xff]  }
 0x48e   : > { %9167 = vmatprep.mubr.msk.bf16.mxu1 %vm9495_vm0, %v9494_v1 }
 0x48f   : > { %9178 = vmatpush3.bf16.msra.mxu0 %v9442_v51 }
 0x490   : > { %9179 = vmatprep.subr.bf16.mxu0 %v9494_v1 }
 0x492   : > { %9132 = vmatmul.mubr.msk.bf16.gmra.mrb[208].mxu0 %vm556_vm1, %v12343_v25  ;;  %v9451_v25 = vld [vmem:[%s12776_s8 + $0xe0] sm:$0xff]  }
 0x493   : > { %9135 = vmatprep.mubr.msk.bf16.mxu0 %vm9495_vm0, %v9494_v1  ;;  %9180 = vmatpush3.bf16.msra.mxu0 %v9446_v52 }
 0x494   : > { %9181 = vmatprep.subr.bf16.mxu0 %v9494_v1 }
 0x495   : > { %9168 = vmatmul.mubr.msk.bf16.gmra.mrb[232].mxu1 %vm556_vm1, %v12452_v58 }
 0x496   : > { %9171 = vmatprep.mubr.msk.bf16.mxu1 %vm9495_vm0, %v9494_v1 }
 0x497   : > { %9182 = vmatpush3.bf16.msra.mxu0 %v9448_v29 }
 0x498   : > { %9231 = vmatprep.subr.bf16.mxu0 %v9494_v1 }
 0x49a   : > { %9136 = vmatmul.mubr.msk.bf16.gmra.mrb[212].mxu0 %vm556_vm1, %v12386_v7  ;;  %v9452_v7 = vld [vmem:[%s12776_s8 + $0xe8] sm:$0xff]  }
 0x49b   : > { %9139 = vmatprep.mubr.msk.bf16.mxu0 %vm9495_vm0, %v9494_v1 }
 0x49d   : > { %9172 = vmatmul.mubr.msk.bf16.gmra.mrb[236].mxu1 %vm556_vm1, %v5956_v43 }
 0x49e   : > { %9211 = vmatprep.mubr.msk.bf16.mxu1 %vm9495_vm0, %v9494_v1 }
 0x4a2   : > { %9140 = vmatmul.mubr.msk.bf16.gmra.mrb[216].mxu0 %vm556_vm1, %v12432_v17  ;;  %v9453_v17 = vld [vmem:[%s12776_s8 + $0xf0] sm:$0xff]  }
 0x4a3   : > { %9143 = vmatprep.mubr.msk.bf16.mxu0 %vm9495_vm0, %v9494_v1 }
 0x4a5   : > { %9212 = vmatmul.mubr.msk.bf16.vlgmr.msra.gmra.mrb[240].mxu1 %vm556_vm1, %v12327_v54  ;;  %v9455_v54 = vld [vmem:[%s12776_s8 + $0xf8] sm:$0xff]  }
 0x4a6   : > { %9215 = vmatprep.mubr.msk.bf16.mxu1 %vm9495_vm0, %v9494_v1  ;;  %9260 = vmatpush3.bf16.msra.mxu1 %v9451_v25 }
 0x4a7   : > { %9261 = vmatprep.subr.bf16.mxu1 %v9494_v1 }
 0x4aa   : > { %9144 = vmatmul.mubr.msk.bf16.gmra.mrb[220].mxu0 %vm556_vm1, %v5796_v56  ;;  %9262 = vmatpush3.bf16.msra.mxu1 %v9452_v7 }
 0x4ab   : > { %9183 = vmatprep.mubr.msk.bf16.mxu0 %vm9495_vm0, %v9494_v1  ;;  %9263 = vmatprep.subr.bf16.mxu1 %v9494_v1 }
 0x4ad   : > { %9216 = vmatmul.mubr.msk.bf16.gmra.mrb[244].mxu1 %vm556_vm1, %v12379_v41  ;;  %v9450_v41 = vld [vmem:[%s12776_s8 + $0xc8] sm:$0xff]  }
 0x4ae   : > { %9219 = vmatprep.mubr.msk.bf16.mxu1 %vm9495_vm0, %v9494_v1  ;;  %9264 = vmatpush3.bf16.msra.mxu1 %v9453_v17 }
 0x4af   : > { %9265 = vmatprep.subr.bf16.mxu1 %v9494_v1 }
 0x4b2   : > { %9184 = vmatmul.mubr.msk.bf16.vlgmr.msra.gmra.mrb[224].mxu0 %vm556_vm1, %v12291_v5  ;;  %9266 = vmatpush3.bf16.msra.mxu1 %v9455_v54  ;;  %v9454_v5 = vld [vmem:[%s12776_s8 + $0xd0] sm:$0xff]  }
 0x4b3   : > { %9232 = vmatpush3.bf16.msra.mxu0 %v9449_v38  ;;  %9187 = vmatprep.mubr.msk.bf16.mxu0 %vm9495_vm0, %v9494_v1 }
 0x4b4   : > { %9233 = vmatprep.subr.bf16.mxu0 %v9494_v1 }
 0x4b5   : > { %9220 = vmatmul.mubr.msk.bf16.gmra.mrb[248].mxu1 %vm556_vm1, %v12411_v10  ;;  %v9456_v10 = vld [vmem:[%s12776_s8 + $0xd8] sm:$0xff]  }
 0x4b6   : > { %9223 = vmatprep.mubr.msk.bf16.mxu1 %vm9495_vm0, %v9494_v1 }
 0x4b7   : > { %9234 = vmatpush3.bf16.msra.mxu0 %v9450_v41 }
 0x4b8   : > { %9235 = vmatprep.subr.bf16.mxu0 %v9494_v1 }
 0x4ba   : > { %9188 = vmatmul.mubr.msk.bf16.gmra.mrb[228].mxu0 %vm556_vm1, %v12352_v44  ;;  %v9457_v44 = vld [vmem:[%s12776_s8 + $0x100] sm:$0xff]  }
 0x4bb   : > { %9191 = vmatprep.mubr.msk.bf16.mxu0 %vm9495_vm0, %v9494_v1  ;;  %9236 = vmatpush3.bf16.msra.mxu0 %v9454_v5 }
 0x4bc   : > { %9237 = vmatprep.subr.bf16.mxu0 %v9494_v1 }
 0x4bd   : > { %9224 = vmatmul.mubr.msk.bf16.gmra.mrb[252].mxu1 %vm556_vm1, %v12455_v13 }
 0x4be   : > { %9227 = vmatprep.mubr.msk.bf16.mxu1 %vm9495_vm0, %v9494_v1 }
 0x4bf   : > { %9238 = vmatpush3.bf16.msra.mxu0 %v9456_v10 }
 0x4c0   : > { %9287 = vmatprep.subr.bf16.mxu0 %v9494_v1 }
 0x4c2   : > { %9192 = vmatmul.mubr.msk.bf16.gmra.mrb[232].mxu0 %vm556_vm1, %v12393_v47  ;;  %v9458_v47 = vld [vmem:[%s12776_s8 + $0x108] sm:$0xff]  }
 0x4c3   : > { %9195 = vmatprep.mubr.msk.bf16.mxu0 %vm9495_vm0, %v9494_v1 }
 0x4c5   : > { %9228 = vmatmul.mubr.msk.bf16.gmra.mrb[0].mxu1 %vm556_vm1, %v12507_v4 }
 0x4c6   : > { %9267 = vmatprep.mubr.msk.bf16.mxu1 %vm9495_vm0, %v9494_v1 }
 0x4ca   : > { %9196 = vmatmul.mubr.msk.bf16.gmra.mrb[236].mxu0 %vm556_vm1, %v12436_v20 }
 0x4cb   : > { %9199 = vmatprep.mubr.msk.bf16.mxu0 %vm9495_vm0, %v9494_v1 }
 0x4cd   : > { %9268 = vmatmul.mubr.msk.bf16.vlgmr.msra.gmra.mrb[4].mxu1 %vm556_vm1, %v12396_v26  ;;  %v9459_v26 = vld [vmem:[%s12776_s8 + $0x110] sm:$0xff]  }
 0x4ce   : > { %9271 = vmatprep.mubr.msk.bf16.mxu1 %vm9495_vm0, %v9494_v1 }
 0x4d2   : > { %9200 = vmatmul.mubr.msk.bf16.gmra.mrb[240].mxu0 %vm556_vm1, %v12483_v21 }
 0x4d3   : > { %9239 = vmatprep.mubr.msk.bf16.mxu0 %vm9495_vm0, %v9494_v1 }
 0x4d5   : > { %9272 = vmatmul.mubr.msk.bf16.gmra.mrb[8].mxu1 %vm556_vm1, %v12439_v37 }
 0x4d6   : > { %9275 = vmatprep.mubr.msk.bf16.mxu1 %vm9495_vm0, %v9494_v1 }
 0x4da   : > { %9240 = vmatmul.mubr.msk.bf16.vlgmr.msra.gmra.mrb[244].mxu0 %vm556_vm1, %v12403_v46  ;;  %v9460_v46 = vld [vmem:[%s12776_s8 + $0x118] sm:$0xff]  }
 0x4db   : > { %9288 = vmatpush3.bf16.msra.mxu0 %v9457_v44  ;;  %9243 = vmatprep.mubr.msk.bf16.mxu0 %vm9495_vm0, %v9494_v1 }
 0x4dc   : > { %9289 = vmatprep.subr.bf16.mxu0 %v9494_v1 }
 0x4dd   : > { %9276 = vmatmul.mubr.msk.bf16.gmra.mrb[12].mxu1 %vm556_vm1, %v12486_v59 }
 0x4de   : > { %9279 = vmatprep.mubr.msk.bf16.mxu1 %vm9495_vm0, %v9494_v1 }
 0x4df   : > { %9290 = vmatpush3.bf16.msra.mxu0 %v9458_v47 }
 0x4e0   : > { %9291 = vmatprep.subr.bf16.mxu0 %v9494_v1 }
 0x4e2   : > { %9244 = vmatmul.mubr.msk.bf16.gmra.mrb[248].mxu0 %vm556_vm1, %v12424_v36 }
 0x4e3   : > { %9247 = vmatprep.mubr.msk.bf16.mxu0 %vm9495_vm0, %v9494_v1  ;;  %9292 = vmatpush3.bf16.msra.mxu0 %v9459_v26 }
 0x4e4   : > { %9293 = vmatprep.subr.bf16.mxu0 %v9494_v1 }
 0x4e5   : > { %9280 = vmatmul.mubr.msk.bf16.gmra.mrb[16].mxu1 %vm556_vm1, %v12516_v11 }
 0x4e6   : > { %9283 = vmatprep.mubr.msk.bf16.mxu1 %vm9495_vm0, %v9494_v1 }
 0x4e7   : > { %9294 = vmatpush3.bf16.msra.mxu0 %v9460_v46 }
 0x4ea   : > { %9248 = vmatmul.mubr.msk.bf16.gmra.mrb[252].mxu0 %vm556_vm1, %v12474_v28 }
 0x4eb   : > { %9251 = vmatprep.mubr.msk.bf16.mxu0 %vm9495_vm0, %v9494_v1 }
 0x4ed   : > { %9284 = vmatmul.mubr.msk.bf16.gmra.mrb[20].mxu1 %vm556_vm1, %v12509_v32 }
 0x4f2   : > { %9252 = vmatmul.mubr.msk.bf16.gmra.mrb[0].mxu0 %vm556_vm1, %v12491_v8 }
 0x4f3   : > { %9255 = vmatprep.mubr.msk.bf16.mxu0 %vm9495_vm0, %v9494_v1 }
 0x4fa   : > { %9256 = vmatmul.mubr.msk.bf16.gmra.mrb[4].mxu0 %vm556_vm1, %v6394_v24 }
 0x4fb   : > { %9295 = vmatprep.mubr.msk.bf16.mxu0 %vm9495_vm0, %v9494_v1 }
 0x502   : > { %9296 = vmatmul.mubr.msk.bf16.vlgmr.msra.gmra.mrb[8].mxu0 %vm556_vm1, %v12340_v0 }
 0x503   : > { %9299 = vmatprep.mubr.msk.bf16.mxu0 %vm9495_vm0, %v9494_v1 }
 0x50a   : > { %9300 = vmatmul.mubr.msk.bf16.gmra.mrb[12].mxu0 %vm556_vm1, %v12462_v50 }
 0x50b   : > { %9303 = vmatprep.mubr.msk.bf16.mxu0 %vm9495_vm0, %v9494_v1 }
 0x512   : > { %9304 = vmatmul.mubr.msk.bf16.gmra.mrb[16].mxu0 %vm556_vm1, %v12496_v14 }
 0x513   : > { %9307 = vmatprep.mubr.msk.bf16.mxu0 %vm9495_vm0, %v9494_v1 }
 0x51a   : > { %9308 = vmatmul.mubr.msk.bf16.gmra.mrb[20].mxu0 %vm556_vm1, %v12499_v16 }
 0x51b   : > { %9311 = vmatprep.mubr.msk.bf16.mxu0 %vm9495_vm0, %v9494_v1  ;;  %vm6892_vm0 = vmand %vm6890_vm14, %vm6891_vm15 }
 0x522   : > { %9312 = vmatmul.mubr.msk.bf16.gmra.mrb[24].mxu0 %vm556_vm1, %v12519_v49 }
 0x527   : > { %v5735_v0 = vpop.f32.mrb[200].mxu1 }
 0x528   : > { %v9101_v56 = vpop.f32.mrb[201].mxu1 }
 0x529   : > { %v5738_v36 = vpop.f32.mrb[202].mxu1 }
 0x52a   : > { %v9102_v20 = vpop.f32.mrb[203].mxu1 }
 0x530   : > { %v5743_v37 = vpop.f32.mrb[204].mxu1 }
 0x531   : > { %v9105_v18 = vpop.f32.mrb[205].mxu1 }
 0x532   : > { %v5746_v63 = vpop.f32.mrb[206].mxu1 }
 0x533   : > { %v9106_v48 = vpop.f32.mrb[207].mxu1 }
 0x535   : > { %v5628_v40 = vpop.f32.mrb[184].mxu0 }
 0x536   : > { %v5736_v31 = vadd.f32 %v5735_v0, %v5628_v40  ;;  %v9073_v58 = vpop.f32.mrb[185].mxu0 }
 0x537   : > { %v5631_v13 = vpop.f32.mrb[186].mxu0 }
 0x538   : > { %v5739_v50 = vadd.f32 %v5738_v36, %v5631_v13  ;;  %v9074_v30 = vpop.f32.mrb[187].mxu0  ;;  %v5751_v53 = vpop.f32.mrb[208].mxu1 }
 0x539   : > { %v9109_v22 = vpop.f32.mrb[209].mxu1 }
 0x53a   : > { %v5754_v1 = vpop.f32.mrb[210].mxu1 }
 0x53b   : > { %v9110_v27 = vpop.f32.mrb[211].mxu1 }
 0x53d   : > { %v5636_v24 = vpop.f32.mrb[188].mxu0 }
 0x53e   : > { %v5744_v55 = vadd.f32 %v5743_v37, %v5636_v24  ;;  %v9077_v39 = vpop.f32.mrb[189].mxu0 }
 0x53f   : > { %v5639_v61 = vpop.f32.mrb[190].mxu0 }
 0x540   : > { %v5747_v42 = vadd.f32 %v5746_v63, %v5639_v61  ;;  %v9078_v28 = vpop.f32.mrb[191].mxu0  ;;  %v5759_v2 = vpop.f32.mrb[212].mxu1 }
 0x541   : > { %v9113_v35 = vpop.f32.mrb[213].mxu1 }
 0x542   : > { %v5762_v62 = vpop.f32.mrb[214].mxu1 }
 0x543   : > { %v9114_v12 = vpop.f32.mrb[215].mxu1 }
 0x545   : > { %v5644_v33 = vpop.f32.mrb[192].mxu0 }
 0x546   : > { %v5752_v19 = vadd.f32 %v5751_v53, %v5644_v33  ;;  %v9081_v21 = vpop.f32.mrb[193].mxu0 }
 0x547   : > { %v5647_v59 = vpop.f32.mrb[194].mxu0 }
 0x548   : > { %v5755_v6 = vadd.f32 %v5754_v1, %v5647_v59  ;;  %v9082_v15 = vpop.f32.mrb[195].mxu0  ;;  %v5767_v60 = vpop.f32.mrb[216].mxu1 }
 0x549   : > { %v9117_v57 = vpop.f32.mrb[217].mxu1 }
 0x54a   : > { %v5770_v8 = vpop.f32.mrb[218].mxu1 }
 0x54b   : > { %v9118_v23 = vpop.f32.mrb[219].mxu1 }
 0x54d   : > { %v5652_v14 = vpop.f32.mrb[196].mxu0 }
 0x54e   : > { %v5760_v16 = vadd.f32 %v5759_v2, %v5652_v14  ;;  %v9085_v43 = vpop.f32.mrb[197].mxu0 }
 0x54f   : > { %v5655_v9 = vpop.f32.mrb[198].mxu0 }
 0x550   : > { %v5763_v4 = vadd.f32 %v5762_v62, %v5655_v9  ;;  %v9086_v32 = vpop.f32.mrb[199].mxu0  ;;  %v6030_v34 = vpop.f32.mrb[220].mxu1 }
 0x551   : > { %v9157_v11 = vpop.f32.mrb[221].mxu1 }
 0x552   : > { %v6033_v49 = vpop.f32.mrb[222].mxu1 }
 0x553   : > { %v9158_v45 = vpop.f32.mrb[223].mxu1 }
 0x555   : > { %v5660_v3 = vpop.f32.mrb[200].mxu0 }
 0x556   : > { %v5768_v51 = vadd.f32 %v5767_v60, %v5660_v3  ;;  %v9089_v52 = vpop.f32.mrb[201].mxu0 }
 0x557   : > { %v5663_v29 = vpop.f32.mrb[202].mxu0 }
 0x558   : > { %v5771_v25 = vadd.f32 %v5770_v8, %v5663_v29  ;;  %v9090_v7 = vpop.f32.mrb[203].mxu0  ;;  %v6038_v17 = vpop.f32.mrb[224].mxu1 }
 0x559   : > { %v9161_v54 = vpop.f32.mrb[225].mxu1 }
 0x55a   : > { %v6041_v38 = vpop.f32.mrb[226].mxu1 }
 0x55b   : > { %v9162_v41 = vpop.f32.mrb[227].mxu1 }
 0x55d   : > { %v5871_v5 = vpop.f32.mrb[204].mxu0 }
 0x55e   : > { %v5910_v10 = vadd.f32 %v5871_v5, %v5736_v31  ;;  %v9129_v44 = vpop.f32.mrb[205].mxu0 }
 0x55f   : > { %v5874_v47 = vpop.f32.mrb[206].mxu0 }
 0x560   : > { %v5911_v26 = vadd.f32 %v5874_v47, %v5739_v50  ;;  %v9130_v46 = vpop.f32.mrb[207].mxu0  ;;  %v6046_v0 = vpop.f32.mrb[228].mxu1  ;;  %v6069_v56 = vadd.f32 %v6030_v34, %v5910_v10 }
 0x561   : > { %v9165_v36 = vpop.f32.mrb[229].mxu1 }
 0x562   : > { %v6049_v20 = vpop.f32.mrb[230].mxu1  ;;  %v6070_v37 = vadd.f32 %v6033_v49, %v5911_v26 }
 0x563   : > { %v9166_v18 = vpop.f32.mrb[231].mxu1 }
 0x565   : > { %v5879_v63 = vpop.f32.mrb[208].mxu0 }
 0x566   : > { %v5912_v48 = vadd.f32 %v5879_v63, %v5744_v55  ;;  %v9133_v40 = vpop.f32.mrb[209].mxu0 }
 0x567   : > { %v5882_v58 = vpop.f32.mrb[210].mxu0 }
 0x568   : > { %v5913_v13 = vadd.f32 %v5882_v58, %v5747_v42  ;;  %v9134_v30 = vpop.f32.mrb[211].mxu0  ;;  %v6054_v53 = vpop.f32.mrb[232].mxu1  ;;  %v6071_v22 = vadd.f32 %v6038_v17, %v5912_v48 }
 0x569   : > { %v9169_v1 = vpop.f32.mrb[233].mxu1 }
 0x56a   : > { %v6057_v31 = vpop.f32.mrb[234].mxu1  ;;  %v6072_v27 = vadd.f32 %v6041_v38, %v5913_v13 }
 0x56b   : > { %v9170_v24 = vpop.f32.mrb[235].mxu1 }
 0x56d   : > { %v5887_v50 = vpop.f32.mrb[212].mxu0 }
 0x56e   : > { %v5914_v39 = vadd.f32 %v5887_v50, %v5752_v19  ;;  %v9137_v61 = vpop.f32.mrb[213].mxu0 }
 0x56f   : > { %v5890_v28 = vpop.f32.mrb[214].mxu0 }
 0x570   : > { %v5915_v2 = vadd.f32 %v5890_v28, %v5755_v6  ;;  %v9138_v35 = vpop.f32.mrb[215].mxu0  ;;  %v6062_v62 = vpop.f32.mrb[236].mxu1  ;;  %v6073_v12 = vadd.f32 %v6046_v0, %v5914_v39 }
 0x571   : > { %v9173_v33 = vpop.f32.mrb[237].mxu1 }
 0x572   : > { %v6065_v55 = vpop.f32.mrb[238].mxu1  ;;  %v6074_v21 = vadd.f32 %v6049_v20, %v5915_v2 }
 0x573   : > { %v9174_v59 = vpop.f32.mrb[239].mxu1 }
 0x575   : > { %v5895_v42 = vpop.f32.mrb[216].mxu0 }
 0x576   : > { %v5916_v15 = vadd.f32 %v5895_v42, %v5760_v16  ;;  %v9141_v60 = vpop.f32.mrb[217].mxu0 }
 0x577   : > { %v5898_v57 = vpop.f32.mrb[218].mxu0 }
 0x578   : > { %v5917_v8 = vadd.f32 %v5898_v57, %v5763_v4  ;;  %v9142_v23 = vpop.f32.mrb[219].mxu0  ;;  %v6328_v14 = vpop.f32.mrb[240].mxu1  ;;  %v6075_v43 = vadd.f32 %v6054_v53, %v5916_v15 }
 0x579   : > { %v9213_v9 = vpop.f32.mrb[241].mxu1 }
 0x57a   : > { %v6331_v19 = vpop.f32.mrb[242].mxu1  ;;  %v6076_v32 = vadd.f32 %v6057_v31, %v5917_v8 }
 0x57b   : > { %v9214_v34 = vpop.f32.mrb[243].mxu1 }
 0x57d   : > { %v5903_v6 = vpop.f32.mrb[220].mxu0 }
 0x57e   : > { %v5918_v11 = vadd.f32 %v5903_v6, %v5768_v51  ;;  %v9145_v49 = vpop.f32.mrb[221].mxu0 }
 0x57f   : > { %v5906_v45 = vpop.f32.mrb[222].mxu0 }
 0x580   : > { %v5919_v3 = vadd.f32 %v5906_v45, %v5771_v25  ;;  %v9146_v52 = vpop.f32.mrb[223].mxu0  ;;  %v6336_v29 = vpop.f32.mrb[244].mxu1  ;;  %v6077_v7 = vadd.f32 %v6062_v62, %v5918_v11 }
 0x581   : > { %v9217_v17 = vpop.f32.mrb[245].mxu1 }
 0x582   : > { %v6339_v16 = vpop.f32.mrb[246].mxu1  ;;  %v6078_v54 = vadd.f32 %v6065_v55, %v5919_v3 }
 0x583   : > { %v9218_v38 = vpop.f32.mrb[247].mxu1 }
 0x585   : > { %v6173_v4 = vpop.f32.mrb[224].mxu0 }
 0x586   : > { %v6212_v41 = vadd.f32 %v6173_v4, %v6069_v56  ;;  %v9185_v5 = vpop.f32.mrb[225].mxu0 }
 0x587   : > { %v6176_v10 = vpop.f32.mrb[226].mxu0 }
 0x588   : > { %v6213_v44 = vadd.f32 %v6176_v10, %v6070_v37  ;;  %v9186_v47 = vpop.f32.mrb[227].mxu0  ;;  %v6344_v26 = vpop.f32.mrb[248].mxu1  ;;  %v6367_v46 = vadd.f32 %v6328_v14, %v6212_v41 }
 0x589   : > { %v9221_v0 = vpop.f32.mrb[249].mxu1 }
 0x58a   : > { %v6347_v51 = vpop.f32.mrb[250].mxu1  ;;  %v6368_v36 = vadd.f32 %v6331_v19, %v6213_v44 }
 0x58b   : > { %v9222_v20 = vpop.f32.mrb[251].mxu1 }
 0x58d   : > { %v6181_v25 = vpop.f32.mrb[228].mxu0 }
 0x58e   : > { %v6214_v18 = vadd.f32 %v6181_v25, %v6071_v22  ;;  %v9189_v63 = vpop.f32.mrb[229].mxu0 }
 0x58f   : > { %v6184_v48 = vpop.f32.mrb[230].mxu0 }
 0x590   : > { %v6215_v40 = vadd.f32 %v6184_v48, %v6072_v27  ;;  %v9190_v58 = vpop.f32.mrb[231].mxu0  ;;  %v6352_v13 = vpop.f32.mrb[252].mxu1  ;;  %v6369_v30 = vadd.f32 %v6336_v29, %v6214_v18 }
 0x591   : > { %v9225_v53 = vpop.f32.mrb[253].mxu1 }
 0x592   : > { %v6355_v56 = vpop.f32.mrb[254].mxu1  ;;  %v6370_v1 = vadd.f32 %v6339_v16, %v6215_v40 }
 0x593   : > { %v9226_v31 = vpop.f32.mrb[255].mxu1 }
 0x595   : > { %v6189_v37 = vpop.f32.mrb[232].mxu0 }
 0x596   : > { %v6216_v24 = vadd.f32 %v6189_v37, %v6073_v12  ;;  %v9193_v50 = vpop.f32.mrb[233].mxu0 }
 0x597   : > { %v6192_v39 = vpop.f32.mrb[234].mxu0 }
 0x598   : > { %v6217_v61 = vadd.f32 %v6192_v39, %v6074_v21  ;;  %v9194_v28 = vpop.f32.mrb[235].mxu0  ;;  %v6360_v2 = vpop.f32.mrb[0].mxu1  ;;  %v6371_v35 = vadd.f32 %v6344_v26, %v6216_v24 }
 0x599   : > { %v9229_v62 = vpop.f32.mrb[1].mxu1 }
 0x59a   : > { %v6363_v22 = vpop.f32.mrb[2].mxu1  ;;  %v6372_v33 = vadd.f32 %v6347_v51, %v6217_v61 }
 0x59b   : > { %v9230_v55 = vpop.f32.mrb[3].mxu1 }
 0x59d   : > { %v6197_v27 = vpop.f32.mrb[236].mxu0 }
 0x59e   : > { %v6218_v59 = vadd.f32 %v6197_v27, %v6075_v43  ;;  %v9197_v42 = vpop.f32.mrb[237].mxu0 }
 0x59f   : > { %v6200_v15 = vpop.f32.mrb[238].mxu0 }
 0x5a0   : > { %v6219_v60 = vadd.f32 %v6200_v15, %v6076_v32  ;;  %v9198_v57 = vpop.f32.mrb[239].mxu0  ;;  %v6620_v8 = vpop.f32.mrb[4].mxu1  ;;  %v6373_v23 = vadd.f32 %v6352_v13, %v6218_v59 }
 0x5a1   : > { %v9269_v14 = vpop.f32.mrb[5].mxu1 }
 0x5a2   : > { %v6623_v12 = vpop.f32.mrb[6].mxu1  ;;  %v6374_v9 = vadd.f32 %v6355_v56, %v6219_v60 }
 0x5a3   : > { %v9270_v19 = vpop.f32.mrb[7].mxu1 }
 0x5a5   : > { %v6205_v21 = vpop.f32.mrb[240].mxu0 }
 0x5a6   : > { %v6220_v34 = vadd.f32 %v6205_v21, %v6077_v7  ;;  %v9201_v6 = vpop.f32.mrb[241].mxu0 }
 0x5a7   : > { %v6208_v11 = vpop.f32.mrb[242].mxu0 }
 0x5a8   : > { %v6221_v49 = vadd.f32 %v6208_v11, %v6078_v54  ;;  %v9202_v45 = vpop.f32.mrb[243].mxu0  ;;  %v6628_v3 = vpop.f32.mrb[8].mxu1  ;;  %v6375_v52 = vadd.f32 %v6360_v2, %v6220_v34 }
 0x5a9   : > { %v9273_v29 = vpop.f32.mrb[9].mxu1 }
 0x5aa   : > { %v6631_v43 = vpop.f32.mrb[10].mxu1  ;;  %v6376_v17 = vadd.f32 %v6363_v22, %v6221_v49 }
 0x5ab   : > { %v9274_v16 = vpop.f32.mrb[11].mxu1 }
 0x5ad   : > { %v6469_v32 = vpop.f32.mrb[244].mxu0 }
 0x5ae   : > { %v6508_v38 = vadd.f32 %v6469_v32, %v6367_v46  ;;  %v9241_v4 = vpop.f32.mrb[245].mxu0 }
 0x5af   : > { %v6472_v41 = vpop.f32.mrb[246].mxu0 }
 0x5b0   : > { %v6509_v5 = vadd.f32 %v6472_v41, %v6368_v36  ;;  %v9242_v10 = vpop.f32.mrb[247].mxu0  ;;  %v6636_v44 = vpop.f32.mrb[12].mxu1  ;;  %v6659_v47 = vadd.f32 %v6620_v8, %v6508_v38 }
 0x5b1   : > { %v9277_v26 = vpop.f32.mrb[13].mxu1 }
 0x5b2   : > { %v6639_v7 = vpop.f32.mrb[14].mxu1  ;;  %v6660_v0 = vadd.f32 %v6623_v12, %v6509_v5 }
 0x5b3   : > { %v9278_v51 = vpop.f32.mrb[15].mxu1 }
 0x5b5   : > { %v6477_v54 = vpop.f32.mrb[248].mxu0 }
 0x5b6   : > { %v6510_v20 = vadd.f32 %v6477_v54, %v6369_v30  ;;  %v9245_v25 = vpop.f32.mrb[249].mxu0 }
 0x5b7   : > { %v6480_v18 = vpop.f32.mrb[250].mxu0 }
 0x5b8   : > { %v6511_v63 = vadd.f32 %v6480_v18, %v6370_v1  ;;  %v9246_v48 = vpop.f32.mrb[251].mxu0  ;;  %v6644_v40 = vpop.f32.mrb[16].mxu1  ;;  %v6661_v58 = vadd.f32 %v6628_v3, %v6510_v20 }
 0x5b9   : > { %v9281_v13 = vpop.f32.mrb[17].mxu1 }
 0x5ba   : > { %v6647_v46 = vpop.f32.mrb[18].mxu1  ;;  %v6662_v53 = vadd.f32 %v6631_v43, %v6511_v63 }
 0x5bb   : > { %v9282_v56 = vpop.f32.mrb[19].mxu1 }
 0x5bd   : > { %v6485_v36 = vpop.f32.mrb[252].mxu0 }
 0x5be   : > { %v6512_v31 = vadd.f32 %v6485_v36, %v6371_v35  ;;  %v9249_v37 = vpop.f32.mrb[253].mxu0 }
 0x5bf   : > { %v6488_v24 = vpop.f32.mrb[254].mxu0 }
 0x5c0   : > { %v6513_v50 = vadd.f32 %v6488_v24, %v6372_v33  ;;  %v9250_v39 = vpop.f32.mrb[255].mxu0  ;;  %v6652_v61 = vpop.f32.mrb[20].mxu1  ;;  %v6663_v28 = vadd.f32 %v6636_v44, %v6512_v31 }
 0x5c1   : > { %v9285_v2 = vpop.f32.mrb[21].mxu1 }
 0x5c2   : > { %v6655_v30 = vpop.f32.mrb[22].mxu1  ;;  %v6664_v62 = vadd.f32 %v6639_v7, %v6513_v50 }
 0x5c3   : > { %v9286_v22 = vpop.f32.mrb[23].mxu1 }
 0x5c5   : > { %v6493_v1 = vpop.f32.mrb[0].mxu0 }
 0x5c6   : > { %v6514_v55 = vadd.f32 %v6493_v1, %v6373_v23  ;;  %v9253_v27 = vpop.f32.mrb[1].mxu0  ;;  %v12726_v23 = vld [vmem:[%s12777_s9] ss:$0 sm:$0xff] }
 0x5c7   : > { %v6496_v59 = vpop.f32.mrb[2].mxu0 }
 0x5c8   : > { %v6515_v42 = vadd.f32 %v6496_v59, %v6374_v9  ;;  %v9254_v15 = vpop.f32.mrb[3].mxu0  ;;  %v6665_v60 = vadd.f32 %v6644_v40, %v6514_v55 }
 0x5ca   : > { %v6666_v57 = vadd.f32 %v6647_v46, %v6515_v42 }
 0x5cd   : > { %v6501_v35 = vpop.f32.mrb[4].mxu0 }
 0x5ce   : > { %v6516_v8 = vadd.f32 %v6501_v35, %v6375_v52  ;;  %v9257_v14 = vpop.f32.mrb[5].mxu0 }
 0x5cf   : > { %v6504_v33 = vpop.f32.mrb[6].mxu0 }
 0x5d0   : > { %v6517_v12 = vadd.f32 %v6504_v33, %v6376_v17  ;;  %v9258_v19 = vpop.f32.mrb[7].mxu0  ;;  %v6667_v21 = vadd.f32 %v6652_v61, %v6516_v8 }
 0x5d2   : > { %v12721_v34 = vadd.f32 %v6655_v30, %v6517_v12  ;;  %v6893_v12 = vld [vmem:[%s12734_s30 + $0x24] sm:$0x1] }
 0x5d5   : > { %v6764_v6 = vpop.f32.mrb[8].mxu0 }
 0x5d6   : > { %v6803_v9 = vadd.f32 %v6764_v6, %v6659_v47  ;;  %v9297_v11 = vpop.f32.mrb[9].mxu0 }
 0x5d7   : > { %v6767_v49 = vpop.f32.mrb[10].mxu0 }
 0x5d8   : > { %v6820_v45 = vadd.f32 %v12726_v23, %v6803_v9  ;;  %v6804_v3 = vadd.f32 %v6767_v49, %v6660_v0  ;;  %v9298_v52 = vpop.f32.mrb[11].mxu0 }
 0x5da   : > { %v6830_v29 = vmax.f32 %v6820_v45, 0.0  ;;  %v6821_v43 = vadd.f32 %v12726_v23, %v6804_v3 }
 0x5dc   : > { %v7564_v17 = vpack.c.bf16 %v6830_v29, %v6830_v29  ;;  %v6831_v16 = vmax.f32 %v6821_v43, 0.0 }
 0x5dd   : > { %v6772_v32 = vpop.f32.mrb[12].mxu0 }
 0x5de   : > { %6881 = vst.msk [vmem:[%s12734_s30] sm:$0xf] %vm6880_vm13, %v7564_v17  ;;  %v7565_v38 = vpack.c.bf16 %v6831_v16, %v6831_v16  ;;  %v6805_v4 = vadd.f32 %v6772_v32, %v6661_v58  ;;  %v9301_v41 = vpop.f32.mrb[13].mxu0 }
 0x5df   : > { %v6775_v5 = vpop.f32.mrb[14].mxu0 }
 0x5e0   : > { %6882 = vst.msk [vmem:[%s12734_s30 + $0x4] sm:$0xf] %vm6880_vm13, %v7565_v38  ;;  %v6822_v10 = vadd.f32 %v12726_v23, %v6805_v4  ;;  %v6806_v44 = vadd.f32 %v6775_v5, %v6662_v53  ;;  %v9302_v47 = vpop.f32.mrb[15].mxu0 }
 0x5e2   : > { %v6832_v26 = vmax.f32 %v6822_v10, 0.0  ;;  %v6823_v7 = vadd.f32 %v12726_v23, %v6806_v44 }
 0x5e4   : > { %v7566_v0 = vpack.c.bf16 %v6832_v26, %v6832_v26  ;;  %v6833_v51 = vmax.f32 %v6823_v7, 0.0 }
 0x5e5   : > { %v6780_v54 = vpop.f32.mrb[16].mxu0 }
 0x5e6   : > { %6883 = vst.msk [vmem:[%s12734_s30 + $0x8] sm:$0xf] %vm6880_vm13, %v7566_v0  ;;  %v7567_v20 = vpack.c.bf16 %v6833_v51, %v6833_v51  ;;  %v6807_v25 = vadd.f32 %v6780_v54, %v6663_v28  ;;  %v9305_v18 = vpop.f32.mrb[17].mxu0 }
 0x5e7   : > { %v6783_v63 = vpop.f32.mrb[18].mxu0 }
 0x5e8   : > { %6884 = vst.msk [vmem:[%s12734_s30 + $0xc] sm:$0xf] %vm6880_vm13, %v7567_v20  ;;  %v6824_v48 = vadd.f32 %v12726_v23, %v6807_v25  ;;  %v6808_v40 = vadd.f32 %v6783_v63, %v6664_v62  ;;  %v9306_v58 = vpop.f32.mrb[19].mxu0 }
 0x5ea   : > { %v6834_v13 = vmax.f32 %v6824_v48, 0.0  ;;  %v6825_v46 = vadd.f32 %v12726_v23, %v6808_v40 }
 0x5ec   : > { %v7568_v53 = vpack.c.bf16 %v6834_v13, %v6834_v13  ;;  %v6835_v56 = vmax.f32 %v6825_v46, 0.0 }
 0x5ed   : > { %v6788_v36 = vpop.f32.mrb[20].mxu0 }
 0x5ee   : > { %6885 = vst.msk [vmem:[%s12734_s30 + $0x10] sm:$0xf] %vm6880_vm13, %v7568_v53  ;;  %v7569_v31 = vpack.c.bf16 %v6835_v56, %v6835_v56  ;;  %v6809_v37 = vadd.f32 %v6788_v36, %v6665_v60  ;;  %v9309_v24 = vpop.f32.mrb[21].mxu0 }
 0x5ef   : > { %v6791_v50 = vpop.f32.mrb[22].mxu0 }
 0x5f0   : > { %6886 = vst.msk [vmem:[%s12734_s30 + $0x14] sm:$0xf] %vm6880_vm13, %v7569_v31  ;;  %v6826_v39 = vadd.f32 %v12726_v23, %v6809_v37  ;;  %v6810_v61 = vadd.f32 %v6791_v50, %v6666_v57  ;;  %v9310_v28 = vpop.f32.mrb[23].mxu0 }
 0x5f2   : > { %v6836_v2 = vmax.f32 %v6826_v39, 0.0  ;;  %v6827_v30 = vadd.f32 %v12726_v23, %v6810_v61 }
 0x5f4   : > { %v7570_v62 = vpack.c.bf16 %v6836_v2, %v6836_v2  ;;  %v6837_v22 = vmax.f32 %v6827_v30, 0.0 }
 0x5f5   : > { %v6796_v1 = vpop.f32.mrb[24].mxu0 }
 0x5f6   : > { %6887 = vst.msk [vmem:[%s12734_s30 + $0x18] sm:$0xf] %vm6880_vm13, %v7570_v62  ;;  %v7571_v55 = vpack.c.bf16 %v6837_v22, %v6837_v22  ;;  %v6811_v27 = vadd.f32 %v6796_v1, %v6667_v21  ;;  %v9313_v59 = vpop.f32.mrb[25].mxu0 }
 0x5f7   : > { %v6799_v42 = vpop.f32.mrb[26].mxu0 }
 0x5f8   : > { %6888 = vst.msk [vmem:[%s12734_s30 + $0x1c] sm:$0xf] %vm6880_vm13, %v7571_v55  ;;  %v6828_v15 = vadd.f32 %v12726_v23, %v6811_v27  ;;  %v6812_v60 = vadd.f32 %v6799_v42, %v12721_v34  ;;  %v9314_v57 = vpop.f32.mrb[27].mxu0 }
 0x5fa   : > { %v6838_v35 = vmax.f32 %v6828_v15, 0.0  ;;  %v6829_v8 = vadd.f32 %v12726_v23, %v6812_v60 }
 0x5fc   : > { %v7572_v14 = vpack.c.bf16 %v6838_v35, %v6838_v35  ;;  %v6839_v33 = vmax.f32 %v6829_v8, 0.0 }
 0x5fe   : > { %6889 = vst.msk [vmem:[%s12734_s30 + $0x20] sm:$0xf] %vm6880_vm13, %v7572_v14  ;;  %v7573_v19 = vpack.c.bf16 %v6839_v33, %v6839_v33 }
 0x600   : > { %v6894_v21 = vsel %vm6892_vm0, %v7573_v19, %v6893_v12 }
 0x601   : > { %6895 = vst [vmem:[%s12734_s30 + $0x24] sm:$0x1] %v6894_v21 }
 0x602 PF: > { %s20_s13 = sadd.s32 1, %s9492_s13  }
 0x603   : > { %p17_p4 = scmp.ge.s32.totalorder %s20_s13, 4  }
 0x605   :  { %19 = sbr.rel (!%p17_p4) target bundleno = 1 (0x1), region = 125 }

</bundles_post_ra>
